<compile_context>
chip_gen: v7x
topology: tpu7x:2x2x1
jax: 0.10.0
libtpu: 0.0.40
codegen_flags: <defaults>
</compile_context>

<pallas_src>
import functools

import jax
import jax.numpy as jnp
from jax import lax
from jax.experimental import pallas as pl
from jax.experimental.pallas import tpu as pltpu


def _round_up(n, m):
    return ((n + m - 1) // m) * m


def torch_oihw_to_hwio(w_oihw):
    """PyTorch Conv2d weights (out, in, kh, kw) -> HWIO (kh, kw, in, out)."""
    return jnp.transpose(w_oihw, (2, 3, 1, 0))


# ----------------------------------------------------------------------------
# Hardware probing + block selection (generation aware, VMEM-capped).
# ----------------------------------------------------------------------------
def _tpu_info():
    """(num_tensorcores, vmem_capacity_bytes) with conservative fallbacks."""
    cores, vmem = 1, 64 * 1024 * 1024
    try:
        info = pltpu.get_tpu_info()
        for f in ("vmem_capacity_bytes", "vmem_bytes"):
            v = getattr(info, f, None)
            if v:
                vmem = int(v)
                break
        for f in ("num_tensorcores", "tensorcore_count", "num_cores", "core_count"):
            v = getattr(info, f, None)
            if v:
                cores = int(v)
                break
    except Exception:
        pass
    try:
        kind = jax.devices()[0].device_kind.lower()
        if cores == 1 and any(t in kind for t in ("v7", "v4", "v5p")):
            cores = 2            # megacore chips: 2 TensorCores
    except Exception:
        pass
    return cores, vmem


def _block_vmem_bytes(tbr, C, P):
    """Rough per-step VMEM footprint (f32): double-buffered blocks + scratch."""
    itemsize = 4
    io_blocks = 2 * tbr * C + 2 * tbr * C + 2 * tbr * 18          # x, out, masks
    params = 2 * (2 * 9 * C * C + 2 * C)                          # both weights + biases
    scratch = (tbr + 2 * P) * C + tbr * 9 * C                     # slab + patch
    return itemsize * (io_blocks + params + scratch)


def _pick_batch_block(N, S, C, P, num_cores, budget_bytes):
    """Images (batch elements) per grid step.  One big block on 1-TC chips; the
    largest block that still leaves >=2 parallel steps on 2-TC chips; always
    capped by the VMEM budget."""
    divs = [d for d in range(1, N + 1) if N % d == 0]
    ok = [d for d in divs
          if _block_vmem_bytes(d * S, C, P) <= budget_bytes
          and (d == N or (d * S) % 8 == 0)]
    if not ok:
        ok = [1]                                   # perf cliff, but always lowers
    if num_cores >= 2:
        multi = [d for d in ok if N // d >= 2]
        if multi:
            return max(multi)
    return max(ok)


# ----------------------------------------------------------------------------
# Precomputed per-row tap-validity masks (avoids in-kernel div/mod).
# ----------------------------------------------------------------------------
def _make_tap_masks(TB, U, V, h, w):
    """(TB*S, 18) f32: 0/1 validity of the 9 verconv taps (cols 0..8) and the 9
    horconv taps (cols 9..17); S = V*w*U*h, rows in (b, V, w, U, h) order.
    Identical for every block, so a single array serves all grid steps."""
    S = V * w * U * h
    m = jnp.arange(TB * S, dtype=jnp.int32)
    yy = m % h                      # position along h   (verconv "width")
    uu = (m // h) % U               # position along U   (verconv "height")
    xx = (m // (U * h)) % w         # position along w   (horconv "width")
    vv = (m // (w * U * h)) % V     # position along V   (horconv "height")
    cols = []
    for hi, wi, Hext, Wext in ((uu, yy, U, h), (vv, xx, V, w)):
        for dy in range(3):
            for dx in range(3):
                valid = jnp.ones_like(m, dtype=jnp.bool_)
                if dy == 0:
                    valid = valid & (hi > 0)
                elif dy == 2:
                    valid = valid & (hi < Hext - 1)
                if dx == 0:
                    valid = valid & (wi > 0)
                elif dx == 2:
                    valid = valid & (wi < Wext - 1)
                cols.append(valid)
    return jnp.stack(cols, axis=1).astype(jnp.float32)


# ----------------------------------------------------------------------------
# Fused kernel: verconv(3x3)+ReLU  ->  horconv(3x3)+ReLU, intermediate in VMEM.
# ----------------------------------------------------------------------------
def _fused_sac_kernel(x_ref, mask_ref, wv_ref, bv_ref, wh_ref, bh_ref, o_ref,
                      slab_ref, patch_ref, *, U, V, h, w, C, P, compute_dtype):
    # x_ref    : (TBR, C)        rows in (b, V, w, U, h) order, channels on lanes
    # mask_ref : (TBR, 18)       tap-validity masks (verconv cols 0..8, horconv 9..17)
    # wv/wh    : (9C, C)         folded 3x3 weights (ky, kx, cin)-major x cout
    # bv/bh    : (1, C)          biases (f32)
    # o_ref    : (TBR, C)        output rows, same ordering as input
    # slab_ref : (TBR + 2P, C)   halo'd staging slab (input, then verconv output)
    # patch_ref: (TBR, 9C)       persistent im2col patch scratch (reused by both stages)
    TBR = x_ref.shape[0]
    cdt = compute_dtype

    # Zero halos every step (cheap: 2P rows).  Not pl.when(pid==0): with a core-parallel
    # grid each TensorCore has its own scratch instance, so step 0 may never run on it.
    halo = jnp.zeros((P, C), cdt)
    slab_ref[pl.ds(0, P), :] = halo
    slab_ref[pl.ds(P + TBR, P), :] = halo
    slab_ref[pl.ds(P, TBR), :] = x_ref[...].astype(cdt)

    def conv_stage(row_stride, col_stride, mask_base, w_ref, b_ref):
        # im2col: 9 masked, row-shifted (sublane) views of the slab written into the
        # patch scratch at static lane offsets, then ONE folded MXU GEMM.
        for t, (dy, dx) in enumerate([(a, b) for a in range(3) for b in range(3)]):
            off = (dy - 1) * row_stride + (dx - 1) * col_stride   # static sublane offset
            sl = slab_ref[pl.ds(P + off, TBR), :]
            if (dy, dx) != (1, 1):                                # center tap always valid
                sl = sl * mask_ref[:, mask_base + t:mask_base + t + 1]
            patch_ref[:, t * C:(t + 1) * C] = sl
        acc = jnp.dot(patch_ref[...], w_ref[...], preferred_element_type=jnp.float32)
        return jnp.maximum(acc + b_ref[...], 0.0)                 # (TBR, C) f32

    # Stage 1: "verconv" over the (U, h) plane  -> taps step by (h, 1) rows.
    ver = conv_stage(h, 1, 0, wv_ref, bv_ref)
    # Keep the intermediate in VMEM: overwrite the slab center; halos stay zero.
    slab_ref[pl.ds(P, TBR), :] = ver.astype(cdt)
    # Stage 2: "horconv" over the (V, w) plane  -> taps step by (w*U*h, U*h) rows.
    out = conv_stage(w * U * h, U * h, 9, wh_ref, bh_ref)
    o_ref[...] = out.astype(o_ref.dtype)


# ----------------------------------------------------------------------------
# Module forward: one pallas_call; only the unavoidable in/out 6-D transposes in XLA.
# ----------------------------------------------------------------------------
def sac_conv_forward(x, ver_w_hwio, ver_b, hor_w_hwio, hor_b, *,
                     compute_dtype=jnp.float32):
    """x: (N, c, U, V, h, w) f32 -> (N, c, U, V, h, w).  Weights in HWIO (3,3,c,c);
    PyTorch OIHW weights must be passed through torch_oihw_to_hwio() first."""
    N, c, U, V, h, w = x.shape
    assert ver_w_hwio.shape == (3, 3, c, c) and hor_w_hwio.shape == (3, 3, c, c)
    S = V * w * U * h

    wv = ver_w_hwio.reshape(9 * c, c).astype(compute_dtype)   # fold taps into K
    wh = hor_w_hwio.reshape(9 * c, c).astype(compute_dtype)
    bv = ver_b.reshape(1, c).astype(jnp.float32)
    bh = hor_b.reshape(1, c).astype(jnp.float32)

    # Rows in (N, V, w, U, h) order, channels last (lanes).
    x2d = jnp.transpose(x, (0, 3, 5, 2, 4, 1)).reshape(N * S, c)

    # Halo must cover the largest tap offset of either stage: U*h*(w+1) rows.
    P = _round_up(U * h * (w + 1), 8)

    cores, vmem_cap = _tpu_info()
    budget = max(min(vmem_cap // 3, 40 << 20), 8 << 20)
    TB = _pick_batch_block(N, S, c, P, cores, budget)   # batch elements per grid step
    NB = N // TB
    TBR = TB * S

    masks = _make_tap_masks(TB, U, V, h, w).astype(compute_dtype)   # (TBR, 18)

    need = _block_vmem_bytes(TBR, c, P)
    vmem_limit = int(min(max(2 * need, 32 << 20), 56 << 20))        # <= v7x physical VMEM

    kernel = functools.partial(_fused_sac_kernel, U=U, V=V, h=h, w=w, C=c, P=P,
                               compute_dtype=compute_dtype)
    out2d = pl.pallas_call(
        kernel,
        out_shape=jax.ShapeDtypeStruct((N * S, c), jnp.float32),
        grid=(NB,),
        in_specs=[
            pl.BlockSpec((TBR, c), lambda i: (i, 0)),        # x rows
            pl.BlockSpec((TBR, 18), lambda i: (0, 0)),       # tap masks (block-invariant)
            pl.BlockSpec((9 * c, c), lambda i: (0, 0)),      # verconv weights
            pl.BlockSpec((1, c), lambda i: (0, 0)),          # verconv bias
            pl.BlockSpec((9 * c, c), lambda i: (0, 0)),      # horconv weights
            pl.BlockSpec((1, c), lambda i: (0, 0)),          # horconv bias
        ],
        out_specs=pl.BlockSpec((TBR, c), lambda i: (i, 0)),
        scratch_shapes=[
            pltpu.VMEM((TBR + 2 * P, c), compute_dtype),     # halo'd slab
            pltpu.VMEM((TBR, 9 * c), compute_dtype),         # im2col patch
        ],
        compiler_params=pltpu.CompilerParams(
            dimension_semantics=("parallel",),
            vmem_limit_bytes=vmem_limit),
    )(x2d, masks, wv, bv, wh, bh)

    out6 = out2d.reshape(N, V, w, U, h, c)
    return jnp.transpose(out6, (0, 5, 3, 1, 4, 2))           # -> (N, c, U, V, h, w)


# ----------------------------------------------------------------------------
# Pure-JAX reference (lax conv, same math) for the correctness check.
# ----------------------------------------------------------------------------
def _ref_conv3x3_relu(x_nhwc, w_hwio, bias_1c):
    y = lax.conv_general_dilated(
        x_nhwc, w_hwio, window_strides=(1, 1), padding="SAME",
        dimension_numbers=("NHWC", "HWIO", "NHWC"))
    return jnp.maximum(y + bias_1c[0], 0.0)


def _ref_forward(x, ver_w, ver_b, hor_w, hor_b):
    N, c, U, V, h, w = x.shape
    x1 = jnp.transpose(x, (0, 3, 5, 2, 4, 1)).reshape(N * V * w, U, h, c)
    y = _ref_conv3x3_relu(x1, ver_w, ver_b)
    y = y.reshape(N, V, w, U, h, c)
    y = jnp.transpose(y, (0, 3, 4, 1, 2, 5)).reshape(N * U * h, V, w, c)
    z = _ref_conv3x3_relu(y, hor_w, hor_b)
    z = z.reshape(N, U, h, V, w, c)
    return jnp.transpose(z, (0, 5, 1, 3, 2, 4))


if __name__ == "__main__":
    # Small shapes consistent with the module (symmetry=True, max_k_size=3); c == fn.
    N, fn, U, V, h, w = 2, 16, 3, 3, 4, 4
    key = jax.random.PRNGKey(0)
    kx, kv, kh, kbv, kbh = jax.random.split(key, 5)

    # kaiming_normal_(fan_in, relu)-equivalent weights stored directly in HWIO.
    fan_in = fn * 3 * 3
    std = (2.0 / fan_in) ** 0.5
    ver_w = jax.random.normal(kv, (3, 3, fn, fn), jnp.float32) * std
    hor_w = jax.random.normal(kh, (3, 3, fn, fn), jnp.float32) * std
    # Module inits biases to 0; use small random biases here to exercise the bias path.
    ver_b = 0.1 * jax.random.normal(kbv, (1, fn), jnp.float32)
    hor_b = 0.1 * jax.random.normal(kbh, (1, fn), jnp.float32)

    x = jax.random.normal(kx, (N, fn, U, V, h, w), jnp.float32)

    out = jax.jit(sac_conv_forward)(x, ver_w, ver_b, hor_w, hor_b)
    out = jax.block_until_ready(out)

    ref = _ref_forward(x, ver_w, ver_b, hor_w, hor_b)
    assert out.shape == (N, fn, U, V, h, w)
    err = float(jnp.max(jnp.abs(out - ref)))
    assert err < 2e-4, f"max abs err = {err}"

    print("KERNEL_OK")
</pallas_src>

<mosaic_0001>
module attributes {stable_mosaic.version = 11 : i64} {
  func.func @_fused_sac_kernel(%arg0: i32, %arg1: memref<288x16xf32, #tpu.memory_space<vmem>>, %arg2: memref<288x18xf32, #tpu.memory_space<vmem>>, %arg3: memref<144x16xf32, #tpu.memory_space<vmem>>, %arg4: memref<1x16xf32, #tpu.memory_space<vmem>>, %arg5: memref<144x16xf32, #tpu.memory_space<vmem>>, %arg6: memref<1x16xf32, #tpu.memory_space<vmem>>, %arg7: memref<288x16xf32, #tpu.memory_space<vmem>>, %arg8: memref<416x16xf32, #tpu.memory_space<vmem>>, %arg9: memref<288x144xf32, #tpu.memory_space<vmem>>) attributes {dimension_semantics = [#tpu.dimension_semantics<parallel>], iteration_bounds = array<i64: 1>, scalar_prefetch = 0 : i64, scratch_operands = 2 : i64, tpu.core_type = #tpu.core_type<tc>, window_params = [{transform_indices = @transform_0, window_bounds = array<i64: 288, 16>}, {pipeline_mode = #tpu.pipeline_mode<synchronous>, transform_indices = @transform_1, window_bounds = array<i64: 288, 18>}, {pipeline_mode = #tpu.pipeline_mode<synchronous>, transform_indices = @transform_2, window_bounds = array<i64: 144, 16>}, {pipeline_mode = #tpu.pipeline_mode<synchronous>, transform_indices = @transform_3, window_bounds = array<i64: 1, 16>}, {pipeline_mode = #tpu.pipeline_mode<synchronous>, transform_indices = @transform_4, window_bounds = array<i64: 144, 16>}, {pipeline_mode = #tpu.pipeline_mode<synchronous>, transform_indices = @transform_5, window_bounds = array<i64: 1, 16>}, {transform_indices = @transform_6, window_bounds = array<i64: 288, 16>}]} {
    %cst = arith.constant 0.000000e+00 : f32
    %0 = vector.broadcast %cst : f32 to vector<64x16xf32>
    %c0 = arith.constant 0 : index
    %c0_0 = arith.constant 0 : index
    %1 = vector.load %arg8[%c0, %c0_0] : memref<416x16xf32, #tpu.memory_space<vmem>>, vector<64x16xf32>
    tpu.vector_store %arg8[%c0, %c0_0], %0 {strides = array<i32>} : memref<416x16xf32, #tpu.memory_space<vmem>>, vector<64x16xf32>,
    %c352 = arith.constant 352 : index
    %c0_1 = arith.constant 0 : index
    %2 = vector.load %arg8[%c352, %c0_1] : memref<416x16xf32, #tpu.memory_space<vmem>>, vector<64x16xf32>
    tpu.vector_store %arg8[%c352, %c0_1], %0 {strides = array<i32>} : memref<416x16xf32, #tpu.memory_space<vmem>>, vector<64x16xf32>,
    %c0_2 = arith.constant 0 : index
    %c0_3 = arith.constant 0 : index
    %3 = vector.load %arg1[%c0_2, %c0_3] : memref<288x16xf32, #tpu.memory_space<vmem>>, vector<288x16xf32>
    %c64 = arith.constant 64 : index
    %c0_4 = arith.constant 0 : index
    %4 = vector.load %arg8[%c64, %c0_4] : memref<416x16xf32, #tpu.memory_space<vmem>>, vector<288x16xf32>
    tpu.vector_store %arg8[%c64, %c0_4], %3 {strides = array<i32>} : memref<416x16xf32, #tpu.memory_space<vmem>>, vector<288x16xf32>,
    %c59 = arith.constant 59 : index
    %c0_5 = arith.constant 0 : index
    %5 = vector.load %arg8[%c59, %c0_5] : memref<416x16xf32, #tpu.memory_space<vmem>>, vector<288x16xf32>
    %c0_6 = arith.constant 0 : index
    %c0_7 = arith.constant 0 : index
    %6 = vector.load %arg2[%c0_6, %c0_7] : memref<288x18xf32, #tpu.memory_space<vmem>>, vector<288x1xf32>
    %7 = vector.broadcast %6 : vector<288x1xf32> to vector<288x16xf32>
    %8 = arith.mulf %5, %7 : vector<288x16xf32>
    %c0_8 = arith.constant 0 : index
    %c0_9 = arith.constant 0 : index
    %9 = vector.load %arg9[%c0_8, %c0_9] : memref<288x144xf32, #tpu.memory_space<vmem>>, vector<288x16xf32>
    tpu.vector_store %arg9[%c0_8, %c0_9], %8 {strides = array<i32>} : memref<288x144xf32, #tpu.memory_space<vmem>>, vector<288x16xf32>,
    %c60 = arith.constant 60 : index
    %c0_10 = arith.constant 0 : index
    %10 = vector.load %arg8[%c60, %c0_10] : memref<416x16xf32, #tpu.memory_space<vmem>>, vector<288x16xf32>
    %c0_11 = arith.constant 0 : index
    %c1 = arith.constant 1 : index
    %11 = vector.load %arg2[%c0_11, %c1] : memref<288x18xf32, #tpu.memory_space<vmem>>, vector<288x1xf32>
    %12 = vector.broadcast %11 : vector<288x1xf32> to vector<288x16xf32>
    %13 = arith.mulf %10, %12 : vector<288x16xf32>
    %c0_12 = arith.constant 0 : index
    %c16 = arith.constant 16 : index
    %14 = vector.load %arg9[%c0_12, %c16] : memref<288x144xf32, #tpu.memory_space<vmem>>, vector<288x16xf32>
    tpu.vector_store %arg9[%c0_12, %c16], %13 {strides = array<i32>} : memref<288x144xf32, #tpu.memory_space<vmem>>, vector<288x16xf32>,
    %c61 = arith.constant 61 : index
    %c0_13 = arith.constant 0 : index
    %15 = vector.load %arg8[%c61, %c0_13] : memref<416x16xf32, #tpu.memory_space<vmem>>, vector<288x16xf32>
    %c0_14 = arith.constant 0 : index
    %c2 = arith.constant 2 : index
    %16 = vector.load %arg2[%c0_14, %c2] : memref<288x18xf32, #tpu.memory_space<vmem>>, vector<288x1xf32>
    %17 = vector.broadcast %16 : vector<288x1xf32> to vector<288x16xf32>
    %18 = arith.mulf %15, %17 : vector<288x16xf32>
    %c0_15 = arith.constant 0 : index
    %c32 = arith.constant 32 : index
    %19 = vector.load %arg9[%c0_15, %c32] : memref<288x144xf32, #tpu.memory_space<vmem>>, vector<288x16xf32>
    tpu.vector_store %arg9[%c0_15, %c32], %18 {strides = array<i32>} : memref<288x144xf32, #tpu.memory_space<vmem>>, vector<288x16xf32>,
    %c63 = arith.constant 63 : index
    %c0_16 = arith.constant 0 : index
    %20 = vector.load %arg8[%c63, %c0_16] : memref<416x16xf32, #tpu.memory_space<vmem>>, vector<288x16xf32>
    %c0_17 = arith.constant 0 : index
    %c3 = arith.constant 3 : index
    %21 = vector.load %arg2[%c0_17, %c3] : memref<288x18xf32, #tpu.memory_space<vmem>>, vector<288x1xf32>
    %22 = vector.broadcast %21 : vector<288x1xf32> to vector<288x16xf32>
    %23 = arith.mulf %20, %22 : vector<288x16xf32>
    %c0_18 = arith.constant 0 : index
    %c48 = arith.constant 48 : index
    %24 = vector.load %arg9[%c0_18, %c48] : memref<288x144xf32, #tpu.memory_space<vmem>>, vector<288x16xf32>
    tpu.vector_store %arg9[%c0_18, %c48], %23 {strides = array<i32>} : memref<288x144xf32, #tpu.memory_space<vmem>>, vector<288x16xf32>,
    %c64_19 = arith.constant 64 : index
    %c0_20 = arith.constant 0 : index
    %25 = vector.load %arg8[%c64_19, %c0_20] : memref<416x16xf32, #tpu.memory_space<vmem>>, vector<288x16xf32>
    %c0_21 = arith.constant 0 : index
    %c64_22 = arith.constant 64 : index
    %26 = vector.load %arg9[%c0_21, %c64_22] : memref<288x144xf32, #tpu.memory_space<vmem>>, vector<288x16xf32>
    tpu.vector_store %arg9[%c0_21, %c64_22], %25 {strides = array<i32>} : memref<288x144xf32, #tpu.memory_space<vmem>>, vector<288x16xf32>,
    %c65 = arith.constant 65 : index
    %c0_23 = arith.constant 0 : index
    %27 = vector.load %arg8[%c65, %c0_23] : memref<416x16xf32, #tpu.memory_space<vmem>>, vector<288x16xf32>
    %c0_24 = arith.constant 0 : index
    %c5 = arith.constant 5 : index
    %28 = vector.load %arg2[%c0_24, %c5] : memref<288x18xf32, #tpu.memory_space<vmem>>, vector<288x1xf32>
    %29 = vector.broadcast %28 : vector<288x1xf32> to vector<288x16xf32>
    %30 = arith.mulf %27, %29 : vector<288x16xf32>
    %c0_25 = arith.constant 0 : index
    %c80 = arith.constant 80 : index
    %31 = vector.load %arg9[%c0_25, %c80] : memref<288x144xf32, #tpu.memory_space<vmem>>, vector<288x16xf32>
    tpu.vector_store %arg9[%c0_25, %c80], %30 {strides = array<i32>} : memref<288x144xf32, #tpu.memory_space<vmem>>, vector<288x16xf32>,
    %c67 = arith.constant 67 : index
    %c0_26 = arith.constant 0 : index
    %32 = vector.load %arg8[%c67, %c0_26] : memref<416x16xf32, #tpu.memory_space<vmem>>, vector<288x16xf32>
    %c0_27 = arith.constant 0 : index
    %c6 = arith.constant 6 : index
    %33 = vector.load %arg2[%c0_27, %c6] : memref<288x18xf32, #tpu.memory_space<vmem>>, vector<288x1xf32>
    %34 = vector.broadcast %33 : vector<288x1xf32> to vector<288x16xf32>
    %35 = arith.mulf %32, %34 : vector<288x16xf32>
    %c0_28 = arith.constant 0 : index
    %c96 = arith.constant 96 : index
    %36 = vector.load %arg9[%c0_28, %c96] : memref<288x144xf32, #tpu.memory_space<vmem>>, vector<288x16xf32>
    tpu.vector_store %arg9[%c0_28, %c96], %35 {strides = array<i32>} : memref<288x144xf32, #tpu.memory_space<vmem>>, vector<288x16xf32>,
    %c68 = arith.constant 68 : index
    %c0_29 = arith.constant 0 : index
    %37 = vector.load %arg8[%c68, %c0_29] : memref<416x16xf32, #tpu.memory_space<vmem>>, vector<288x16xf32>
    %c0_30 = arith.constant 0 : index
    %c7 = arith.constant 7 : index
    %38 = vector.load %arg2[%c0_30, %c7] : memref<288x18xf32, #tpu.memory_space<vmem>>, vector<288x1xf32>
    %39 = vector.broadcast %38 : vector<288x1xf32> to vector<288x16xf32>
    %40 = arith.mulf %37, %39 : vector<288x16xf32>
    %c0_31 = arith.constant 0 : index
    %c112 = arith.constant 112 : index
    %41 = vector.load %arg9[%c0_31, %c112] : memref<288x144xf32, #tpu.memory_space<vmem>>, vector<288x16xf32>
    tpu.vector_store %arg9[%c0_31, %c112], %40 {strides = array<i32>} : memref<288x144xf32, #tpu.memory_space<vmem>>, vector<288x16xf32>,
    %c69 = arith.constant 69 : index
    %c0_32 = arith.constant 0 : index
    %42 = vector.load %arg8[%c69, %c0_32] : memref<416x16xf32, #tpu.memory_space<vmem>>, vector<288x16xf32>
    %c0_33 = arith.constant 0 : index
    %c8 = arith.constant 8 : index
    %43 = vector.load %arg2[%c0_33, %c8] : memref<288x18xf32, #tpu.memory_space<vmem>>, vector<288x1xf32>
    %44 = vector.broadcast %43 : vector<288x1xf32> to vector<288x16xf32>
    %45 = arith.mulf %42, %44 : vector<288x16xf32>
    %c0_34 = arith.constant 0 : index
    %c128 = arith.constant 128 : index
    %46 = vector.load %arg9[%c0_34, %c128] : memref<288x144xf32, #tpu.memory_space<vmem>>, vector<288x16xf32>
    tpu.vector_store %arg9[%c0_34, %c128], %45 {strides = array<i32>} : memref<288x144xf32, #tpu.memory_space<vmem>>, vector<288x16xf32>,
    %c0_35 = arith.constant 0 : index
    %c0_36 = arith.constant 0 : index
    %47 = vector.load %arg9[%c0_35, %c0_36] : memref<288x144xf32, #tpu.memory_space<vmem>>, vector<288x144xf32>
    %c0_37 = arith.constant 0 : index
    %c0_38 = arith.constant 0 : index
    %48 = vector.load %arg3[%c0_37, %c0_38] : memref<144x16xf32, #tpu.memory_space<vmem>>, vector<144x16xf32>
    %cst_39 = arith.constant dense<0.000000e+00> : vector<288x16xf32>
    %49 = tpu.matmul %47, %48, %cst_39 {dimension_numbers = #tpu.dot_dimension_numbers<[1], [0], [0], [1], [0, 0, 1, 1], [], []>} : vector<288x144xf32>, vector<144x16xf32>, vector<288x16xf32> -> vector<288x16xf32>
    %c0_40 = arith.constant 0 : index
    %c0_41 = arith.constant 0 : index
    %50 = vector.load %arg4[%c0_40, %c0_41] : memref<1x16xf32, #tpu.memory_space<vmem>>, vector<1x16xf32>
    %51 = vector.broadcast %50 : vector<1x16xf32> to vector<288x16xf32>
    %52 = arith.addf %49, %51 : vector<288x16xf32>
    %cst_42 = arith.constant 0.000000e+00 : f32
    %53 = vector.broadcast %cst_42 : f32 to vector<288x16xf32>
    %54 = arith.maximumf %52, %53 : vector<288x16xf32>
    %c64_43 = arith.constant 64 : index
    %c0_44 = arith.constant 0 : index
    %55 = vector.load %arg8[%c64_43, %c0_44] : memref<416x16xf32, #tpu.memory_space<vmem>>, vector<288x16xf32>
    tpu.vector_store %arg8[%c64_43, %c0_44], %54 {strides = array<i32>} : memref<416x16xf32, #tpu.memory_space<vmem>>, vector<288x16xf32>,
    %c4 = arith.constant 4 : index
    %c0_45 = arith.constant 0 : index
    %56 = vector.load %arg8[%c4, %c0_45] : memref<416x16xf32, #tpu.memory_space<vmem>>, vector<288x16xf32>
    %c0_46 = arith.constant 0 : index
    %c9 = arith.constant 9 : index
    %57 = vector.load %arg2[%c0_46, %c9] : memref<288x18xf32, #tpu.memory_space<vmem>>, vector<288x1xf32>
    %58 = vector.broadcast %57 : vector<288x1xf32> to vector<288x16xf32>
    %59 = arith.mulf %56, %58 : vector<288x16xf32>
    %c0_47 = arith.constant 0 : index
    %c0_48 = arith.constant 0 : index
    %60 = vector.load %arg9[%c0_47, %c0_48] : memref<288x144xf32, #tpu.memory_space<vmem>>, vector<288x16xf32>
    tpu.vector_store %arg9[%c0_47, %c0_48], %59 {strides = array<i32>} : memref<288x144xf32, #tpu.memory_space<vmem>>, vector<288x16xf32>,
    %c16_49 = arith.constant 16 : index
    %c0_50 = arith.constant 0 : index
    %61 = vector.load %arg8[%c16_49, %c0_50] : memref<416x16xf32, #tpu.memory_space<vmem>>, vector<288x16xf32>
    %c0_51 = arith.constant 0 : index
    %c10 = arith.constant 10 : index
    %62 = vector.load %arg2[%c0_51, %c10] : memref<288x18xf32, #tpu.memory_space<vmem>>, vector<288x1xf32>
    %63 = vector.broadcast %62 : vector<288x1xf32> to vector<288x16xf32>
    %64 = arith.mulf %61, %63 : vector<288x16xf32>
    %c0_52 = arith.constant 0 : index
    %c16_53 = arith.constant 16 : index
    %65 = vector.load %arg9[%c0_52, %c16_53] : memref<288x144xf32, #tpu.memory_space<vmem>>, vector<288x16xf32>
    tpu.vector_store %arg9[%c0_52, %c16_53], %64 {strides = array<i32>} : memref<288x144xf32, #tpu.memory_space<vmem>>, vector<288x16xf32>,
    %c28 = arith.constant 28 : index
    %c0_54 = arith.constant 0 : index
    %66 = vector.load %arg8[%c28, %c0_54] : memref<416x16xf32, #tpu.memory_space<vmem>>, vector<288x16xf32>
    %c0_55 = arith.constant 0 : index
    %c11 = arith.constant 11 : index
    %67 = vector.load %arg2[%c0_55, %c11] : memref<288x18xf32, #tpu.memory_space<vmem>>, vector<288x1xf32>
    %68 = vector.broadcast %67 : vector<288x1xf32> to vector<288x16xf32>
    %69 = arith.mulf %66, %68 : vector<288x16xf32>
    %c0_56 = arith.constant 0 : index
    %c32_57 = arith.constant 32 : index
    %70 = vector.load %arg9[%c0_56, %c32_57] : memref<288x144xf32, #tpu.memory_space<vmem>>, vector<288x16xf32>
    tpu.vector_store %arg9[%c0_56, %c32_57], %69 {strides = array<i32>} : memref<288x144xf32, #tpu.memory_space<vmem>>, vector<288x16xf32>,
    %c52 = arith.constant 52 : index
    %c0_58 = arith.constant 0 : index
    %71 = vector.load %arg8[%c52, %c0_58] : memref<416x16xf32, #tpu.memory_space<vmem>>, vector<288x16xf32>
    %c0_59 = arith.constant 0 : index
    %c12 = arith.constant 12 : index
    %72 = vector.load %arg2[%c0_59, %c12] : memref<288x18xf32, #tpu.memory_space<vmem>>, vector<288x1xf32>
    %73 = vector.broadcast %72 : vector<288x1xf32> to vector<288x16xf32>
    %74 = arith.mulf %71, %73 : vector<288x16xf32>
    %c0_60 = arith.constant 0 : index
    %c48_61 = arith.constant 48 : index
    %75 = vector.load %arg9[%c0_60, %c48_61] : memref<288x144xf32, #tpu.memory_space<vmem>>, vector<288x16xf32>
    tpu.vector_store %arg9[%c0_60, %c48_61], %74 {strides = array<i32>} : memref<288x144xf32, #tpu.memory_space<vmem>>, vector<288x16xf32>,
    %c64_62 = arith.constant 64 : index
    %c0_63 = arith.constant 0 : index
    %76 = vector.load %arg8[%c64_62, %c0_63] : memref<416x16xf32, #tpu.memory_space<vmem>>, vector<288x16xf32>
    %c0_64 = arith.constant 0 : index
    %c64_65 = arith.constant 64 : index
    %77 = vector.load %arg9[%c0_64, %c64_65] : memref<288x144xf32, #tpu.memory_space<vmem>>, vector<288x16xf32>
    tpu.vector_store %arg9[%c0_64, %c64_65], %76 {strides = array<i32>} : memref<288x144xf32, #tpu.memory_space<vmem>>, vector<288x16xf32>,
    %c76 = arith.constant 76 : index
    %c0_66 = arith.constant 0 : index
    %78 = vector.load %arg8[%c76, %c0_66] : memref<416x16xf32, #tpu.memory_space<vmem>>, vector<288x16xf32>
    %c0_67 = arith.constant 0 : index
    %c14 = arith.constant 14 : index
    %79 = vector.load %arg2[%c0_67, %c14] : memref<288x18xf32, #tpu.memory_space<vmem>>, vector<288x1xf32>
    %80 = vector.broadcast %79 : vector<288x1xf32> to vector<288x16xf32>
    %81 = arith.mulf %78, %80 : vector<288x16xf32>
    %c0_68 = arith.constant 0 : index
    %c80_69 = arith.constant 80 : index
    %82 = vector.load %arg9[%c0_68, %c80_69] : memref<288x144xf32, #tpu.memory_space<vmem>>, vector<288x16xf32>
    tpu.vector_store %arg9[%c0_68, %c80_69], %81 {strides = array<i32>} : memref<288x144xf32, #tpu.memory_space<vmem>>, vector<288x16xf32>,
    %c100 = arith.constant 100 : index
    %c0_70 = arith.constant 0 : index
    %83 = vector.load %arg8[%c100, %c0_70] : memref<416x16xf32, #tpu.memory_space<vmem>>, vector<288x16xf32>
    %c0_71 = arith.constant 0 : index
    %c15 = arith.constant 15 : index
    %84 = vector.load %arg2[%c0_71, %c15] : memref<288x18xf32, #tpu.memory_space<vmem>>, vector<288x1xf32>
    %85 = vector.broadcast %84 : vector<288x1xf32> to vector<288x16xf32>
    %86 = arith.mulf %83, %85 : vector<288x16xf32>
    %c0_72 = arith.constant 0 : index
    %c96_73 = arith.constant 96 : index
    %87 = vector.load %arg9[%c0_72, %c96_73] : memref<288x144xf32, #tpu.memory_space<vmem>>, vector<288x16xf32>
    tpu.vector_store %arg9[%c0_72, %c96_73], %86 {strides = array<i32>} : memref<288x144xf32, #tpu.memory_space<vmem>>, vector<288x16xf32>,
    %c112_74 = arith.constant 112 : index
    %c0_75 = arith.constant 0 : index
    %88 = vector.load %arg8[%c112_74, %c0_75] : memref<416x16xf32, #tpu.memory_space<vmem>>, vector<288x16xf32>
    %c0_76 = arith.constant 0 : index
    %c16_77 = arith.constant 16 : index
    %89 = vector.load %arg2[%c0_76, %c16_77] : memref<288x18xf32, #tpu.memory_space<vmem>>, vector<288x1xf32>
    %90 = vector.broadcast %89 : vector<288x1xf32> to vector<288x16xf32>
    %91 = arith.mulf %88, %90 : vector<288x16xf32>
    %c0_78 = arith.constant 0 : index
    %c112_79 = arith.constant 112 : index
    %92 = vector.load %arg9[%c0_78, %c112_79] : memref<288x144xf32, #tpu.memory_space<vmem>>, vector<288x16xf32>
    tpu.vector_store %arg9[%c0_78, %c112_79], %91 {strides = array<i32>} : memref<288x144xf32, #tpu.memory_space<vmem>>, vector<288x16xf32>,
    %c124 = arith.constant 124 : index
    %c0_80 = arith.constant 0 : index
    %93 = vector.load %arg8[%c124, %c0_80] : memref<416x16xf32, #tpu.memory_space<vmem>>, vector<288x16xf32>
    %c0_81 = arith.constant 0 : index
    %c17 = arith.constant 17 : index
    %94 = vector.load %arg2[%c0_81, %c17] : memref<288x18xf32, #tpu.memory_space<vmem>>, vector<288x1xf32>
    %95 = vector.broadcast %94 : vector<288x1xf32> to vector<288x16xf32>
    %96 = arith.mulf %93, %95 : vector<288x16xf32>
    %c0_82 = arith.constant 0 : index
    %c128_83 = arith.constant 128 : index
    %97 = vector.load %arg9[%c0_82, %c128_83] : memref<288x144xf32, #tpu.memory_space<vmem>>, vector<288x16xf32>
    tpu.vector_store %arg9[%c0_82, %c128_83], %96 {strides = array<i32>} : memref<288x144xf32, #tpu.memory_space<vmem>>, vector<288x16xf32>,
    %c0_84 = arith.constant 0 : index
    %c0_85 = arith.constant 0 : index
    %98 = vector.load %arg9[%c0_84, %c0_85] : memref<288x144xf32, #tpu.memory_space<vmem>>, vector<288x144xf32>
    %c0_86 = arith.constant 0 : index
    %c0_87 = arith.constant 0 : index
    %99 = vector.load %arg5[%c0_86, %c0_87] : memref<144x16xf32, #tpu.memory_space<vmem>>, vector<144x16xf32>
    %cst_88 = arith.constant dense<0.000000e+00> : vector<288x16xf32>
    %100 = tpu.matmul %98, %99, %cst_88 {dimension_numbers = #tpu.dot_dimension_numbers<[1], [0], [0], [1], [0, 0, 1, 1], [], []>} : vector<288x144xf32>, vector<144x16xf32>, vector<288x16xf32> -> vector<288x16xf32>
    %c0_89 = arith.constant 0 : index
    %c0_90 = arith.constant 0 : index
    %101 = vector.load %arg6[%c0_89, %c0_90] : memref<1x16xf32, #tpu.memory_space<vmem>>, vector<1x16xf32>
    %102 = vector.broadcast %101 : vector<1x16xf32> to vector<288x16xf32>
    %103 = arith.addf %100, %102 : vector<288x16xf32>
    %cst_91 = arith.constant 0.000000e+00 : f32
    %104 = vector.broadcast %cst_91 : f32 to vector<288x16xf32>
    %105 = arith.maximumf %103, %104 : vector<288x16xf32>
    %c0_92 = arith.constant 0 : index
    %c0_93 = arith.constant 0 : index
    %106 = vector.load %arg7[%c0_92, %c0_93] : memref<288x16xf32, #tpu.memory_space<vmem>>, vector<288x16xf32>
    tpu.vector_store %arg7[%c0_92, %c0_93], %105 {strides = array<i32>} : memref<288x16xf32, #tpu.memory_space<vmem>>, vector<288x16xf32>,
    return
  }
  func.func @transform_0(%arg0: i32) -> (i32, i32) {
    %c0_i32 = arith.constant 0 : i32
    %c0_i32_0 = arith.constant 0 : i32
    return %arg0, %c0_i32 : i32, i32
  }
  func.func @transform_1(%arg0: i32) -> (i32, i32) {
    %c0_i32 = arith.constant 0 : i32
    %c0_i32_0 = arith.constant 0 : i32
    %c0_i32_1 = arith.constant 0 : i32
    return %c0_i32, %c0_i32_0 : i32, i32
  }
  func.func @transform_2(%arg0: i32) -> (i32, i32) {
    %c0_i32 = arith.constant 0 : i32
    %c0_i32_0 = arith.constant 0 : i32
    %c0_i32_1 = arith.constant 0 : i32
    return %c0_i32, %c0_i32_0 : i32, i32
  }
  func.func @transform_3(%arg0: i32) -> (i32, i32) {
    %c0_i32 = arith.constant 0 : i32
    %c0_i32_0 = arith.constant 0 : i32
    %c0_i32_1 = arith.constant 0 : i32
    return %c0_i32, %c0_i32_0 : i32, i32
  }
  func.func @transform_4(%arg0: i32) -> (i32, i32) {
    %c0_i32 = arith.constant 0 : i32
    %c0_i32_0 = arith.constant 0 : i32
    %c0_i32_1 = arith.constant 0 : i32
    return %c0_i32, %c0_i32_0 : i32, i32
  }
  func.func @transform_5(%arg0: i32) -> (i32, i32) {
    %c0_i32 = arith.constant 0 : i32
    %c0_i32_0 = arith.constant 0 : i32
    %c0_i32_1 = arith.constant 0 : i32
    return %c0_i32, %c0_i32_0 : i32, i32
  }
  func.func @transform_6(%arg0: i32) -> (i32, i32) {
    %c0_i32 = arith.constant 0 : i32
    %c0_i32_0 = arith.constant 0 : i32
    return %arg0, %c0_i32 : i32, i32
  }
}

</mosaic_0001>

<bundles_post_ra>
// kernel: sac_conv_forward.1
= control target key start
LH: loop header
LB: loop body
LE: loop exit
PB: predicated region body
PF: predicated region fallthrough
CT: control target
= control target key end

     0   :  { %vm23_vm0 = vcmask 130048   ;;  %v8745_v0 = vmov 0   ;;  %v8746_v3 = vmov 0.0   ;;  %s8749_s20 = smov 16   ;;  %vm868_vm1 = vcmask 261248   ;;  %s8751_s21 = smov 32   ;;  %s13055_s1 = inlined_call_operand.vmem [shape: f32[288,18], index: 1, kind: input, shape index: {}]   ;;  %s13056_s0 = inlined_call_operand.vmem [shape: f32[288,16], index: 0, kind: input, shape index: {}]   ;;  %s13057_s2 = inlined_call_operand.vmem [shape: f32[144,16], index: 2, kind: input, shape index: {}]   ;;  %s13058_s3 = inlined_call_operand.vmem [shape: f32[1,16], index: 3, kind: input, shape index: {}]   ;;  %s13059_s4 = inlined_call_operand.vmem [shape: f32[144,16], index: 4, kind: input, shape index: {}]   ;;  %s13060_s5 = inlined_call_operand.vmem [shape: f32[1,16], index: 5, kind: input, shape index: {}]   ;;  %s13061_s6 = inlined_call_operand.vmem [shape: f32[288,16], index: 6, kind: output, shape index: {}]  }
   0x1   :  { %8665 = vset.pattern.permute.xlu1 %v8745_v0  ;;  %8664 = vset.pattern.permute.xlu0 %v8745_v0  ;;  %v8808_v1 = vld [vmem:[%s13055_s1 + $0x10] sm:$0xff]  ;;  %v8813_v2 = vld [vmem:[%s13055_s1] sm:$0xff]  ;;  %31 = vst.msk [vmem:[#allocation2 + $0x38] sm:$0xff] %vm23_vm0, %v8746_v3  ;;  %24 = vst.msk [vmem:[#allocation2] sm:$0xff] %vm23_vm0, %v8746_v3  ;;  %vm1337_vm2 = vcmask 392448   ;;  %s8752_s22 = smov 48  }
   0x2   :  { %25 = vst.msk [vmem:[#allocation2 + $0x8] sm:$0xff] %vm23_vm0, %v8746_v3  ;;  %26 = vst.msk [vmem:[#allocation2 + $0x10] sm:$0xff] %vm23_vm0, %v8746_v3  ;;  %196 = vperm.xlu1 %8665, %v8808_v1   ;;  %186 = vperm.xlu0 %8664, %v8813_v2   ;;  %v8836_v4 = vld [vmem:[%s13055_s1 + $0x18] sm:$0xff]  ;;  %v8841_v5 = vld [vmem:[%s13055_s1 + $0x8] sm:$0xff]  ;;  %s8754_s23 = smov 64   ;;  %vm1806_vm3 = vcmask 523648  }
   0x3   :  { %27 = vst.msk [vmem:[#allocation2 + $0x18] sm:$0xff] %vm23_vm0, %v8746_v3  ;;  %28 = vst.msk [vmem:[#allocation2 + $0x20] sm:$0xff] %vm23_vm0, %v8746_v3  ;;  %v8848_v6 = vld [vmem:[%s13055_s1 + $0x28] sm:$0xff]  ;;  %v8853_v7 = vld [vmem:[%s13055_s1 + $0x20] sm:$0xff]  ;;  %vm2023_vm4 = vcmask 654848   ;;  %s8756_s9 = smov 80  }
   0x4   :  { %29 = vst.msk [vmem:[#allocation2 + $0x28] sm:$0xff] %vm23_vm0, %v8746_v3  ;;  %30 = vst.msk [vmem:[#allocation2 + $0x30] sm:$0xff] %vm23_vm0, %v8746_v3  ;;  %v8860_v8 = vld [vmem:[%s13055_s1 + $0x38] sm:$0xff]  ;;  %v8865_v9 = vld [vmem:[%s13055_s1 + $0x30] sm:$0xff]  ;;  %vm2492_vm5 = vcmask 786048   ;;  %s8758_s10 = smov 96  }
   0x5   :  { %32 = vst.msk [vmem:[#allocation2 + $0x160] sm:$0xff] %vm23_vm0, %v8746_v3  ;;  %33 = vst.msk [vmem:[#allocation2 + $0x168] sm:$0xff] %vm23_vm0, %v8746_v3  ;;  %v8870_v10 = vld [vmem:[%s13055_s1 + $0x48] sm:$0xff]  ;;  %v8875_v11 = vld [vmem:[%s13055_s1 + $0x40] sm:$0xff]  ;;  %vm2961_vm6 = vcmask 917248   ;;  %s8760_s29 = smov 112  }
   0x6   :  { %34 = vst.msk [vmem:[#allocation2 + $0x170] sm:$0xff] %vm23_vm0, %v8746_v3  ;;  %35 = vst.msk [vmem:[#allocation2 + $0x178] sm:$0xff] %vm23_vm0, %v8746_v3  ;;  %201 = vperm.xlu1 %8665, %v8836_v4   ;;  %191 = vperm.xlu0 %8664, %v8841_v5   ;;  %v41_v12 = vld [vmem:[%s13056_s0 + $0x8] sm:$0xff]  ;;  %v42_v13 = vld [vmem:[%s13056_s0 + $0x10] sm:$0xff]  ;;  %vm3430_vm7 = vcmask 1048448  }
   0x7   :  { %36 = vst.msk [vmem:[#allocation2 + $0x180] sm:$0xff] %vm23_vm0, %v8746_v3  ;;  %37 = vst.msk [vmem:[#allocation2 + $0x188] sm:$0xff] %vm23_vm0, %v8746_v3  ;;  %v40_v14 = vld [vmem:[%s13056_s0] sm:$0xff]  ;;  %v43_v15 = vld [vmem:[%s13056_s0 + $0x18] sm:$0xff] }
   0x8   :  { %38 = vst.msk [vmem:[#allocation2 + $0x190] sm:$0xff] %vm23_vm0, %v8746_v3  ;;  %39 = vst.msk [vmem:[#allocation2 + $0x198] sm:$0xff] %vm23_vm0, %v8746_v3  ;;  %v44_v16 = vld [vmem:[%s13056_s0 + $0x20] sm:$0xff]  ;;  %v45_v17 = vld [vmem:[%s13056_s0 + $0x28] sm:$0xff] }
   0x9   :  { %77 = vst.msk [vmem:[#allocation2 + $0x48] sm:$0xff] %vm23_vm0, %v41_v12  ;;  %78 = vst.msk [vmem:[#allocation2 + $0x50] sm:$0xff] %vm23_vm0, %v42_v13  ;;  %v46_v18 = vld [vmem:[%s13056_s0 + $0x30] sm:$0xff]  ;;  %v47_v19 = vld [vmem:[%s13056_s0 + $0x38] sm:$0xff] }
   0xa   :  { %211 = vperm.xlu1 %8665, %v8848_v6   ;;  %206 = vperm.xlu0 %8664, %v8853_v7   ;;  %76 = vst.msk [vmem:[#allocation2 + $0x40] sm:$0xff] %vm23_vm0, %v40_v14  ;;  %79 = vst.msk [vmem:[#allocation2 + $0x58] sm:$0xff] %vm23_vm0, %v43_v15  ;;  %v48_v20 = vld [vmem:[%s13056_s0 + $0x40] sm:$0xff]  ;;  %v49_v21 = vld [vmem:[%s13056_s0 + $0x48] sm:$0xff] }
   0xb   :  { %80 = vst.msk [vmem:[#allocation2 + $0x60] sm:$0xff] %vm23_vm0, %v44_v16  ;;  %81 = vst.msk [vmem:[#allocation2 + $0x68] sm:$0xff] %vm23_vm0, %v45_v17  ;;  %v50_v22 = vld [vmem:[%s13056_s0 + $0x50] sm:$0xff]  ;;  %v51_v23 = vld [vmem:[%s13056_s0 + $0x58] sm:$0xff] }
   0xc   :  { %82 = vst.msk [vmem:[#allocation2 + $0x70] sm:$0xff] %vm23_vm0, %v46_v18  ;;  %83 = vst.msk [vmem:[#allocation2 + $0x78] sm:$0xff] %vm23_vm0, %v47_v19  ;;  %v52_v24 = vld [vmem:[%s13056_s0 + $0x60] sm:$0xff]  ;;  %v53_v25 = vld [vmem:[%s13056_s0 + $0x68] sm:$0xff] }
   0xd   :  { %84 = vst.msk [vmem:[#allocation2 + $0x80] sm:$0xff] %vm23_vm0, %v48_v20  ;;  %85 = vst.msk [vmem:[#allocation2 + $0x88] sm:$0xff] %vm23_vm0, %v49_v21  ;;  %v8940_v26 = vld [vmem:[%s13055_s1 + $0x58] sm:$0xff]  ;;  %v8945_v27 = vld [vmem:[%s13055_s1 + $0x50] sm:$0xff]  ;;  %v8747_v20 = vmov 1  }
   0xe   :  { %221 = vperm.xlu1 %8665, %v8860_v8   ;;  %216 = vperm.xlu0 %8664, %v8865_v9   ;;  %86 = vst.msk [vmem:[#allocation2 + $0x90] sm:$0xff] %vm23_vm0, %v50_v22  ;;  %87 = vst.msk [vmem:[#allocation2 + $0x98] sm:$0xff] %vm23_vm0, %v51_v23  ;;  %v8952_v28 = vld [vmem:[%s13055_s1 + $0x68] sm:$0xff]  ;;  %v8957_v29 = vld [vmem:[%s13055_s1 + $0x60] sm:$0xff] }
   0xf   :  { %88 = vst.msk [vmem:[#allocation2 + $0xa0] sm:$0xff] %vm23_vm0, %v52_v24  ;;  %89 = vst.msk [vmem:[#allocation2 + $0xa8] sm:$0xff] %vm23_vm0, %v53_v25  ;;  %v54_v30 = vld [vmem:[%s13056_s0 + $0x70] sm:$0xff]  ;;  %v55_v31 = vld [vmem:[%s13056_s0 + $0x78] sm:$0xff] }
  0x10   :  { %90 = vst.msk [vmem:[#allocation2 + $0xb0] sm:$0xff] %vm23_vm0, %v54_v30  ;;  %v56_v32 = vld [vmem:[%s13056_s0 + $0x80] sm:$0xff]  ;;  %v57_v33 = vld [vmem:[%s13056_s0 + $0x88] sm:$0xff]  ;;  %v8977_v34 = vld [vmem:[%s13055_s1 + $0x78] sm:$0xff] }
  0x11   :  { %v8982_v35 = vld [vmem:[%s13055_s1 + $0x70] sm:$0xff]  ;;  %91 = vst.msk [vmem:[#allocation2 + $0xb8] sm:$0xff] %vm23_vm0, %v55_v31  ;;  %92 = vst.msk [vmem:[#allocation2 + $0xc0] sm:$0xff] %vm23_vm0, %v56_v32  ;;  %v59_v37 = vld [vmem:[%s13056_s0 + $0x98] sm:$0xff] }
  0x12   :  { %231 = vperm.xlu1 %8665, %v8870_v10   ;;  %226 = vperm.xlu0 %8664, %v8875_v11   ;;  %93 = vst.msk [vmem:[#allocation2 + $0xc8] sm:$0xff] %vm23_vm0, %v57_v33  ;;  %v58_v36 = vld [vmem:[%s13056_s0 + $0x90] sm:$0xff]  ;;  %95 = vst.msk [vmem:[#allocation2 + $0xd8] sm:$0xff] %vm23_vm0, %v59_v37  ;;  %v9000_v38 = vld [vmem:[%s13055_s1 + $0x88] sm:$0xff] }
  0x13   :  { %94 = vst.msk [vmem:[#allocation2 + $0xd0] sm:$0xff] %vm23_vm0, %v58_v36  ;;  %v9005_v39 = vld [vmem:[%s13055_s1 + $0x80] sm:$0xff]  ;;  %v61_v41 = vld [vmem:[%s13056_s0 + $0xa8] sm:$0xff]  ;;  %v9020_v42 = vld [vmem:[%s13055_s1 + $0x98] sm:$0xff] }
  0x14   :  { %v60_v40 = vld [vmem:[%s13056_s0 + $0xa0] sm:$0xff]  ;;  %97 = vst.msk [vmem:[#allocation2 + $0xe8] sm:$0xff] %vm23_vm0, %v61_v41  ;;  %v9025_v43 = vld [vmem:[%s13055_s1 + $0x90] sm:$0xff]  ;;  %v63_v45 = vld [vmem:[%s13056_s0 + $0xb8] sm:$0xff] }
  0x15   :  { %96 = vst.msk [vmem:[#allocation2 + $0xe0] sm:$0xff] %vm23_vm0, %v60_v40  ;;  %v62_v44 = vld [vmem:[%s13056_s0 + $0xb0] sm:$0xff]  ;;  %v9039_v46 = vld [vmem:[%s13055_s1 + $0xa8] sm:$0xff]  ;;  %v9044_v47 = vld [vmem:[%s13055_s1 + $0xa0] sm:$0xff] }
  0x16   :  { %241 = vperm.xlu1 %8665, %v8940_v26   ;;  %236 = vperm.xlu0 %8664, %v8945_v27   ;;  %98 = vst.msk [vmem:[#allocation2 + $0xf0] sm:$0xff] %vm23_vm0, %v62_v44  ;;  %99 = vst.msk [vmem:[#allocation2 + $0xf8] sm:$0xff] %vm23_vm0, %v63_v45  ;;  %v64_v48 = vld [vmem:[%s13056_s0 + $0xc0] sm:$0xff]  ;;  %v65_v49 = vld [vmem:[%s13056_s0 + $0xc8] sm:$0xff] }
  0x17   :  { %100 = vst.msk [vmem:[#allocation2 + $0x100] sm:$0xff] %vm23_vm0, %v64_v48  ;;  %v9059_v50 = vld [vmem:[%s13055_s1 + $0xb8] sm:$0xff]  ;;  %v9064_v51 = vld [vmem:[%s13055_s1 + $0xb0] sm:$0xff]  ;;  %101 = vst.msk [vmem:[#allocation2 + $0x108] sm:$0xff] %vm23_vm0, %v65_v49 }
  0x18   :  { %v66_v52 = vld [vmem:[%s13056_s0 + $0xd0] sm:$0xff]  ;;  %v67_v53 = vld [vmem:[%s13056_s0 + $0xd8] sm:$0xff]  ;;  %v9080_v54 = vld [vmem:[%s13055_s1 + $0xc8] sm:$0xff] }
  0x19   :  { %102 = vst.msk [vmem:[#allocation2 + $0x110] sm:$0xff] %vm23_vm0, %v66_v52  ;;  %103 = vst.msk [vmem:[#allocation2 + $0x118] sm:$0xff] %vm23_vm0, %v67_v53  ;;  %v9085_v55 = vld [vmem:[%s13055_s1 + $0xc0] sm:$0xff]  ;;  %v69_v57 = vld [vmem:[%s13056_s0 + $0xe8] sm:$0xff] }
  0x1a   :  { %251 = vperm.xlu1 %8665, %v8952_v28   ;;  %246 = vperm.xlu0 %8664, %v8957_v29   ;;  %v68_v56 = vld [vmem:[%s13056_s0 + $0xe0] sm:$0xff]  ;;  %105 = vst.msk [vmem:[#allocation2 + $0x128] sm:$0xff] %vm23_vm0, %v69_v57  ;;  %v175_v58 = vld [vmem:[%s13055_s1 + $0xd8] sm:$0xff]  ;;  %v174_v59 = vld [vmem:[%s13055_s1 + $0xd0] sm:$0xff] }
  0x1b   :  { %104 = vst.msk [vmem:[#allocation2 + $0x120] sm:$0xff] %vm23_vm0, %v68_v56  ;;  %v70_v60 = vld [vmem:[%s13056_s0 + $0xf0] sm:$0xff]  ;;  %v71_v61 = vld [vmem:[%s13056_s0 + $0xf8] sm:$0xff]  ;;  %v177_v62 = vld [vmem:[%s13055_s1 + $0xe8] sm:$0xff] }
  0x1c   :  { %106 = vst.msk [vmem:[#allocation2 + $0x130] sm:$0xff] %vm23_vm0, %v70_v60  ;;  %v176_v63 = vld [vmem:[%s13055_s1 + $0xe0] sm:$0xff]  ;;  %107 = vst.msk [vmem:[#allocation2 + $0x138] sm:$0xff] %vm23_vm0, %v71_v61  ;;  %v73_v3 = vld [vmem:[%s13056_s0 + $0x108] sm:$0xff] }
  0x1d   :  { %v72_v0 = vld [vmem:[%s13056_s0 + $0x100] sm:$0xff]  ;;  %v9127_v12 = vld [vmem:[%s13055_s1 + $0xf8] sm:$0xff]  ;;  %v9132_v13 = vld [vmem:[%s13055_s1 + $0xf0] sm:$0xff]  ;;  %109 = vst.msk [vmem:[#allocation2 + $0x148] sm:$0xff] %vm23_vm0, %v73_v3 }
  0x1e   :  { %261 = vperm.xlu1 %8665, %v8977_v34   ;;  %256 = vperm.xlu0 %8664, %v8982_v35   ;;  %108 = vst.msk [vmem:[#allocation2 + $0x140] sm:$0xff] %vm23_vm0, %v72_v0  ;;  %v74_v14 = vld [vmem:[%s13056_s0 + $0x110] sm:$0xff]  ;;  %v75_v15 = vld [vmem:[%s13056_s0 + $0x118] sm:$0xff]  ;;  %v9148_v16 = vld [vmem:[%s13055_s1 + $0x108] sm:$0xff] }
  0x1f   :  { %110 = vst.msk [vmem:[#allocation2 + $0x150] sm:$0xff] %vm23_vm0, %v74_v14  ;;  %111 = vst.msk [vmem:[#allocation2 + $0x158] sm:$0xff] %vm23_vm0, %v75_v15  ;;  %v9153_v17 = vld [vmem:[%s13055_s1 + $0x100] sm:$0xff]  ;;  %v9160_v18 = vld [vmem:[%s13055_s1 + $0x118] sm:$0xff] }
  0x20   :  { %v9165_v19 = vld [vmem:[%s13055_s1 + $0x110] sm:$0xff]  ;;  %v117_v23 = vld [vmem:[#allocation2 + $0x63] sm:$0xff]  ;;  %v116_v24 = vld [vmem:[#allocation2 + $0x5b] sm:$0xff] }
  0x21   :  { %v118_v30 = vld [vmem:[#allocation2 + $0x6b] sm:$0xff]  ;;  %v120_v36 = vld [vmem:[#allocation2 + $0x7b] sm:$0xff]  ;;  %v123_v41 = vld [vmem:[#allocation2 + $0x93] sm:$0xff] }
  0x22   :  { %271 = vperm.xlu1 %8665, %v9000_v38   ;;  %266 = vperm.xlu0 %8664, %v9005_v39   ;;  %v125_v48 = vld [vmem:[#allocation2 + $0xa3] sm:$0xff]  ;;  %v124_v49 = vld [vmem:[#allocation2 + $0x9b] sm:$0xff] }
  0x23   :  { %v129_v60 = vld [vmem:[#allocation2 + $0xc3] sm:$0xff]  ;;  %v128_v61 = vld [vmem:[#allocation2 + $0xbb] sm:$0xff] }
  0x26   :  { %281 = vperm.xlu1 %8665, %v9020_v42   ;;  %276 = vperm.xlu0 %8664, %v9025_v43  }
  0x2a   :  { %291 = vperm.xlu1 %8665, %v9039_v46   ;;  %286 = vperm.xlu0 %8664, %v9044_v47  }
  0x2e   :  { %301 = vperm.xlu1 %8665, %v9059_v50   ;;  %296 = vperm.xlu0 %8664, %v9064_v51  }
  0x32   :  { %311 = vperm.xlu1 %8665, %v9080_v54   ;;  %306 = vperm.xlu0 %8664, %v9085_v55  }
  0x36   :  { %321 = vperm.xlu1 %8665, %v175_v58   ;;  %316 = vperm.xlu0 %8664, %v174_v59  }
  0x3a   :  { %331 = vperm.xlu1 %8665, %v177_v62   ;;  %326 = vperm.xlu0 %8664, %v176_v63  }
  0x3e   :  { %341 = vperm.xlu1 %8665, %v9127_v12   ;;  %336 = vperm.xlu0 %8664, %v9132_v13  }
  0x42   :  { %351 = vperm.xlu1 %8665, %v9148_v16   ;;  %346 = vperm.xlu0 %8664, %v9153_v17  }
  0x46   :  { %361 = vperm.xlu1 %8665, %v9160_v18   ;;  %356 = vperm.xlu0 %8664, %v9165_v19  }
  0x4a   :  { %8667 = vset.pattern.permute.xlu1 %v8747_v20  ;;  %8666 = vset.pattern.permute.xlu0 %v8747_v20 }
  0x4b   :  { %515 = vperm.xlu1 %8667, %v8841_v5   ;;  %510 = vperm.xlu0 %8666, %v8813_v2   ;;  %v112_v2 = vld [vmem:[#allocation2 + $0x3b] sm:$0xff] }
  0x4f   :  { %520 = vperm.xlu1 %8667, %v8808_v1   ;;  %525 = vperm.xlu0 %8666, %v8836_v4   ;;  %v114_v1 = vld [vmem:[#allocation2 + $0x4b] sm:$0xff] }
  0x53   :  { %530 = vperm.xlu1 %8667, %v8853_v7   ;;  %535 = vperm.xlu0 %8666, %v8848_v6  }
  0x57   :  { %540 = vperm.xlu1 %8667, %v8865_v9   ;;  %545 = vperm.xlu0 %8666, %v8860_v8   ;;  %v115_v8 = vld [vmem:[#allocation2 + $0x53] sm:$0xff]  ;;  %v113_v9 = vld [vmem:[#allocation2 + $0x43] sm:$0xff] }
  0x5b   :  { %550 = vperm.xlu1 %8667, %v8875_v11   ;;  %555 = vperm.xlu0 %8666, %v8870_v10  }
  0x5f   :  { %560 = vperm.xlu1 %8667, %v8945_v27   ;;  %565 = vperm.xlu0 %8666, %v8940_v26  }
  0x63   :  { %570 = vperm.xlu1 %8667, %v8957_v29   ;;  %575 = vperm.xlu0 %8666, %v8952_v28   ;;  %v119_v29 = vld [vmem:[#allocation2 + $0x73] sm:$0xff] }
  0x67   :  { %580 = vperm.xlu1 %8667, %v8982_v35   ;;  %585 = vperm.xlu0 %8666, %v8977_v34   ;;  %v121_v35 = vld [vmem:[#allocation2 + $0x83] sm:$0xff] }
  0x6b   :  { %590 = vperm.xlu1 %8667, %v9005_v39   ;;  %595 = vperm.xlu0 %8666, %v9000_v38  }
  0x6f   :  { %600 = vperm.xlu1 %8667, %v9025_v43   ;;  %605 = vperm.xlu0 %8666, %v9020_v42   ;;  %v122_v42 = vld [vmem:[#allocation2 + $0x8b] sm:$0xff]  ;;  %v8748_v43 = vmov 2  }
  0x73   :  { %610 = vperm.xlu1 %8667, %v9044_v47   ;;  %615 = vperm.xlu0 %8666, %v9039_v46  }
  0x77   :  { %620 = vperm.xlu1 %8667, %v9064_v51   ;;  %625 = vperm.xlu0 %8666, %v9059_v50  }
  0x7b   :  { %630 = vperm.xlu1 %8667, %v9085_v55   ;;  %635 = vperm.xlu0 %8666, %v9080_v54   ;;  %v127_v54 = vld [vmem:[#allocation2 + $0xb3] sm:$0xff]  ;;  %v126_v55 = vld [vmem:[#allocation2 + $0xab] sm:$0xff] }
  0x7f   :  { %640 = vperm.xlu1 %8667, %v174_v59   ;;  %645 = vperm.xlu0 %8666, %v175_v58  }
  0x81   :  { %v197_v4 = vpop.permute.xlu1 %196  ;;  %v187_v5 = vpop.permute.xlu0 %186 }
  0x82   :  { %v366_v6 = vmul.f32 %v197_v4, %v114_v1  ;;  %v364_v7 = vmul.f32 %v187_v5, %v112_v2  ;;  %v135_v5 = vld [vmem:[#allocation2 + $0xf3] sm:$0xff] }
  0x83   :  { %650 = vperm.xlu1 %8667, %v176_v63   ;;  %655 = vperm.xlu0 %8666, %v177_v62  }
  0x84   :  { %402 = vst.msk [vmem:[#allocation3 + $0x20] sm:$0xff] %vm23_vm0, %v366_v6  ;;  %400 = vst.msk [vmem:[#allocation3] sm:$0xff] %vm23_vm0, %v364_v7  ;;  %v134_v6 = vld [vmem:[#allocation2 + $0xeb] sm:$0xff] }
  0x85   :  { %v202_v10 = vpop.permute.xlu1 %201  ;;  %v192_v11 = vpop.permute.xlu0 %191 }
  0x86   :  { %v367_v21 = vmul.f32 %v202_v10, %v115_v8  ;;  %v365_v22 = vmul.f32 %v192_v11, %v113_v9  ;;  %v137_v11 = vld [vmem:[#allocation2 + $0x103] sm:$0xff] }
  0x87   :  { %660 = vperm.xlu1 %8667, %v9132_v13   ;;  %665 = vperm.xlu0 %8666, %v9127_v12   ;;  %v131_v12 = vld [vmem:[#allocation2 + $0xd3] sm:$0xff]  ;;  %v130_v13 = vld [vmem:[#allocation2 + $0xcb] sm:$0xff] }
  0x88   :  { %403 = vst.msk [vmem:[#allocation3 + $0x30] sm:$0xff] %vm23_vm0, %v367_v21  ;;  %401 = vst.msk [vmem:[#allocation3 + $0x10] sm:$0xff] %vm23_vm0, %v365_v22  ;;  %v136_v21 = vld [vmem:[#allocation2 + $0xfb] sm:$0xff] }
  0x89   :  { %v212_v25 = vpop.permute.xlu1 %211  ;;  %v207_v26 = vpop.permute.xlu0 %206 }
  0x8a   :  { %v369_v27 = vmul.f32 %v212_v25, %v117_v23  ;;  %v368_v28 = vmul.f32 %v207_v26, %v116_v24  ;;  %v139_v26 = vld [vmem:[#allocation2 + $0x113] sm:$0xff] }
  0x8b   :  { %670 = vperm.xlu1 %8667, %v9153_v17   ;;  %675 = vperm.xlu0 %8666, %v9148_v16  }
  0x8c   :  { %405 = vst.msk [vmem:[#allocation3 + $0x50] sm:$0xff] %vm23_vm0, %v369_v27  ;;  %404 = vst.msk [vmem:[#allocation3 + $0x40] sm:$0xff] %vm23_vm0, %v368_v28  ;;  %v138_v27 = vld [vmem:[#allocation2 + $0x10b] sm:$0xff] }
  0x8d   :  { %v222_v31 = vpop.permute.xlu1 %221  ;;  %v217_v32 = vpop.permute.xlu0 %216 }
  0x8e   :  { %v371_v33 = vmul.f32 %v222_v31, %v119_v29  ;;  %v370_v34 = vmul.f32 %v217_v32, %v118_v30  ;;  %v141_v32 = vld [vmem:[#allocation2 + $0x123] sm:$0xff] }
  0x8f   :  { %680 = vperm.xlu1 %8667, %v9165_v19   ;;  %685 = vperm.xlu0 %8666, %v9160_v18   ;;  %v133_v18 = vld [vmem:[#allocation2 + $0xe3] sm:$0xff]  ;;  %v132_v19 = vld [vmem:[#allocation2 + $0xdb] sm:$0xff] }
  0x90   :  { %407 = vst.msk [vmem:[#allocation3 + $0x70] sm:$0xff] %vm23_vm0, %v371_v33  ;;  %406 = vst.msk [vmem:[#allocation3 + $0x60] sm:$0xff] %vm23_vm0, %v370_v34  ;;  %v140_v33 = vld [vmem:[#allocation2 + $0x11b] sm:$0xff] }
  0x91   :  { %v232_v37 = vpop.permute.xlu1 %231  ;;  %v227_v38 = vpop.permute.xlu0 %226 }
  0x92   :  { %v373_v39 = vmul.f32 %v232_v37, %v121_v35  ;;  %v372_v40 = vmul.f32 %v227_v38, %v120_v36  ;;  %v143_v38 = vld [vmem:[#allocation2 + $0x133] sm:$0xff] }
  0x93   :  { %8668 = vset.pattern.permute.xlu1 %v8748_v43  ;;  %8669 = vset.pattern.permute.xlu0 %v8748_v43 }
  0x94   :  { %409 = vst.msk [vmem:[#allocation3 + $0x90] sm:$0xff] %vm23_vm0, %v373_v39  ;;  %408 = vst.msk [vmem:[#allocation3 + $0x80] sm:$0xff] %vm23_vm0, %v372_v40  ;;  %v142_v39 = vld [vmem:[#allocation2 + $0x12b] sm:$0xff] }
  0x95   :  { %v242_v44 = vpop.permute.xlu1 %241  ;;  %v237_v45 = vpop.permute.xlu0 %236 }
  0x96   :  { %v375_v46 = vmul.f32 %v242_v44, %v123_v41  ;;  %v374_v47 = vmul.f32 %v237_v45, %v122_v42  ;;  %v145_v44 = vld [vmem:[#allocation2 + $0x143] sm:$0xff]  ;;  %v144_v45 = vld [vmem:[#allocation2 + $0x13b] sm:$0xff] }
  0x98   :  { %411 = vst.msk [vmem:[#allocation3 + $0xb0] sm:$0xff] %vm23_vm0, %v375_v46  ;;  %410 = vst.msk [vmem:[#allocation3 + $0xa0] sm:$0xff] %vm23_vm0, %v374_v47 }
  0x99   :  { %v252_v50 = vpop.permute.xlu1 %251  ;;  %v247_v51 = vpop.permute.xlu0 %246 }
  0x9a   :  { %v377_v52 = vmul.f32 %v252_v50, %v125_v48  ;;  %v376_v53 = vmul.f32 %v247_v51, %v124_v49  ;;  %v147_v50 = vld [vmem:[#allocation2 + $0x153] sm:$0xff]  ;;  %v146_v51 = vld [vmem:[#allocation2 + $0x14b] sm:$0xff] }
  0x9c   :  { %413 = vst.msk [vmem:[#allocation3 + $0xd0] sm:$0xff] %vm23_vm0, %v377_v52  ;;  %412 = vst.msk [vmem:[#allocation3 + $0xc0] sm:$0xff] %vm23_vm0, %v376_v53 }
  0x9d   :  { %v262_v56 = vpop.permute.xlu1 %261  ;;  %v257_v57 = vpop.permute.xlu0 %256 }
  0x9e   :  { %v379_v58 = vmul.f32 %v262_v56, %v127_v54  ;;  %v378_v59 = vmul.f32 %v257_v57, %v126_v55  ;;  %v437_v56 = vld [vmem:[#allocation2 + $0x44] sm:$0xff]  ;;  %v436_v57 = vld [vmem:[#allocation2 + $0x3c] sm:$0xff] }
  0xa0   :  { %415 = vst.msk [vmem:[#allocation3 + $0xf0] sm:$0xff] %vm23_vm0, %v379_v58  ;;  %414 = vst.msk [vmem:[#allocation3 + $0xe0] sm:$0xff] %vm23_vm0, %v378_v59 }
  0xa1   :  { %v272_v62 = vpop.permute.xlu1 %271  ;;  %v267_v63 = vpop.permute.xlu0 %266 }
  0xa2   :  { %v381_v0 = vmul.f32 %v272_v62, %v129_v60  ;;  %v380_v3 = vmul.f32 %v267_v63, %v128_v61  ;;  %v438_v62 = vld [vmem:[#allocation2 + $0x4c] sm:$0xff]  ;;  %v439_v63 = vld [vmem:[#allocation2 + $0x54] sm:$0xff] }
  0xa4   :  { %417 = vst.msk [vmem:[#allocation3 + $0x110] sm:$0xff] %vm23_vm0, %v381_v0  ;;  %416 = vst.msk [vmem:[#allocation3 + $0x100] sm:$0xff] %vm23_vm0, %v380_v3 }
  0xa5   :  { %v282_v14 = vpop.permute.xlu1 %281  ;;  %v277_v15 = vpop.permute.xlu0 %276 }
  0xa6   :  { %v383_v16 = vmul.f32 %v282_v14, %v131_v12  ;;  %v382_v17 = vmul.f32 %v277_v15, %v130_v13  ;;  %v440_v14 = vld [vmem:[#allocation2 + $0x5c] sm:$0xff]  ;;  %v441_v15 = vld [vmem:[#allocation2 + $0x64] sm:$0xff] }
  0xa8   :  { %419 = vst.msk [vmem:[#allocation3 + $0x130] sm:$0xff] %vm23_vm0, %v383_v16  ;;  %418 = vst.msk [vmem:[#allocation3 + $0x120] sm:$0xff] %vm23_vm0, %v382_v17 }
  0xa9   :  { %v292_v20 = vpop.permute.xlu1 %291  ;;  %v287_v1 = vpop.permute.xlu0 %286 }
  0xaa   :  { %v385_v2 = vmul.f32 %v292_v20, %v133_v18  ;;  %v384_v4 = vmul.f32 %v287_v1, %v132_v19  ;;  %v442_v20 = vld [vmem:[#allocation2 + $0x6c] sm:$0xff]  ;;  %v443_v1 = vld [vmem:[#allocation2 + $0x74] sm:$0xff] }
  0xac   :  { %421 = vst.msk [vmem:[#allocation3 + $0x150] sm:$0xff] %vm23_vm0, %v385_v2  ;;  %420 = vst.msk [vmem:[#allocation3 + $0x140] sm:$0xff] %vm23_vm0, %v384_v4 }
  0xad   :  { %v302_v7 = vpop.permute.xlu1 %301  ;;  %v297_v8 = vpop.permute.xlu0 %296 }
  0xae   :  { %v387_v9 = vmul.f32 %v302_v7, %v135_v5  ;;  %v386_v10 = vmul.f32 %v297_v8, %v134_v6  ;;  %v444_v7 = vld [vmem:[#allocation2 + $0x7c] sm:$0xff]  ;;  %v445_v8 = vld [vmem:[#allocation2 + $0x84] sm:$0xff] }
  0xb0   :  { %423 = vst.msk [vmem:[#allocation3 + $0x170] sm:$0xff] %vm23_vm0, %v387_v9  ;;  %422 = vst.msk [vmem:[#allocation3 + $0x160] sm:$0xff] %vm23_vm0, %v386_v10 }
  0xb1   :  { %v312_v22 = vpop.permute.xlu1 %311  ;;  %v307_v23 = vpop.permute.xlu0 %306 }
  0xb2   :  { %v389_v24 = vmul.f32 %v312_v22, %v137_v11  ;;  %v388_v25 = vmul.f32 %v307_v23, %v136_v21  ;;  %v446_v22 = vld [vmem:[#allocation2 + $0x8c] sm:$0xff]  ;;  %v447_v23 = vld [vmem:[#allocation2 + $0x94] sm:$0xff] }
  0xb4   :  { %425 = vst.msk [vmem:[#allocation3 + $0x190] sm:$0xff] %vm23_vm0, %v389_v24  ;;  %424 = vst.msk [vmem:[#allocation3 + $0x180] sm:$0xff] %vm23_vm0, %v388_v25 }
  0xb5   :  { %v322_v28 = vpop.permute.xlu1 %321  ;;  %v317_v29 = vpop.permute.xlu0 %316 }
  0xb6   :  { %v391_v30 = vmul.f32 %v322_v28, %v139_v26  ;;  %v390_v31 = vmul.f32 %v317_v29, %v138_v27  ;;  %v448_v28 = vld [vmem:[#allocation2 + $0x9c] sm:$0xff]  ;;  %v449_v29 = vld [vmem:[#allocation2 + $0xa4] sm:$0xff] }
  0xb8   :  { %427 = vst.msk [vmem:[#allocation3 + $0x1b0] sm:$0xff] %vm23_vm0, %v391_v30  ;;  %426 = vst.msk [vmem:[#allocation3 + $0x1a0] sm:$0xff] %vm23_vm0, %v390_v31 }
  0xb9   :  { %v332_v34 = vpop.permute.xlu1 %331  ;;  %v327_v35 = vpop.permute.xlu0 %326 }
  0xba   :  { %v393_v36 = vmul.f32 %v332_v34, %v141_v32  ;;  %v392_v37 = vmul.f32 %v327_v35, %v140_v33  ;;  %v450_v34 = vld [vmem:[#allocation2 + $0xac] sm:$0xff]  ;;  %v451_v35 = vld [vmem:[#allocation2 + $0xb4] sm:$0xff] }
  0xbc   :  { %429 = vst.msk [vmem:[#allocation3 + $0x1d0] sm:$0xff] %vm23_vm0, %v393_v36  ;;  %428 = vst.msk [vmem:[#allocation3 + $0x1c0] sm:$0xff] %vm23_vm0, %v392_v37 }
  0xbd   :  { %v342_v40 = vpop.permute.xlu1 %341  ;;  %v337_v41 = vpop.permute.xlu0 %336 }
  0xbe   :  { %v395_v42 = vmul.f32 %v342_v40, %v143_v38  ;;  %v394_v43 = vmul.f32 %v337_v41, %v142_v39  ;;  %v452_v40 = vld [vmem:[#allocation2 + $0xbc] sm:$0xff]  ;;  %v453_v41 = vld [vmem:[#allocation2 + $0xc4] sm:$0xff] }
  0xc0   :  { %431 = vst.msk [vmem:[#allocation3 + $0x1f0] sm:$0xff] %vm23_vm0, %v395_v42  ;;  %430 = vst.msk [vmem:[#allocation3 + $0x1e0] sm:$0xff] %vm23_vm0, %v394_v43 }
  0xc1   :  { %v352_v46 = vpop.permute.xlu1 %351  ;;  %v347_v47 = vpop.permute.xlu0 %346 }
  0xc2   :  { %v397_v48 = vmul.f32 %v352_v46, %v145_v44  ;;  %v396_v49 = vmul.f32 %v347_v47, %v144_v45  ;;  %v454_v46 = vld [vmem:[#allocation2 + $0xcc] sm:$0xff]  ;;  %v455_v47 = vld [vmem:[#allocation2 + $0xd4] sm:$0xff] }
  0xc4   :  { %433 = vst.msk [vmem:[#allocation3 + $0x210] sm:$0xff] %vm23_vm0, %v397_v48  ;;  %432 = vst.msk [vmem:[#allocation3 + $0x200] sm:$0xff] %vm23_vm0, %v396_v49 }
  0xc5   :  { %v362_v52 = vpop.permute.xlu1 %361  ;;  %v357_v53 = vpop.permute.xlu0 %356 }
  0xc6   :  { %v399_v54 = vmul.f32 %v362_v52, %v147_v50  ;;  %v398_v55 = vmul.f32 %v357_v53, %v146_v51  ;;  %v456_v52 = vld [vmem:[#allocation2 + $0xdc] sm:$0xff]  ;;  %v457_v53 = vld [vmem:[#allocation2 + $0xe4] sm:$0xff] }
  0xc8   :  { %435 = vst.msk [vmem:[#allocation3 + $0x230] sm:$0xff] %vm23_vm0, %v399_v54  ;;  %434 = vst.msk [vmem:[#allocation3 + $0x220] sm:$0xff] %vm23_vm0, %v398_v55 }
  0xca   :  { %v516_v58 = vpop.permute.xlu1 %515  ;;  %v511_v59 = vpop.permute.xlu0 %510 }
  0xcb   :  { %v689_v60 = vmul.f32 %v516_v58, %v437_v56  ;;  %v688_v61 = vmul.f32 %v511_v59, %v436_v57  ;;  %v458_v58 = vld [vmem:[#allocation2 + $0xec] sm:$0xff]  ;;  %v459_v59 = vld [vmem:[#allocation2 + $0xf4] sm:$0xff] }
  0xcd   :  { %762 = vrot.lane.b32.xlu0 %v689_v60, %s8749_s20  ;;  %760 = vrot.lane.b32.xlu1 %v688_v61, %s8749_s20 }
  0xce   :  { %v521_v0 = vpop.permute.xlu1 %520  ;;  %v526_v3 = vpop.permute.xlu0 %525 }
  0xcf   :  { %v690_v12 = vmul.f32 %v521_v0, %v438_v62  ;;  %v691_v13 = vmul.f32 %v526_v3, %v439_v63  ;;  %v460_v0 = vld [vmem:[#allocation2 + $0xfc] sm:$0xff]  ;;  %v461_v3 = vld [vmem:[#allocation2 + $0x104] sm:$0xff] }
  0xd1   :  { %766 = vrot.lane.b32.xlu0 %v691_v13, %s8749_s20  ;;  %764 = vrot.lane.b32.xlu1 %v690_v12, %s8749_s20 }
  0xd2   :  { %v531_v16 = vpop.permute.xlu1 %530  ;;  %v536_v17 = vpop.permute.xlu0 %535 }
  0xd3   :  { %v692_v18 = vmul.f32 %v531_v16, %v440_v14  ;;  %v693_v19 = vmul.f32 %v536_v17, %v441_v15  ;;  %v462_v16 = vld [vmem:[#allocation2 + $0x10c] sm:$0xff]  ;;  %v463_v17 = vld [vmem:[#allocation2 + $0x114] sm:$0xff] }
  0xd5   :  { %770 = vrot.lane.b32.xlu0 %v693_v19, %s8749_s20  ;;  %768 = vrot.lane.b32.xlu1 %v692_v18, %s8749_s20 }
  0xd6   :  { %v541_v2 = vpop.permute.xlu1 %540  ;;  %v546_v4 = vpop.permute.xlu0 %545 }
  0xd7   :  { %v694_v5 = vmul.f32 %v541_v2, %v442_v20  ;;  %v695_v6 = vmul.f32 %v546_v4, %v443_v1  ;;  %v464_v2 = vld [vmem:[#allocation2 + $0x11c] sm:$0xff]  ;;  %v465_v4 = vld [vmem:[#allocation2 + $0x124] sm:$0xff] }
  0xd9   :  { %774 = vrot.lane.b32.xlu0 %v695_v6, %s8749_s20  ;;  %772 = vrot.lane.b32.xlu1 %v694_v5, %s8749_s20 }
  0xda   :  { %v551_v9 = vpop.permute.xlu1 %550  ;;  %v556_v10 = vpop.permute.xlu0 %555 }
  0xdb   :  { %v696_v11 = vmul.f32 %v551_v9, %v444_v7  ;;  %v697_v21 = vmul.f32 %v556_v10, %v445_v8  ;;  %v466_v9 = vld [vmem:[#allocation2 + $0x12c] sm:$0xff]  ;;  %v467_v10 = vld [vmem:[#allocation2 + $0x134] sm:$0xff] }
  0xdd   :  { %778 = vrot.lane.b32.xlu0 %v697_v21, %s8749_s20  ;;  %776 = vrot.lane.b32.xlu1 %v696_v11, %s8749_s20 }
  0xde   :  { %v561_v24 = vpop.permute.xlu1 %560  ;;  %v566_v25 = vpop.permute.xlu0 %565 }
  0xdf   :  { %v698_v26 = vmul.f32 %v561_v24, %v446_v22  ;;  %v699_v27 = vmul.f32 %v566_v25, %v447_v23  ;;  %v468_v24 = vld [vmem:[#allocation2 + $0x13c] sm:$0xff]  ;;  %v469_v25 = vld [vmem:[#allocation2 + $0x144] sm:$0xff] }
  0xe1   :  { %782 = vrot.lane.b32.xlu0 %v699_v27, %s8749_s20  ;;  %780 = vrot.lane.b32.xlu1 %v698_v26, %s8749_s20 }
  0xe2   :  { %v571_v30 = vpop.permute.xlu1 %570  ;;  %v576_v31 = vpop.permute.xlu0 %575 }
  0xe3   :  { %v700_v32 = vmul.f32 %v571_v30, %v448_v28  ;;  %v701_v33 = vmul.f32 %v576_v31, %v449_v29  ;;  %v470_v30 = vld [vmem:[#allocation2 + $0x14c] sm:$0xff]  ;;  %v471_v31 = vld [vmem:[#allocation2 + $0x154] sm:$0xff] }
  0xe5   :  { %786 = vrot.lane.b32.xlu0 %v701_v33, %s8749_s20  ;;  %784 = vrot.lane.b32.xlu1 %v700_v32, %s8749_s20 }
  0xe6   :  { %v581_v36 = vpop.permute.xlu1 %580  ;;  %v586_v37 = vpop.permute.xlu0 %585 }
  0xe7   :  { %v702_v38 = vmul.f32 %v581_v36, %v450_v34  ;;  %v703_v39 = vmul.f32 %v586_v37, %v451_v35  ;;  %v9276_v36 = vld [vmem:[%s13055_s1 + $0x8] sm:$0xff]  ;;  %v9281_v37 = vld [vmem:[%s13055_s1] sm:$0xff] }
  0xe9   :  { %790 = vrot.lane.b32.xlu0 %v703_v39, %s8749_s20  ;;  %788 = vrot.lane.b32.xlu1 %v702_v38, %s8749_s20  ;;  %v9288_v38 = vld [vmem:[%s13055_s1 + $0x20] sm:$0xff]  ;;  %v9293_v39 = vld [vmem:[%s13055_s1 + $0x10] sm:$0xff] }
  0xea   :  { %v591_v42 = vpop.permute.xlu1 %590  ;;  %v596_v43 = vpop.permute.xlu0 %595 }
  0xeb   :  { %v704_v44 = vmul.f32 %v591_v42, %v452_v40  ;;  %v705_v45 = vmul.f32 %v596_v43, %v453_v41  ;;  %v9300_v40 = vld [vmem:[%s13055_s1 + $0x30] sm:$0xff]  ;;  %v9305_v41 = vld [vmem:[%s13055_s1 + $0x18] sm:$0xff]  ;;  %v9312_v42 = vld [vmem:[%s13055_s1 + $0x40] sm:$0xff] }
  0xec   :  { %v9317_v43 = vld [vmem:[%s13055_s1 + $0x28] sm:$0xff] }
  0xed   :  { %794 = vrot.lane.b32.xlu0 %v705_v45, %s8749_s20  ;;  %792 = vrot.lane.b32.xlu1 %v704_v44, %s8749_s20  ;;  %v9324_v44 = vld [vmem:[%s13055_s1 + $0x50] sm:$0xff]  ;;  %v9329_v45 = vld [vmem:[%s13055_s1 + $0x38] sm:$0xff] }
  0xee   :  { %v601_v48 = vpop.permute.xlu1 %600  ;;  %v606_v49 = vpop.permute.xlu0 %605 }
  0xef   :  { %v706_v50 = vmul.f32 %v601_v48, %v454_v46  ;;  %v707_v51 = vmul.f32 %v606_v49, %v455_v47  ;;  %v9336_v46 = vld [vmem:[%s13055_s1 + $0x60] sm:$0xff]  ;;  %v9341_v47 = vld [vmem:[%s13055_s1 + $0x48] sm:$0xff]  ;;  %v9348_v48 = vld [vmem:[%s13055_s1 + $0x70] sm:$0xff] }
  0xf0   :  { %v9353_v49 = vld [vmem:[%s13055_s1 + $0x58] sm:$0xff] }
  0xf1   :  { %798 = vrot.lane.b32.xlu0 %v707_v51, %s8749_s20  ;;  %796 = vrot.lane.b32.xlu1 %v706_v50, %s8749_s20  ;;  %v9360_v50 = vld [vmem:[%s13055_s1 + $0x80] sm:$0xff]  ;;  %v9365_v51 = vld [vmem:[%s13055_s1 + $0x68] sm:$0xff] }
  0xf2   :  { %v611_v54 = vpop.permute.xlu1 %610  ;;  %v616_v55 = vpop.permute.xlu0 %615 }
  0xf3   :  { %v708_v56 = vmul.f32 %v611_v54, %v456_v52  ;;  %v709_v57 = vmul.f32 %v616_v55, %v457_v53  ;;  %v9372_v52 = vld [vmem:[%s13055_s1 + $0x90] sm:$0xff]  ;;  %v9377_v53 = vld [vmem:[%s13055_s1 + $0x78] sm:$0xff]  ;;  %v9384_v54 = vld [vmem:[%s13055_s1 + $0xa0] sm:$0xff] }
  0xf4   :  { %v9389_v55 = vld [vmem:[%s13055_s1 + $0x88] sm:$0xff] }
  0xf5   :  { %802 = vrot.lane.b32.xlu0 %v709_v57, %s8749_s20  ;;  %800 = vrot.lane.b32.xlu1 %v708_v56, %s8749_s20  ;;  %v9396_v56 = vld [vmem:[%s13055_s1 + $0xb0] sm:$0xff]  ;;  %v9401_v57 = vld [vmem:[%s13055_s1 + $0x98] sm:$0xff] }
  0xf6   :  { %v621_v60 = vpop.permute.xlu1 %620  ;;  %v626_v61 = vpop.permute.xlu0 %625 }
  0xf7   :  { %v710_v62 = vmul.f32 %v621_v60, %v458_v58  ;;  %v711_v63 = vmul.f32 %v626_v61, %v459_v59  ;;  %v9408_v58 = vld [vmem:[%s13055_s1 + $0xc0] sm:$0xff]  ;;  %v9413_v59 = vld [vmem:[%s13055_s1 + $0xa8] sm:$0xff] }
  0xf9   :  { %806 = vrot.lane.b32.xlu0 %v711_v63, %s8749_s20  ;;  %804 = vrot.lane.b32.xlu1 %v710_v62, %s8749_s20  ;;  %v9422_v62 = vld [vmem:[%s13055_s1 + $0xd0] sm:$0xff]  ;;  %v9427_v63 = vld [vmem:[%s13055_s1 + $0xb8] sm:$0xff] }
  0xfa   :  { %v631_v12 = vpop.permute.xlu1 %630  ;;  %v636_v13 = vpop.permute.xlu0 %635 }
  0xfb   :  { %v712_v14 = vmul.f32 %v631_v12, %v460_v0  ;;  %v713_v15 = vmul.f32 %v636_v13, %v461_v3  ;;  %v9436_v12 = vld [vmem:[%s13055_s1 + $0xe0] sm:$0xff]  ;;  %v9441_v13 = vld [vmem:[%s13055_s1 + $0xc8] sm:$0xff] }
  0xfd   :  { %810 = vrot.lane.b32.xlu0 %v713_v15, %s8749_s20  ;;  %808 = vrot.lane.b32.xlu1 %v712_v14, %s8749_s20 }
  0xfe   :  { %v641_v18 = vpop.permute.xlu1 %640  ;;  %v646_v19 = vpop.permute.xlu0 %645 }
  0xff   :  { %v714_v20 = vmul.f32 %v641_v18, %v462_v16  ;;  %v715_v1 = vmul.f32 %v646_v19, %v463_v17  ;;  %v9450_v16 = vld [vmem:[%s13055_s1 + $0xf0] sm:$0xff]  ;;  %v9455_v17 = vld [vmem:[%s13055_s1 + $0xd8] sm:$0xff] }
 0x101   :  { %814 = vrot.lane.b32.xlu0 %v715_v1, %s8749_s20  ;;  %812 = vrot.lane.b32.xlu1 %v714_v20, %s8749_s20  ;;  %v9464_v20 = vld [vmem:[%s13055_s1 + $0x100] sm:$0xff]  ;;  %v9469_v1 = vld [vmem:[%s13055_s1 + $0xe8] sm:$0xff] }
 0x102   :  { %v651_v5 = vpop.permute.xlu1 %650  ;;  %v656_v6 = vpop.permute.xlu0 %655 }
 0x103   :  { %v716_v7 = vmul.f32 %v651_v5, %v464_v2  ;;  %v717_v8 = vmul.f32 %v656_v6, %v465_v4  ;;  %v9478_v5 = vld [vmem:[%s13055_s1 + $0x110] sm:$0xff]  ;;  %v9483_v6 = vld [vmem:[%s13055_s1 + $0xf8] sm:$0xff] }
 0x105   :  { %818 = vrot.lane.b32.xlu0 %v717_v8, %s8749_s20  ;;  %816 = vrot.lane.b32.xlu1 %v716_v7, %s8749_s20 }
 0x106   :  { %v661_v11 = vpop.permute.xlu1 %660  ;;  %v666_v21 = vpop.permute.xlu0 %665 }
 0x107   :  { %v718_v22 = vmul.f32 %v661_v11, %v466_v9  ;;  %v719_v23 = vmul.f32 %v666_v21, %v467_v10  ;;  %v9492_v9 = vld [vmem:[%s13055_s1 + $0x108] sm:$0xff]  ;;  %v9500_v21 = vld [vmem:[%s13055_s1 + $0x118] sm:$0xff] }
 0x109   :  { %822 = vrot.lane.b32.xlu0 %v719_v23, %s8749_s20  ;;  %820 = vrot.lane.b32.xlu1 %v718_v22, %s8749_s20 }
 0x10a   :  { %v671_v26 = vpop.permute.xlu1 %670  ;;  %v676_v27 = vpop.permute.xlu0 %675 }
 0x10b   :  { %v720_v28 = vmul.f32 %v671_v26, %v468_v24  ;;  %v721_v29 = vmul.f32 %v676_v27, %v469_v25  ;;  %v8750_v24 = vmov 3  }
 0x10d   :  { %826 = vrot.lane.b32.xlu0 %v721_v29, %s8749_s20  ;;  %824 = vrot.lane.b32.xlu1 %v720_v28, %s8749_s20 }
 0x10e   :  { %v681_v32 = vpop.permute.xlu1 %680  ;;  %v686_v33 = vpop.permute.xlu0 %685 }
 0x10f   :  { %v722_v34 = vmul.f32 %v681_v32, %v470_v30  ;;  %v723_v35 = vmul.f32 %v686_v33, %v471_v31 }
 0x111   :  { %830 = vrot.lane.b32.xlu0 %v723_v35, %s8749_s20  ;;  %828 = vrot.lane.b32.xlu1 %v722_v34, %s8749_s20 }
 0x115   :  { %984 = vperm.xlu0 %8669, %v9276_v36   ;;  %979 = vperm.xlu1 %8668, %v9281_v37  }
 0x119   :  { %999 = vperm.xlu0 %8669, %v9288_v38   ;;  %989 = vperm.xlu1 %8668, %v9293_v39  }
 0x11d   :  { %1009 = vperm.xlu0 %8669, %v9300_v40   ;;  %994 = vperm.xlu1 %8668, %v9305_v41  }
 0x121   :  { %1019 = vperm.xlu0 %8669, %v9312_v42   ;;  %1004 = vperm.xlu1 %8668, %v9317_v43  }
 0x125   :  { %1029 = vperm.xlu0 %8669, %v9324_v44   ;;  %1014 = vperm.xlu1 %8668, %v9329_v45  }
 0x129   :  { %1039 = vperm.xlu0 %8669, %v9336_v46   ;;  %1024 = vperm.xlu1 %8668, %v9341_v47  }
 0x12d   :  { %1049 = vperm.xlu0 %8669, %v9348_v48   ;;  %1034 = vperm.xlu1 %8668, %v9353_v49  }
 0x131   :  { %1059 = vperm.xlu0 %8669, %v9360_v50   ;;  %1044 = vperm.xlu1 %8668, %v9365_v51  }
 0x135   :  { %1069 = vperm.xlu0 %8669, %v9372_v52   ;;  %1054 = vperm.xlu1 %8668, %v9377_v53  }
 0x139   :  { %1079 = vperm.xlu0 %8669, %v9384_v54   ;;  %1064 = vperm.xlu1 %8668, %v9389_v55  }
 0x13d   :  { %1089 = vperm.xlu0 %8669, %v9396_v56   ;;  %1074 = vperm.xlu1 %8668, %v9401_v57  }
 0x13f   :  { %v763_v60 = vpop.permute.xlu0 %762  ;;  %v761_v61 = vpop.permute.xlu1 %760 }
 0x140   :  { %870 = vst.msk [vmem:[#allocation3 + $0x10] sm:$0xff] %vm868_vm1, %v763_v60  ;;  %869 = vst.msk [vmem:[#allocation3] sm:$0xff] %vm868_vm1, %v761_v61 }
 0x141   :  { %1099 = vperm.xlu0 %8669, %v9408_v58   ;;  %1084 = vperm.xlu1 %8668, %v9413_v59  }
 0x143   :  { %v767_v0 = vpop.permute.xlu0 %766  ;;  %v765_v3 = vpop.permute.xlu1 %764 }
 0x144   :  { %872 = vst.msk [vmem:[#allocation3 + $0x30] sm:$0xff] %vm868_vm1, %v767_v0  ;;  %871 = vst.msk [vmem:[#allocation3 + $0x20] sm:$0xff] %vm868_vm1, %v765_v3 }
 0x145   :  { %1109 = vperm.xlu0 %8669, %v9422_v62   ;;  %1094 = vperm.xlu1 %8668, %v9427_v63  }
 0x147   :  { %v771_v14 = vpop.permute.xlu0 %770  ;;  %v769_v15 = vpop.permute.xlu1 %768 }
 0x148   :  { %874 = vst.msk [vmem:[#allocation3 + $0x50] sm:$0xff] %vm868_vm1, %v771_v14  ;;  %873 = vst.msk [vmem:[#allocation3 + $0x40] sm:$0xff] %vm868_vm1, %v769_v15 }
 0x149   :  { %1119 = vperm.xlu0 %8669, %v9436_v12   ;;  %1104 = vperm.xlu1 %8668, %v9441_v13  }
 0x14b   :  { %v775_v18 = vpop.permute.xlu0 %774  ;;  %v773_v19 = vpop.permute.xlu1 %772 }
 0x14c   :  { %876 = vst.msk [vmem:[#allocation3 + $0x70] sm:$0xff] %vm868_vm1, %v775_v18  ;;  %875 = vst.msk [vmem:[#allocation3 + $0x60] sm:$0xff] %vm868_vm1, %v773_v19 }
 0x14d   :  { %1129 = vperm.xlu0 %8669, %v9450_v16   ;;  %1114 = vperm.xlu1 %8668, %v9455_v17  }
 0x14f   :  { %v779_v2 = vpop.permute.xlu0 %778  ;;  %v777_v4 = vpop.permute.xlu1 %776 }
 0x150   :  { %878 = vst.msk [vmem:[#allocation3 + $0x90] sm:$0xff] %vm868_vm1, %v779_v2  ;;  %877 = vst.msk [vmem:[#allocation3 + $0x80] sm:$0xff] %vm868_vm1, %v777_v4  ;;  %v906_v4 = vld [vmem:[#allocation2 + $0x45] sm:$0xff] }
 0x151   :  { %1139 = vperm.xlu0 %8669, %v9464_v20   ;;  %1124 = vperm.xlu1 %8668, %v9469_v1  }
 0x153   :  { %v783_v7 = vpop.permute.xlu0 %782  ;;  %v781_v8 = vpop.permute.xlu1 %780 }
 0x154   :  { %880 = vst.msk [vmem:[#allocation3 + $0xb0] sm:$0xff] %vm868_vm1, %v783_v7  ;;  %879 = vst.msk [vmem:[#allocation3 + $0xa0] sm:$0xff] %vm868_vm1, %v781_v8  ;;  %v905_v7 = vld [vmem:[#allocation2 + $0x3d] sm:$0xff] }
 0x155   :  { %1149 = vperm.xlu0 %8669, %v9478_v5   ;;  %1134 = vperm.xlu1 %8668, %v9483_v6  }
 0x157   :  { %v787_v10 = vpop.permute.xlu0 %786  ;;  %v785_v11 = vpop.permute.xlu1 %784 }
 0x158   :  { %882 = vst.msk [vmem:[#allocation3 + $0xd0] sm:$0xff] %vm868_vm1, %v787_v10  ;;  %881 = vst.msk [vmem:[#allocation3 + $0xc0] sm:$0xff] %vm868_vm1, %v785_v11 }
 0x159   :  { %1144 = vperm.xlu1 %8668, %v9492_v9   ;;  %8670 = vset.pattern.permute.xlu0 %v8750_v24 }
 0x15b   :  { %v791_v22 = vpop.permute.xlu0 %790  ;;  %v789_v23 = vpop.permute.xlu1 %788 }
 0x15c   :  { %884 = vst.msk [vmem:[#allocation3 + $0xf0] sm:$0xff] %vm868_vm1, %v791_v22  ;;  %883 = vst.msk [vmem:[#allocation3 + $0xe0] sm:$0xff] %vm868_vm1, %v789_v23  ;;  %v907_v23 = vld [vmem:[#allocation2 + $0x4d] sm:$0xff] }
 0x15d   :  { %1154 = vperm.xlu1 %8668, %v9500_v21  }
 0x15f   :  { %v795_v25 = vpop.permute.xlu0 %794  ;;  %v793_v26 = vpop.permute.xlu1 %792 }
 0x160   :  { %886 = vst.msk [vmem:[#allocation3 + $0x110] sm:$0xff] %vm868_vm1, %v795_v25  ;;  %885 = vst.msk [vmem:[#allocation3 + $0x100] sm:$0xff] %vm868_vm1, %v793_v26 }
 0x161   :  { %8671 = vset.pattern.permute.xlu1 %v8750_v24 }
 0x163   :  { %v799_v27 = vpop.permute.xlu0 %798  ;;  %v797_v28 = vpop.permute.xlu1 %796 }
 0x164   :  { %888 = vst.msk [vmem:[#allocation3 + $0x130] sm:$0xff] %vm868_vm1, %v799_v27  ;;  %887 = vst.msk [vmem:[#allocation3 + $0x120] sm:$0xff] %vm868_vm1, %v797_v28  ;;  %v909_v27 = vld [vmem:[#allocation2 + $0x5d] sm:$0xff]  ;;  %v908_v28 = vld [vmem:[#allocation2 + $0x55] sm:$0xff] }
 0x167   :  { %v803_v29 = vpop.permute.xlu0 %802  ;;  %v801_v30 = vpop.permute.xlu1 %800 }
 0x168   :  { %890 = vst.msk [vmem:[#allocation3 + $0x150] sm:$0xff] %vm868_vm1, %v803_v29  ;;  %889 = vst.msk [vmem:[#allocation3 + $0x140] sm:$0xff] %vm868_vm1, %v801_v30 }
 0x16b   :  { %v807_v31 = vpop.permute.xlu0 %806  ;;  %v805_v32 = vpop.permute.xlu1 %804 }
 0x16c   :  { %892 = vst.msk [vmem:[#allocation3 + $0x170] sm:$0xff] %vm868_vm1, %v807_v31  ;;  %891 = vst.msk [vmem:[#allocation3 + $0x160] sm:$0xff] %vm868_vm1, %v805_v32 }
 0x16f   :  { %v811_v33 = vpop.permute.xlu0 %810  ;;  %v809_v34 = vpop.permute.xlu1 %808 }
 0x170   :  { %894 = vst.msk [vmem:[#allocation3 + $0x190] sm:$0xff] %vm868_vm1, %v811_v33  ;;  %893 = vst.msk [vmem:[#allocation3 + $0x180] sm:$0xff] %vm868_vm1, %v809_v34  ;;  %v911_v33 = vld [vmem:[#allocation2 + $0x6d] sm:$0xff]  ;;  %v910_v34 = vld [vmem:[#allocation2 + $0x65] sm:$0xff] }
 0x173   :  { %v815_v35 = vpop.permute.xlu0 %814  ;;  %v813_v60 = vpop.permute.xlu1 %812 }
 0x174   :  { %896 = vst.msk [vmem:[#allocation3 + $0x1b0] sm:$0xff] %vm868_vm1, %v815_v35  ;;  %895 = vst.msk [vmem:[#allocation3 + $0x1a0] sm:$0xff] %vm868_vm1, %v813_v60 }
 0x177   :  { %v819_v61 = vpop.permute.xlu0 %818  ;;  %v817_v0 = vpop.permute.xlu1 %816 }
 0x178   :  { %898 = vst.msk [vmem:[#allocation3 + $0x1d0] sm:$0xff] %vm868_vm1, %v819_v61  ;;  %897 = vst.msk [vmem:[#allocation3 + $0x1c0] sm:$0xff] %vm868_vm1, %v817_v0 }
 0x17b   :  { %v823_v3 = vpop.permute.xlu0 %822  ;;  %v821_v14 = vpop.permute.xlu1 %820 }
 0x17c   :  { %900 = vst.msk [vmem:[#allocation3 + $0x1f0] sm:$0xff] %vm868_vm1, %v823_v3  ;;  %899 = vst.msk [vmem:[#allocation3 + $0x1e0] sm:$0xff] %vm868_vm1, %v821_v14  ;;  %v913_v3 = vld [vmem:[#allocation2 + $0x7d] sm:$0xff]  ;;  %v912_v14 = vld [vmem:[#allocation2 + $0x75] sm:$0xff] }
 0x17f   :  { %v827_v15 = vpop.permute.xlu0 %826  ;;  %v825_v18 = vpop.permute.xlu1 %824 }
 0x180   :  { %902 = vst.msk [vmem:[#allocation3 + $0x210] sm:$0xff] %vm868_vm1, %v827_v15  ;;  %901 = vst.msk [vmem:[#allocation3 + $0x200] sm:$0xff] %vm868_vm1, %v825_v18 }
 0x183   :  { %v831_v19 = vpop.permute.xlu0 %830  ;;  %v829_v2 = vpop.permute.xlu1 %828 }
 0x184   :  { %904 = vst.msk [vmem:[#allocation3 + $0x230] sm:$0xff] %vm868_vm1, %v831_v19  ;;  %903 = vst.msk [vmem:[#allocation3 + $0x220] sm:$0xff] %vm868_vm1, %v829_v2 }
 0x194   :  { %v985_v8 = vpop.permute.xlu0 %984  ;;  %v980_v10 = vpop.permute.xlu1 %979 }
 0x195   :  { %v1158_v11 = vmul.f32 %v985_v8, %v906_v4  ;;  %v1157_v22 = vmul.f32 %v980_v10, %v905_v7  ;;  %v915_v4 = vld [vmem:[#allocation2 + $0x8d] sm:$0xff]  ;;  %v914_v7 = vld [vmem:[#allocation2 + $0x85] sm:$0xff] }
 0x197   :  { %1229 = vrot.lane.b32.xlu0 %v1157_v22, %s8751_s21  ;;  %1231 = vrot.lane.b32.xlu1 %v1158_v11, %s8751_s21 }
 0x198   :  { %v1000_v24 = vpop.permute.xlu0 %999  ;;  %v990_v25 = vpop.permute.xlu1 %989 }
 0x199   :  { %v1159_v26 = vmul.f32 %v990_v25, %v907_v23  ;;  %v1161_v31 = vmul.f32 %v1000_v24, %v909_v27  ;;  %v917_v23 = vld [vmem:[#allocation2 + $0x9d] sm:$0xff]  ;;  %v916_v24 = vld [vmem:[#allocation2 + $0x95] sm:$0xff] }
 0x19b   :  { %1233 = vrot.lane.b32.xlu0 %v1159_v26, %s8751_s21 }
 0x19c   :  { %v1010_v29 = vpop.permute.xlu0 %1009  ;;  %v995_v30 = vpop.permute.xlu1 %994 }
 0x19d   :  { %v1160_v32 = vmul.f32 %v995_v30, %v908_v28  ;;  %v1163_v61 = vmul.f32 %v1010_v29, %v911_v33  ;;  %v919_v29 = vld [vmem:[#allocation2 + $0xad] sm:$0xff]  ;;  %v918_v30 = vld [vmem:[#allocation2 + $0xa5] sm:$0xff] }
 0x19f   :  { %1237 = vrot.lane.b32.xlu0 %v1161_v31, %s8751_s21  ;;  %1235 = vrot.lane.b32.xlu1 %v1160_v32, %s8751_s21 }
 0x1a0   :  { %v1020_v35 = vpop.permute.xlu0 %1019  ;;  %v1005_v60 = vpop.permute.xlu1 %1004 }
 0x1a1   :  { %v1162_v0 = vmul.f32 %v1005_v60, %v910_v34  ;;  %v1165_v19 = vmul.f32 %v1020_v35, %v913_v3  ;;  %v921_v35 = vld [vmem:[#allocation2 + $0xbd] sm:$0xff]  ;;  %v920_v60 = vld [vmem:[#allocation2 + $0xb5] sm:$0xff] }
 0x1a3   :  { %1241 = vrot.lane.b32.xlu0 %v1163_v61, %s8751_s21  ;;  %1239 = vrot.lane.b32.xlu1 %v1162_v0, %s8751_s21 }
 0x1a4   :  { %v1030_v15 = vpop.permute.xlu0 %1029  ;;  %v1015_v18 = vpop.permute.xlu1 %1014 }
 0x1a5   :  { %v1164_v2 = vmul.f32 %v1015_v18, %v912_v14  ;;  %v1167_v11 = vmul.f32 %v1030_v15, %v915_v4  ;;  %v923_v15 = vld [vmem:[#allocation2 + $0xcd] sm:$0xff]  ;;  %v922_v18 = vld [vmem:[#allocation2 + $0xc5] sm:$0xff] }
 0x1a7   :  { %1245 = vrot.lane.b32.xlu0 %v1165_v19, %s8751_s21  ;;  %1243 = vrot.lane.b32.xlu1 %v1164_v2, %s8751_s21 }
 0x1a8   :  { %v1040_v8 = vpop.permute.xlu0 %1039  ;;  %v1025_v10 = vpop.permute.xlu1 %1024 }
 0x1a9   :  { %v1166_v22 = vmul.f32 %v1025_v10, %v914_v7  ;;  %v1169_v27 = vmul.f32 %v1040_v8, %v917_v23  ;;  %v925_v8 = vld [vmem:[#allocation2 + $0xdd] sm:$0xff]  ;;  %v924_v10 = vld [vmem:[#allocation2 + $0xd5] sm:$0xff] }
 0x1ab   :  { %1249 = vrot.lane.b32.xlu0 %v1167_v11, %s8751_s21  ;;  %1247 = vrot.lane.b32.xlu1 %v1166_v22, %s8751_s21 }
 0x1ac   :  { %v1050_v25 = vpop.permute.xlu0 %1049  ;;  %v1035_v26 = vpop.permute.xlu1 %1034 }
 0x1ad   :  { %v1168_v28 = vmul.f32 %v1035_v26, %v916_v24  ;;  %v1171_v33 = vmul.f32 %v1050_v25, %v919_v29  ;;  %v927_v25 = vld [vmem:[#allocation2 + $0xed] sm:$0xff]  ;;  %v926_v26 = vld [vmem:[#allocation2 + $0xe5] sm:$0xff] }
 0x1af   :  { %1253 = vrot.lane.b32.xlu0 %v1169_v27, %s8751_s21  ;;  %1251 = vrot.lane.b32.xlu1 %v1168_v28, %s8751_s21 }
 0x1b0   :  { %v1060_v31 = vpop.permute.xlu0 %1059  ;;  %v1045_v32 = vpop.permute.xlu1 %1044 }
 0x1b1   :  { %v1170_v34 = vmul.f32 %v1045_v32, %v918_v30  ;;  %v1173_v3 = vmul.f32 %v1060_v31, %v921_v35  ;;  %v929_v31 = vld [vmem:[#allocation2 + $0xfd] sm:$0xff]  ;;  %v928_v32 = vld [vmem:[#allocation2 + $0xf5] sm:$0xff] }
 0x1b3   :  { %1257 = vrot.lane.b32.xlu0 %v1171_v33, %s8751_s21  ;;  %1255 = vrot.lane.b32.xlu1 %v1170_v34, %s8751_s21 }
 0x1b4   :  { %v1070_v61 = vpop.permute.xlu0 %1069  ;;  %v1055_v0 = vpop.permute.xlu1 %1054 }
 0x1b5   :  { %v1172_v14 = vmul.f32 %v1055_v0, %v920_v60  ;;  %v1175_v4 = vmul.f32 %v1070_v61, %v923_v15  ;;  %v931_v61 = vld [vmem:[#allocation2 + $0x10d] sm:$0xff]  ;;  %v930_v0 = vld [vmem:[#allocation2 + $0x105] sm:$0xff] }
 0x1b7   :  { %1261 = vrot.lane.b32.xlu0 %v1173_v3, %s8751_s21  ;;  %1259 = vrot.lane.b32.xlu1 %v1172_v14, %s8751_s21 }
 0x1b8   :  { %v1080_v19 = vpop.permute.xlu0 %1079  ;;  %v1065_v2 = vpop.permute.xlu1 %1064 }
 0x1b9   :  { %v1174_v7 = vmul.f32 %v1065_v2, %v922_v18  ;;  %v1177_v23 = vmul.f32 %v1080_v19, %v925_v8  ;;  %v933_v19 = vld [vmem:[#allocation2 + $0x11d] sm:$0xff]  ;;  %v932_v2 = vld [vmem:[#allocation2 + $0x115] sm:$0xff] }
 0x1bb   :  { %1265 = vrot.lane.b32.xlu0 %v1175_v4, %s8751_s21  ;;  %1263 = vrot.lane.b32.xlu1 %v1174_v7, %s8751_s21 }
 0x1bc   :  { %v1090_v11 = vpop.permute.xlu0 %1089  ;;  %v1075_v22 = vpop.permute.xlu1 %1074 }
 0x1bd   :  { %v1176_v24 = vmul.f32 %v1075_v22, %v924_v10  ;;  %v1179_v29 = vmul.f32 %v1090_v11, %v927_v25  ;;  %v935_v11 = vld [vmem:[#allocation2 + $0x12d] sm:$0xff]  ;;  %v934_v22 = vld [vmem:[#allocation2 + $0x125] sm:$0xff] }
 0x1bf   :  { %1269 = vrot.lane.b32.xlu0 %v1177_v23, %s8751_s21  ;;  %1267 = vrot.lane.b32.xlu1 %v1176_v24, %s8751_s21 }
 0x1c0   :  { %v1100_v27 = vpop.permute.xlu0 %1099  ;;  %v1085_v28 = vpop.permute.xlu1 %1084 }
 0x1c1   :  { %v1178_v30 = vmul.f32 %v1085_v28, %v926_v26  ;;  %v1181_v35 = vmul.f32 %v1100_v27, %v929_v31  ;;  %v937_v27 = vld [vmem:[#allocation2 + $0x13d] sm:$0xff]  ;;  %v936_v28 = vld [vmem:[#allocation2 + $0x135] sm:$0xff] }
 0x1c3   :  { %1273 = vrot.lane.b32.xlu0 %v1179_v29, %s8751_s21  ;;  %1271 = vrot.lane.b32.xlu1 %v1178_v30, %s8751_s21 }
 0x1c4   :  { %v1110_v33 = vpop.permute.xlu0 %1109  ;;  %v1095_v34 = vpop.permute.xlu1 %1094 }
 0x1c5   :  { %v1180_v60 = vmul.f32 %v1095_v34, %v928_v32  ;;  %v1183_v15 = vmul.f32 %v1110_v33, %v931_v61  ;;  %v939_v32 = vld [vmem:[#allocation2 + $0x14d] sm:$0xff]  ;;  %v938_v34 = vld [vmem:[#allocation2 + $0x145] sm:$0xff] }
 0x1c7   :  { %1277 = vrot.lane.b32.xlu0 %v1181_v35, %s8751_s21  ;;  %1275 = vrot.lane.b32.xlu1 %v1180_v60, %s8751_s21 }
 0x1c8   :  { %v1120_v3 = vpop.permute.xlu0 %1119  ;;  %v1105_v14 = vpop.permute.xlu1 %1104 }
 0x1c9   :  { %v1182_v18 = vmul.f32 %v1105_v14, %v930_v0  ;;  %v1185_v8 = vmul.f32 %v1120_v3, %v933_v19  ;;  %v940_v0 = vld [vmem:[#allocation2 + $0x155] sm:$0xff] }
 0x1cb   :  { %1281 = vrot.lane.b32.xlu0 %v1183_v15, %s8751_s21  ;;  %1279 = vrot.lane.b32.xlu1 %v1182_v18, %s8751_s21  ;;  %v1374_v15 = vld [vmem:[#allocation2 + $0x3f] sm:$0xff] }
 0x1cc   :  { %v1130_v4 = vpop.permute.xlu0 %1129  ;;  %v1115_v7 = vpop.permute.xlu1 %1114 }
 0x1cd   :  { %v1184_v10 = vmul.f32 %v1115_v7, %v932_v2  ;;  %v1187_v25 = vmul.f32 %v1130_v4, %v935_v11  ;;  %v1375_v2 = vld [vmem:[#allocation2 + $0x47] sm:$0xff]  ;;  %v1376_v11 = vld [vmem:[#allocation2 + $0x4f] sm:$0xff] }
 0x1cf   :  { %1285 = vrot.lane.b32.xlu0 %v1185_v8, %s8751_s21  ;;  %1283 = vrot.lane.b32.xlu1 %v1184_v10, %s8751_s21  ;;  %v1377_v10 = vld [vmem:[#allocation2 + $0x57] sm:$0xff] }
 0x1d0   :  { %v1140_v23 = vpop.permute.xlu0 %1139  ;;  %v1125_v24 = vpop.permute.xlu1 %1124 }
 0x1d1   :  { %v1186_v26 = vmul.f32 %v1125_v24, %v934_v22  ;;  %v1189_v30 = vmul.f32 %v1140_v23, %v937_v27  ;;  %v1378_v27 = vld [vmem:[#allocation2 + $0x5f] sm:$0xff] }
 0x1d3   :  { %1289 = vrot.lane.b32.xlu0 %v1187_v25, %s8751_s21  ;;  %1287 = vrot.lane.b32.xlu1 %v1186_v26, %s8751_s21  ;;  %v1379_v26 = vld [vmem:[#allocation2 + $0x67] sm:$0xff] }
 0x1d4   :  { %v1135_v29 = vpop.permute.xlu1 %1134  ;;  %v1150_v33 = vpop.permute.xlu0 %1149 }
 0x1d5   :  { %v1188_v31 = vmul.f32 %v1135_v29, %v936_v28  ;;  %v1191_v60 = vmul.f32 %v1150_v33, %v939_v32  ;;  %v1381_v32 = vld [vmem:[#allocation2 + $0x77] sm:$0xff]  ;;  %v1380_v33 = vld [vmem:[#allocation2 + $0x6f] sm:$0xff] }
 0x1d7   :  { %1293 = vrot.lane.b32.xlu0 %v1189_v30, %s8751_s21  ;;  %1291 = vrot.lane.b32.xlu1 %v1188_v31, %s8751_s21 }
 0x1d8   :  { %v1145_v35 = vpop.permute.xlu1 %1144 }
 0x1d9   :  { %v1190_v61 = vmul.f32 %v1145_v35, %v938_v34 }
 0x1db   :  { %1297 = vrot.lane.b32.xlu0 %v1191_v60, %s8751_s21  ;;  %1295 = vrot.lane.b32.xlu1 %v1190_v61, %s8751_s21 }
 0x1dc   :  { %v1155_v3 = vpop.permute.xlu1 %1154 }
 0x1dd   :  { %v1192_v14 = vmul.f32 %v1155_v3, %v940_v0  ;;  %v1383_v0 = vld [vmem:[#allocation2 + $0x87] sm:$0xff]  ;;  %v1382_v3 = vld [vmem:[#allocation2 + $0x7f] sm:$0xff] }
 0x1df   :  { %1448 = vperm.xlu0 %8670, %v9281_v37   ;;  %1299 = vrot.lane.b32.xlu1 %v1192_v14, %s8751_s21 }
 0x1e3   :  { %1463 = vperm.xlu0 %8670, %v9305_v41   ;;  %1453 = vperm.xlu1 %8671, %v9276_v36  }
 0x1e7   :  { %1473 = vperm.xlu0 %8670, %v9317_v43   ;;  %1458 = vperm.xlu1 %8671, %v9293_v39  }
 0x1eb   :  { %1483 = vperm.xlu0 %8670, %v9329_v45   ;;  %1468 = vperm.xlu1 %8671, %v9288_v38  }
 0x1ef   :  { %1493 = vperm.xlu0 %8670, %v9341_v47   ;;  %1478 = vperm.xlu1 %8671, %v9300_v40  }
 0x1f3   :  { %1503 = vperm.xlu0 %8670, %v9353_v49   ;;  %1488 = vperm.xlu1 %8671, %v9312_v42  }
 0x1f7   :  { %1513 = vperm.xlu0 %8670, %v9365_v51   ;;  %1498 = vperm.xlu1 %8671, %v9324_v44  }
 0x1fb   :  { %1523 = vperm.xlu0 %8670, %v9377_v53   ;;  %1508 = vperm.xlu1 %8671, %v9336_v46  }
 0x1ff   :  { %1533 = vperm.xlu0 %8670, %v9389_v55   ;;  %1518 = vperm.xlu1 %8671, %v9348_v48  }
 0x203   :  { %1543 = vperm.xlu0 %8670, %v9401_v57   ;;  %1528 = vperm.xlu1 %8671, %v9360_v50  }
 0x207   :  { %1553 = vperm.xlu0 %8670, %v9413_v59   ;;  %1538 = vperm.xlu1 %8671, %v9372_v52  }
 0x209   :  { %v1230_v36 = vpop.permute.xlu0 %1229  ;;  %v1232_v37 = vpop.permute.xlu1 %1231 }
 0x20a   :  { %1338 = vst.msk [vmem:[#allocation3] sm:$0xff] %vm1337_vm2, %v1230_v36  ;;  %1339 = vst.msk [vmem:[#allocation3 + $0x10] sm:$0xff] %vm1337_vm2, %v1232_v37 }
 0x20b   :  { %1563 = vperm.xlu0 %8670, %v9427_v63   ;;  %1548 = vperm.xlu1 %8671, %v9384_v54  }
 0x20d   :  { %v1234_v38 = vpop.permute.xlu0 %1233 }
 0x20e   :  { %1340 = vst.msk [vmem:[#allocation3 + $0x20] sm:$0xff] %vm1337_vm2, %v1234_v38 }
 0x20f   :  { %1573 = vperm.xlu0 %8670, %v9441_v13   ;;  %1558 = vperm.xlu1 %8671, %v9396_v56  }
 0x211   :  { %v1238_v39 = vpop.permute.xlu0 %1237  ;;  %v1236_v40 = vpop.permute.xlu1 %1235 }
 0x212   :  { %1342 = vst.msk [vmem:[#allocation3 + $0x40] sm:$0xff] %vm1337_vm2, %v1238_v39  ;;  %1341 = vst.msk [vmem:[#allocation3 + $0x30] sm:$0xff] %vm1337_vm2, %v1236_v40  ;;  %v1385_v39 = vld [vmem:[#allocation2 + $0x97] sm:$0xff]  ;;  %v1384_v40 = vld [vmem:[#allocation2 + $0x8f] sm:$0xff] }
 0x213   :  { %1583 = vperm.xlu0 %8670, %v9455_v17   ;;  %1568 = vperm.xlu1 %8671, %v9408_v58  }
 0x215   :  { %v1242_v41 = vpop.permute.xlu0 %1241  ;;  %v1240_v42 = vpop.permute.xlu1 %1239 }
 0x216   :  { %1344 = vst.msk [vmem:[#allocation3 + $0x60] sm:$0xff] %vm1337_vm2, %v1242_v41  ;;  %1343 = vst.msk [vmem:[#allocation3 + $0x50] sm:$0xff] %vm1337_vm2, %v1240_v42  ;;  %v8753_v41 = vmov 5  }
 0x217   :  { %1593 = vperm.xlu0 %8670, %v9469_v1   ;;  %1578 = vperm.xlu1 %8671, %v9422_v62  }
 0x219   :  { %v1246_v43 = vpop.permute.xlu0 %1245  ;;  %v1244_v44 = vpop.permute.xlu1 %1243 }
 0x21a   :  { %1346 = vst.msk [vmem:[#allocation3 + $0x80] sm:$0xff] %vm1337_vm2, %v1246_v43  ;;  %1345 = vst.msk [vmem:[#allocation3 + $0x70] sm:$0xff] %vm1337_vm2, %v1244_v44 }
 0x21b   :  { %1603 = vperm.xlu0 %8670, %v9483_v6   ;;  %1588 = vperm.xlu1 %8671, %v9436_v12  }
 0x21d   :  { %v1250_v45 = vpop.permute.xlu0 %1249  ;;  %v1248_v46 = vpop.permute.xlu1 %1247 }
 0x21e   :  { %1348 = vst.msk [vmem:[#allocation3 + $0xa0] sm:$0xff] %vm1337_vm2, %v1250_v45  ;;  %1347 = vst.msk [vmem:[#allocation3 + $0x90] sm:$0xff] %vm1337_vm2, %v1248_v46  ;;  %v1387_v46 = vld [vmem:[#allocation2 + $0xa7] sm:$0xff] }
 0x21f   :  { %1613 = vperm.xlu0 %8670, %v9492_v9   ;;  %1598 = vperm.xlu1 %8671, %v9450_v16  }
 0x221   :  { %v1254_v47 = vpop.permute.xlu0 %1253  ;;  %v1252_v48 = vpop.permute.xlu1 %1251 }
 0x222   :  { %1350 = vst.msk [vmem:[#allocation3 + $0xc0] sm:$0xff] %vm1337_vm2, %v1254_v47  ;;  %1349 = vst.msk [vmem:[#allocation3 + $0xb0] sm:$0xff] %vm1337_vm2, %v1252_v48  ;;  %v1386_v47 = vld [vmem:[#allocation2 + $0x9f] sm:$0xff] }
 0x223   :  { %1623 = vperm.xlu0 %8670, %v9500_v21   ;;  %1608 = vperm.xlu1 %8671, %v9464_v20  }
 0x225   :  { %v1258_v49 = vpop.permute.xlu0 %1257  ;;  %v1256_v50 = vpop.permute.xlu1 %1255 }
 0x226   :  { %1352 = vst.msk [vmem:[#allocation3 + $0xe0] sm:$0xff] %vm1337_vm2, %v1258_v49  ;;  %1351 = vst.msk [vmem:[#allocation3 + $0xd0] sm:$0xff] %vm1337_vm2, %v1256_v50 }
 0x227   :  { %1618 = vperm.xlu1 %8671, %v9478_v5   ;;  %8673 = vset.pattern.permute.xlu0 %v8753_v41 }
 0x229   :  { %v1262_v51 = vpop.permute.xlu0 %1261  ;;  %v1260_v52 = vpop.permute.xlu1 %1259 }
 0x22a   :  { %1354 = vst.msk [vmem:[#allocation3 + $0x100] sm:$0xff] %vm1337_vm2, %v1262_v51  ;;  %1353 = vst.msk [vmem:[#allocation3 + $0xf0] sm:$0xff] %vm1337_vm2, %v1260_v52  ;;  %v1389_v52 = vld [vmem:[#allocation2 + $0xb7] sm:$0xff] }
 0x22b   :  { %8672 = vset.pattern.permute.xlu1 %v8753_v41 }
 0x22d   :  { %v1266_v53 = vpop.permute.xlu0 %1265  ;;  %v1264_v54 = vpop.permute.xlu1 %1263 }
 0x22e   :  { %1356 = vst.msk [vmem:[#allocation3 + $0x120] sm:$0xff] %vm1337_vm2, %v1266_v53  ;;  %1355 = vst.msk [vmem:[#allocation3 + $0x110] sm:$0xff] %vm1337_vm2, %v1264_v54  ;;  %v1388_v53 = vld [vmem:[#allocation2 + $0xaf] sm:$0xff] }
 0x231   :  { %v1270_v55 = vpop.permute.xlu0 %1269  ;;  %v1268_v56 = vpop.permute.xlu1 %1267 }
 0x232   :  { %1358 = vst.msk [vmem:[#allocation3 + $0x140] sm:$0xff] %vm1337_vm2, %v1270_v55  ;;  %1357 = vst.msk [vmem:[#allocation3 + $0x130] sm:$0xff] %vm1337_vm2, %v1268_v56 }
 0x235   :  { %v1274_v57 = vpop.permute.xlu0 %1273  ;;  %v1272_v58 = vpop.permute.xlu1 %1271 }
 0x236   :  { %1360 = vst.msk [vmem:[#allocation3 + $0x160] sm:$0xff] %vm1337_vm2, %v1274_v57  ;;  %1359 = vst.msk [vmem:[#allocation3 + $0x150] sm:$0xff] %vm1337_vm2, %v1272_v58  ;;  %v1391_v58 = vld [vmem:[#allocation2 + $0xc7] sm:$0xff] }
 0x239   :  { %v1278_v59 = vpop.permute.xlu0 %1277  ;;  %v1276_v62 = vpop.permute.xlu1 %1275 }
 0x23a   :  { %1362 = vst.msk [vmem:[#allocation3 + $0x180] sm:$0xff] %vm1337_vm2, %v1278_v59  ;;  %1361 = vst.msk [vmem:[#allocation3 + $0x170] sm:$0xff] %vm1337_vm2, %v1276_v62  ;;  %v1390_v59 = vld [vmem:[#allocation2 + $0xbf] sm:$0xff] }
 0x23d   :  { %v1282_v63 = vpop.permute.xlu0 %1281  ;;  %v1280_v12 = vpop.permute.xlu1 %1279 }
 0x23e   :  { %1364 = vst.msk [vmem:[#allocation3 + $0x1a0] sm:$0xff] %vm1337_vm2, %v1282_v63  ;;  %1363 = vst.msk [vmem:[#allocation3 + $0x190] sm:$0xff] %vm1337_vm2, %v1280_v12 }
 0x241   :  { %v1286_v13 = vpop.permute.xlu0 %1285  ;;  %v1284_v16 = vpop.permute.xlu1 %1283 }
 0x242   :  { %1366 = vst.msk [vmem:[#allocation3 + $0x1c0] sm:$0xff] %vm1337_vm2, %v1286_v13  ;;  %1365 = vst.msk [vmem:[#allocation3 + $0x1b0] sm:$0xff] %vm1337_vm2, %v1284_v16  ;;  %v1393_v16 = vld [vmem:[#allocation2 + $0xd7] sm:$0xff] }
 0x245   :  { %v1290_v17 = vpop.permute.xlu0 %1289  ;;  %v1288_v20 = vpop.permute.xlu1 %1287 }
 0x246   :  { %1368 = vst.msk [vmem:[#allocation3 + $0x1e0] sm:$0xff] %vm1337_vm2, %v1290_v17  ;;  %1367 = vst.msk [vmem:[#allocation3 + $0x1d0] sm:$0xff] %vm1337_vm2, %v1288_v20  ;;  %v1392_v17 = vld [vmem:[#allocation2 + $0xcf] sm:$0xff] }
 0x249   :  { %v1294_v1 = vpop.permute.xlu0 %1293  ;;  %v1292_v5 = vpop.permute.xlu1 %1291 }
 0x24a   :  { %1370 = vst.msk [vmem:[#allocation3 + $0x200] sm:$0xff] %vm1337_vm2, %v1294_v1  ;;  %1369 = vst.msk [vmem:[#allocation3 + $0x1f0] sm:$0xff] %vm1337_vm2, %v1292_v5 }
 0x24d   :  { %v1298_v6 = vpop.permute.xlu0 %1297  ;;  %v1296_v9 = vpop.permute.xlu1 %1295 }
 0x24e   :  { %1372 = vst.msk [vmem:[#allocation3 + $0x220] sm:$0xff] %vm1337_vm2, %v1298_v6  ;;  %1371 = vst.msk [vmem:[#allocation3 + $0x210] sm:$0xff] %vm1337_vm2, %v1296_v9  ;;  %v1395_v9 = vld [vmem:[#allocation2 + $0xe7] sm:$0xff] }
 0x251   :  { %v1300_v21 = vpop.permute.xlu1 %1299 }
 0x252   :  { %1373 = vst.msk [vmem:[#allocation3 + $0x230] sm:$0xff] %vm1337_vm2, %v1300_v21  ;;  %v1394_v21 = vld [vmem:[#allocation2 + $0xdf] sm:$0xff] }
 0x25e   :  { %v1449_v18 = vpop.permute.xlu0 %1448 }
 0x25f   :  { %v1626_v19 = vmul.f32 %v1449_v18, %v1374_v15 }
 0x261   :  { %1698 = vrot.lane.b32.xlu1 %v1626_v19, %s8752_s22 }
 0x262   :  { %v1464_v4 = vpop.permute.xlu0 %1463  ;;  %v1454_v7 = vpop.permute.xlu1 %1453 }
 0x263   :  { %v1627_v8 = vmul.f32 %v1454_v7, %v1375_v2  ;;  %v1629_v24 = vmul.f32 %v1464_v4, %v1377_v10  ;;  %v1397_v4 = vld [vmem:[#allocation2 + $0xf7] sm:$0xff]  ;;  %v1396_v7 = vld [vmem:[#allocation2 + $0xef] sm:$0xff] }
 0x265   :  { %1700 = vrot.lane.b32.xlu0 %v1627_v8, %s8752_s22 }
 0x266   :  { %v1474_v22 = vpop.permute.xlu0 %1473  ;;  %v1459_v23 = vpop.permute.xlu1 %1458 }
 0x267   :  { %v1628_v25 = vmul.f32 %v1459_v23, %v1376_v11  ;;  %v1631_v30 = vmul.f32 %v1474_v22, %v1379_v26  ;;  %v1399_v23 = vld [vmem:[#allocation2 + $0x107] sm:$0xff] }
 0x269   :  { %1704 = vrot.lane.b32.xlu0 %v1629_v24, %s8752_s22  ;;  %1702 = vrot.lane.b32.xlu1 %v1628_v25, %s8752_s22  ;;  %v1398_v24 = vld [vmem:[#allocation2 + $0xff] sm:$0xff] }
 0x26a   :  { %v1484_v28 = vpop.permute.xlu0 %1483  ;;  %v1469_v29 = vpop.permute.xlu1 %1468 }
 0x26b   :  { %v1630_v31 = vmul.f32 %v1469_v29, %v1378_v27  ;;  %v1633_v60 = vmul.f32 %v1484_v28, %v1381_v32  ;;  %v1401_v29 = vld [vmem:[#allocation2 + $0x117] sm:$0xff] }
 0x26d   :  { %1708 = vrot.lane.b32.xlu0 %v1631_v30, %s8752_s22  ;;  %1706 = vrot.lane.b32.xlu1 %v1630_v31, %s8752_s22  ;;  %v1400_v30 = vld [vmem:[#allocation2 + $0x10f] sm:$0xff] }
 0x26e   :  { %v1494_v34 = vpop.permute.xlu0 %1493  ;;  %v1479_v35 = vpop.permute.xlu1 %1478 }
 0x26f   :  { %v1632_v61 = vmul.f32 %v1479_v35, %v1380_v33  ;;  %v1635_v37 = vmul.f32 %v1494_v34, %v1383_v0  ;;  %v1403_v35 = vld [vmem:[#allocation2 + $0x127] sm:$0xff] }
 0x271   :  { %1712 = vrot.lane.b32.xlu0 %v1633_v60, %s8752_s22  ;;  %1710 = vrot.lane.b32.xlu1 %v1632_v61, %s8752_s22  ;;  %v1402_v60 = vld [vmem:[#allocation2 + $0x11f] sm:$0xff] }
 0x272   :  { %v1504_v14 = vpop.permute.xlu0 %1503  ;;  %v1489_v36 = vpop.permute.xlu1 %1488 }
 0x273   :  { %v1634_v38 = vmul.f32 %v1489_v36, %v1382_v3  ;;  %v1637_v44 = vmul.f32 %v1504_v14, %v1385_v39  ;;  %v1405_v36 = vld [vmem:[#allocation2 + $0x137] sm:$0xff] }
 0x275   :  { %1716 = vrot.lane.b32.xlu0 %v1635_v37, %s8752_s22  ;;  %1714 = vrot.lane.b32.xlu1 %v1634_v38, %s8752_s22  ;;  %v1404_v37 = vld [vmem:[#allocation2 + $0x12f] sm:$0xff] }
 0x276   :  { %v1514_v42 = vpop.permute.xlu0 %1513  ;;  %v1499_v43 = vpop.permute.xlu1 %1498 }
 0x277   :  { %v1636_v45 = vmul.f32 %v1499_v43, %v1384_v40  ;;  %v1639_v50 = vmul.f32 %v1514_v42, %v1387_v46  ;;  %v1407_v42 = vld [vmem:[#allocation2 + $0x147] sm:$0xff]  ;;  %v1406_v43 = vld [vmem:[#allocation2 + $0x13f] sm:$0xff] }
 0x279   :  { %1720 = vrot.lane.b32.xlu0 %v1637_v44, %s8752_s22  ;;  %1718 = vrot.lane.b32.xlu1 %v1636_v45, %s8752_s22 }
 0x27a   :  { %v1524_v48 = vpop.permute.xlu0 %1523  ;;  %v1509_v49 = vpop.permute.xlu1 %1508 }
 0x27b   :  { %v1638_v51 = vmul.f32 %v1509_v49, %v1386_v47  ;;  %v1641_v56 = vmul.f32 %v1524_v48, %v1389_v52  ;;  %v1409_v47 = vld [vmem:[#allocation2 + $0x157] sm:$0xff]  ;;  %v1408_v49 = vld [vmem:[#allocation2 + $0x14f] sm:$0xff] }
 0x27d   :  { %1724 = vrot.lane.b32.xlu0 %v1639_v50, %s8752_s22  ;;  %1722 = vrot.lane.b32.xlu1 %v1638_v51, %s8752_s22 }
 0x27e   :  { %v1534_v54 = vpop.permute.xlu0 %1533  ;;  %v1519_v55 = vpop.permute.xlu1 %1518 }
 0x27f   :  { %v1640_v57 = vmul.f32 %v1519_v55, %v1388_v53  ;;  %v1643_v12 = vmul.f32 %v1534_v54, %v1391_v58  ;;  %v1844_v53 = vld [vmem:[#allocation2 + $0x48] sm:$0xff]  ;;  %v1843_v54 = vld [vmem:[#allocation2 + $0x40] sm:$0xff]  ;;  %v1846_v55 = vld [vmem:[#allocation2 + $0x58] sm:$0xff] }
 0x280   :  { %v1847_v58 = vld [vmem:[#allocation2 + $0x60] sm:$0xff] }
 0x281   :  { %1728 = vrot.lane.b32.xlu0 %v1641_v56, %s8752_s22  ;;  %1726 = vrot.lane.b32.xlu1 %v1640_v57, %s8752_s22  ;;  %v1845_v56 = vld [vmem:[#allocation2 + $0x50] sm:$0xff]  ;;  %v1848_v57 = vld [vmem:[#allocation2 + $0x68] sm:$0xff] }
 0x282   :  { %v1544_v62 = vpop.permute.xlu0 %1543  ;;  %v1529_v63 = vpop.permute.xlu1 %1528 }
 0x283   :  { %v1642_v13 = vmul.f32 %v1529_v63, %v1390_v59  ;;  %v1645_v5 = vmul.f32 %v1544_v62, %v1393_v16  ;;  %v1850_v59 = vld [vmem:[#allocation2 + $0x78] sm:$0xff]  ;;  %v1849_v62 = vld [vmem:[#allocation2 + $0x70] sm:$0xff]  ;;  %v1852_v63 = vld [vmem:[#allocation2 + $0x88] sm:$0xff] }
 0x284   :  { %v1853_v16 = vld [vmem:[#allocation2 + $0x90] sm:$0xff] }
 0x285   :  { %1732 = vrot.lane.b32.xlu0 %v1643_v12, %s8752_s22  ;;  %1730 = vrot.lane.b32.xlu1 %v1642_v13, %s8752_s22  ;;  %v1851_v12 = vld [vmem:[#allocation2 + $0x80] sm:$0xff]  ;;  %v1854_v13 = vld [vmem:[#allocation2 + $0x98] sm:$0xff] }
 0x286   :  { %v1554_v20 = vpop.permute.xlu0 %1553  ;;  %v1539_v1 = vpop.permute.xlu1 %1538 }
 0x287   :  { %v1644_v6 = vmul.f32 %v1539_v1, %v1392_v17  ;;  %v1647_v19 = vmul.f32 %v1554_v20, %v1395_v9  ;;  %v1856_v17 = vld [vmem:[#allocation2 + $0xa8] sm:$0xff]  ;;  %v1855_v20 = vld [vmem:[#allocation2 + $0xa0] sm:$0xff]  ;;  %v1858_v1 = vld [vmem:[#allocation2 + $0xb8] sm:$0xff] }
 0x288   :  { %v1859_v9 = vld [vmem:[#allocation2 + $0xc0] sm:$0xff] }
 0x289   :  { %1736 = vrot.lane.b32.xlu0 %v1645_v5, %s8752_s22  ;;  %1734 = vrot.lane.b32.xlu1 %v1644_v6, %s8752_s22  ;;  %v1857_v5 = vld [vmem:[#allocation2 + $0xb0] sm:$0xff]  ;;  %v1860_v6 = vld [vmem:[#allocation2 + $0xc8] sm:$0xff] }
 0x28a   :  { %v1564_v15 = vpop.permute.xlu0 %1563  ;;  %v1549_v18 = vpop.permute.xlu1 %1548 }
 0x28b   :  { %v1646_v2 = vmul.f32 %v1549_v18, %v1394_v21  ;;  %v1649_v11 = vmul.f32 %v1564_v15, %v1397_v4  ;;  %v1862_v21 = vld [vmem:[#allocation2 + $0xd8] sm:$0xff]  ;;  %v1861_v15 = vld [vmem:[#allocation2 + $0xd0] sm:$0xff]  ;;  %v1864_v18 = vld [vmem:[#allocation2 + $0xe8] sm:$0xff] }
 0x28c   :  { %v1866_v4 = vld [vmem:[#allocation2 + $0xf8] sm:$0xff] }
 0x28d   :  { %1740 = vrot.lane.b32.xlu0 %v1647_v19, %s8752_s22  ;;  %1738 = vrot.lane.b32.xlu1 %v1646_v2, %s8752_s22  ;;  %v1863_v19 = vld [vmem:[#allocation2 + $0xe0] sm:$0xff] }
 0x28e   :  { %v1574_v8 = vpop.permute.xlu0 %1573  ;;  %v1559_v10 = vpop.permute.xlu1 %1558 }
 0x28f   :  { %v1648_v22 = vmul.f32 %v1559_v10, %v1396_v7  ;;  %v1651_v27 = vmul.f32 %v1574_v8, %v1399_v23  ;;  %v1865_v7 = vld [vmem:[#allocation2 + $0xf0] sm:$0xff]  ;;  %v1868_v10 = vld [vmem:[#allocation2 + $0x108] sm:$0xff] }
 0x291   :  { %1744 = vrot.lane.b32.xlu0 %v1649_v11, %s8752_s22  ;;  %1742 = vrot.lane.b32.xlu1 %v1648_v22, %s8752_s22  ;;  %v1867_v11 = vld [vmem:[#allocation2 + $0x100] sm:$0xff] }
 0x292   :  { %v1584_v25 = vpop.permute.xlu0 %1583  ;;  %v1569_v26 = vpop.permute.xlu1 %1568 }
 0x293   :  { %v1650_v28 = vmul.f32 %v1569_v26, %v1398_v24  ;;  %v1653_v33 = vmul.f32 %v1584_v25, %v1401_v29  ;;  %v1870_v24 = vld [vmem:[#allocation2 + $0x118] sm:$0xff]  ;;  %v1869_v25 = vld [vmem:[#allocation2 + $0x110] sm:$0xff]  ;;  %v1871_v29 = vld [vmem:[#allocation2 + $0x120] sm:$0xff] }
 0x295   :  { %1748 = vrot.lane.b32.xlu0 %v1651_v27, %s8752_s22  ;;  %1746 = vrot.lane.b32.xlu1 %v1650_v28, %s8752_s22  ;;  %v1872_v28 = vld [vmem:[#allocation2 + $0x128] sm:$0xff] }
 0x296   :  { %v1594_v31 = vpop.permute.xlu0 %1593  ;;  %v1579_v32 = vpop.permute.xlu1 %1578 }
 0x297   :  { %v1652_v34 = vmul.f32 %v1579_v32, %v1400_v30  ;;  %v1655_v3 = vmul.f32 %v1594_v31, %v1403_v35  ;;  %v1874_v32 = vld [vmem:[#allocation2 + $0x138] sm:$0xff] }
 0x299   :  { %1752 = vrot.lane.b32.xlu0 %v1653_v33, %s8752_s22  ;;  %1750 = vrot.lane.b32.xlu1 %v1652_v34, %s8752_s22  ;;  %v1873_v33 = vld [vmem:[#allocation2 + $0x130] sm:$0xff] }
 0x29a   :  { %v1604_v61 = vpop.permute.xlu0 %1603  ;;  %v1589_v0 = vpop.permute.xlu1 %1588 }
 0x29b   :  { %v1654_v14 = vmul.f32 %v1589_v0, %v1402_v60  ;;  %v1657_v40 = vmul.f32 %v1604_v61, %v1405_v36  ;;  %v1876_v60 = vld [vmem:[#allocation2 + $0x148] sm:$0xff]  ;;  %v1875_v61 = vld [vmem:[#allocation2 + $0x140] sm:$0xff]  ;;  %v1877_v36 = vld [vmem:[#allocation2 + $0x150] sm:$0xff] }
 0x29d   :  { %1756 = vrot.lane.b32.xlu0 %v1655_v3, %s8752_s22  ;;  %1754 = vrot.lane.b32.xlu1 %v1654_v14, %s8752_s22  ;;  %v1878_v14 = vld [vmem:[#allocation2 + $0x158] sm:$0xff] }
 0x29e   :  { %v1614_v38 = vpop.permute.xlu0 %1613  ;;  %v1599_v39 = vpop.permute.xlu1 %1598 }
 0x29f   :  { %v1656_v41 = vmul.f32 %v1599_v39, %v1404_v37  ;;  %v1659_v45 = vmul.f32 %v1614_v38, %v1407_v42  ;;  %v9722_v39 = vld [vmem:[%s13055_s1 + $0x8] sm:$0xff] }
 0x2a1   :  { %1760 = vrot.lane.b32.xlu0 %v1657_v40, %s8752_s22  ;;  %1758 = vrot.lane.b32.xlu1 %v1656_v41, %s8752_s22  ;;  %v9727_v40 = vld [vmem:[%s13055_s1] sm:$0xff] }
 0x2a2   :  { %v1609_v44 = vpop.permute.xlu1 %1608  ;;  %v1624_v48 = vpop.permute.xlu0 %1623 }
 0x2a3   :  { %v1658_v46 = vmul.f32 %v1609_v44, %v1406_v43  ;;  %v1661_v51 = vmul.f32 %v1624_v48, %v1409_v47  ;;  %v9736_v43 = vld [vmem:[%s13055_s1 + $0x20] sm:$0xff]  ;;  %v9741_v44 = vld [vmem:[%s13055_s1 + $0x10] sm:$0xff]  ;;  %v9755_v48 = vld [vmem:[%s13055_s1 + $0x18] sm:$0xff] }
 0x2a4   :  { %v9750_v47 = vld [vmem:[%s13055_s1 + $0x30] sm:$0xff] }
 0x2a5   :  { %1764 = vrot.lane.b32.xlu0 %v1659_v45, %s8752_s22  ;;  %1762 = vrot.lane.b32.xlu1 %v1658_v46, %s8752_s22 }
 0x2a6   :  { %v1619_v50 = vpop.permute.xlu1 %1618 }
 0x2a7   :  { %v1660_v52 = vmul.f32 %v1619_v50, %v1408_v49 }
 0x2a9   :  { %1768 = vrot.lane.b32.xlu0 %v1661_v51, %s8752_s22  ;;  %1766 = vrot.lane.b32.xlu1 %v1660_v52, %s8752_s22  ;;  %v9764_v51 = vld [vmem:[%s13055_s1 + $0x40] sm:$0xff]  ;;  %v9769_v52 = vld [vmem:[%s13055_s1 + $0x28] sm:$0xff] }
 0x2ad   :  { %1917 = vrot.lane.b32.xlu0 %v1844_v53, %s8754_s23  ;;  %1915 = vrot.lane.b32.xlu1 %v1843_v54, %s8754_s23 }
 0x2b1   :  { %1921 = vrot.lane.b32.xlu0 %v1846_v55, %s8754_s23  ;;  %1919 = vrot.lane.b32.xlu1 %v1845_v56, %s8754_s23  ;;  %v9778_v55 = vld [vmem:[%s13055_s1 + $0x50] sm:$0xff]  ;;  %v9783_v56 = vld [vmem:[%s13055_s1 + $0x38] sm:$0xff] }
 0x2b5   :  { %1925 = vrot.lane.b32.xlu0 %v1848_v57, %s8754_s23  ;;  %1923 = vrot.lane.b32.xlu1 %v1847_v58, %s8754_s23 }
 0x2b9   :  { %1929 = vrot.lane.b32.xlu0 %v1850_v59, %s8754_s23  ;;  %1927 = vrot.lane.b32.xlu1 %v1849_v62, %s8754_s23  ;;  %v9792_v59 = vld [vmem:[%s13055_s1 + $0x60] sm:$0xff]  ;;  %v9797_v62 = vld [vmem:[%s13055_s1 + $0x48] sm:$0xff] }
 0x2bd   :  { %1933 = vrot.lane.b32.xlu0 %v1852_v63, %s8754_s23  ;;  %1931 = vrot.lane.b32.xlu1 %v1851_v12, %s8754_s23 }
 0x2c1   :  { %1937 = vrot.lane.b32.xlu0 %v1854_v13, %s8754_s23  ;;  %1935 = vrot.lane.b32.xlu1 %v1853_v16, %s8754_s23  ;;  %v9806_v13 = vld [vmem:[%s13055_s1 + $0x70] sm:$0xff]  ;;  %v9811_v16 = vld [vmem:[%s13055_s1 + $0x58] sm:$0xff] }
 0x2c5   :  { %1941 = vrot.lane.b32.xlu0 %v1856_v17, %s8754_s23  ;;  %1939 = vrot.lane.b32.xlu1 %v1855_v20, %s8754_s23 }
 0x2c9   :  { %1945 = vrot.lane.b32.xlu0 %v1858_v1, %s8754_s23  ;;  %1943 = vrot.lane.b32.xlu1 %v1857_v5, %s8754_s23  ;;  %v9820_v1 = vld [vmem:[%s13055_s1 + $0x80] sm:$0xff]  ;;  %v9825_v5 = vld [vmem:[%s13055_s1 + $0x68] sm:$0xff] }
 0x2cd   :  { %1949 = vrot.lane.b32.xlu0 %v1860_v6, %s8754_s23  ;;  %1947 = vrot.lane.b32.xlu1 %v1859_v9, %s8754_s23 }
 0x2d1   :  { %1953 = vrot.lane.b32.xlu0 %v1862_v21, %s8754_s23  ;;  %1951 = vrot.lane.b32.xlu1 %v1861_v15, %s8754_s23  ;;  %v9834_v21 = vld [vmem:[%s13055_s1 + $0x90] sm:$0xff]  ;;  %v9839_v15 = vld [vmem:[%s13055_s1 + $0x78] sm:$0xff] }
 0x2d3   :  { %v1699_v2 = vpop.permute.xlu1 %1698 }
 0x2d4   :  { %1807 = vst.msk [vmem:[#allocation3] sm:$0xff] %vm1806_vm3, %v1699_v2  ;;  %v9848_v2 = vld [vmem:[%s13055_s1 + $0xa0] sm:$0xff] }
 0x2d5   :  { %1957 = vrot.lane.b32.xlu0 %v1864_v18, %s8754_s23  ;;  %1955 = vrot.lane.b32.xlu1 %v1863_v19, %s8754_s23 }
 0x2d7   :  { %v1701_v8 = vpop.permute.xlu0 %1700 }
 0x2d8   :  { %1808 = vst.msk [vmem:[#allocation3 + $0x10] sm:$0xff] %vm1806_vm3, %v1701_v8 }
 0x2d9   :  { %1961 = vrot.lane.b32.xlu0 %v1866_v4, %s8754_s23  ;;  %1959 = vrot.lane.b32.xlu1 %v1865_v7, %s8754_s23  ;;  %v9853_v4 = vld [vmem:[%s13055_s1 + $0x88] sm:$0xff] }
 0x2db   :  { %v1705_v22 = vpop.permute.xlu0 %1704  ;;  %v1703_v23 = vpop.permute.xlu1 %1702 }
 0x2dc   :  { %1810 = vst.msk [vmem:[#allocation3 + $0x30] sm:$0xff] %vm1806_vm3, %v1705_v22  ;;  %1809 = vst.msk [vmem:[#allocation3 + $0x20] sm:$0xff] %vm1806_vm3, %v1703_v23 }
 0x2dd   :  { %1965 = vrot.lane.b32.xlu0 %v1868_v10, %s8754_s23  ;;  %1963 = vrot.lane.b32.xlu1 %v1867_v11, %s8754_s23  ;;  %v9862_v10 = vld [vmem:[%s13055_s1 + $0xb0] sm:$0xff]  ;;  %v9867_v11 = vld [vmem:[%s13055_s1 + $0x98] sm:$0xff] }
 0x2df   :  { %v1709_v26 = vpop.permute.xlu0 %1708  ;;  %v1707_v27 = vpop.permute.xlu1 %1706 }
 0x2e0   :  { %1812 = vst.msk [vmem:[#allocation3 + $0x50] sm:$0xff] %vm1806_vm3, %v1709_v26  ;;  %1811 = vst.msk [vmem:[#allocation3 + $0x40] sm:$0xff] %vm1806_vm3, %v1707_v27 }
 0x2e1   :  { %1969 = vrot.lane.b32.xlu0 %v1870_v24, %s8754_s23  ;;  %1967 = vrot.lane.b32.xlu1 %v1869_v25, %s8754_s23  ;;  %v9876_v24 = vld [vmem:[%s13055_s1 + $0xc0] sm:$0xff]  ;;  %v9881_v25 = vld [vmem:[%s13055_s1 + $0xa8] sm:$0xff] }
 0x2e3   :  { %v1713_v30 = vpop.permute.xlu0 %1712  ;;  %v1711_v31 = vpop.permute.xlu1 %1710 }
 0x2e4   :  { %1814 = vst.msk [vmem:[#allocation3 + $0x70] sm:$0xff] %vm1806_vm3, %v1713_v30  ;;  %1813 = vst.msk [vmem:[#allocation3 + $0x60] sm:$0xff] %vm1806_vm3, %v1711_v31 }
 0x2e5   :  { %1973 = vrot.lane.b32.xlu0 %v1872_v28, %s8754_s23  ;;  %1971 = vrot.lane.b32.xlu1 %v1871_v29, %s8754_s23  ;;  %v9890_v28 = vld [vmem:[%s13055_s1 + $0xd0] sm:$0xff]  ;;  %v9895_v29 = vld [vmem:[%s13055_s1 + $0xb8] sm:$0xff] }
 0x2e7   :  { %v1717_v34 = vpop.permute.xlu0 %1716  ;;  %v1715_v35 = vpop.permute.xlu1 %1714 }
 0x2e8   :  { %1816 = vst.msk [vmem:[#allocation3 + $0x90] sm:$0xff] %vm1806_vm3, %v1717_v34  ;;  %1815 = vst.msk [vmem:[#allocation3 + $0x80] sm:$0xff] %vm1806_vm3, %v1715_v35 }
 0x2e9   :  { %1977 = vrot.lane.b32.xlu0 %v1874_v32, %s8754_s23  ;;  %1975 = vrot.lane.b32.xlu1 %v1873_v33, %s8754_s23  ;;  %v9904_v32 = vld [vmem:[%s13055_s1 + $0xe0] sm:$0xff]  ;;  %v9909_v33 = vld [vmem:[%s13055_s1 + $0xc8] sm:$0xff] }
 0x2eb   :  { %v1721_v0 = vpop.permute.xlu0 %1720  ;;  %v1719_v3 = vpop.permute.xlu1 %1718 }
 0x2ec   :  { %1818 = vst.msk [vmem:[#allocation3 + $0xb0] sm:$0xff] %vm1806_vm3, %v1721_v0  ;;  %1817 = vst.msk [vmem:[#allocation3 + $0xa0] sm:$0xff] %vm1806_vm3, %v1719_v3 }
 0x2ed   :  { %1981 = vrot.lane.b32.xlu0 %v1876_v60, %s8754_s23  ;;  %1979 = vrot.lane.b32.xlu1 %v1875_v61, %s8754_s23  ;;  %v9918_v60 = vld [vmem:[%s13055_s1 + $0xf0] sm:$0xff]  ;;  %v9923_v61 = vld [vmem:[%s13055_s1 + $0xd8] sm:$0xff] }
 0x2ef   :  { %v1725_v37 = vpop.permute.xlu0 %1724  ;;  %v1723_v38 = vpop.permute.xlu1 %1722 }
 0x2f0   :  { %1820 = vst.msk [vmem:[#allocation3 + $0xd0] sm:$0xff] %vm1806_vm3, %v1725_v37  ;;  %1819 = vst.msk [vmem:[#allocation3 + $0xc0] sm:$0xff] %vm1806_vm3, %v1723_v38 }
 0x2f1   :  { %1985 = vrot.lane.b32.xlu0 %v1878_v14, %s8754_s23  ;;  %1983 = vrot.lane.b32.xlu1 %v1877_v36, %s8754_s23  ;;  %v9932_v14 = vld [vmem:[%s13055_s1 + $0x100] sm:$0xff]  ;;  %v9937_v36 = vld [vmem:[%s13055_s1 + $0xe8] sm:$0xff] }
 0x2f3   :  { %v1729_v41 = vpop.permute.xlu0 %1728  ;;  %v1727_v42 = vpop.permute.xlu1 %1726 }
 0x2f4   :  { %1822 = vst.msk [vmem:[#allocation3 + $0xf0] sm:$0xff] %vm1806_vm3, %v1729_v41  ;;  %1821 = vst.msk [vmem:[#allocation3 + $0xe0] sm:$0xff] %vm1806_vm3, %v1727_v42  ;;  %v9946_v41 = vld [vmem:[%s13055_s1 + $0x110] sm:$0xff]  ;;  %v9951_v42 = vld [vmem:[%s13055_s1 + $0xf8] sm:$0xff] }
 0x2f5   :  { %2139 = vperm.xlu0 %8673, %v9722_v39   ;;  %2134 = vperm.xlu1 %8672, %v9727_v40  }
 0x2f7   :  { %v1733_v45 = vpop.permute.xlu0 %1732  ;;  %v1731_v46 = vpop.permute.xlu1 %1730 }
 0x2f8   :  { %1824 = vst.msk [vmem:[#allocation3 + $0x110] sm:$0xff] %vm1806_vm3, %v1733_v45  ;;  %1823 = vst.msk [vmem:[#allocation3 + $0x100] sm:$0xff] %vm1806_vm3, %v1731_v46 }
 0x2f9   :  { %2154 = vperm.xlu0 %8673, %v9736_v43   ;;  %2144 = vperm.xlu1 %8672, %v9741_v44  }
 0x2fb   :  { %v1737_v49 = vpop.permute.xlu0 %1736  ;;  %v1735_v50 = vpop.permute.xlu1 %1734 }
 0x2fc   :  { %1826 = vst.msk [vmem:[#allocation3 + $0x130] sm:$0xff] %vm1806_vm3, %v1737_v49  ;;  %1825 = vst.msk [vmem:[#allocation3 + $0x120] sm:$0xff] %vm1806_vm3, %v1735_v50  ;;  %v9960_v49 = vld [vmem:[%s13055_s1 + $0x108] sm:$0xff] }
 0x2fd   :  { %2164 = vperm.xlu0 %8673, %v9750_v47   ;;  %2149 = vperm.xlu1 %8672, %v9755_v48  }
 0x2ff   :  { %v1741_v53 = vpop.permute.xlu0 %1740  ;;  %v1739_v54 = vpop.permute.xlu1 %1738 }
 0x300   :  { %1828 = vst.msk [vmem:[#allocation3 + $0x150] sm:$0xff] %vm1806_vm3, %v1741_v53  ;;  %1827 = vst.msk [vmem:[#allocation3 + $0x140] sm:$0xff] %vm1806_vm3, %v1739_v54  ;;  %v9968_v54 = vld [vmem:[%s13055_s1 + $0x118] sm:$0xff] }
 0x301   :  { %2174 = vperm.xlu0 %8673, %v9764_v51   ;;  %2159 = vperm.xlu1 %8672, %v9769_v52  }
 0x303   :  { %v1745_v57 = vpop.permute.xlu0 %1744  ;;  %v1743_v58 = vpop.permute.xlu1 %1742 }
 0x304   :  { %1830 = vst.msk [vmem:[#allocation3 + $0x170] sm:$0xff] %vm1806_vm3, %v1745_v57  ;;  %1829 = vst.msk [vmem:[#allocation3 + $0x160] sm:$0xff] %vm1806_vm3, %v1743_v58 }
 0x305   :  { %2184 = vperm.xlu0 %8673, %v9778_v55   ;;  %2169 = vperm.xlu1 %8672, %v9783_v56  }
 0x307   :  { %v1749_v63 = vpop.permute.xlu0 %1748  ;;  %v1747_v12 = vpop.permute.xlu1 %1746 }
 0x308   :  { %1832 = vst.msk [vmem:[#allocation3 + $0x190] sm:$0xff] %vm1806_vm3, %v1749_v63  ;;  %1831 = vst.msk [vmem:[#allocation3 + $0x180] sm:$0xff] %vm1806_vm3, %v1747_v12  ;;  %v8755_v63 = vmov 6  }
 0x309   :  { %2194 = vperm.xlu0 %8673, %v9792_v59   ;;  %2179 = vperm.xlu1 %8672, %v9797_v62  }
 0x30b   :  { %v1753_v17 = vpop.permute.xlu0 %1752  ;;  %v1751_v20 = vpop.permute.xlu1 %1750 }
 0x30c   :  { %1834 = vst.msk [vmem:[#allocation3 + $0x1b0] sm:$0xff] %vm1806_vm3, %v1753_v17  ;;  %1833 = vst.msk [vmem:[#allocation3 + $0x1a0] sm:$0xff] %vm1806_vm3, %v1751_v20 }
 0x30d   :  { %2204 = vperm.xlu0 %8673, %v9806_v13   ;;  %2189 = vperm.xlu1 %8672, %v9811_v16  }
 0x30f   :  { %v1757_v6 = vpop.permute.xlu0 %1756  ;;  %v1755_v9 = vpop.permute.xlu1 %1754 }
 0x310   :  { %1836 = vst.msk [vmem:[#allocation3 + $0x1d0] sm:$0xff] %vm1806_vm3, %v1757_v6  ;;  %1835 = vst.msk [vmem:[#allocation3 + $0x1c0] sm:$0xff] %vm1806_vm3, %v1755_v9 }
 0x311   :  { %2214 = vperm.xlu0 %8673, %v9820_v1   ;;  %2199 = vperm.xlu1 %8672, %v9825_v5  }
 0x313   :  { %v1761_v18 = vpop.permute.xlu0 %1760  ;;  %v1759_v19 = vpop.permute.xlu1 %1758 }
 0x314   :  { %1838 = vst.msk [vmem:[#allocation3 + $0x1f0] sm:$0xff] %vm1806_vm3, %v1761_v18  ;;  %1837 = vst.msk [vmem:[#allocation3 + $0x1e0] sm:$0xff] %vm1806_vm3, %v1759_v19 }
 0x315   :  { %2224 = vperm.xlu0 %8673, %v9834_v21   ;;  %2209 = vperm.xlu1 %8672, %v9839_v15  }
 0x317   :  { %v1765_v7 = vpop.permute.xlu0 %1764  ;;  %v1763_v8 = vpop.permute.xlu1 %1762 }
 0x318   :  { %1840 = vst.msk [vmem:[#allocation3 + $0x210] sm:$0xff] %vm1806_vm3, %v1765_v7  ;;  %1839 = vst.msk [vmem:[#allocation3 + $0x200] sm:$0xff] %vm1806_vm3, %v1763_v8 }
 0x319   :  { %2234 = vperm.xlu0 %8673, %v9848_v2   ;;  %2219 = vperm.xlu1 %8672, %v9853_v4  }
 0x31b   :  { %v1769_v22 = vpop.permute.xlu0 %1768  ;;  %v1767_v23 = vpop.permute.xlu1 %1766 }
 0x31c   :  { %1842 = vst.msk [vmem:[#allocation3 + $0x230] sm:$0xff] %vm1806_vm3, %v1769_v22  ;;  %1841 = vst.msk [vmem:[#allocation3 + $0x220] sm:$0xff] %vm1806_vm3, %v1767_v23 }
 0x31d   :  { %2244 = vperm.xlu0 %8673, %v9862_v10   ;;  %2229 = vperm.xlu1 %8672, %v9867_v11  }
 0x31f   :  { %v1916_v26 = vpop.permute.xlu1 %1915  ;;  %v1918_v27 = vpop.permute.xlu0 %1917 }
 0x320   :  { %2024 = vst.msk [vmem:[#allocation3] sm:$0xff] %vm2023_vm4, %v1916_v26  ;;  %2025 = vst.msk [vmem:[#allocation3 + $0x10] sm:$0xff] %vm2023_vm4, %v1918_v27 }
 0x321   :  { %2254 = vperm.xlu0 %8673, %v9876_v24   ;;  %2239 = vperm.xlu1 %8672, %v9881_v25  }
 0x323   :  { %v1920_v30 = vpop.permute.xlu1 %1919  ;;  %v1922_v31 = vpop.permute.xlu0 %1921 }
 0x324   :  { %2026 = vst.msk [vmem:[#allocation3 + $0x20] sm:$0xff] %vm2023_vm4, %v1920_v30  ;;  %2027 = vst.msk [vmem:[#allocation3 + $0x30] sm:$0xff] %vm2023_vm4, %v1922_v31 }
 0x325   :  { %2264 = vperm.xlu0 %8673, %v9890_v28   ;;  %2249 = vperm.xlu1 %8672, %v9895_v29  }
 0x327   :  { %v1924_v34 = vpop.permute.xlu1 %1923  ;;  %v1926_v35 = vpop.permute.xlu0 %1925 }
 0x328   :  { %2028 = vst.msk [vmem:[#allocation3 + $0x40] sm:$0xff] %vm2023_vm4, %v1924_v34  ;;  %2029 = vst.msk [vmem:[#allocation3 + $0x50] sm:$0xff] %vm2023_vm4, %v1926_v35 }
 0x329   :  { %2274 = vperm.xlu0 %8673, %v9904_v32   ;;  %2259 = vperm.xlu1 %8672, %v9909_v33  }
 0x32b   :  { %v1928_v0 = vpop.permute.xlu1 %1927  ;;  %v1930_v3 = vpop.permute.xlu0 %1929 }
 0x32c   :  { %2030 = vst.msk [vmem:[#allocation3 + $0x60] sm:$0xff] %vm2023_vm4, %v1928_v0  ;;  %2031 = vst.msk [vmem:[#allocation3 + $0x70] sm:$0xff] %vm2023_vm4, %v1930_v3 }
 0x32d   :  { %2284 = vperm.xlu0 %8673, %v9918_v60   ;;  %2269 = vperm.xlu1 %8672, %v9923_v61  }
 0x32f   :  { %v1932_v37 = vpop.permute.xlu1 %1931  ;;  %v1934_v38 = vpop.permute.xlu0 %1933 }
 0x330   :  { %2032 = vst.msk [vmem:[#allocation3 + $0x80] sm:$0xff] %vm2023_vm4, %v1932_v37  ;;  %2033 = vst.msk [vmem:[#allocation3 + $0x90] sm:$0xff] %vm2023_vm4, %v1934_v38  ;;  %v2061_v38 = vld [vmem:[#allocation2 + $0x49] sm:$0xff] }
 0x331   :  { %2294 = vperm.xlu0 %8673, %v9932_v14   ;;  %2279 = vperm.xlu1 %8672, %v9937_v36  }
 0x333   :  { %v1936_v45 = vpop.permute.xlu1 %1935  ;;  %v1938_v46 = vpop.permute.xlu0 %1937 }
 0x334   :  { %2034 = vst.msk [vmem:[#allocation3 + $0xa0] sm:$0xff] %vm2023_vm4, %v1936_v45  ;;  %2035 = vst.msk [vmem:[#allocation3 + $0xb0] sm:$0xff] %vm2023_vm4, %v1938_v46  ;;  %v2060_v45 = vld [vmem:[#allocation2 + $0x41] sm:$0xff] }
 0x335   :  { %2304 = vperm.xlu0 %8673, %v9946_v41   ;;  %2289 = vperm.xlu1 %8672, %v9951_v42  }
 0x337   :  { %v1940_v50 = vpop.permute.xlu1 %1939  ;;  %v1942_v53 = vpop.permute.xlu0 %1941 }
 0x338   :  { %2036 = vst.msk [vmem:[#allocation3 + $0xc0] sm:$0xff] %vm2023_vm4, %v1940_v50  ;;  %2037 = vst.msk [vmem:[#allocation3 + $0xd0] sm:$0xff] %vm2023_vm4, %v1942_v53 }
 0x339   :  { %2299 = vperm.xlu1 %8672, %v9960_v49   ;;  %8674 = vset.pattern.permute.xlu0 %v8755_v63 }
 0x33b   :  { %v1944_v57 = vpop.permute.xlu1 %1943  ;;  %v1946_v58 = vpop.permute.xlu0 %1945 }
 0x33c   :  { %2038 = vst.msk [vmem:[#allocation3 + $0xe0] sm:$0xff] %vm2023_vm4, %v1944_v57  ;;  %2039 = vst.msk [vmem:[#allocation3 + $0xf0] sm:$0xff] %vm2023_vm4, %v1946_v58  ;;  %v2062_v58 = vld [vmem:[#allocation2 + $0x51] sm:$0xff] }
 0x33d   :  { %2309 = vperm.xlu1 %8672, %v9968_v54  }
 0x33f   :  { %v1948_v12 = vpop.permute.xlu1 %1947  ;;  %v1950_v17 = vpop.permute.xlu0 %1949 }
 0x340   :  { %2040 = vst.msk [vmem:[#allocation3 + $0x100] sm:$0xff] %vm2023_vm4, %v1948_v12  ;;  %2041 = vst.msk [vmem:[#allocation3 + $0x110] sm:$0xff] %vm2023_vm4, %v1950_v17 }
 0x341   :  { %8675 = vset.pattern.permute.xlu1 %v8755_v63 }
 0x343   :  { %v1952_v20 = vpop.permute.xlu1 %1951  ;;  %v1954_v6 = vpop.permute.xlu0 %1953 }
 0x344   :  { %2042 = vst.msk [vmem:[#allocation3 + $0x120] sm:$0xff] %vm2023_vm4, %v1952_v20  ;;  %2043 = vst.msk [vmem:[#allocation3 + $0x130] sm:$0xff] %vm2023_vm4, %v1954_v6  ;;  %v2064_v20 = vld [vmem:[#allocation2 + $0x61] sm:$0xff]  ;;  %v2063_v6 = vld [vmem:[#allocation2 + $0x59] sm:$0xff] }
 0x347   :  { %v1956_v9 = vpop.permute.xlu1 %1955  ;;  %v1958_v18 = vpop.permute.xlu0 %1957 }
 0x348   :  { %2044 = vst.msk [vmem:[#allocation3 + $0x140] sm:$0xff] %vm2023_vm4, %v1956_v9  ;;  %2045 = vst.msk [vmem:[#allocation3 + $0x150] sm:$0xff] %vm2023_vm4, %v1958_v18 }
 0x34b   :  { %v1960_v19 = vpop.permute.xlu1 %1959  ;;  %v1962_v7 = vpop.permute.xlu0 %1961 }
 0x34c   :  { %2046 = vst.msk [vmem:[#allocation3 + $0x160] sm:$0xff] %vm2023_vm4, %v1960_v19  ;;  %2047 = vst.msk [vmem:[#allocation3 + $0x170] sm:$0xff] %vm2023_vm4, %v1962_v7 }
 0x34f   :  { %v1964_v8 = vpop.permute.xlu1 %1963  ;;  %v1966_v22 = vpop.permute.xlu0 %1965 }
 0x350   :  { %2048 = vst.msk [vmem:[#allocation3 + $0x180] sm:$0xff] %vm2023_vm4, %v1964_v8  ;;  %2049 = vst.msk [vmem:[#allocation3 + $0x190] sm:$0xff] %vm2023_vm4, %v1966_v22  ;;  %v2066_v8 = vld [vmem:[#allocation2 + $0x71] sm:$0xff]  ;;  %v2065_v22 = vld [vmem:[#allocation2 + $0x69] sm:$0xff] }
 0x353   :  { %v1968_v23 = vpop.permute.xlu1 %1967  ;;  %v1970_v26 = vpop.permute.xlu0 %1969 }
 0x354   :  { %2050 = vst.msk [vmem:[#allocation3 + $0x1a0] sm:$0xff] %vm2023_vm4, %v1968_v23  ;;  %2051 = vst.msk [vmem:[#allocation3 + $0x1b0] sm:$0xff] %vm2023_vm4, %v1970_v26 }
 0x357   :  { %v1972_v27 = vpop.permute.xlu1 %1971  ;;  %v1974_v30 = vpop.permute.xlu0 %1973 }
 0x358   :  { %2052 = vst.msk [vmem:[#allocation3 + $0x1c0] sm:$0xff] %vm2023_vm4, %v1972_v27  ;;  %2053 = vst.msk [vmem:[#allocation3 + $0x1d0] sm:$0xff] %vm2023_vm4, %v1974_v30 }
 0x35b   :  { %v1976_v31 = vpop.permute.xlu1 %1975  ;;  %v1978_v34 = vpop.permute.xlu0 %1977 }
 0x35c   :  { %2054 = vst.msk [vmem:[#allocation3 + $0x1e0] sm:$0xff] %vm2023_vm4, %v1976_v31  ;;  %2055 = vst.msk [vmem:[#allocation3 + $0x1f0] sm:$0xff] %vm2023_vm4, %v1978_v34  ;;  %v2068_v31 = vld [vmem:[#allocation2 + $0x81] sm:$0xff]  ;;  %v2067_v34 = vld [vmem:[#allocation2 + $0x79] sm:$0xff] }
 0x35f   :  { %v1980_v35 = vpop.permute.xlu1 %1979  ;;  %v1982_v0 = vpop.permute.xlu0 %1981 }
 0x360   :  { %2056 = vst.msk [vmem:[#allocation3 + $0x200] sm:$0xff] %vm2023_vm4, %v1980_v35  ;;  %2057 = vst.msk [vmem:[#allocation3 + $0x210] sm:$0xff] %vm2023_vm4, %v1982_v0 }
 0x363   :  { %v1984_v3 = vpop.permute.xlu1 %1983  ;;  %v1986_v37 = vpop.permute.xlu0 %1985 }
 0x364   :  { %2058 = vst.msk [vmem:[#allocation3 + $0x220] sm:$0xff] %vm2023_vm4, %v1984_v3  ;;  %2059 = vst.msk [vmem:[#allocation3 + $0x230] sm:$0xff] %vm2023_vm4, %v1986_v37 }
 0x374   :  { %v2140_v46 = vpop.permute.xlu0 %2139  ;;  %v2135_v50 = vpop.permute.xlu1 %2134 }
 0x375   :  { %v2313_v53 = vmul.f32 %v2140_v46, %v2061_v38  ;;  %v2312_v57 = vmul.f32 %v2135_v50, %v2060_v45  ;;  %v2070_v38 = vld [vmem:[#allocation2 + $0x91] sm:$0xff]  ;;  %v2069_v45 = vld [vmem:[#allocation2 + $0x89] sm:$0xff] }
 0x377   :  { %2384 = vrot.lane.b32.xlu0 %v2312_v57, %s8756_s9  ;;  %2386 = vrot.lane.b32.xlu1 %v2313_v53, %s8756_s9 }
 0x378   :  { %v2155_v63 = vpop.permute.xlu0 %2154  ;;  %v2145_v12 = vpop.permute.xlu1 %2144 }
 0x379   :  { %v2314_v17 = vmul.f32 %v2145_v12, %v2062_v58  ;;  %v2316_v19 = vmul.f32 %v2155_v63, %v2064_v20  ;;  %v2072_v58 = vld [vmem:[#allocation2 + $0xa1] sm:$0xff]  ;;  %v2071_v63 = vld [vmem:[#allocation2 + $0x99] sm:$0xff] }
 0x37b   :  { %2388 = vrot.lane.b32.xlu0 %v2314_v17, %s8756_s9 }
 0x37c   :  { %v2165_v9 = vpop.permute.xlu0 %2164  ;;  %v2150_v18 = vpop.permute.xlu1 %2149 }
 0x37d   :  { %v2315_v7 = vmul.f32 %v2150_v18, %v2063_v6  ;;  %v2318_v27 = vmul.f32 %v2165_v9, %v2066_v8  ;;  %v2074_v9 = vld [vmem:[#allocation2 + $0xb1] sm:$0xff]  ;;  %v2073_v18 = vld [vmem:[#allocation2 + $0xa9] sm:$0xff] }
 0x37f   :  { %2392 = vrot.lane.b32.xlu0 %v2316_v19, %s8756_s9  ;;  %2390 = vrot.lane.b32.xlu1 %v2315_v7, %s8756_s9 }
 0x380   :  { %v2175_v23 = vpop.permute.xlu0 %2174  ;;  %v2160_v26 = vpop.permute.xlu1 %2159 }
 0x381   :  { %v2317_v30 = vmul.f32 %v2160_v26, %v2065_v22  ;;  %v2320_v3 = vmul.f32 %v2175_v23, %v2068_v31  ;;  %v2076_v23 = vld [vmem:[#allocation2 + $0xc1] sm:$0xff]  ;;  %v2075_v26 = vld [vmem:[#allocation2 + $0xb9] sm:$0xff] }
 0x383   :  { %2396 = vrot.lane.b32.xlu0 %v2318_v27, %s8756_s9  ;;  %2394 = vrot.lane.b32.xlu1 %v2317_v30, %s8756_s9 }
 0x384   :  { %v2185_v35 = vpop.permute.xlu0 %2184  ;;  %v2170_v0 = vpop.permute.xlu1 %2169 }
 0x385   :  { %v2319_v37 = vmul.f32 %v2170_v0, %v2067_v34  ;;  %v2322_v53 = vmul.f32 %v2185_v35, %v2070_v38  ;;  %v2078_v35 = vld [vmem:[#allocation2 + $0xd1] sm:$0xff]  ;;  %v2077_v0 = vld [vmem:[#allocation2 + $0xc9] sm:$0xff] }
 0x387   :  { %2400 = vrot.lane.b32.xlu0 %v2320_v3, %s8756_s9  ;;  %2398 = vrot.lane.b32.xlu1 %v2319_v37, %s8756_s9 }
 0x388   :  { %v2195_v46 = vpop.permute.xlu0 %2194  ;;  %v2180_v50 = vpop.permute.xlu1 %2179 }
 0x389   :  { %v2321_v57 = vmul.f32 %v2180_v50, %v2069_v45  ;;  %v2324_v20 = vmul.f32 %v2195_v46, %v2072_v58  ;;  %v2080_v46 = vld [vmem:[#allocation2 + $0xe1] sm:$0xff]  ;;  %v2079_v50 = vld [vmem:[#allocation2 + $0xd9] sm:$0xff] }
 0x38b   :  { %2404 = vrot.lane.b32.xlu0 %v2322_v53, %s8756_s9  ;;  %2402 = vrot.lane.b32.xlu1 %v2321_v57, %s8756_s9 }
 0x38c   :  { %v2205_v12 = vpop.permute.xlu0 %2204  ;;  %v2190_v17 = vpop.permute.xlu1 %2189 }
 0x38d   :  { %v2323_v6 = vmul.f32 %v2190_v17, %v2071_v63  ;;  %v2326_v8 = vmul.f32 %v2205_v12, %v2074_v9  ;;  %v2082_v12 = vld [vmem:[#allocation2 + $0xf1] sm:$0xff]  ;;  %v2081_v17 = vld [vmem:[#allocation2 + $0xe9] sm:$0xff] }
 0x38f   :  { %2408 = vrot.lane.b32.xlu0 %v2324_v20, %s8756_s9  ;;  %2406 = vrot.lane.b32.xlu1 %v2323_v6, %s8756_s9 }
 0x390   :  { %v2215_v19 = vpop.permute.xlu0 %2214  ;;  %v2200_v7 = vpop.permute.xlu1 %2199 }
 0x391   :  { %v2325_v22 = vmul.f32 %v2200_v7, %v2073_v18  ;;  %v2328_v31 = vmul.f32 %v2215_v19, %v2076_v23  ;;  %v2084_v19 = vld [vmem:[#allocation2 + $0x101] sm:$0xff]  ;;  %v2083_v7 = vld [vmem:[#allocation2 + $0xf9] sm:$0xff] }
 0x393   :  { %2412 = vrot.lane.b32.xlu0 %v2326_v8, %s8756_s9  ;;  %2410 = vrot.lane.b32.xlu1 %v2325_v22, %s8756_s9 }
 0x394   :  { %v2225_v27 = vpop.permute.xlu0 %2224  ;;  %v2210_v30 = vpop.permute.xlu1 %2209 }
 0x395   :  { %v2327_v34 = vmul.f32 %v2210_v30, %v2075_v26  ;;  %v2330_v38 = vmul.f32 %v2225_v27, %v2078_v35  ;;  %v2086_v27 = vld [vmem:[#allocation2 + $0x111] sm:$0xff]  ;;  %v2085_v30 = vld [vmem:[#allocation2 + $0x109] sm:$0xff] }
 0x397   :  { %2416 = vrot.lane.b32.xlu0 %v2328_v31, %s8756_s9  ;;  %2414 = vrot.lane.b32.xlu1 %v2327_v34, %s8756_s9 }
 0x398   :  { %v2235_v3 = vpop.permute.xlu0 %2234  ;;  %v2220_v37 = vpop.permute.xlu1 %2219 }
 0x399   :  { %v2329_v45 = vmul.f32 %v2220_v37, %v2077_v0  ;;  %v2332_v58 = vmul.f32 %v2235_v3, %v2080_v46  ;;  %v2088_v3 = vld [vmem:[#allocation2 + $0x121] sm:$0xff]  ;;  %v2087_v37 = vld [vmem:[#allocation2 + $0x119] sm:$0xff] }
 0x39b   :  { %2420 = vrot.lane.b32.xlu0 %v2330_v38, %s8756_s9  ;;  %2418 = vrot.lane.b32.xlu1 %v2329_v45, %s8756_s9 }
 0x39c   :  { %v2245_v53 = vpop.permute.xlu0 %2244  ;;  %v2230_v57 = vpop.permute.xlu1 %2229 }
 0x39d   :  { %v2331_v63 = vmul.f32 %v2230_v57, %v2079_v50  ;;  %v2334_v9 = vmul.f32 %v2245_v53, %v2082_v12  ;;  %v2090_v53 = vld [vmem:[#allocation2 + $0x131] sm:$0xff]  ;;  %v2089_v57 = vld [vmem:[#allocation2 + $0x129] sm:$0xff] }
 0x39f   :  { %2424 = vrot.lane.b32.xlu0 %v2332_v58, %s8756_s9  ;;  %2422 = vrot.lane.b32.xlu1 %v2331_v63, %s8756_s9 }
 0x3a0   :  { %v2255_v20 = vpop.permute.xlu0 %2254  ;;  %v2240_v6 = vpop.permute.xlu1 %2239 }
 0x3a1   :  { %v2333_v18 = vmul.f32 %v2240_v6, %v2081_v17  ;;  %v2336_v23 = vmul.f32 %v2255_v20, %v2084_v19  ;;  %v2092_v20 = vld [vmem:[#allocation2 + $0x141] sm:$0xff]  ;;  %v2091_v6 = vld [vmem:[#allocation2 + $0x139] sm:$0xff] }
 0x3a3   :  { %2428 = vrot.lane.b32.xlu0 %v2334_v9, %s8756_s9  ;;  %2426 = vrot.lane.b32.xlu1 %v2333_v18, %s8756_s9 }
 0x3a4   :  { %v2265_v8 = vpop.permute.xlu0 %2264  ;;  %v2250_v22 = vpop.permute.xlu1 %2249 }
 0x3a5   :  { %v2335_v26 = vmul.f32 %v2250_v22, %v2083_v7  ;;  %v2338_v35 = vmul.f32 %v2265_v8, %v2086_v27  ;;  %v2094_v7 = vld [vmem:[#allocation2 + $0x151] sm:$0xff]  ;;  %v2093_v22 = vld [vmem:[#allocation2 + $0x149] sm:$0xff] }
 0x3a7   :  { %2432 = vrot.lane.b32.xlu0 %v2336_v23, %s8756_s9  ;;  %2430 = vrot.lane.b32.xlu1 %v2335_v26, %s8756_s9 }
 0x3a8   :  { %v2275_v31 = vpop.permute.xlu0 %2274  ;;  %v2260_v34 = vpop.permute.xlu1 %2259 }
 0x3a9   :  { %v2337_v0 = vmul.f32 %v2260_v34, %v2085_v30  ;;  %v2340_v46 = vmul.f32 %v2275_v31, %v2088_v3  ;;  %v2095_v30 = vld [vmem:[#allocation2 + $0x159] sm:$0xff] }
 0x3ab   :  { %2436 = vrot.lane.b32.xlu0 %v2338_v35, %s8756_s9  ;;  %2434 = vrot.lane.b32.xlu1 %v2337_v0, %s8756_s9  ;;  %v2529_v0 = vld [vmem:[#allocation2 + $0x43] sm:$0xff] }
 0x3ac   :  { %v2285_v38 = vpop.permute.xlu0 %2284  ;;  %v2270_v45 = vpop.permute.xlu1 %2269 }
 0x3ad   :  { %v2339_v50 = vmul.f32 %v2270_v45, %v2087_v37  ;;  %v2342_v12 = vmul.f32 %v2285_v38, %v2090_v53  ;;  %v2530_v38 = vld [vmem:[#allocation2 + $0x4b] sm:$0xff]  ;;  %v2532_v53 = vld [vmem:[#allocation2 + $0x5b] sm:$0xff] }
 0x3af   :  { %2440 = vrot.lane.b32.xlu0 %v2340_v46, %s8756_s9  ;;  %2438 = vrot.lane.b32.xlu1 %v2339_v50, %s8756_s9 }
 0x3b0   :  { %v2295_v58 = vpop.permute.xlu0 %2294  ;;  %v2280_v63 = vpop.permute.xlu1 %2279 }
 0x3b1   :  { %v2341_v17 = vmul.f32 %v2280_v63, %v2089_v57  ;;  %v2344_v18 = vmul.f32 %v2295_v58, %v2092_v20  ;;  %v2531_v57 = vld [vmem:[#allocation2 + $0x53] sm:$0xff]  ;;  %v2534_v20 = vld [vmem:[#allocation2 + $0x6b] sm:$0xff] }
 0x3b3   :  { %2444 = vrot.lane.b32.xlu0 %v2342_v12, %s8756_s9  ;;  %2442 = vrot.lane.b32.xlu1 %v2341_v17, %s8756_s9 }
 0x3b4   :  { %v2290_v9 = vpop.permute.xlu1 %2289  ;;  %v2305_v8 = vpop.permute.xlu0 %2304 }
 0x3b5   :  { %v2343_v19 = vmul.f32 %v2290_v9, %v2091_v6  ;;  %v2346_v26 = vmul.f32 %v2305_v8, %v2094_v7  ;;  %v2533_v6 = vld [vmem:[#allocation2 + $0x63] sm:$0xff]  ;;  %v2536_v8 = vld [vmem:[#allocation2 + $0x7b] sm:$0xff] }
 0x3b7   :  { %2448 = vrot.lane.b32.xlu0 %v2344_v18, %s8756_s9  ;;  %2446 = vrot.lane.b32.xlu1 %v2343_v19, %s8756_s9 }
 0x3b8   :  { %v2300_v23 = vpop.permute.xlu1 %2299 }
 0x3b9   :  { %v2345_v27 = vmul.f32 %v2300_v23, %v2093_v22  ;;  %v2535_v22 = vld [vmem:[#allocation2 + $0x73] sm:$0xff] }
 0x3bb   :  { %2452 = vrot.lane.b32.xlu0 %v2346_v26, %s8756_s9  ;;  %2450 = vrot.lane.b32.xlu1 %v2345_v27, %s8756_s9 }
 0x3bc   :  { %v2310_v31 = vpop.permute.xlu1 %2309 }
 0x3bd   :  { %v2347_v34 = vmul.f32 %v2310_v31, %v2095_v30  ;;  %v2538_v31 = vld [vmem:[#allocation2 + $0x8b] sm:$0xff] }
 0x3bf   :  { %2603 = vperm.xlu0 %8674, %v9727_v40   ;;  %2454 = vrot.lane.b32.xlu1 %v2347_v34, %s8756_s9  ;;  %v2537_v34 = vld [vmem:[#allocation2 + $0x83] sm:$0xff] }
 0x3c3   :  { %2618 = vperm.xlu0 %8674, %v9755_v48   ;;  %2608 = vperm.xlu1 %8675, %v9722_v39  }
 0x3c7   :  { %2628 = vperm.xlu0 %8674, %v9769_v52   ;;  %2613 = vperm.xlu1 %8675, %v9741_v44  }
 0x3cb   :  { %2638 = vperm.xlu0 %8674, %v9783_v56   ;;  %2623 = vperm.xlu1 %8675, %v9736_v43  }
 0x3cf   :  { %2648 = vperm.xlu0 %8674, %v9797_v62   ;;  %2633 = vperm.xlu1 %8675, %v9750_v47  }
 0x3d3   :  { %2658 = vperm.xlu0 %8674, %v9811_v16   ;;  %2643 = vperm.xlu1 %8675, %v9764_v51  }
 0x3d7   :  { %2668 = vperm.xlu0 %8674, %v9825_v5   ;;  %2653 = vperm.xlu1 %8675, %v9778_v55  }
 0x3db   :  { %2678 = vperm.xlu0 %8674, %v9839_v15   ;;  %2663 = vperm.xlu1 %8675, %v9792_v59   ;;  %v8757_v15 = vmov 7  }
 0x3df   :  { %2688 = vperm.xlu0 %8674, %v9853_v4   ;;  %2673 = vperm.xlu1 %8675, %v9806_v13  }
 0x3e3   :  { %2698 = vperm.xlu0 %8674, %v9867_v11   ;;  %2683 = vperm.xlu1 %8675, %v9820_v1  }
 0x3e7   :  { %2708 = vperm.xlu0 %8674, %v9881_v25   ;;  %2693 = vperm.xlu1 %8675, %v9834_v21  }
 0x3e9   :  { %v2385_v39 = vpop.permute.xlu0 %2384  ;;  %v2387_v40 = vpop.permute.xlu1 %2386 }
 0x3ea   :  { %2493 = vst.msk [vmem:[#allocation3] sm:$0xff] %vm2492_vm5, %v2385_v39  ;;  %2494 = vst.msk [vmem:[#allocation3 + $0x10] sm:$0xff] %vm2492_vm5, %v2387_v40 }
 0x3eb   :  { %2718 = vperm.xlu0 %8674, %v9895_v29   ;;  %2703 = vperm.xlu1 %8675, %v9848_v2  }
 0x3ed   :  { %v2389_v43 = vpop.permute.xlu0 %2388 }
 0x3ee   :  { %2495 = vst.msk [vmem:[#allocation3 + $0x20] sm:$0xff] %vm2492_vm5, %v2389_v43 }
 0x3ef   :  { %2728 = vperm.xlu0 %8674, %v9909_v33   ;;  %2713 = vperm.xlu1 %8675, %v9862_v10  }
 0x3f1   :  { %v2393_v44 = vpop.permute.xlu0 %2392  ;;  %v2391_v47 = vpop.permute.xlu1 %2390 }
 0x3f2   :  { %2497 = vst.msk [vmem:[#allocation3 + $0x40] sm:$0xff] %vm2492_vm5, %v2393_v44  ;;  %2496 = vst.msk [vmem:[#allocation3 + $0x30] sm:$0xff] %vm2492_vm5, %v2391_v47  ;;  %v2540_v47 = vld [vmem:[#allocation2 + $0x9b] sm:$0xff] }
 0x3f3   :  { %2738 = vperm.xlu0 %8674, %v9923_v61   ;;  %2723 = vperm.xlu1 %8675, %v9876_v24  }
 0x3f5   :  { %v2397_v48 = vpop.permute.xlu0 %2396  ;;  %v2395_v51 = vpop.permute.xlu1 %2394 }
 0x3f6   :  { %2499 = vst.msk [vmem:[#allocation3 + $0x60] sm:$0xff] %vm2492_vm5, %v2397_v48  ;;  %2498 = vst.msk [vmem:[#allocation3 + $0x50] sm:$0xff] %vm2492_vm5, %v2395_v51  ;;  %v2539_v48 = vld [vmem:[#allocation2 + $0x93] sm:$0xff] }
 0x3f7   :  { %2748 = vperm.xlu0 %8674, %v9937_v36   ;;  %2733 = vperm.xlu1 %8675, %v9890_v28  }
 0x3f9   :  { %v2401_v52 = vpop.permute.xlu0 %2400  ;;  %v2399_v55 = vpop.permute.xlu1 %2398 }
 0x3fa   :  { %2501 = vst.msk [vmem:[#allocation3 + $0x80] sm:$0xff] %vm2492_vm5, %v2401_v52  ;;  %2500 = vst.msk [vmem:[#allocation3 + $0x70] sm:$0xff] %vm2492_vm5, %v2399_v55 }
 0x3fb   :  { %2758 = vperm.xlu0 %8674, %v9951_v42   ;;  %2743 = vperm.xlu1 %8675, %v9904_v32  }
 0x3fd   :  { %v2405_v56 = vpop.permute.xlu0 %2404  ;;  %v2403_v59 = vpop.permute.xlu1 %2402 }
 0x3fe   :  { %2503 = vst.msk [vmem:[#allocation3 + $0xa0] sm:$0xff] %vm2492_vm5, %v2405_v56  ;;  %2502 = vst.msk [vmem:[#allocation3 + $0x90] sm:$0xff] %vm2492_vm5, %v2403_v59  ;;  %v2542_v59 = vld [vmem:[#allocation2 + $0xab] sm:$0xff] }
 0x3ff   :  { %2768 = vperm.xlu0 %8674, %v9960_v49   ;;  %2753 = vperm.xlu1 %8675, %v9918_v60  }
 0x401   :  { %v2409_v62 = vpop.permute.xlu0 %2408  ;;  %v2407_v13 = vpop.permute.xlu1 %2406 }
 0x402   :  { %2505 = vst.msk [vmem:[#allocation3 + $0xc0] sm:$0xff] %vm2492_vm5, %v2409_v62  ;;  %2504 = vst.msk [vmem:[#allocation3 + $0xb0] sm:$0xff] %vm2492_vm5, %v2407_v13  ;;  %v2541_v62 = vld [vmem:[#allocation2 + $0xa3] sm:$0xff] }
 0x403   :  { %2778 = vperm.xlu0 %8674, %v9968_v54   ;;  %2763 = vperm.xlu1 %8675, %v9932_v14  }
 0x405   :  { %v2413_v16 = vpop.permute.xlu0 %2412  ;;  %v2411_v1 = vpop.permute.xlu1 %2410 }
 0x406   :  { %2507 = vst.msk [vmem:[#allocation3 + $0xe0] sm:$0xff] %vm2492_vm5, %v2413_v16  ;;  %2506 = vst.msk [vmem:[#allocation3 + $0xd0] sm:$0xff] %vm2492_vm5, %v2411_v1 }
 0x407   :  { %2773 = vperm.xlu1 %8675, %v9946_v41   ;;  %8677 = vset.pattern.permute.xlu0 %v8757_v15 }
 0x409   :  { %v2417_v5 = vpop.permute.xlu0 %2416  ;;  %v2415_v21 = vpop.permute.xlu1 %2414 }
 0x40a   :  { %2509 = vst.msk [vmem:[#allocation3 + $0x100] sm:$0xff] %vm2492_vm5, %v2417_v5  ;;  %2508 = vst.msk [vmem:[#allocation3 + $0xf0] sm:$0xff] %vm2492_vm5, %v2415_v21  ;;  %v2544_v21 = vld [vmem:[#allocation2 + $0xbb] sm:$0xff] }
 0x40b   :  { %8676 = vset.pattern.permute.xlu1 %v8757_v15  ;;  %v2543_v15 = vld [vmem:[#allocation2 + $0xb3] sm:$0xff] }
 0x40d   :  { %v2421_v2 = vpop.permute.xlu0 %2420  ;;  %v2419_v4 = vpop.permute.xlu1 %2418 }
 0x40e   :  { %2511 = vst.msk [vmem:[#allocation3 + $0x120] sm:$0xff] %vm2492_vm5, %v2421_v2  ;;  %2510 = vst.msk [vmem:[#allocation3 + $0x110] sm:$0xff] %vm2492_vm5, %v2419_v4 }
 0x411   :  { %v2425_v10 = vpop.permute.xlu0 %2424  ;;  %v2423_v11 = vpop.permute.xlu1 %2422 }
 0x412   :  { %2513 = vst.msk [vmem:[#allocation3 + $0x140] sm:$0xff] %vm2492_vm5, %v2425_v10  ;;  %2512 = vst.msk [vmem:[#allocation3 + $0x130] sm:$0xff] %vm2492_vm5, %v2423_v11 }
 0x415   :  { %v2429_v24 = vpop.permute.xlu0 %2428  ;;  %v2427_v25 = vpop.permute.xlu1 %2426 }
 0x416   :  { %2515 = vst.msk [vmem:[#allocation3 + $0x160] sm:$0xff] %vm2492_vm5, %v2429_v24  ;;  %2514 = vst.msk [vmem:[#allocation3 + $0x150] sm:$0xff] %vm2492_vm5, %v2427_v25  ;;  %v2546_v24 = vld [vmem:[#allocation2 + $0xcb] sm:$0xff]  ;;  %v2545_v25 = vld [vmem:[#allocation2 + $0xc3] sm:$0xff] }
 0x419   :  { %v2433_v28 = vpop.permute.xlu0 %2432  ;;  %v2431_v29 = vpop.permute.xlu1 %2430 }
 0x41a   :  { %2517 = vst.msk [vmem:[#allocation3 + $0x180] sm:$0xff] %vm2492_vm5, %v2433_v28  ;;  %2516 = vst.msk [vmem:[#allocation3 + $0x170] sm:$0xff] %vm2492_vm5, %v2431_v29 }
 0x41d   :  { %v2437_v32 = vpop.permute.xlu0 %2436  ;;  %v2435_v33 = vpop.permute.xlu1 %2434 }
 0x41e   :  { %2519 = vst.msk [vmem:[#allocation3 + $0x1a0] sm:$0xff] %vm2492_vm5, %v2437_v32  ;;  %2518 = vst.msk [vmem:[#allocation3 + $0x190] sm:$0xff] %vm2492_vm5, %v2435_v33 }
 0x421   :  { %v2441_v60 = vpop.permute.xlu0 %2440  ;;  %v2439_v61 = vpop.permute.xlu1 %2438 }
 0x422   :  { %2521 = vst.msk [vmem:[#allocation3 + $0x1c0] sm:$0xff] %vm2492_vm5, %v2441_v60  ;;  %2520 = vst.msk [vmem:[#allocation3 + $0x1b0] sm:$0xff] %vm2492_vm5, %v2439_v61  ;;  %v2548_v60 = vld [vmem:[#allocation2 + $0xdb] sm:$0xff]  ;;  %v2547_v61 = vld [vmem:[#allocation2 + $0xd3] sm:$0xff] }
 0x425   :  { %v2445_v14 = vpop.permute.xlu0 %2444  ;;  %v2443_v36 = vpop.permute.xlu1 %2442 }
 0x426   :  { %2523 = vst.msk [vmem:[#allocation3 + $0x1e0] sm:$0xff] %vm2492_vm5, %v2445_v14  ;;  %2522 = vst.msk [vmem:[#allocation3 + $0x1d0] sm:$0xff] %vm2492_vm5, %v2443_v36 }
 0x429   :  { %v2449_v41 = vpop.permute.xlu0 %2448  ;;  %v2447_v42 = vpop.permute.xlu1 %2446 }
 0x42a   :  { %2525 = vst.msk [vmem:[#allocation3 + $0x200] sm:$0xff] %vm2492_vm5, %v2449_v41  ;;  %2524 = vst.msk [vmem:[#allocation3 + $0x1f0] sm:$0xff] %vm2492_vm5, %v2447_v42 }
 0x42d   :  { %v2453_v49 = vpop.permute.xlu0 %2452  ;;  %v2451_v54 = vpop.permute.xlu1 %2450 }
 0x42e   :  { %2527 = vst.msk [vmem:[#allocation3 + $0x220] sm:$0xff] %vm2492_vm5, %v2453_v49  ;;  %2526 = vst.msk [vmem:[#allocation3 + $0x210] sm:$0xff] %vm2492_vm5, %v2451_v54  ;;  %v2550_v49 = vld [vmem:[#allocation2 + $0xeb] sm:$0xff]  ;;  %v2549_v54 = vld [vmem:[#allocation2 + $0xe3] sm:$0xff] }
 0x431   :  { %v2455_v35 = vpop.permute.xlu1 %2454 }
 0x432   :  { %2528 = vst.msk [vmem:[#allocation3 + $0x230] sm:$0xff] %vm2492_vm5, %v2455_v35 }
 0x43e   :  { %v2604_v3 = vpop.permute.xlu0 %2603 }
 0x43f   :  { %v2781_v37 = vmul.f32 %v2604_v3, %v2529_v0 }
 0x441   :  { %2853 = vrot.lane.b32.xlu1 %v2781_v37, %s8758_s10 }
 0x442   :  { %v2619_v45 = vpop.permute.xlu0 %2618  ;;  %v2609_v46 = vpop.permute.xlu1 %2608 }
 0x443   :  { %v2782_v50 = vmul.f32 %v2609_v46, %v2530_v38  ;;  %v2784_v12 = vmul.f32 %v2619_v45, %v2532_v53  ;;  %v2552_v38 = vld [vmem:[#allocation2 + $0xfb] sm:$0xff]  ;;  %v2551_v45 = vld [vmem:[#allocation2 + $0xf3] sm:$0xff] }
 0x445   :  { %2855 = vrot.lane.b32.xlu0 %v2782_v50, %s8758_s10 }
 0x446   :  { %v2629_v58 = vpop.permute.xlu0 %2628  ;;  %v2614_v63 = vpop.permute.xlu1 %2613 }
 0x447   :  { %v2783_v17 = vmul.f32 %v2614_v63, %v2531_v57  ;;  %v2786_v19 = vmul.f32 %v2629_v58, %v2534_v20  ;;  %v2554_v58 = vld [vmem:[#allocation2 + $0x10b] sm:$0xff]  ;;  %v2553_v63 = vld [vmem:[#allocation2 + $0x103] sm:$0xff] }
 0x449   :  { %2859 = vrot.lane.b32.xlu0 %v2784_v12, %s8758_s10  ;;  %2857 = vrot.lane.b32.xlu1 %v2783_v17, %s8758_s10 }
 0x44a   :  { %v2639_v9 = vpop.permute.xlu0 %2638  ;;  %v2624_v18 = vpop.permute.xlu1 %2623 }
 0x44b   :  { %v2785_v7 = vmul.f32 %v2624_v18, %v2533_v6  ;;  %v2788_v27 = vmul.f32 %v2639_v9, %v2536_v8  ;;  %v2556_v9 = vld [vmem:[#allocation2 + $0x11b] sm:$0xff]  ;;  %v2555_v18 = vld [vmem:[#allocation2 + $0x113] sm:$0xff] }
 0x44d   :  { %2863 = vrot.lane.b32.xlu0 %v2786_v19, %s8758_s10  ;;  %2861 = vrot.lane.b32.xlu1 %v2785_v7, %s8758_s10 }
 0x44e   :  { %v2649_v23 = vpop.permute.xlu0 %2648  ;;  %v2634_v26 = vpop.permute.xlu1 %2633 }
 0x44f   :  { %v2787_v30 = vmul.f32 %v2634_v26, %v2535_v22  ;;  %v2790_v43 = vmul.f32 %v2649_v23, %v2538_v31  ;;  %v2558_v23 = vld [vmem:[#allocation2 + $0x12b] sm:$0xff]  ;;  %v2557_v26 = vld [vmem:[#allocation2 + $0x123] sm:$0xff] }
 0x451   :  { %2867 = vrot.lane.b32.xlu0 %v2788_v27, %s8758_s10  ;;  %2865 = vrot.lane.b32.xlu1 %v2787_v30, %s8758_s10 }
 0x452   :  { %v2659_v39 = vpop.permute.xlu0 %2658  ;;  %v2644_v40 = vpop.permute.xlu1 %2643 }
 0x453   :  { %v2789_v44 = vmul.f32 %v2644_v40, %v2537_v34  ;;  %v2792_v55 = vmul.f32 %v2659_v39, %v2540_v47  ;;  %v2560_v39 = vld [vmem:[#allocation2 + $0x13b] sm:$0xff]  ;;  %v2559_v40 = vld [vmem:[#allocation2 + $0x133] sm:$0xff] }
 0x455   :  { %2871 = vrot.lane.b32.xlu0 %v2790_v43, %s8758_s10  ;;  %2869 = vrot.lane.b32.xlu1 %v2789_v44, %s8758_s10 }
 0x456   :  { %v2669_v51 = vpop.permute.xlu0 %2668  ;;  %v2654_v52 = vpop.permute.xlu1 %2653 }
 0x457   :  { %v2791_v56 = vmul.f32 %v2654_v52, %v2539_v48  ;;  %v2794_v1 = vmul.f32 %v2669_v51, %v2542_v59  ;;  %v2562_v51 = vld [vmem:[#allocation2 + $0x14b] sm:$0xff]  ;;  %v2561_v52 = vld [vmem:[#allocation2 + $0x143] sm:$0xff] }
 0x459   :  { %2875 = vrot.lane.b32.xlu0 %v2792_v55, %s8758_s10  ;;  %2873 = vrot.lane.b32.xlu1 %v2791_v56, %s8758_s10 }
 0x45a   :  { %v2679_v13 = vpop.permute.xlu0 %2678  ;;  %v2664_v16 = vpop.permute.xlu1 %2663 }
 0x45b   :  { %v2793_v5 = vmul.f32 %v2664_v16, %v2541_v62  ;;  %v2796_v10 = vmul.f32 %v2679_v13, %v2544_v21  ;;  %v2564_v62 = vld [vmem:[#allocation2 + $0x15b] sm:$0xff]  ;;  %v2563_v16 = vld [vmem:[#allocation2 + $0x153] sm:$0xff] }
 0x45d   :  { %2879 = vrot.lane.b32.xlu0 %v2794_v1, %s8758_s10  ;;  %2877 = vrot.lane.b32.xlu1 %v2793_v5, %s8758_s10 }
 0x45e   :  { %v2689_v2 = vpop.permute.xlu0 %2688  ;;  %v2674_v4 = vpop.permute.xlu1 %2673 }
 0x45f   :  { %v2795_v11 = vmul.f32 %v2674_v4, %v2543_v15  ;;  %v2798_v32 = vmul.f32 %v2689_v2, %v2546_v24  ;;  %v10140_v15 = vld [vmem:[%s13055_s1 + $0x8] sm:$0xff]  ;;  %v10145_v2 = vld [vmem:[%s13055_s1] sm:$0xff]  ;;  %v10169_v24 = vld [vmem:[%s13055_s1 + $0x18] sm:$0xff] }
 0x460   :  { %v10152_v4 = vld [vmem:[%s13055_s1 + $0x20] sm:$0xff] }
 0x461   :  { %2883 = vrot.lane.b32.xlu0 %v2796_v10, %s8758_s10  ;;  %2881 = vrot.lane.b32.xlu1 %v2795_v11, %s8758_s10  ;;  %v10157_v10 = vld [vmem:[%s13055_s1 + $0x10] sm:$0xff] }
 0x462   :  { %v2699_v28 = vpop.permute.xlu0 %2698  ;;  %v2684_v29 = vpop.permute.xlu1 %2683  ;;  %v10164_v11 = vld [vmem:[%s13055_s1 + $0x30] sm:$0xff] }
 0x463   :  { %v2797_v33 = vmul.f32 %v2684_v29, %v2545_v25  ;;  %v2800_v41 = vmul.f32 %v2699_v28, %v2548_v60  ;;  %v10176_v25 = vld [vmem:[%s13055_s1 + $0x40] sm:$0xff]  ;;  %v10181_v28 = vld [vmem:[%s13055_s1 + $0x28] sm:$0xff]  ;;  %v10188_v29 = vld [vmem:[%s13055_s1 + $0x50] sm:$0xff] }
 0x464   :  { %v10205_v60 = vld [vmem:[%s13055_s1 + $0x48] sm:$0xff] }
 0x465   :  { %2887 = vrot.lane.b32.xlu0 %v2798_v32, %s8758_s10  ;;  %2885 = vrot.lane.b32.xlu1 %v2797_v33, %s8758_s10  ;;  %v10193_v32 = vld [vmem:[%s13055_s1 + $0x38] sm:$0xff]  ;;  %v10200_v33 = vld [vmem:[%s13055_s1 + $0x60] sm:$0xff] }
 0x466   :  { %v2709_v14 = vpop.permute.xlu0 %2708  ;;  %v2694_v36 = vpop.permute.xlu1 %2693 }
 0x467   :  { %v2799_v42 = vmul.f32 %v2694_v36, %v2547_v61  ;;  %v2802_v3 = vmul.f32 %v2709_v14, %v2550_v49  ;;  %v10212_v61 = vld [vmem:[%s13055_s1 + $0x70] sm:$0xff]  ;;  %v10217_v14 = vld [vmem:[%s13055_s1 + $0x58] sm:$0xff]  ;;  %v10224_v36 = vld [vmem:[%s13055_s1 + $0x80] sm:$0xff] }
 0x468   :  { %v10241_v49 = vld [vmem:[%s13055_s1 + $0x78] sm:$0xff] }
 0x469   :  { %2891 = vrot.lane.b32.xlu0 %v2800_v41, %s8758_s10  ;;  %2889 = vrot.lane.b32.xlu1 %v2799_v42, %s8758_s10  ;;  %v10229_v41 = vld [vmem:[%s13055_s1 + $0x68] sm:$0xff]  ;;  %v10236_v42 = vld [vmem:[%s13055_s1 + $0x90] sm:$0xff] }
 0x46a   :  { %v2719_v35 = vpop.permute.xlu0 %2718  ;;  %v2704_v0 = vpop.permute.xlu1 %2703 }
 0x46b   :  { %v2801_v37 = vmul.f32 %v2704_v0, %v2549_v54  ;;  %v2804_v53 = vmul.f32 %v2719_v35, %v2552_v38  ;;  %v10248_v54 = vld [vmem:[%s13055_s1 + $0xa0] sm:$0xff]  ;;  %v10253_v35 = vld [vmem:[%s13055_s1 + $0x88] sm:$0xff]  ;;  %v10260_v0 = vld [vmem:[%s13055_s1 + $0xb0] sm:$0xff] }
 0x46c   :  { %v10273_v38 = vld [vmem:[%s13055_s1 + $0xc0] sm:$0xff] }
 0x46d   :  { %2895 = vrot.lane.b32.xlu0 %v2802_v3, %s8758_s10  ;;  %2893 = vrot.lane.b32.xlu1 %v2801_v37, %s8758_s10  ;;  %v10265_v3 = vld [vmem:[%s13055_s1 + $0x98] sm:$0xff] }
 0x46e   :  { %v2729_v46 = vpop.permute.xlu0 %2728  ;;  %v2714_v50 = vpop.permute.xlu1 %2713 }
 0x46f   :  { %v2803_v57 = vmul.f32 %v2714_v50, %v2551_v45  ;;  %v2806_v20 = vmul.f32 %v2729_v46, %v2554_v58  ;;  %v10278_v45 = vld [vmem:[%s13055_s1 + $0xa8] sm:$0xff]  ;;  %v10286_v50 = vld [vmem:[%s13055_s1 + $0xd0] sm:$0xff] }
 0x471   :  { %2899 = vrot.lane.b32.xlu0 %v2804_v53, %s8758_s10  ;;  %2897 = vrot.lane.b32.xlu1 %v2803_v57, %s8758_s10  ;;  %v10291_v53 = vld [vmem:[%s13055_s1 + $0xb8] sm:$0xff] }
 0x472   :  { %v2739_v12 = vpop.permute.xlu0 %2738  ;;  %v2724_v17 = vpop.permute.xlu1 %2723 }
 0x473   :  { %v2805_v6 = vmul.f32 %v2724_v17, %v2553_v63  ;;  %v2808_v8 = vmul.f32 %v2739_v12, %v2556_v9  ;;  %v10300_v63 = vld [vmem:[%s13055_s1 + $0xe0] sm:$0xff]  ;;  %v10305_v12 = vld [vmem:[%s13055_s1 + $0xc8] sm:$0xff]  ;;  %v10319_v9 = vld [vmem:[%s13055_s1 + $0xd8] sm:$0xff] }
 0x475   :  { %2903 = vrot.lane.b32.xlu0 %v2806_v20, %s8758_s10  ;;  %2901 = vrot.lane.b32.xlu1 %v2805_v6, %s8758_s10  ;;  %v10314_v6 = vld [vmem:[%s13055_s1 + $0xf0] sm:$0xff] }
 0x476   :  { %v2749_v19 = vpop.permute.xlu0 %2748  ;;  %v2734_v7 = vpop.permute.xlu1 %2733 }
 0x477   :  { %v2807_v22 = vmul.f32 %v2734_v7, %v2555_v18  ;;  %v2810_v31 = vmul.f32 %v2749_v19, %v2558_v23  ;;  %v10328_v7 = vld [vmem:[%s13055_s1 + $0x100] sm:$0xff] }
 0x479   :  { %2907 = vrot.lane.b32.xlu0 %v2808_v8, %s8758_s10  ;;  %2905 = vrot.lane.b32.xlu1 %v2807_v22, %s8758_s10  ;;  %v10333_v8 = vld [vmem:[%s13055_s1 + $0xe8] sm:$0xff] }
 0x47a   :  { %v2759_v27 = vpop.permute.xlu0 %2758  ;;  %v2744_v30 = vpop.permute.xlu1 %2743 }
 0x47b   :  { %v2809_v34 = vmul.f32 %v2744_v30, %v2557_v26  ;;  %v2812_v47 = vmul.f32 %v2759_v27, %v2560_v39  ;;  %v10342_v26 = vld [vmem:[%s13055_s1 + $0x110] sm:$0xff]  ;;  %v10347_v27 = vld [vmem:[%s13055_s1 + $0xf8] sm:$0xff] }
 0x47d   :  { %2911 = vrot.lane.b32.xlu0 %v2810_v31, %s8758_s10  ;;  %2909 = vrot.lane.b32.xlu1 %v2809_v34, %s8758_s10  ;;  %v10356_v34 = vld [vmem:[%s13055_s1 + $0x108] sm:$0xff] }
 0x47e   :  { %v2769_v43 = vpop.permute.xlu0 %2768  ;;  %v2754_v44 = vpop.permute.xlu1 %2753 }
 0x47f   :  { %v2811_v48 = vmul.f32 %v2754_v44, %v2559_v40  ;;  %v2814_v56 = vmul.f32 %v2769_v43, %v2562_v51  ;;  %v10364_v43 = vld [vmem:[%s13055_s1 + $0x118] sm:$0xff] }
 0x481   :  { %2915 = vrot.lane.b32.xlu0 %v2812_v47, %s8758_s10  ;;  %2913 = vrot.lane.b32.xlu1 %v2811_v48, %s8758_s10  ;;  %v8759_v48 = vmov 8  }
 0x482   :  { %v2764_v55 = vpop.permute.xlu1 %2763  ;;  %v2779_v13 = vpop.permute.xlu0 %2778 }
 0x483   :  { %v2813_v59 = vmul.f32 %v2764_v55, %v2561_v52  ;;  %v2816_v5 = vmul.f32 %v2779_v13, %v2564_v62 }
 0x485   :  { %2919 = vrot.lane.b32.xlu0 %v2814_v56, %s8758_s10  ;;  %2917 = vrot.lane.b32.xlu1 %v2813_v59, %s8758_s10 }
 0x486   :  { %v2774_v1 = vpop.permute.xlu1 %2773 }
 0x487   :  { %v2815_v21 = vmul.f32 %v2774_v1, %v2563_v16 }
 0x489   :  { %2923 = vrot.lane.b32.xlu0 %v2816_v5, %s8758_s10  ;;  %2921 = vrot.lane.b32.xlu1 %v2815_v21, %s8758_s10 }
 0x48d   :  { %3077 = vperm.xlu0 %8677, %v10140_v15   ;;  %3072 = vperm.xlu1 %8676, %v10145_v2  }
 0x491   :  { %3092 = vperm.xlu0 %8677, %v10152_v4   ;;  %3082 = vperm.xlu1 %8676, %v10157_v10  }
 0x495   :  { %3102 = vperm.xlu0 %8677, %v10164_v11   ;;  %3087 = vperm.xlu1 %8676, %v10169_v24  }
 0x499   :  { %3112 = vperm.xlu0 %8677, %v10176_v25   ;;  %3097 = vperm.xlu1 %8676, %v10181_v28  }
 0x49d   :  { %3122 = vperm.xlu0 %8677, %v10188_v29   ;;  %3107 = vperm.xlu1 %8676, %v10193_v32  }
 0x4a1   :  { %3132 = vperm.xlu0 %8677, %v10200_v33   ;;  %3117 = vperm.xlu1 %8676, %v10205_v60  }
 0x4a5   :  { %3142 = vperm.xlu0 %8677, %v10212_v61   ;;  %3127 = vperm.xlu1 %8676, %v10217_v14  }
 0x4a9   :  { %3152 = vperm.xlu0 %8677, %v10224_v36   ;;  %3137 = vperm.xlu1 %8676, %v10229_v41  }
 0x4ad   :  { %3162 = vperm.xlu0 %8677, %v10236_v42   ;;  %3147 = vperm.xlu1 %8676, %v10241_v49  }
 0x4b1   :  { %3172 = vperm.xlu0 %8677, %v10248_v54   ;;  %3157 = vperm.xlu1 %8676, %v10253_v35  }
 0x4b3   :  { %v2854_v37 = vpop.permute.xlu1 %2853 }
 0x4b4   :  { %2962 = vst.msk [vmem:[#allocation3] sm:$0xff] %vm2961_vm6, %v2854_v37 }
 0x4b5   :  { %3182 = vperm.xlu0 %8677, %v10260_v0   ;;  %3167 = vperm.xlu1 %8676, %v10265_v3  }
 0x4b7   :  { %v2856_v46 = vpop.permute.xlu0 %2855 }
 0x4b8   :  { %2963 = vst.msk [vmem:[#allocation3 + $0x10] sm:$0xff] %vm2961_vm6, %v2856_v46 }
 0x4b9   :  { %3192 = vperm.xlu0 %8677, %v10273_v38   ;;  %3177 = vperm.xlu1 %8676, %v10278_v45  }
 0x4bb   :  { %v2860_v57 = vpop.permute.xlu0 %2859  ;;  %v2858_v58 = vpop.permute.xlu1 %2857 }
 0x4bc   :  { %2965 = vst.msk [vmem:[#allocation3 + $0x30] sm:$0xff] %vm2961_vm6, %v2860_v57  ;;  %2964 = vst.msk [vmem:[#allocation3 + $0x20] sm:$0xff] %vm2961_vm6, %v2858_v58 }
 0x4bd   :  { %3202 = vperm.xlu0 %8677, %v10286_v50   ;;  %3187 = vperm.xlu1 %8676, %v10291_v53  }
 0x4bf   :  { %v2864_v17 = vpop.permute.xlu0 %2863  ;;  %v2862_v20 = vpop.permute.xlu1 %2861 }
 0x4c0   :  { %2967 = vst.msk [vmem:[#allocation3 + $0x50] sm:$0xff] %vm2961_vm6, %v2864_v17  ;;  %2966 = vst.msk [vmem:[#allocation3 + $0x40] sm:$0xff] %vm2961_vm6, %v2862_v20 }
 0x4c1   :  { %3212 = vperm.xlu0 %8677, %v10300_v63   ;;  %3197 = vperm.xlu1 %8676, %v10305_v12  }
 0x4c3   :  { %v2868_v18 = vpop.permute.xlu0 %2867  ;;  %v2866_v19 = vpop.permute.xlu1 %2865 }
 0x4c4   :  { %2969 = vst.msk [vmem:[#allocation3 + $0x70] sm:$0xff] %vm2961_vm6, %v2868_v18  ;;  %2968 = vst.msk [vmem:[#allocation3 + $0x60] sm:$0xff] %vm2961_vm6, %v2866_v19 }
 0x4c5   :  { %3222 = vperm.xlu0 %8677, %v10314_v6   ;;  %3207 = vperm.xlu1 %8676, %v10319_v9  }
 0x4c7   :  { %v2872_v22 = vpop.permute.xlu0 %2871  ;;  %v2870_v23 = vpop.permute.xlu1 %2869 }
 0x4c8   :  { %2971 = vst.msk [vmem:[#allocation3 + $0x90] sm:$0xff] %vm2961_vm6, %v2872_v22  ;;  %2970 = vst.msk [vmem:[#allocation3 + $0x80] sm:$0xff] %vm2961_vm6, %v2870_v23  ;;  %v2999_v23 = vld [vmem:[#allocation2 + $0x4c] sm:$0xff] }
 0x4c9   :  { %3232 = vperm.xlu0 %8677, %v10328_v7   ;;  %3217 = vperm.xlu1 %8676, %v10333_v8  }
 0x4cb   :  { %v2876_v30 = vpop.permute.xlu0 %2875  ;;  %v2874_v31 = vpop.permute.xlu1 %2873 }
 0x4cc   :  { %2973 = vst.msk [vmem:[#allocation3 + $0xb0] sm:$0xff] %vm2961_vm6, %v2876_v30  ;;  %2972 = vst.msk [vmem:[#allocation3 + $0xa0] sm:$0xff] %vm2961_vm6, %v2874_v31  ;;  %v2998_v30 = vld [vmem:[#allocation2 + $0x44] sm:$0xff] }
 0x4cd   :  { %3242 = vperm.xlu0 %8677, %v10342_v26   ;;  %3227 = vperm.xlu1 %8676, %v10347_v27  }
 0x4cf   :  { %v2880_v39 = vpop.permute.xlu0 %2879  ;;  %v2878_v40 = vpop.permute.xlu1 %2877 }
 0x4d0   :  { %2975 = vst.msk [vmem:[#allocation3 + $0xd0] sm:$0xff] %vm2961_vm6, %v2880_v39  ;;  %2974 = vst.msk [vmem:[#allocation3 + $0xc0] sm:$0xff] %vm2961_vm6, %v2878_v40 }
 0x4d1   :  { %3237 = vperm.xlu1 %8676, %v10356_v34   ;;  %8678 = vset.pattern.permute.xlu0 %v8759_v48 }
 0x4d3   :  { %v2884_v44 = vpop.permute.xlu0 %2883  ;;  %v2882_v47 = vpop.permute.xlu1 %2881 }
 0x4d4   :  { %2977 = vst.msk [vmem:[#allocation3 + $0xf0] sm:$0xff] %vm2961_vm6, %v2884_v44  ;;  %2976 = vst.msk [vmem:[#allocation3 + $0xe0] sm:$0xff] %vm2961_vm6, %v2882_v47  ;;  %v3000_v47 = vld [vmem:[#allocation2 + $0x54] sm:$0xff] }
 0x4d5   :  { %3247 = vperm.xlu1 %8676, %v10364_v43  }
 0x4d7   :  { %v2888_v51 = vpop.permute.xlu0 %2887  ;;  %v2886_v52 = vpop.permute.xlu1 %2885 }
 0x4d8   :  { %2979 = vst.msk [vmem:[#allocation3 + $0x110] sm:$0xff] %vm2961_vm6, %v2888_v51  ;;  %2978 = vst.msk [vmem:[#allocation3 + $0x100] sm:$0xff] %vm2961_vm6, %v2886_v52 }
 0x4d9   :  { %8679 = vset.pattern.permute.xlu1 %v8759_v48 }
 0x4db   :  { %v2892_v55 = vpop.permute.xlu0 %2891  ;;  %v2890_v56 = vpop.permute.xlu1 %2889 }
 0x4dc   :  { %2981 = vst.msk [vmem:[#allocation3 + $0x130] sm:$0xff] %vm2961_vm6, %v2892_v55  ;;  %2980 = vst.msk [vmem:[#allocation3 + $0x120] sm:$0xff] %vm2961_vm6, %v2890_v56  ;;  %v3002_v55 = vld [vmem:[#allocation2 + $0x64] sm:$0xff]  ;;  %v3001_v56 = vld [vmem:[#allocation2 + $0x5c] sm:$0xff] }
 0x4df   :  { %v2896_v59 = vpop.permute.xlu0 %2895  ;;  %v2894_v62 = vpop.permute.xlu1 %2893 }
 0x4e0   :  { %2983 = vst.msk [vmem:[#allocation3 + $0x150] sm:$0xff] %vm2961_vm6, %v2896_v59  ;;  %2982 = vst.msk [vmem:[#allocation3 + $0x140] sm:$0xff] %vm2961_vm6, %v2894_v62 }
 0x4e3   :  { %v2900_v13 = vpop.permute.xlu0 %2899  ;;  %v2898_v16 = vpop.permute.xlu1 %2897 }
 0x4e4   :  { %2985 = vst.msk [vmem:[#allocation3 + $0x170] sm:$0xff] %vm2961_vm6, %v2900_v13  ;;  %2984 = vst.msk [vmem:[#allocation3 + $0x160] sm:$0xff] %vm2961_vm6, %v2898_v16 }
 0x4e7   :  { %v2904_v1 = vpop.permute.xlu0 %2903  ;;  %v2902_v5 = vpop.permute.xlu1 %2901 }
 0x4e8   :  { %2987 = vst.msk [vmem:[#allocation3 + $0x190] sm:$0xff] %vm2961_vm6, %v2904_v1  ;;  %2986 = vst.msk [vmem:[#allocation3 + $0x180] sm:$0xff] %vm2961_vm6, %v2902_v5  ;;  %v3004_v1 = vld [vmem:[#allocation2 + $0x74] sm:$0xff]  ;;  %v3003_v5 = vld [vmem:[#allocation2 + $0x6c] sm:$0xff] }
 0x4eb   :  { %v2908_v21 = vpop.permute.xlu0 %2907  ;;  %v2906_v37 = vpop.permute.xlu1 %2905 }
 0x4ec   :  { %2989 = vst.msk [vmem:[#allocation3 + $0x1b0] sm:$0xff] %vm2961_vm6, %v2908_v21  ;;  %2988 = vst.msk [vmem:[#allocation3 + $0x1a0] sm:$0xff] %vm2961_vm6, %v2906_v37 }
 0x4ef   :  { %v2912_v46 = vpop.permute.xlu0 %2911  ;;  %v2910_v57 = vpop.permute.xlu1 %2909 }
 0x4f0   :  { %2991 = vst.msk [vmem:[#allocation3 + $0x1d0] sm:$0xff] %vm2961_vm6, %v2912_v46  ;;  %2990 = vst.msk [vmem:[#allocation3 + $0x1c0] sm:$0xff] %vm2961_vm6, %v2910_v57 }
 0x4f3   :  { %v2916_v58 = vpop.permute.xlu0 %2915  ;;  %v2914_v17 = vpop.permute.xlu1 %2913 }
 0x4f4   :  { %2993 = vst.msk [vmem:[#allocation3 + $0x1f0] sm:$0xff] %vm2961_vm6, %v2916_v58  ;;  %2992 = vst.msk [vmem:[#allocation3 + $0x1e0] sm:$0xff] %vm2961_vm6, %v2914_v17  ;;  %v3006_v58 = vld [vmem:[#allocation2 + $0x84] sm:$0xff]  ;;  %v3005_v17 = vld [vmem:[#allocation2 + $0x7c] sm:$0xff] }
 0x4f7   :  { %v2920_v20 = vpop.permute.xlu0 %2919  ;;  %v2918_v18 = vpop.permute.xlu1 %2917 }
 0x4f8   :  { %2995 = vst.msk [vmem:[#allocation3 + $0x210] sm:$0xff] %vm2961_vm6, %v2920_v20  ;;  %2994 = vst.msk [vmem:[#allocation3 + $0x200] sm:$0xff] %vm2961_vm6, %v2918_v18 }
 0x4fb   :  { %v2924_v19 = vpop.permute.xlu0 %2923  ;;  %v2922_v22 = vpop.permute.xlu1 %2921 }
 0x4fc   :  { %2997 = vst.msk [vmem:[#allocation3 + $0x230] sm:$0xff] %vm2961_vm6, %v2924_v19  ;;  %2996 = vst.msk [vmem:[#allocation3 + $0x220] sm:$0xff] %vm2961_vm6, %v2922_v22 }
 0x50c   :  { %v3078_v31 = vpop.permute.xlu0 %3077  ;;  %v3073_v39 = vpop.permute.xlu1 %3072 }
 0x50d   :  { %v3251_v40 = vmul.f32 %v3078_v31, %v2999_v23  ;;  %v3250_v44 = vmul.f32 %v3073_v39, %v2998_v30  ;;  %v3008_v23 = vld [vmem:[#allocation2 + $0x94] sm:$0xff]  ;;  %v3007_v30 = vld [vmem:[#allocation2 + $0x8c] sm:$0xff] }
 0x50f   :  { %3322 = vrot.lane.b32.xlu0 %v3250_v44, %s8760_s29  ;;  %3324 = vrot.lane.b32.xlu1 %v3251_v40, %s8760_s29 }
 0x510   :  { %v3093_v48 = vpop.permute.xlu0 %3092  ;;  %v3083_v51 = vpop.permute.xlu1 %3082 }
 0x511   :  { %v3252_v52 = vmul.f32 %v3083_v51, %v3000_v47  ;;  %v3254_v13 = vmul.f32 %v3093_v48, %v3002_v55  ;;  %v3010_v47 = vld [vmem:[#allocation2 + $0xa4] sm:$0xff]  ;;  %v3009_v48 = vld [vmem:[#allocation2 + $0x9c] sm:$0xff] }
 0x513   :  { %3326 = vrot.lane.b32.xlu0 %v3252_v52, %s8760_s29 }
 0x514   :  { %v3103_v59 = vpop.permute.xlu0 %3102  ;;  %v3088_v62 = vpop.permute.xlu1 %3087 }
 0x515   :  { %v3253_v16 = vmul.f32 %v3088_v62, %v3001_v56  ;;  %v3256_v46 = vmul.f32 %v3103_v59, %v3004_v1  ;;  %v3012_v59 = vld [vmem:[#allocation2 + $0xb4] sm:$0xff]  ;;  %v3011_v62 = vld [vmem:[#allocation2 + $0xac] sm:$0xff] }
 0x517   :  { %3330 = vrot.lane.b32.xlu0 %v3254_v13, %s8760_s29  ;;  %3328 = vrot.lane.b32.xlu1 %v3253_v16, %s8760_s29 }
 0x518   :  { %v3113_v21 = vpop.permute.xlu0 %3112  ;;  %v3098_v37 = vpop.permute.xlu1 %3097 }
 0x519   :  { %v3255_v57 = vmul.f32 %v3098_v37, %v3003_v5  ;;  %v3258_v19 = vmul.f32 %v3113_v21, %v3006_v58  ;;  %v3014_v21 = vld [vmem:[#allocation2 + $0xc4] sm:$0xff]  ;;  %v3013_v37 = vld [vmem:[#allocation2 + $0xbc] sm:$0xff] }
 0x51b   :  { %3334 = vrot.lane.b32.xlu0 %v3256_v46, %s8760_s29  ;;  %3332 = vrot.lane.b32.xlu1 %v3255_v57, %s8760_s29 }
 0x51c   :  { %v3123_v20 = vpop.permute.xlu0 %3122  ;;  %v3108_v18 = vpop.permute.xlu1 %3107 }
 0x51d   :  { %v3257_v22 = vmul.f32 %v3108_v18, %v3005_v17  ;;  %v3260_v40 = vmul.f32 %v3123_v20, %v3008_v23  ;;  %v3016_v20 = vld [vmem:[#allocation2 + $0xd4] sm:$0xff]  ;;  %v3015_v18 = vld [vmem:[#allocation2 + $0xcc] sm:$0xff] }
 0x51f   :  { %3338 = vrot.lane.b32.xlu0 %v3258_v19, %s8760_s29  ;;  %3336 = vrot.lane.b32.xlu1 %v3257_v22, %s8760_s29 }
 0x520   :  { %v3133_v31 = vpop.permute.xlu0 %3132  ;;  %v3118_v39 = vpop.permute.xlu1 %3117 }
 0x521   :  { %v3259_v44 = vmul.f32 %v3118_v39, %v3007_v30  ;;  %v3262_v55 = vmul.f32 %v3133_v31, %v3010_v47  ;;  %v3018_v31 = vld [vmem:[#allocation2 + $0xe4] sm:$0xff]  ;;  %v3017_v39 = vld [vmem:[#allocation2 + $0xdc] sm:$0xff] }
 0x523   :  { %3342 = vrot.lane.b32.xlu0 %v3260_v40, %s8760_s29  ;;  %3340 = vrot.lane.b32.xlu1 %v3259_v44, %s8760_s29 }
 0x524   :  { %v3143_v51 = vpop.permute.xlu0 %3142  ;;  %v3128_v52 = vpop.permute.xlu1 %3127 }
 0x525   :  { %v3261_v56 = vmul.f32 %v3128_v52, %v3009_v48  ;;  %v3264_v1 = vmul.f32 %v3143_v51, %v3012_v59  ;;  %v3020_v51 = vld [vmem:[#allocation2 + $0xf4] sm:$0xff]  ;;  %v3019_v52 = vld [vmem:[#allocation2 + $0xec] sm:$0xff] }
 0x527   :  { %3346 = vrot.lane.b32.xlu0 %v3262_v55, %s8760_s29  ;;  %3344 = vrot.lane.b32.xlu1 %v3261_v56, %s8760_s29 }
 0x528   :  { %v3153_v13 = vpop.permute.xlu0 %3152  ;;  %v3138_v16 = vpop.permute.xlu1 %3137 }
 0x529   :  { %v3263_v5 = vmul.f32 %v3138_v16, %v3011_v62  ;;  %v3266_v58 = vmul.f32 %v3153_v13, %v3014_v21  ;;  %v3022_v13 = vld [vmem:[#allocation2 + $0x104] sm:$0xff]  ;;  %v3021_v16 = vld [vmem:[#allocation2 + $0xfc] sm:$0xff] }
 0x52a   :  { %v3863_v21 = vld [vmem:[%s13057_s2] sm:$0xff] }
 0x52b   :  { %3350 = vrot.lane.b32.xlu0 %v3264_v1, %s8760_s29  ;;  %3348 = vrot.lane.b32.xlu1 %v3263_v5, %s8760_s29 }
 0x52c   :  { %v3163_v46 = vpop.permute.xlu0 %3162  ;;  %v3148_v57 = vpop.permute.xlu1 %3147 }
 0x52d   :  { %v3265_v17 = vmul.f32 %v3148_v57, %v3013_v37  ;;  %v3268_v23 = vmul.f32 %v3163_v46, %v3016_v20  ;;  %v3864_v37 = vld [vmem:[%s13057_s2 + $0x8] sm:$0xff] }
 0x52e   :  { %v3023_v20 = vld [vmem:[#allocation2 + $0x10c] sm:$0xff] }
 0x52f   :  { %3354 = vrot.lane.b32.xlu0 %v3266_v58, %s8760_s29  ;;  %3352 = vrot.lane.b32.xlu1 %v3265_v17, %s8760_s29  ;;  %v8586_v58 = vpack.c.bf16 %v3864_v37, %v3863_v21  ;;  %v3024_v17 = vld [vmem:[#allocation2 + $0x114] sm:$0xff] }
 0x530   :  { %v3173_v19 = vpop.permute.xlu0 %3172  ;;  %v3158_v22 = vpop.permute.xlu1 %3157  ;;  %v3869_v21 = vld [vmem:[%s13057_s2 + $0x30] sm:$0xff]  ;;  %v3870_v37 = vld [vmem:[%s13057_s2 + $0x38] sm:$0xff] }
 0x531   :  { %v3267_v30 = vmul.f32 %v3158_v22, %v3015_v18  ;;  %v3270_v47 = vmul.f32 %v3173_v19, %v3018_v31  ;;  %v13062_v18 = vmov 0.0|0.0  }
 0x532   :  { %8585 = vmatprep.subr.bf16.mxu0 %v13062_v18  ;;  %8612 = vmatprep.subr.bf16.mxu1 %v13062_v18 }
 0x533   :  { %3358 = vrot.lane.b32.xlu0 %v3268_v23, %s8760_s29  ;;  %3356 = vrot.lane.b32.xlu1 %v3267_v30, %s8760_s29  ;;  %v3865_v23 = vld [vmem:[%s13057_s2 + $0x10] sm:$0xff]  ;;  %v3866_v30 = vld [vmem:[%s13057_s2 + $0x18] sm:$0xff] }
 0x534   :  { %v3183_v40 = vpop.permute.xlu0 %3182  ;;  %v3168_v44 = vpop.permute.xlu1 %3167  ;;  %8587 = vmatpush1.bf16.msra.mxu0 %v8586_v58 }
 0x535   :  { %v3269_v48 = vmul.f32 %v3168_v44, %v3017_v39  ;;  %v3272_v59 = vmul.f32 %v3183_v40, %v3020_v51  ;;  %8588 = vmatprep.subr.bf16.mxu0 %v13062_v18  ;;  %v8589_v40 = vpack.c.bf16 %v3866_v30, %v3865_v23  ;;  %v3026_v44 = vld [vmem:[#allocation2 + $0x124] sm:$0xff] }
 0x537   :  { %3362 = vrot.lane.b32.xlu0 %v3270_v47, %s8760_s29  ;;  %3360 = vrot.lane.b32.xlu1 %v3269_v48, %s8760_s29  ;;  %v3025_v47 = vld [vmem:[#allocation2 + $0x11c] sm:$0xff] }
 0x538   :  { %v3193_v55 = vpop.permute.xlu0 %3192  ;;  %v3178_v56 = vpop.permute.xlu1 %3177  ;;  %8590 = vmatpush1.bf16.msra.mxu0 %v8589_v40  ;;  %v3873_v40 = vld [vmem:[%s13057_s2 + $0x50] sm:$0xff] }
 0x539   :  { %v3271_v62 = vmul.f32 %v3178_v56, %v3019_v52  ;;  %v3274_v46 = vmul.f32 %v3193_v55, %v3022_v13  ;;  %v3867_v52 = vld [vmem:[%s13057_s2 + $0x20] sm:$0xff]  ;;  %v3868_v55 = vld [vmem:[%s13057_s2 + $0x28] sm:$0xff]  ;;  %8591 = vmatprep.subr.bf16.mxu0 %v13062_v18  ;;  %v3028_v13 = vld [vmem:[#allocation2 + $0x134] sm:$0xff] }
 0x53b   :  { %3366 = vrot.lane.b32.xlu0 %v3272_v59, %s8760_s29  ;;  %3364 = vrot.lane.b32.xlu1 %v3271_v62, %s8760_s29  ;;  %v8592_v62 = vpack.c.bf16 %v3868_v55, %v3867_v52 }
 0x53c   :  { %v3203_v1 = vpop.permute.xlu0 %3202  ;;  %v3188_v5 = vpop.permute.xlu1 %3187 }
 0x53d   :  { %v3273_v57 = vmul.f32 %v3188_v5, %v3021_v16  ;;  %v3276_v31 = vmul.f32 %v3203_v1, %v3024_v17  ;;  %v3027_v16 = vld [vmem:[#allocation2 + $0x12c] sm:$0xff]  ;;  %8593 = vmatpush1.bf16.msra.mxu0 %v8592_v62  ;;  %v8595_v17 = vpack.c.bf16 %v3870_v37, %v3869_v21  ;;  %v3033_v62 = vld [vmem:[#allocation2 + $0x15c] sm:$0xff] }
 0x53e   :  { %8594 = vmatprep.subr.bf16.mxu0 %v13062_v18  ;;  %v3877_v37 = vld [vmem:[%s13057_s2 + $0x70] sm:$0xff] }
 0x53f   :  { %3370 = vrot.lane.b32.xlu0 %v3274_v46, %s8760_s29  ;;  %3368 = vrot.lane.b32.xlu1 %v3273_v57, %s8760_s29  ;;  %v3030_v57 = vld [vmem:[#allocation2 + $0x144] sm:$0xff] }
 0x540   :  { %v3213_v19 = vpop.permute.xlu0 %3212  ;;  %v3198_v22 = vpop.permute.xlu1 %3197 }
 0x541   :  { %v3275_v39 = vmul.f32 %v3198_v22, %v3023_v20  ;;  %v3278_v56 = vmul.f32 %v3213_v19, %v3026_v44  ;;  %v3029_v20 = vld [vmem:[#allocation2 + $0x13c] sm:$0xff]  ;;  %v3872_v22 = vld [vmem:[%s13057_s2 + $0x48] sm:$0xff]  ;;  %8596 = vmatpush1.bf16.msra.mxu0 %v8595_v17 }
 0x542   :  { %v3871_v19 = vld [vmem:[%s13057_s2 + $0x40] sm:$0xff]  ;;  %8597 = vmatprep.subr.bf16.mxu0 %v13062_v18  ;;  %v3874_v44 = vld [vmem:[%s13057_s2 + $0x58] sm:$0xff]  ;;  %v3880_v17 = vld [vmem:[%s13057_s2 + $0x88] sm:$0xff] }
 0x543   :  { %3374 = vrot.lane.b32.xlu0 %v3276_v31, %s8760_s29  ;;  %3372 = vrot.lane.b32.xlu1 %v3275_v39, %s8760_s29  ;;  %v8598_v30 = vpack.c.bf16 %v3872_v22, %v3871_v19  ;;  %v8601_v55 = vpack.c.bf16 %v3874_v44, %v3873_v40  ;;  %v10604_v19 = vld [vmem:[%s13055_s1 + $0x48] sm:$0xff]  ;;  %v10609_v22 = vld [vmem:[%s13055_s1 + $0x70] sm:$0xff] }
 0x544   :  { %v3223_v48 = vpop.permute.xlu0 %3222  ;;  %v3208_v51 = vpop.permute.xlu1 %3207 }
 0x545   :  { %v3277_v59 = vmul.f32 %v3208_v51, %v3025_v47  ;;  %v3280_v46 = vmul.f32 %v3223_v48, %v3028_v13  ;;  %v3032_v47 = vld [vmem:[#allocation2 + $0x154] sm:$0xff]  ;;  %v3031_v51 = vld [vmem:[#allocation2 + $0x14c] sm:$0xff]  ;;  %8599 = vmatpush1.bf16.msra.mxu0 %v8598_v30 }
 0x546   :  { %8600 = vmatprep.subr.bf16.mxu0 %v13062_v18 }
 0x547   :  { %3378 = vrot.lane.b32.xlu0 %v3278_v56, %s8760_s29  ;;  %3376 = vrot.lane.b32.xlu1 %v3277_v59, %s8760_s29 }
 0x548   :  { %v3233_v1 = vpop.permute.xlu0 %3232  ;;  %v3218_v5 = vpop.permute.xlu1 %3217 }
 0x549   :  { %v3279_v58 = vmul.f32 %v3218_v5, %v3027_v16  ;;  %v3282_v31 = vmul.f32 %v3233_v1, %v3030_v57  ;;  %8602 = vmatpush1.bf16.msra.mxu0 %v8601_v55  ;;  %v3875_v16 = vld [vmem:[%s13057_s2 + $0x60] sm:$0xff]  ;;  %v3876_v1 = vld [vmem:[%s13057_s2 + $0x68] sm:$0xff]  ;;  %v10646_v55 = vld [vmem:[%s13055_s1 + $0x78] sm:$0xff] }
 0x54a   :  { %8603 = vmatprep.subr.bf16.mxu0 %v13062_v18  ;;  %v8604_v21 = vpack.c.bf16 %v3876_v1, %v3875_v16  ;;  %v10665_v16 = vld [vmem:[%s13055_s1 + $0xb0] sm:$0xff] }
 0x54b   :  { %3382 = vrot.lane.b32.xlu0 %v3280_v46, %s8760_s29  ;;  %3380 = vrot.lane.b32.xlu1 %v3279_v58, %s8760_s29  ;;  %v3878_v46 = vld [vmem:[%s13057_s2 + $0x78] sm:$0xff]  ;;  %v3879_v58 = vld [vmem:[%s13057_s2 + $0x80] sm:$0xff] }
 0x54c   :  { %v3228_v23 = vpop.permute.xlu1 %3227  ;;  %v3243_v48 = vpop.permute.xlu0 %3242  ;;  %v8607_v57 = vpack.c.bf16 %v3878_v46, %v3877_v37  ;;  %v10687_v37 = vld [vmem:[%s13055_s1 + $0xa8] sm:$0xff]  ;;  %v10692_v46 = vld [vmem:[%s13055_s1 + $0xd0] sm:$0xff] }
 0x54d   :  { %v3281_v39 = vmul.f32 %v3228_v23, %v3029_v20  ;;  %v3284_v56 = vmul.f32 %v3243_v48, %v3032_v47  ;;  %8605 = vmatpush1.bf16.msra.mxu0 %v8604_v21  ;;  %v8610_v20 = vpack.c.bf16 %v3880_v17, %v3879_v58  ;;  %v10632_v47 = vld [vmem:[%s13055_s1 + $0x68] sm:$0xff]  ;;  %v10637_v48 = vld [vmem:[%s13055_s1 + $0x90] sm:$0xff]  ;;  %v10679_v21 = vld [vmem:[%s13055_s1 + $0xc0] sm:$0xff] }
 0x54e   :  { %8606 = vmatprep.subr.bf16.mxu0 %v13062_v18  ;;  %v10704_v58 = vld [vmem:[%s13055_s1 + $0xe0] sm:$0xff] }
 0x54f   :  { %3386 = vrot.lane.b32.xlu0 %v3282_v31, %s8760_s29  ;;  %3384 = vrot.lane.b32.xlu1 %v3281_v39, %s8760_s29  ;;  %v10618_v31 = vld [vmem:[%s13055_s1 + $0x58] sm:$0xff]  ;;  %v10623_v39 = vld [vmem:[%s13055_s1 + $0x80] sm:$0xff] }
 0x550   :  { %v3238_v52 = vpop.permute.xlu1 %3237  ;;  %v3467_v17 = vld [vmem:[#allocation2 + $0x45] sm:$0xff] }
 0x551   :  { %v3283_v59 = vmul.f32 %v3238_v52, %v3031_v51  ;;  %8608 = vmatpush1.bf16.msra.mxu0 %v8607_v57  ;;  %v10699_v57 = vld [vmem:[%s13055_s1 + $0xb8] sm:$0xff] }
 0x552   :  { %8609 = vmatprep.subr.bf16.mxu0 %v13062_v18 }
 0x553   :  { %3390 = vrot.lane.b32.xlu0 %v3284_v56, %s8760_s29  ;;  %3388 = vrot.lane.b32.xlu1 %v3283_v59, %s8760_s29  ;;  %v10651_v56 = vld [vmem:[%s13055_s1 + $0xa0] sm:$0xff] }
 0x554   :  { %v3248_v13 = vpop.permute.xlu1 %3247 }
 0x555   :  { %v3285_v5 = vmul.f32 %v3248_v13, %v3033_v62  ;;  %8611 = vmatpush1.bf16.msra.mxu0 %v8610_v20  ;;  %v10660_v13 = vld [vmem:[%s13055_s1 + $0x88] sm:$0xff] }
 0x556   :  { %v10711_v20 = vld [vmem:[%s13055_s1 + $0xc8] sm:$0xff] }
 0x557   :  { %3541 = vperm.xlu0 %8678, %v10145_v2   ;;  %3392 = vrot.lane.b32.xlu1 %v3285_v5, %s8760_s29  ;;  %v10674_v5 = vld [vmem:[%s13055_s1 + $0x98] sm:$0xff] }
 0x55b   :  { %3556 = vperm.xlu0 %8678, %v10169_v24   ;;  %3546 = vperm.xlu1 %8679, %v10140_v15  }
 0x55f   :  { %3566 = vperm.xlu0 %8678, %v10181_v28   ;;  %3551 = vperm.xlu1 %8679, %v10157_v10  }
 0x563   :  { %3576 = vperm.xlu0 %8678, %v10193_v32   ;;  %3561 = vperm.xlu1 %8679, %v10152_v4  }
 0x567   :  { %3586 = vperm.xlu0 %8678, %v10205_v60   ;;  %3571 = vperm.xlu1 %8679, %v10164_v11  }
 0x56b   :  { %3596 = vperm.xlu0 %8678, %v10217_v14   ;;  %3581 = vperm.xlu1 %8679, %v10176_v25  }
 0x56f   :  { %3606 = vperm.xlu0 %8678, %v10229_v41   ;;  %3591 = vperm.xlu1 %8679, %v10188_v29  }
 0x573   :  { %3616 = vperm.xlu0 %8678, %v10241_v49   ;;  %3601 = vperm.xlu1 %8679, %v10200_v33  }
 0x577   :  { %3626 = vperm.xlu0 %8678, %v10253_v35   ;;  %3611 = vperm.xlu1 %8679, %v10212_v61   ;;  %v8762_v35 = vmov 9  }
 0x57b   :  { %3636 = vperm.xlu0 %8678, %v10265_v3   ;;  %3621 = vperm.xlu1 %8679, %v10224_v36  }
 0x57f   :  { %3646 = vperm.xlu0 %8678, %v10278_v45   ;;  %3631 = vperm.xlu1 %8679, %v10236_v42  }
 0x581   :  { %v3323_v15 = vpop.permute.xlu0 %3322  ;;  %v3325_v4 = vpop.permute.xlu1 %3324 }
 0x582   :  { %3431 = vst.msk [vmem:[#allocation3] sm:$0xff] %vm3430_vm7, %v3323_v15  ;;  %3432 = vst.msk [vmem:[#allocation3 + $0x10] sm:$0xff] %vm3430_vm7, %v3325_v4  ;;  %v10716_v15 = vld [vmem:[%s13055_s1 + $0xf0] sm:$0xff] }
 0x583   :  { %3656 = vperm.xlu0 %8678, %v10291_v53   ;;  %3641 = vperm.xlu1 %8679, %v10248_v54   ;;  %v10540_v54 = vld [vmem:[%s13055_s1 + $0x8] sm:$0xff]  ;;  %v10558_v53 = vld [vmem:[%s13055_s1 + $0x30] sm:$0xff] }
 0x585   :  { %v3327_v11 = vpop.permute.xlu0 %3326 }
 0x586   :  { %3433 = vst.msk [vmem:[#allocation3 + $0x20] sm:$0xff] %vm3430_vm7, %v3327_v11 }
 0x587   :  { %3666 = vperm.xlu0 %8678, %v10305_v12   ;;  %3651 = vperm.xlu1 %8679, %v10260_v0  }
 0x589   :  { %v3331_v25 = vpop.permute.xlu0 %3330  ;;  %v3329_v28 = vpop.permute.xlu1 %3328 }
 0x58a   :  { %3435 = vst.msk [vmem:[#allocation3 + $0x40] sm:$0xff] %vm3430_vm7, %v3331_v25  ;;  %3434 = vst.msk [vmem:[#allocation3 + $0x30] sm:$0xff] %vm3430_vm7, %v3329_v28  ;;  %v3470_v25 = vld [vmem:[#allocation2 + $0x5d] sm:$0xff]  ;;  %v3468_v28 = vld [vmem:[#allocation2 + $0x4d] sm:$0xff] }
 0x58b   :  { %3676 = vperm.xlu0 %8678, %v10319_v9   ;;  %3661 = vperm.xlu1 %8679, %v10273_v38   ;;  %v10549_v38 = vld [vmem:[%s13055_s1 + $0x20] sm:$0xff] }
 0x58d   :  { %v3335_v29 = vpop.permute.xlu0 %3334  ;;  %v3333_v32 = vpop.permute.xlu1 %3332 }
 0x58e   :  { %3437 = vst.msk [vmem:[#allocation3 + $0x60] sm:$0xff] %vm3430_vm7, %v3335_v29  ;;  %3436 = vst.msk [vmem:[#allocation3 + $0x50] sm:$0xff] %vm3430_vm7, %v3333_v32  ;;  %v10724_v29 = vld [vmem:[%s13055_s1 + $0xd8] sm:$0xff]  ;;  %v10729_v32 = vld [vmem:[%s13055_s1 + $0x100] sm:$0xff] }
 0x58f   :  { %3686 = vperm.xlu0 %8678, %v10333_v8   ;;  %3671 = vperm.xlu1 %8679, %v10286_v50  }
 0x591   :  { %v3339_v33 = vpop.permute.xlu0 %3338  ;;  %v3337_v60 = vpop.permute.xlu1 %3336 }
 0x592   :  { %3439 = vst.msk [vmem:[#allocation3 + $0x80] sm:$0xff] %vm3430_vm7, %v3339_v33  ;;  %3438 = vst.msk [vmem:[#allocation3 + $0x70] sm:$0xff] %vm3430_vm7, %v3337_v60 }
 0x593   :  { %3696 = vperm.xlu0 %8678, %v10347_v27   ;;  %3681 = vperm.xlu1 %8679, %v10300_v63   ;;  %v10595_v27 = vld [vmem:[%s13055_s1 + $0x60] sm:$0xff] }
 0x595   :  { %v3343_v61 = vpop.permute.xlu0 %3342  ;;  %v3341_v14 = vpop.permute.xlu1 %3340 }
 0x596   :  { %3441 = vst.msk [vmem:[#allocation3 + $0xa0] sm:$0xff] %vm3430_vm7, %v3343_v61  ;;  %3440 = vst.msk [vmem:[#allocation3 + $0x90] sm:$0xff] %vm3430_vm7, %v3341_v14 }
 0x597   :  { %3706 = vperm.xlu0 %8678, %v10356_v34   ;;  %3691 = vperm.xlu1 %8679, %v10314_v6  }
 0x599   :  { %v3347_v36 = vpop.permute.xlu0 %3346  ;;  %v3345_v41 = vpop.permute.xlu1 %3344 }
 0x59a   :  { %3443 = vst.msk [vmem:[#allocation3 + $0xc0] sm:$0xff] %vm3430_vm7, %v3347_v36  ;;  %3442 = vst.msk [vmem:[#allocation3 + $0xb0] sm:$0xff] %vm3430_vm7, %v3345_v41  ;;  %v3472_v36 = vld [vmem:[#allocation2 + $0x6d] sm:$0xff]  ;;  %v3469_v41 = vld [vmem:[#allocation2 + $0x55] sm:$0xff] }
 0x59b   :  { %3716 = vperm.xlu0 %8678, %v10364_v43   ;;  %3701 = vperm.xlu1 %8679, %v10328_v7   ;;  %v10581_v7 = vld [vmem:[%s13055_s1 + $0x50] sm:$0xff] }
 0x59d   :  { %v3351_v42 = vpop.permute.xlu0 %3350  ;;  %v3349_v49 = vpop.permute.xlu1 %3348 }
 0x59e   :  { %3445 = vst.msk [vmem:[#allocation3 + $0xe0] sm:$0xff] %vm3430_vm7, %v3351_v42  ;;  %3444 = vst.msk [vmem:[#allocation3 + $0xd0] sm:$0xff] %vm3430_vm7, %v3349_v49  ;;  %v10738_v42 = vld [vmem:[%s13055_s1 + $0xe8] sm:$0xff]  ;;  %v10743_v49 = vld [vmem:[%s13055_s1 + $0x110] sm:$0xff] }
 0x59f   :  { %3711 = vperm.xlu1 %8679, %v10342_v26   ;;  %8681 = vset.pattern.permute.xlu0 %v8762_v35  ;;  %v10590_v26 = vld [vmem:[%s13055_s1 + $0x38] sm:$0xff] }
 0x5a0   :  { %4392 = vperm.xlu0 %8681, %v10540_v54  }
 0x5a1   :  { %v3355_v0 = vpop.permute.xlu0 %3354  ;;  %v3353_v3 = vpop.permute.xlu1 %3352 }
 0x5a2   :  { %3447 = vst.msk [vmem:[#allocation3 + $0x100] sm:$0xff] %vm3430_vm7, %v3355_v0  ;;  %3446 = vst.msk [vmem:[#allocation3 + $0xf0] sm:$0xff] %vm3430_vm7, %v3353_v3 }
 0x5a3   :  { %8680 = vset.pattern.permute.xlu1 %v8762_v35 }
 0x5a4   :  { %4387 = vperm.xlu1 %8680, %v10145_v2   ;;  %4407 = vperm.xlu0 %8681, %v10549_v38   ;;  %v10567_v2 = vld [vmem:[%s13055_s1 + $0x40] sm:$0xff] }
 0x5a5   :  { %v3359_v45 = vpop.permute.xlu0 %3358  ;;  %v3357_v50 = vpop.permute.xlu1 %3356 }
 0x5a6   :  { %3449 = vst.msk [vmem:[#allocation3 + $0x120] sm:$0xff] %vm3430_vm7, %v3359_v45  ;;  %3448 = vst.msk [vmem:[#allocation3 + $0x110] sm:$0xff] %vm3430_vm7, %v3357_v50 }
 0x5a8   :  { %4397 = vperm.xlu1 %8680, %v10157_v10   ;;  %4417 = vperm.xlu0 %8681, %v10558_v53   ;;  %v10576_v10 = vld [vmem:[%s13055_s1 + $0x28] sm:$0xff] }
 0x5a9   :  { %v3363_v63 = vpop.permute.xlu0 %3362  ;;  %v3361_v12 = vpop.permute.xlu1 %3360 }
 0x5aa   :  { %3451 = vst.msk [vmem:[#allocation3 + $0x140] sm:$0xff] %vm3430_vm7, %v3363_v63  ;;  %3450 = vst.msk [vmem:[#allocation3 + $0x130] sm:$0xff] %vm3430_vm7, %v3361_v12  ;;  %v3474_v63 = vld [vmem:[#allocation2 + $0x7d] sm:$0xff]  ;;  %v3471_v12 = vld [vmem:[#allocation2 + $0x65] sm:$0xff] }
 0x5ac   :  { %4402 = vperm.xlu1 %8680, %v10169_v24   ;;  %4427 = vperm.xlu0 %8681, %v10567_v2  }
 0x5ad   :  { %v3367_v6 = vpop.permute.xlu0 %3366  ;;  %v3365_v9 = vpop.permute.xlu1 %3364 }
 0x5ae   :  { %3453 = vst.msk [vmem:[#allocation3 + $0x160] sm:$0xff] %vm3430_vm7, %v3367_v6  ;;  %3452 = vst.msk [vmem:[#allocation3 + $0x150] sm:$0xff] %vm3430_vm7, %v3365_v9  ;;  %v3791_v6 = vld [vmem:[#allocation3] sm:$0xff]  ;;  %v10753_v9 = vld [vmem:[%s13055_s1 + $0xf8] sm:$0xff] }
 0x5b0   :  { %4412 = vperm.xlu1 %8680, %v10576_v10   ;;  %4437 = vperm.xlu0 %8681, %v10581_v7  }
 0x5b1   :  { %v3371_v24 = vpop.permute.xlu0 %3370  ;;  %v3369_v8 = vpop.permute.xlu1 %3368 }
 0x5b2   :  { %3455 = vst.msk [vmem:[#allocation3 + $0x180] sm:$0xff] %vm3430_vm7, %v3371_v24  ;;  %3454 = vst.msk [vmem:[#allocation3 + $0x170] sm:$0xff] %vm3430_vm7, %v3369_v8 }
 0x5b4   :  { %4422 = vperm.xlu1 %8680, %v10590_v26   ;;  %4447 = vperm.xlu0 %8681, %v10595_v27  }
 0x5b5   :  { %v3375_v34 = vpop.permute.xlu0 %3374  ;;  %v3373_v43 = vpop.permute.xlu1 %3372 }
 0x5b6   :  { %3457 = vst.msk [vmem:[#allocation3 + $0x1a0] sm:$0xff] %vm3430_vm7, %v3375_v34  ;;  %3456 = vst.msk [vmem:[#allocation3 + $0x190] sm:$0xff] %vm3430_vm7, %v3373_v43  ;;  %v4673_v34 = vld [vmem:[%s13055_s1] sm:$0xff] }
 0x5b8   :  { %4432 = vperm.xlu1 %8680, %v10604_v19   ;;  %4457 = vperm.xlu0 %8681, %v10609_v22  }
 0x5b9   :  { %v3379_v23 = vpop.permute.xlu0 %3378  ;;  %v3377_v30 = vpop.permute.xlu1 %3376 }
 0x5ba   :  { %3459 = vst.msk [vmem:[#allocation3 + $0x1c0] sm:$0xff] %vm3430_vm7, %v3379_v23  ;;  %3458 = vst.msk [vmem:[#allocation3 + $0x1b0] sm:$0xff] %vm3430_vm7, %v3377_v30 }
 0x5bc   :  { %4442 = vperm.xlu1 %8680, %v10618_v31   ;;  %4467 = vperm.xlu0 %8681, %v10623_v39  }
 0x5bd   :  { %v3383_v40 = vpop.permute.xlu0 %3382  ;;  %v3381_v44 = vpop.permute.xlu1 %3380 }
 0x5be   :  { %3461 = vst.msk [vmem:[#allocation3 + $0x1e0] sm:$0xff] %vm3430_vm7, %v3383_v40  ;;  %3460 = vst.msk [vmem:[#allocation3 + $0x1d0] sm:$0xff] %vm3430_vm7, %v3381_v44  ;;  %v3476_v40 = vld [vmem:[#allocation2 + $0x8d] sm:$0xff]  ;;  %v3473_v44 = vld [vmem:[#allocation2 + $0x75] sm:$0xff] }
 0x5c0   :  { %4452 = vperm.xlu1 %8680, %v10632_v47   ;;  %4477 = vperm.xlu0 %8681, %v10637_v48  }
 0x5c1   :  { %v3387_v51 = vpop.permute.xlu0 %3386  ;;  %v3385_v52 = vpop.permute.xlu1 %3384 }
 0x5c2   :  { %3463 = vst.msk [vmem:[#allocation3 + $0x200] sm:$0xff] %vm3430_vm7, %v3387_v51  ;;  %3462 = vst.msk [vmem:[#allocation3 + $0x1f0] sm:$0xff] %vm3430_vm7, %v3385_v52  ;;  %v8763_v51 = vmov 10   ;;  %v3793_v52 = vld [vmem:[#allocation3 + $0x10] sm:$0xff] }
 0x5c4   :  { %4462 = vperm.xlu1 %8680, %v10646_v55   ;;  %4487 = vperm.xlu0 %8681, %v10651_v56  }
 0x5c5   :  { %v3391_v59 = vpop.permute.xlu0 %3390  ;;  %v3389_v62 = vpop.permute.xlu1 %3388 }
 0x5c6   :  { %3465 = vst.msk [vmem:[#allocation3 + $0x220] sm:$0xff] %vm3430_vm7, %v3391_v59  ;;  %3464 = vst.msk [vmem:[#allocation3 + $0x210] sm:$0xff] %vm3430_vm7, %v3389_v62  ;;  %v10765_v59 = vld [vmem:[%s13055_s1 + $0x108] sm:$0xff] }
 0x5c8   :  { %4472 = vperm.xlu1 %8680, %v10660_v13   ;;  %4497 = vperm.xlu0 %8681, %v10665_v16  }
 0x5c9   :  { %v3393_v1 = vpop.permute.xlu1 %3392 }
 0x5ca   :  { %3466 = vst.msk [vmem:[#allocation3 + $0x230] sm:$0xff] %vm3430_vm7, %v3393_v1 }
 0x5cc   :  { %4482 = vperm.xlu1 %8680, %v10674_v5   ;;  %4507 = vperm.xlu0 %8681, %v10679_v21  }
 0x5d0   :  { %4492 = vperm.xlu1 %8680, %v10687_v37   ;;  %4517 = vperm.xlu0 %8681, %v10692_v46  }
 0x5d4   :  { %4502 = vperm.xlu1 %8680, %v10699_v57   ;;  %4527 = vperm.xlu0 %8681, %v10704_v58  }
 0x5d6   :  { %v3542_v4 = vpop.permute.xlu0 %3541 }
 0x5d7   :  { %v3719_v11 = vmul.f32 %v3542_v4, %v3467_v17  ;;  %v4676_v17 = vld [vmem:[%s13055_s1 + $0x18] sm:$0xff] }
 0x5d8   :  { %4512 = vperm.xlu1 %8680, %v10711_v20   ;;  %4537 = vperm.xlu0 %8681, %v10716_v15  }
 0x5d9   :  { %3755 = vst.msk [vmem:[#allocation3 + $0x8] sm:$0xff] %vm23_vm0, %v3719_v11 }
 0x5da   :  { %v3557_v33 = vpop.permute.xlu0 %3556  ;;  %v3547_v60 = vpop.permute.xlu1 %3546 }
 0x5db   :  { %v3722_v61 = vmul.f32 %v3557_v33, %v3470_v25  ;;  %v3720_v14 = vmul.f32 %v3547_v60, %v3468_v28  ;;  %v3478_v28 = vld [vmem:[#allocation2 + $0x9d] sm:$0xff]  ;;  %v3475_v33 = vld [vmem:[#allocation2 + $0x85] sm:$0xff] }
 0x5dc   :  { %4522 = vperm.xlu1 %8680, %v10724_v29   ;;  %4547 = vperm.xlu0 %8681, %v10729_v32   ;;  %v3795_v60 = vld [vmem:[#allocation3 + $0x20] sm:$0xff] }
 0x5dd   :  { %3758 = vst.msk [vmem:[#allocation3 + $0x38] sm:$0xff] %vm23_vm0, %v3722_v61  ;;  %3756 = vst.msk [vmem:[#allocation3 + $0x18] sm:$0xff] %vm23_vm0, %v3720_v14  ;;  %v10777_v61 = vld [vmem:[%s13055_s1 + $0x118] sm:$0xff] }
 0x5de   :  { %v3567_v35 = vpop.permute.xlu0 %3566  ;;  %v3552_v0 = vpop.permute.xlu1 %3551 }
 0x5df   :  { %v3724_v3 = vmul.f32 %v3567_v35, %v3472_v36  ;;  %v3721_v45 = vmul.f32 %v3552_v0, %v3469_v41 }
 0x5e0   :  { %v3792_v50 = vld [vmem:[#allocation3 + $0x8] sm:$0xff]  ;;  %4532 = vperm.xlu1 %8680, %v10738_v42   ;;  %4557 = vperm.xlu0 %8681, %v10743_v49  }
 0x5e1   :  { %3760 = vst.msk [vmem:[#allocation3 + $0x58] sm:$0xff] %vm23_vm0, %v3724_v3  ;;  %3757 = vst.msk [vmem:[#allocation3 + $0x28] sm:$0xff] %vm23_vm0, %v3721_v45  ;;  %8512 = vmatprep.mubr.msk.f32.mxu0 %vm23_vm0, %v3792_v50  ;;  %v3480_v3 = vld [vmem:[#allocation2 + $0xad] sm:$0xff]  ;;  %v3477_v45 = vld [vmem:[#allocation2 + $0x95] sm:$0xff] }
 0x5e2   :  { %v3577_v24 = vpop.permute.xlu0 %3576  ;;  %v3562_v8 = vpop.permute.xlu1 %3561  ;;  %4061 = vmatmul.mubr.f32.vlgmr.msra.gmra.mrb[0].mxu0 %v3791_v6  ;;  %v3797_v50 = vld [vmem:[#allocation3 + $0x30] sm:$0xff] }
 0x5e3   :  { %v3726_v43 = vmul.f32 %v3577_v24, %v3474_v63  ;;  %v3723_v23 = vmul.f32 %v3562_v8, %v3471_v12 }
 0x5e4   :  { %v3794_v30 = vld [vmem:[#allocation3 + $0x18] sm:$0xff]  ;;  %4542 = vperm.xlu1 %8680, %v10753_v9   ;;  %8682 = vset.pattern.permute.xlu0 %v8763_v51 }
 0x5e5   :  { %3762 = vst.msk [vmem:[#allocation3 + $0x78] sm:$0xff] %vm23_vm0, %v3726_v43  ;;  %3759 = vst.msk [vmem:[#allocation3 + $0x48] sm:$0xff] %vm23_vm0, %v3723_v23  ;;  %8513 = vmatprep.mubr.msk.f32.mxu0 %vm23_vm0, %v3794_v30  ;;  %4711 = vperm.xlu0 %8682, %v4673_v34   ;;  %v3798_v41 = vld [vmem:[#allocation3 + $0x38] sm:$0xff]  ;;  %v3479_v43 = vld [vmem:[#allocation2 + $0xa5] sm:$0xff] }
 0x5e6   :  { %v3587_v62 = vpop.permute.xlu0 %3586  ;;  %v3572_v1 = vpop.permute.xlu1 %3571  ;;  %4066 = vmatmul.mubr.f32.gmra.mrb[2].mxu0 %v3793_v52  ;;  %v3482_v34 = vld [vmem:[#allocation2 + $0xbd] sm:$0xff] }
 0x5e7   :  { %v3728_v4 = vmul.f32 %v3587_v62, %v3476_v40  ;;  %v3725_v11 = vmul.f32 %v3572_v1, %v3473_v44  ;;  %v3799_v23 = vld [vmem:[#allocation3 + $0x40] sm:$0xff]  ;;  %v4675_v44 = vld [vmem:[%s13055_s1 + $0x10] sm:$0xff] }
 0x5e8   :  { %v3796_v25 = vld [vmem:[#allocation3 + $0x28] sm:$0xff]  ;;  %4552 = vperm.xlu1 %8680, %v10765_v59   ;;  %v3802_v40 = vld [vmem:[#allocation3 + $0x58] sm:$0xff] }
 0x5e9   :  { %3764 = vst.msk [vmem:[#allocation3 + $0x98] sm:$0xff] %vm23_vm0, %v3728_v4  ;;  %3761 = vst.msk [vmem:[#allocation3 + $0x68] sm:$0xff] %vm23_vm0, %v3725_v11  ;;  %8514 = vmatprep.mubr.msk.f32.mxu0 %vm23_vm0, %v3796_v25  ;;  %4726 = vperm.xlu0 %8682, %v4676_v17   ;;  %v3481_v1 = vld [vmem:[#allocation2 + $0xb5] sm:$0xff] }
 0x5ea   :  { %v3597_v14 = vpop.permute.xlu0 %3596  ;;  %v3582_v36 = vpop.permute.xlu1 %3581  ;;  %4071 = vmatmul.mubr.f32.gmra.mrb[4].mxu0 %v3795_v60  ;;  %v3803_v60 = vld [vmem:[#allocation3 + $0x60] sm:$0xff] }
 0x5eb   :  { %v3730_v35 = vmul.f32 %v3597_v14, %v3478_v28  ;;  %v3727_v0 = vmul.f32 %v3582_v36, %v3475_v33  ;;  %8515 = vmatprep.mubr.msk.f32.mxu0 %vm23_vm0, %v3798_v41  ;;  %v3486_v28 = vld [vmem:[#allocation2 + $0xdd] sm:$0xff]  ;;  %v3483_v33 = vld [vmem:[#allocation2 + $0xc5] sm:$0xff] }
 0x5ec   :  { %4562 = vperm.xlu1 %8680, %v10777_v61   ;;  %v3800_v6 = vld [vmem:[#allocation3 + $0x48] sm:$0xff]  ;;  %v3806_v36 = vld [vmem:[#allocation3 + $0x78] sm:$0xff] }
 0x5ed   :  { %3766 = vst.msk [vmem:[#allocation3 + $0xb8] sm:$0xff] %vm23_vm0, %v3730_v35  ;;  %3763 = vst.msk [vmem:[#allocation3 + $0x88] sm:$0xff] %vm23_vm0, %v3727_v0  ;;  %4736 = vperm.xlu0 %8682, %v10576_v10   ;;  %v3488_v0 = vld [vmem:[#allocation2 + $0xed] sm:$0xff] }
 0x5ee   :  { %v3607_v63 = vpop.permute.xlu0 %3606  ;;  %v3592_v12 = vpop.permute.xlu1 %3591  ;;  %4076 = vmatmul.mubr.f32.gmra.mrb[6].mxu0 %v3797_v50 }
 0x5ef   :  { %v3732_v24 = vmul.f32 %v3607_v63, %v3480_v3  ;;  %v3729_v8 = vmul.f32 %v3592_v12, %v3477_v45  ;;  %8516 = vmatprep.mubr.msk.f32.mxu0 %vm23_vm0, %v3800_v6  ;;  %v3485_v3 = vld [vmem:[#allocation2 + $0xd5] sm:$0xff]  ;;  %v3490_v6 = vld [vmem:[#allocation2 + $0xfd] sm:$0xff] }
 0x5f0   :  { %8683 = vset.pattern.permute.xlu1 %v8763_v51  ;;  %v3484_v51 = vld [vmem:[#allocation2 + $0xcd] sm:$0xff] }
 0x5f1   :  { %3768 = vst.msk [vmem:[#allocation3 + $0xd8] sm:$0xff] %vm23_vm0, %v3732_v24  ;;  %3765 = vst.msk [vmem:[#allocation3 + $0xa8] sm:$0xff] %vm23_vm0, %v3729_v8  ;;  %4716 = vperm.xlu1 %8683, %v10540_v54   ;;  %4746 = vperm.xlu0 %8682, %v10590_v26   ;;  %v3801_v54 = vld [vmem:[#allocation3 + $0x50] sm:$0xff]  ;;  %v3804_v4 = vld [vmem:[#allocation3 + $0x68] sm:$0xff] }
 0x5f2   :  { %v3617_v10 = vpop.permute.xlu0 %3616  ;;  %v3602_v30 = vpop.permute.xlu1 %3601  ;;  %4081 = vmatmul.mubr.f32.gmra.mrb[8].mxu0 %v3799_v23  ;;  %v3805_v45 = vld [vmem:[#allocation3 + $0x70] sm:$0xff]  ;;  %v3487_v24 = vld [vmem:[#allocation2 + $0xe5] sm:$0xff] }
 0x5f3   :  { %v3734_v52 = vmul.f32 %v3617_v10, %v3482_v34  ;;  %v3731_v62 = vmul.f32 %v3602_v30, %v3479_v43  ;;  %8517 = vmatprep.mubr.msk.f32.mxu0 %vm23_vm0, %v3802_v40  ;;  %v3807_v8 = vld [vmem:[#allocation3 + $0x80] sm:$0xff]  ;;  %v3810_v34 = vld [vmem:[#allocation3 + $0x98] sm:$0xff]  ;;  %v3492_v10 = vld [vmem:[#allocation2 + $0x10d] sm:$0xff] }
 0x5f4   :  { %v3808_v50 = vld [vmem:[#allocation3 + $0x88] sm:$0xff]  ;;  %v3489_v30 = vld [vmem:[#allocation2 + $0xf5] sm:$0xff] }
 0x5f5   :  { %3770 = vst.msk [vmem:[#allocation3 + $0xf8] sm:$0xff] %vm23_vm0, %v3734_v52  ;;  %3767 = vst.msk [vmem:[#allocation3 + $0xc8] sm:$0xff] %vm23_vm0, %v3731_v62  ;;  %4721 = vperm.xlu1 %8683, %v4675_v44   ;;  %4756 = vperm.xlu0 %8682, %v10604_v19   ;;  %v3809_v40 = vld [vmem:[#allocation3 + $0x90] sm:$0xff] }
 0x5f6   :  { %v3627_v26 = vpop.permute.xlu0 %3626  ;;  %v3612_v17 = vpop.permute.xlu1 %3611  ;;  %4086 = vmatmul.mubr.f32.gmra.mrb[10].mxu0 %v3801_v54  ;;  %v3811_v54 = vld [vmem:[#allocation3 + $0xa0] sm:$0xff] }
 0x5f7   :  { %v3736_v11 = vmul.f32 %v3627_v26, %v3484_v51  ;;  %v3733_v25 = vmul.f32 %v3612_v17, %v3481_v1  ;;  %8518 = vmatprep.mubr.msk.f32.mxu0 %vm23_vm0, %v3804_v4  ;;  %v3494_v51 = vld [vmem:[#allocation2 + $0x11d] sm:$0xff]  ;;  %v3491_v1 = vld [vmem:[#allocation2 + $0x105] sm:$0xff] }
 0x5f8   :  { %v3812_v44 = vld [vmem:[#allocation3 + $0xa8] sm:$0xff]  ;;  %v3814_v26 = vld [vmem:[#allocation3 + $0xb8] sm:$0xff] }
 0x5f9   :  { %3772 = vst.msk [vmem:[#allocation3 + $0x118] sm:$0xff] %vm23_vm0, %v3736_v11  ;;  %3769 = vst.msk [vmem:[#allocation3 + $0xe8] sm:$0xff] %vm23_vm0, %v3733_v25  ;;  %4731 = vperm.xlu1 %8683, %v10549_v38   ;;  %4766 = vperm.xlu0 %8682, %v10618_v31   ;;  %v3496_v11 = vld [vmem:[#allocation2 + $0x12d] sm:$0xff]  ;;  %v3493_v25 = vld [vmem:[#allocation2 + $0x115] sm:$0xff] }
 0x5fa   :  { %v3637_v19 = vpop.permute.xlu0 %3636  ;;  %v3622_v14 = vpop.permute.xlu1 %3621  ;;  %4091 = vmatmul.mubr.f32.gmra.mrb[12].mxu0 %v3803_v60 }
 0x5fb   :  { %v3738_v41 = vmul.f32 %v3637_v19, %v3486_v28  ;;  %v3735_v35 = vmul.f32 %v3622_v14, %v3483_v33  ;;  %8519 = vmatprep.mubr.msk.f32.mxu0 %vm23_vm0, %v3806_v36  ;;  %v3813_v28 = vld [vmem:[#allocation3 + $0xb0] sm:$0xff]  ;;  %v3498_v14 = vld [vmem:[#allocation2 + $0x13d] sm:$0xff]  ;;  %v3495_v36 = vld [vmem:[#allocation2 + $0x125] sm:$0xff] }
 0x5fc   :  { %v3816_v33 = vld [vmem:[#allocation3 + $0xc8] sm:$0xff] }
 0x5fd   :  { %3774 = vst.msk [vmem:[#allocation3 + $0x138] sm:$0xff] %vm23_vm0, %v3738_v41  ;;  %3771 = vst.msk [vmem:[#allocation3 + $0x108] sm:$0xff] %vm23_vm0, %v3735_v35  ;;  %4741 = vperm.xlu1 %8683, %v10558_v53   ;;  %4776 = vperm.xlu0 %8682, %v10632_v47   ;;  %v3815_v41 = vld [vmem:[#allocation3 + $0xc0] sm:$0xff]  ;;  %v3818_v35 = vld [vmem:[#allocation3 + $0xd8] sm:$0xff] }
 0x5fe   :  { %v3647_v38 = vpop.permute.xlu0 %3646  ;;  %v3632_v31 = vpop.permute.xlu1 %3631  ;;  %4096 = vmatmul.mubr.f32.gmra.mrb[14].mxu0 %v3805_v45  ;;  %v3500_v45 = vld [vmem:[#allocation2 + $0x14d] sm:$0xff] }
 0x5ff   :  { %v3740_v63 = vmul.f32 %v3647_v38, %v3488_v0  ;;  %v3737_v12 = vmul.f32 %v3632_v31, %v3485_v3  ;;  %8520 = vmatprep.mubr.msk.f32.mxu0 %vm23_vm0, %v3808_v50  ;;  %v3497_v38 = vld [vmem:[#allocation2 + $0x135] sm:$0xff] }
 0x600   :  { %v3817_v31 = vld [vmem:[#allocation3 + $0xd0] sm:$0xff]  ;;  %v3820_v50 = vld [vmem:[#allocation3 + $0xe8] sm:$0xff] }
 0x601   :  { %3776 = vst.msk [vmem:[#allocation3 + $0x158] sm:$0xff] %vm23_vm0, %v3740_v63  ;;  %3773 = vst.msk [vmem:[#allocation3 + $0x128] sm:$0xff] %vm23_vm0, %v3737_v12  ;;  %4751 = vperm.xlu1 %8683, %v10567_v2   ;;  %4786 = vperm.xlu0 %8682, %v10646_v55  }
 0x602   :  { %v3657_v53 = vpop.permute.xlu0 %3656  ;;  %v3642_v47 = vpop.permute.xlu1 %3641  ;;  %4101 = vmatmul.mubr.f32.gmra.mrb[16].mxu0 %v3807_v8  ;;  %v3819_v8 = vld [vmem:[#allocation3 + $0xe0] sm:$0xff] }
 0x603   :  { %v3742_v43 = vmul.f32 %v3657_v53, %v3490_v6  ;;  %v3739_v23 = vmul.f32 %v3642_v47, %v3487_v24  ;;  %8521 = vmatprep.mubr.msk.f32.mxu0 %vm23_vm0, %v3810_v34  ;;  %v3502_v6 = vld [vmem:[#allocation2 + $0x15d] sm:$0xff]  ;;  %v3499_v24 = vld [vmem:[#allocation2 + $0x145] sm:$0xff] }
 0x604   :  { %v3822_v53 = vld [vmem:[#allocation3 + $0xf8] sm:$0xff] }
 0x605   :  { %3778 = vst.msk [vmem:[#allocation3 + $0x178] sm:$0xff] %vm23_vm0, %v3742_v43  ;;  %3775 = vst.msk [vmem:[#allocation3 + $0x148] sm:$0xff] %vm23_vm0, %v3739_v23  ;;  %4761 = vperm.xlu1 %8683, %v10581_v7   ;;  %4796 = vperm.xlu0 %8682, %v10660_v13   ;;  %v3501_v43 = vld [vmem:[#allocation2 + $0x155] sm:$0xff] }
 0x606   :  { %v3667_v2 = vpop.permute.xlu0 %3666  ;;  %v3652_v55 = vpop.permute.xlu1 %3651  ;;  %4106 = vmatmul.mubr.f32.gmra.mrb[18].mxu0 %v3809_v40  ;;  %v3821_v23 = vld [vmem:[#allocation3 + $0xf0] sm:$0xff] }
 0x607   :  { %v3744_v52 = vmul.f32 %v3667_v2, %v3492_v10  ;;  %v3741_v62 = vmul.f32 %v3652_v55, %v3489_v30  ;;  %8522 = vmatprep.mubr.msk.f32.mxu0 %vm23_vm0, %v3812_v44  ;;  %v3824_v10 = vld [vmem:[#allocation3 + $0x108] sm:$0xff]  ;;  %v3823_v55 = vld [vmem:[#allocation3 + $0x100] sm:$0xff] }
 0x608   :  { %v4313_v44 = vld [vmem:[#allocation2 + $0x4] sm:$0xff] }
 0x609   :  { %3780 = vst.msk [vmem:[#allocation3 + $0x198] sm:$0xff] %vm23_vm0, %v3744_v52  ;;  %3777 = vst.msk [vmem:[#allocation3 + $0x168] sm:$0xff] %vm23_vm0, %v3741_v62  ;;  %4771 = vperm.xlu1 %8683, %v10595_v27   ;;  %4806 = vperm.xlu0 %8682, %v10674_v5  }
 0x60a   :  { %v3677_v7 = vpop.permute.xlu0 %3676  ;;  %v3662_v13 = vpop.permute.xlu1 %3661  ;;  %4111 = vmatmul.mubr.f32.gmra.mrb[20].mxu0 %v3811_v54  ;;  %v3825_v54 = vld [vmem:[#allocation3 + $0x110] sm:$0xff] }
 0x60b   :  { %v3746_v17 = vmul.f32 %v3677_v7, %v3494_v51  ;;  %v3743_v4 = vmul.f32 %v3662_v13, %v3491_v1  ;;  %8523 = vmatprep.mubr.msk.f32.mxu0 %vm23_vm0, %v3814_v26  ;;  %v4315_v7 = vld [vmem:[#allocation2 + $0x14] sm:$0xff] }
 0x60d   :  { %3782 = vst.msk [vmem:[#allocation3 + $0x1b8] sm:$0xff] %vm23_vm0, %v3746_v17  ;;  %3779 = vst.msk [vmem:[#allocation3 + $0x188] sm:$0xff] %vm23_vm0, %v3743_v4  ;;  %4781 = vperm.xlu1 %8683, %v10609_v22   ;;  %4816 = vperm.xlu0 %8682, %v10687_v37  }
 0x60e   :  { %v3687_v27 = vpop.permute.xlu0 %3686  ;;  %v3672_v5 = vpop.permute.xlu1 %3671  ;;  %4116 = vmatmul.mubr.f32.gmra.mrb[22].mxu0 %v3813_v28 }
 0x60f   :  { %v3748_v60 = vmul.f32 %v3687_v27, %v3496_v11  ;;  %v3745_v19 = vmul.f32 %v3672_v5, %v3493_v25  ;;  %8524 = vmatprep.mubr.msk.f32.mxu0 %vm23_vm0, %v3816_v33  ;;  %v3827_v11 = vld [vmem:[#allocation3 + $0x120] sm:$0xff]  ;;  %v3829_v5 = vld [vmem:[#allocation3 + $0x130] sm:$0xff] }
 0x610   :  { %v4316_v25 = vld [vmem:[#allocation2 + $0x1c] sm:$0xff]  ;;  %v4318_v33 = vld [vmem:[#allocation2 + $0x2c] sm:$0xff] }
 0x611   :  { %3784 = vst.msk [vmem:[#allocation3 + $0x1d8] sm:$0xff] %vm23_vm0, %v3748_v60  ;;  %3781 = vst.msk [vmem:[#allocation3 + $0x1a8] sm:$0xff] %vm23_vm0, %v3745_v19  ;;  %4791 = vperm.xlu1 %8683, %v10623_v39   ;;  %4826 = vperm.xlu0 %8682, %v10699_v57  }
 0x612   :  { %v3697_v22 = vpop.permute.xlu0 %3696  ;;  %v3682_v37 = vpop.permute.xlu1 %3681  ;;  %4121 = vmatmul.mubr.f32.gmra.mrb[24].mxu0 %v3815_v41 }
 0x613   :  { %v3750_v0 = vmul.f32 %v3697_v22, %v3498_v14  ;;  %v3747_v3 = vmul.f32 %v3682_v37, %v3495_v36  ;;  %8525 = vmatprep.mubr.msk.f32.mxu0 %vm23_vm0, %v3818_v35  ;;  %v3831_v14 = vld [vmem:[#allocation3 + $0x140] sm:$0xff]  ;;  %v3834_v36 = vld [vmem:[#allocation3 + $0x158] sm:$0xff]  ;;  %v3833_v22 = vld [vmem:[#allocation3 + $0x150] sm:$0xff] }
 0x614   :  { %v3836_v37 = vld [vmem:[#allocation3 + $0x168] sm:$0xff] }
 0x615   :  { %3786 = vst.msk [vmem:[#allocation3 + $0x1f8] sm:$0xff] %vm23_vm0, %v3750_v0  ;;  %3783 = vst.msk [vmem:[#allocation3 + $0x1c8] sm:$0xff] %vm23_vm0, %v3747_v3  ;;  %4801 = vperm.xlu1 %8683, %v10637_v48   ;;  %4836 = vperm.xlu0 %8682, %v10711_v20   ;;  %v3835_v0 = vld [vmem:[#allocation3 + $0x160] sm:$0xff]  ;;  %v3838_v3 = vld [vmem:[#allocation3 + $0x178] sm:$0xff] }
 0x616   :  { %v3707_v39 = vpop.permute.xlu0 %3706  ;;  %v3692_v57 = vpop.permute.xlu1 %3691  ;;  %4126 = vmatmul.mubr.f32.gmra.mrb[26].mxu0 %v3817_v31  ;;  %v3837_v31 = vld [vmem:[#allocation3 + $0x170] sm:$0xff] }
 0x617   :  { %v3752_v63 = vmul.f32 %v3707_v39, %v3500_v45  ;;  %v3749_v12 = vmul.f32 %v3692_v57, %v3497_v38  ;;  %8526 = vmatprep.mubr.msk.f32.mxu0 %vm23_vm0, %v3820_v50  ;;  %v3839_v50 = vld [vmem:[#allocation3 + $0x180] sm:$0xff] }
 0x619   :  { %3788 = vst.msk [vmem:[#allocation3 + $0x218] sm:$0xff] %vm23_vm0, %v3752_v63  ;;  %3785 = vst.msk [vmem:[#allocation3 + $0x1e8] sm:$0xff] %vm23_vm0, %v3749_v12  ;;  %4811 = vperm.xlu1 %8683, %v10651_v56   ;;  %4846 = vperm.xlu0 %8682, %v10724_v29   ;;  %v4314_v56 = vld [vmem:[#allocation2 + $0xc] sm:$0xff]  ;;  %v3842_v63 = vld [vmem:[#allocation3 + $0x198] sm:$0xff] }
 0x61a   :  { %v3717_v48 = vpop.permute.xlu0 %3716  ;;  %v3702_v20 = vpop.permute.xlu1 %3701  ;;  %4131 = vmatmul.mubr.f32.gmra.mrb[28].mxu0 %v3819_v8  ;;  %v3844_v8 = vld [vmem:[#allocation3 + $0x1a8] sm:$0xff] }
 0x61b   :  { %v3754_v47 = vmul.f32 %v3717_v48, %v3502_v6  ;;  %v3751_v34 = vmul.f32 %v3702_v20, %v3499_v24  ;;  %8527 = vmatprep.mubr.msk.f32.mxu0 %vm23_vm0, %v3822_v53  ;;  %v3841_v24 = vld [vmem:[#allocation3 + $0x190] sm:$0xff]  ;;  %v3843_v53 = vld [vmem:[#allocation3 + $0x1a0] sm:$0xff] }
 0x61d   :  { %3790 = vst.msk [vmem:[#allocation3 + $0x238] sm:$0xff] %vm23_vm0, %v3754_v47  ;;  %3787 = vst.msk [vmem:[#allocation3 + $0x208] sm:$0xff] %vm23_vm0, %v3751_v34  ;;  %4821 = vperm.xlu1 %8683, %v10665_v16   ;;  %4856 = vperm.xlu0 %8682, %v10738_v42   ;;  %v4317_v16 = vld [vmem:[#allocation2 + $0x24] sm:$0xff]  ;;  %v3826_v42 = vld [vmem:[#allocation3 + $0x118] sm:$0xff] }
 0x61e   :  { %v3712_v29 = vpop.permute.xlu1 %3711  ;;  %4136 = vmatmul.mubr.f32.gmra.mrb[30].mxu0 %v3821_v23  ;;  %v3846_v47 = vld [vmem:[#allocation3 + $0x1b8] sm:$0xff]  ;;  %v3845_v23 = vld [vmem:[#allocation3 + $0x1b0] sm:$0xff] }
 0x61f   :  { %v3753_v30 = vmul.f32 %v3712_v29, %v3501_v43  ;;  %8528 = vmatprep.mubr.msk.f32.mxu0 %vm23_vm0, %v3824_v10  ;;  %v4393_v40 = vpop.permute.xlu0 %4392 }
 0x620   :  { %v4566_v2 = vmul.f32 %v4393_v40, %v4314_v56  ;;  %v3848_v56 = vld [vmem:[#allocation3 + $0x1c8] sm:$0xff]  ;;  %v3850_v40 = vld [vmem:[#allocation3 + $0x1d8] sm:$0xff] }
 0x621   :  { %3789 = vst.msk [vmem:[#allocation3 + $0x228] sm:$0xff] %vm23_vm0, %v3753_v30  ;;  %4831 = vperm.xlu1 %8683, %v10679_v21   ;;  %4866 = vperm.xlu0 %8682, %v10753_v9   ;;  %v4319_v21 = vld [vmem:[#allocation2 + $0x34] sm:$0xff]  ;;  %v3828_v9 = vld [vmem:[#allocation3 + $0x128] sm:$0xff]  ;;  %v3847_v30 = vld [vmem:[#allocation3 + $0x1c0] sm:$0xff] }
 0x622   :  { %4141 = vmatmul.mubr.f32.gmra.mrb[32].mxu0 %v3823_v55  ;;  %4602 = vst.msk [vmem:[#allocation3 + $0x10] sm:$0xff] %vm23_vm0, %v4566_v2 }
 0x623   :  { %8529 = vmatprep.mubr.msk.f32.mxu0 %vm23_vm0, %v3826_v42  ;;  %v4388_v52 = vpop.permute.xlu1 %4387  ;;  %v4408_v62 = vpop.permute.xlu0 %4407 }
 0x624   :  { %v4565_v51 = vmul.f32 %v4388_v52, %v4313_v44  ;;  %v4569_v1 = vmul.f32 %v4408_v62, %v4317_v16  ;;  %v3849_v44 = vld [vmem:[#allocation3 + $0x1d0] sm:$0xff]  ;;  %v3852_v16 = vld [vmem:[#allocation3 + $0x1e8] sm:$0xff]  ;;  %v3851_v62 = vld [vmem:[#allocation3 + $0x1e0] sm:$0xff] }
 0x625   :  { %4841 = vperm.xlu1 %8683, %v10692_v46   ;;  %4876 = vperm.xlu0 %8682, %v10765_v59   ;;  %v3830_v46 = vld [vmem:[#allocation3 + $0x138] sm:$0xff] }
 0x626   :  { %4146 = vmatmul.mubr.f32.gmra.mrb[34].mxu0 %v3825_v54  ;;  %4601 = vst.msk [vmem:[#allocation3] sm:$0xff] %vm23_vm0, %v4565_v51  ;;  %4605 = vst.msk [vmem:[#allocation3 + $0x40] sm:$0xff] %vm23_vm0, %v4569_v1  ;;  %v3854_v51 = vld [vmem:[#allocation3 + $0x1f8] sm:$0xff] }
 0x627   :  { %8530 = vmatprep.mubr.msk.f32.mxu0 %vm23_vm0, %v3828_v9  ;;  %v4398_v13 = vpop.permute.xlu1 %4397  ;;  %v4418_v26 = vpop.permute.xlu0 %4417 }
 0x628   :  { %v4567_v17 = vmul.f32 %v4398_v13, %v4315_v7  ;;  %v4571_v4 = vmul.f32 %v4418_v26, %v4319_v21  ;;  %v3853_v7 = vld [vmem:[#allocation3 + $0x1f0] sm:$0xff]  ;;  %v3856_v21 = vld [vmem:[#allocation3 + $0x208] sm:$0xff]  ;;  %v3855_v26 = vld [vmem:[#allocation3 + $0x200] sm:$0xff] }
 0x629   :  { %4851 = vperm.xlu1 %8683, %v10704_v58   ;;  %4886 = vperm.xlu0 %8682, %v10777_v61   ;;  %v3832_v58 = vld [vmem:[#allocation3 + $0x148] sm:$0xff] }
 0x62a   :  { %4151 = vmatmul.mubr.f32.gmra.mrb[36].mxu0 %v3827_v11  ;;  %4603 = vst.msk [vmem:[#allocation3 + $0x20] sm:$0xff] %vm23_vm0, %v4567_v17  ;;  %4607 = vst.msk [vmem:[#allocation3 + $0x60] sm:$0xff] %vm23_vm0, %v4571_v4  ;;  %v3858_v17 = vld [vmem:[#allocation3 + $0x218] sm:$0xff]  ;;  %v4637_v4 = vld [vmem:[#allocation2 + $0x10] sm:$0xff] }
 0x62b   :  { %8531 = vmatprep.mubr.msk.f32.mxu0 %vm23_vm0, %v3830_v46  ;;  %v4403_v59 = vpop.permute.xlu1 %4402  ;;  %v10862_v28 = vpop.permute.xlu0 %4427  ;;  %v3857_v46 = vld [vmem:[#allocation3 + $0x210] sm:$0xff] }
 0x62c   :  { %v4568_v27 = vmul.f32 %v4403_v59, %v4316_v25 }
 0x62d   :  { %4861 = vperm.xlu1 %8683, %v10716_v15  }
 0x62e   :  { %4156 = vmatmul.mubr.f32.gmra.mrb[38].mxu0 %v3829_v5  ;;  %4604 = vst.msk [vmem:[#allocation3 + $0x30] sm:$0xff] %vm23_vm0, %v4568_v27  ;;  %v3860_v27 = vld [vmem:[#allocation3 + $0x228] sm:$0xff] }
 0x62f   :  { %8532 = vmatprep.mubr.msk.f32.mxu0 %vm23_vm0, %v3832_v58  ;;  %v4413_v61 = vpop.permute.xlu1 %4412  ;;  %v10867_v60 = vpop.permute.xlu0 %4437  ;;  %v3862_v58 = vld [vmem:[#allocation3 + $0x238] sm:$0xff] }
 0x630   :  { %v4570_v19 = vmul.f32 %v4413_v61, %v4318_v33  ;;  %v3859_v33 = vld [vmem:[#allocation3 + $0x220] sm:$0xff] }
 0x631   :  { %4871 = vperm.xlu1 %8683, %v10729_v32  }
 0x632   :  { %4161 = vmatmul.mubr.f32.gmra.mrb[40].mxu0 %v3831_v14  ;;  %4606 = vst.msk [vmem:[#allocation3 + $0x50] sm:$0xff] %vm23_vm0, %v4570_v19  ;;  %v3861_v19 = vld [vmem:[#allocation3 + $0x230] sm:$0xff]  ;;  %v4638_v14 = vld [vmem:[#allocation2 + $0x18] sm:$0xff] }
 0x633   :  { %8533 = vmatprep.mubr.msk.f32.mxu0 %vm23_vm0, %v3834_v36  ;;  %v10872_v15 = vpop.permute.xlu1 %4422  ;;  %v10874_v41 = vpop.permute.xlu0 %4447 }
 0x635   :  { %4881 = vperm.xlu1 %8683, %v10743_v49   ;;  %v3840_v49 = vld [vmem:[#allocation3 + $0x188] sm:$0xff] }
 0x636   :  { %4166 = vmatmul.mubr.f32.gmra.mrb[42].mxu0 %v3833_v22  ;;  %v4640_v22 = vld [vmem:[#allocation2 + $0x28] sm:$0xff] }
 0x637   :  { %8534 = vmatprep.mubr.msk.f32.mxu0 %vm23_vm0, %v3836_v37  ;;  %v10878_v35 = vpop.permute.xlu1 %4432  ;;  %v10880_v32 = vpop.permute.xlu0 %4457 }
 0x63a   :  { %4171 = vmatmul.mubr.f32.gmra.mrb[44].mxu0 %v3835_v0 }
 0x63b   :  { %8535 = vmatprep.mubr.msk.f32.mxu0 %vm23_vm0, %v3838_v3  ;;  %v10883_v45 = vpop.permute.xlu1 %4442  ;;  %v10885_v38 = vpop.permute.xlu0 %4467  ;;  %v4639_v3 = vld [vmem:[#allocation2 + $0x20] sm:$0xff] }
 0x63e   :  { %4176 = vmatmul.mubr.f32.gmra.mrb[46].mxu0 %v3837_v31 }
 0x63f   :  { %8536 = vmatprep.mubr.msk.f32.mxu0 %vm23_vm0, %v3840_v49  ;;  %v10888_v39 = vpop.permute.xlu1 %4452  ;;  %v10890_v57 = vpop.permute.xlu0 %4477 }
 0x642   :  { %4181 = vmatmul.mubr.f32.gmra.mrb[48].mxu0 %v3839_v50  ;;  %v4642_v50 = vld [vmem:[#allocation2 + $0x38] sm:$0xff] }
 0x643   :  { %8537 = vmatprep.mubr.msk.f32.mxu0 %vm23_vm0, %v3842_v63  ;;  %v10893_v12 = vpop.permute.xlu1 %4462  ;;  %v10895_v6 = vpop.permute.xlu0 %4487 }
 0x646   :  { %4186 = vmatmul.mubr.f32.gmra.mrb[50].mxu0 %v3841_v24 }
 0x647   :  { %8538 = vmatprep.mubr.msk.f32.mxu0 %vm23_vm0, %v3844_v8  ;;  %v10898_v48 = vpop.permute.xlu1 %4472  ;;  %v10900_v20 = vpop.permute.xlu0 %4497  ;;  %v4641_v8 = vld [vmem:[#allocation2 + $0x30] sm:$0xff] }
 0x64a   :  { %4191 = vmatmul.mubr.f32.gmra.mrb[52].mxu0 %v3843_v53 }
 0x64b   :  { %8539 = vmatprep.mubr.msk.f32.mxu0 %vm23_vm0, %v3846_v47  ;;  %v10903_v34 = vpop.permute.xlu1 %4482  ;;  %v10905_v43 = vpop.permute.xlu0 %4507 }
 0x64e   :  { %4196 = vmatmul.mubr.f32.gmra.mrb[54].mxu0 %v3845_v23 }
 0x64f   :  { %8540 = vmatprep.mubr.msk.f32.mxu0 %vm23_vm0, %v3848_v56  ;;  %v10908_v29 = vpop.permute.xlu1 %4492  ;;  %v10910_v10 = vpop.permute.xlu0 %4517 }
 0x652   :  { %4201 = vmatmul.mubr.f32.gmra.mrb[56].mxu0 %v3847_v30 }
 0x653   :  { %8541 = vmatprep.mubr.msk.f32.mxu0 %vm23_vm0, %v3850_v40  ;;  %v10913_v2 = vpop.permute.xlu1 %4502  ;;  %v10915_v55 = vpop.permute.xlu0 %4527 }
 0x656   :  { %4206 = vmatmul.mubr.f32.gmra.mrb[58].mxu0 %v3849_v44 }
 0x657   :  { %8542 = vmatprep.mubr.msk.f32.mxu0 %vm23_vm0, %v3852_v16  ;;  %v10918_v42 = vpop.permute.xlu1 %4512  ;;  %v10920_v52 = vpop.permute.xlu0 %4537 }
 0x65a   :  { %4211 = vmatmul.mubr.f32.gmra.mrb[60].mxu0 %v3851_v62 }
 0x65b   :  { %8543 = vmatprep.mubr.msk.f32.mxu0 %vm23_vm0, %v3854_v51  ;;  %v10923_v1 = vpop.permute.xlu1 %4522  ;;  %v10925_v54 = vpop.permute.xlu0 %4547 }
 0x65e   :  { %4216 = vmatmul.mubr.f32.gmra.mrb[62].mxu0 %v3853_v7 }
 0x65f   :  { %8544 = vmatprep.mubr.msk.f32.mxu0 %vm23_vm0, %v3856_v21  ;;  %v10928_v9 = vpop.permute.xlu1 %4532  ;;  %v10930_v13 = vpop.permute.xlu0 %4557 }
 0x662   :  { %4221 = vmatmul.mubr.f32.gmra.mrb[64].mxu0 %v3855_v26 }
 0x663   :  { %8545 = vmatprep.mubr.msk.f32.mxu0 %vm23_vm0, %v3858_v17  ;;  %v10933_v11 = vpop.permute.xlu1 %4542 }
 0x664   :  { %v4712_v25 = vpop.permute.xlu0 %4711 }
 0x665   :  { %v4889_v59 = vmul.f32 %v4712_v25, %v4637_v4 }
 0x666   :  { %4226 = vmatmul.mubr.f32.gmra.mrb[66].mxu0 %v3857_v46 }
 0x667   :  { %8546 = vmatprep.mubr.msk.f32.mxu0 %vm23_vm0, %v3860_v27  ;;  %v10936_v5 = vpop.permute.xlu1 %4552  ;;  %4961 = vrot.lane.b32.xlu1 %v4889_v59, %s8749_s20 }
 0x668   :  { %v4727_v37 = vpop.permute.xlu0 %4726 }
 0x669   :  { %v4892_v31 = vmul.f32 %v4727_v37, %v4640_v22  ;;  %v8764_v37 = vmov 11  }
 0x66a   :  { %4231 = vmatmul.mubr.f32.gmra.mrb[68].mxu0 %v3859_v33  ;;  %v10978_v33 = vld [vmem:[%s13058_s3] ss:$0 sm:$0xff]  ;;  %8684 = vset.pattern.permute.xlu1 %v8764_v37 }
 0x66b   :  { %8547 = vmatprep.mubr.msk.f32.mxu0 %vm23_vm0, %v3862_v58  ;;  %v10940_v61 = vpop.permute.xlu1 %4562  ;;  %8685 = vset.pattern.permute.xlu0 %v8764_v37 }
 0x66c   :  { %v4737_v24 = vpop.permute.xlu0 %4736 }
 0x66d   :  { %v4894_v53 = vmul.f32 %v4737_v24, %v4642_v50 }
 0x66e   :  { %4236 = vmatmul.mubr.f32.gmra.mrb[70].mxu0 %v3861_v19 }
 0x670   :  { %v4717_v36 = vpop.permute.xlu1 %4716  ;;  %v4747_v40 = vpop.permute.xlu0 %4746 }
 0x671   :  { %v4890_v0 = vmul.f32 %v4717_v36, %v4638_v14 }
 0x673   :  { %4963 = vrot.lane.b32.xlu0 %v4890_v0, %s8749_s20 }
 0x674   :  { %v4722_v49 = vpop.permute.xlu1 %4721  ;;  %v10951_v16 = vpop.permute.xlu0 %4756 }
 0x675   :  { %v4891_v63 = vmul.f32 %v4722_v49, %v4639_v3 }
 0x677   :  { %4965 = vrot.lane.b32.xlu1 %v4891_v63, %s8749_s20  ;;  %4967 = vrot.lane.b32.xlu0 %v4892_v31, %s8749_s20 }
 0x678   :  { %v4732_v47 = vpop.permute.xlu1 %4731  ;;  %v10955_v51 = vpop.permute.xlu0 %4766 }
 0x679   :  { %v4893_v23 = vmul.f32 %v4732_v47, %v4641_v8 }
 0x67b   :  { %4969 = vrot.lane.b32.xlu1 %v4893_v23, %s8749_s20  ;;  %4971 = vrot.lane.b32.xlu0 %v4894_v53, %s8749_s20 }
 0x67c   :  { %v4742_v56 = vpop.permute.xlu1 %4741  ;;  %v10959_v21 = vpop.permute.xlu0 %4776 }
 0x680   :  { %v10947_v30 = vpop.permute.xlu1 %4751  ;;  %v10963_v17 = vpop.permute.xlu0 %4786 }
 0x684   :  { %v10949_v44 = vpop.permute.xlu1 %4761  ;;  %v10967_v25 = vpop.permute.xlu0 %4796 }
 0x688   :  { %v10953_v62 = vpop.permute.xlu1 %4771  ;;  %v10971_v59 = vpop.permute.xlu0 %4806 }
 0x68c   :  { %v10957_v7 = vpop.permute.xlu1 %4781  ;;  %v10981_v36 = vpop.permute.xlu0 %4816 }
 0x690   :  { %v10961_v26 = vpop.permute.xlu1 %4791  ;;  %v10987_v63 = vpop.permute.xlu0 %4826 }
 0x694   :  { %v10965_v4 = vpop.permute.xlu1 %4801 }
 0x698   :  { %v10969_v46 = vpop.permute.xlu1 %4811 }
 0x69c   :  { %v10973_v27 = vpop.permute.xlu1 %4821 }
 0x6a0   :  { %v10983_v22 = vpop.permute.xlu1 %4831 }
 0x6a4   :  { %v10989_v8 = vpop.permute.xlu1 %4841 }
 0x6a8   :  { %v10998_v18 = vpop.permute.xlu1 %4851 }
 0x6b5   :  { %v4062_v58 = vpop.f32.mrb[0].mxu0 }
 0x6b6   :  { %v4063_v19 = vadd.f32 %v10978_v33, %v4062_v58  ;;  %v4064_v14 = vpop.f32.mrb[1].mxu0 }
 0x6b8   :  { %v4241_v0 = vmax.f32 %v4063_v19, 0.0 }
 0x6b9   :  { %v4067_v3 = vpop.f32.mrb[2].mxu0 }
 0x6ba   :  { %4277 = vst.msk [vmem:[#allocation2 + $0x40] sm:$0xff] %vm23_vm0, %v4241_v0  ;;  %v4068_v31 = vadd.f32 %v10978_v33, %v4067_v3  ;;  %v4069_v49 = vpop.f32.mrb[3].mxu0 }
 0x6bc   :  { %v4242_v50 = vmax.f32 %v4068_v31, 0.0  ;;  %v10995_v31 = vpop.permute.xlu0 %4836 }
 0x6bd   :  { %v4072_v24 = vpop.f32.mrb[4].mxu0 }
 0x6be   :  { %4278 = vst.msk [vmem:[#allocation2 + $0x48] sm:$0xff] %vm23_vm0, %v4242_v50  ;;  %v4073_v53 = vadd.f32 %v10978_v33, %v4072_v24  ;;  %v4074_v47 = vpop.f32.mrb[5].mxu0 }
 0x6c0   :  { %v4243_v23 = vmax.f32 %v4073_v53, 0.0 }
 0x6c1   :  { %v4077_v58 = vpop.f32.mrb[6].mxu0  ;;  %v4643_v19 = vld [vmem:[#allocation2 + $0x40] sm:$0xff] }
 0x6c2   :  { %v4320_v14 = vld [vmem:[#allocation2 + $0x3c] sm:$0xff]  ;;  %4279 = vst.msk [vmem:[#allocation2 + $0x50] sm:$0xff] %vm23_vm0, %v4243_v23  ;;  %v4078_v37 = vadd.f32 %v10978_v33, %v4077_v58  ;;  %v4079_v0 = vpop.f32.mrb[7].mxu0  ;;  %v4895_v3 = vmul.f32 %v4742_v56, %v4643_v19 }
 0x6c3   :  { %v4572_v49 = vmul.f32 %v10872_v15, %v4320_v14  ;;  %v11009_v14 = vpop.permute.xlu0 %4846 }
 0x6c4   :  { %v4244_v50 = vmax.f32 %v4078_v37, 0.0  ;;  %4973 = vrot.lane.b32.xlu1 %v4895_v3, %s8749_s20  ;;  %v11012_v3 = vpop.permute.xlu1 %4861 }
 0x6c5   :  { %4608 = vst.msk [vmem:[#allocation3 + $0x70] sm:$0xff] %vm23_vm0, %v4572_v49  ;;  %v4082_v24 = vpop.f32.mrb[8].mxu0  ;;  %v4644_v53 = vld [vmem:[#allocation2 + $0x48] sm:$0xff] }
 0x6c6   :  { %v11002_v47 = vld [vmem:[#allocation2 + $0x44] sm:$0xff]  ;;  %4280 = vst.msk [vmem:[#allocation2 + $0x58] sm:$0xff] %vm23_vm0, %v4244_v50  ;;  %v4083_v23 = vadd.f32 %v10978_v33, %v4082_v24  ;;  %v4084_v56 = vpop.f32.mrb[9].mxu0  ;;  %v4896_v58 = vmul.f32 %v4747_v40, %v4644_v53 }
 0x6c7   :  { %v4573_v15 = vmul.f32 %v10862_v28, %v11002_v47 }
 0x6c8   :  { %v4245_v19 = vmax.f32 %v4083_v23, 0.0  ;;  %4975 = vrot.lane.b32.xlu0 %v4896_v58, %s8749_s20 }
 0x6c9   :  { %4609 = vst.msk [vmem:[#allocation3 + $0x80] sm:$0xff] %vm23_vm0, %v4573_v15  ;;  %v4087_v37 = vpop.f32.mrb[10].mxu0  ;;  %v4645_v0 = vld [vmem:[#allocation2 + $0x50] sm:$0xff] }
 0x6ca   :  { %v11014_v49 = vld [vmem:[#allocation2 + $0x4c] sm:$0xff]  ;;  %4281 = vst.msk [vmem:[#allocation2 + $0x60] sm:$0xff] %vm23_vm0, %v4245_v19  ;;  %v4088_v40 = vadd.f32 %v10978_v33, %v4087_v37  ;;  %v4089_v50 = vpop.f32.mrb[11].mxu0  ;;  %v4897_v28 = vmul.f32 %v10947_v30, %v4645_v0  ;;  %v11028_v30 = vpop.permute.xlu0 %4856 }
 0x6cb   :  { %v4574_v24 = vmul.f32 %v10878_v35, %v11014_v49  ;;  %v11032_v0 = vpop.permute.xlu1 %4871 }
 0x6cc   :  { %v4246_v53 = vmax.f32 %v4088_v40, 0.0  ;;  %4977 = vrot.lane.b32.xlu1 %v4897_v28, %s8749_s20 }
 0x6cd   :  { %4610 = vst.msk [vmem:[#allocation3 + $0x90] sm:$0xff] %vm23_vm0, %v4574_v24  ;;  %v4092_v23 = vpop.f32.mrb[12].mxu0  ;;  %v4646_v56 = vld [vmem:[#allocation2 + $0x58] sm:$0xff] }
 0x6ce   :  { %v11023_v58 = vld [vmem:[#allocation2 + $0x54] sm:$0xff]  ;;  %4282 = vst.msk [vmem:[#allocation2 + $0x68] sm:$0xff] %vm23_vm0, %v4246_v53  ;;  %v4093_v15 = vadd.f32 %v10978_v33, %v4092_v23  ;;  %v4094_v19 = vpop.f32.mrb[13].mxu0  ;;  %v4898_v37 = vmul.f32 %v10951_v16, %v4646_v56 }
 0x6cf   :  { %13078 = vst [vmem:[#allocation4_spill] sm:$0xff] %v11023_v58  ;;  %v4575_v35 = vmul.f32 %v10867_v60, %v11023_v58 }
 0x6d0   :  { %v4247_v40 = vmax.f32 %v4093_v15, 0.0  ;;  %4979 = vrot.lane.b32.xlu0 %v4898_v37, %s8749_s20  ;;  %v11044_v15 = vpop.permute.xlu0 %4866 }
 0x6d1   :  { %4611 = vst.msk [vmem:[#allocation3 + $0xa0] sm:$0xff] %vm23_vm0, %v4575_v35  ;;  %v4097_v50 = vpop.f32.mrb[14].mxu0  ;;  %v4647_v28 = vld [vmem:[#allocation2 + $0x60] sm:$0xff]  ;;  %v11047_v35 = vpop.permute.xlu1 %4881 }
 0x6d2   :  { %v11036_v24 = vld [vmem:[#allocation2 + $0x5c] sm:$0xff]  ;;  %4283 = vst.msk [vmem:[#allocation2 + $0x70] sm:$0xff] %vm23_vm0, %v4247_v40  ;;  %v4098_v16 = vadd.f32 %v10978_v33, %v4097_v50  ;;  %v4099_v53 = vpop.f32.mrb[15].mxu0  ;;  %v4899_v23 = vmul.f32 %v10949_v44, %v4647_v28 }
 0x6d3   :  { %v4576_v60 = vmul.f32 %v10883_v45, %v11036_v24 }
 0x6d4   :  { %v4248_v56 = vmax.f32 %v4098_v16, 0.0  ;;  %4981 = vrot.lane.b32.xlu1 %v4899_v23, %s8749_s20 }
 0x6d5   :  { %4612 = vst.msk [vmem:[#allocation3 + $0xb0] sm:$0xff] %vm23_vm0, %v4576_v60  ;;  %v4102_v19 = vpop.f32.mrb[16].mxu0  ;;  %v4648_v37 = vld [vmem:[#allocation2 + $0x68] sm:$0xff] }
 0x6d6   :  { %v11049_v40 = vld [vmem:[#allocation2 + $0x64] sm:$0xff]  ;;  %4284 = vst.msk [vmem:[#allocation2 + $0x78] sm:$0xff] %vm23_vm0, %v4248_v56  ;;  %v4103_v44 = vadd.f32 %v10978_v33, %v4102_v19  ;;  %v4104_v50 = vpop.f32.mrb[17].mxu0  ;;  %v4900_v45 = vmul.f32 %v10955_v51, %v4648_v37  ;;  %v11066_v37 = vpop.permute.xlu0 %4876 }
 0x6d7   :  { %v4577_v28 = vmul.f32 %v10874_v41, %v11049_v40 }
 0x6d8   :  { %v4249_v16 = vmax.f32 %v4103_v44, 0.0  ;;  %4983 = vrot.lane.b32.xlu0 %v4900_v45, %s8749_s20 }
 0x6d9   :  { %4613 = vst.msk [vmem:[#allocation3 + $0xc0] sm:$0xff] %vm23_vm0, %v4577_v28  ;;  %v4107_v53 = vpop.f32.mrb[18].mxu0  ;;  %v4649_v23 = vld [vmem:[#allocation2 + $0x70] sm:$0xff]  ;;  %v4962_v60 = vpop.permute.xlu1 %4961 }
 0x6da   :  { %v11058_v58 = vld [vmem:[#allocation2 + $0x6c] sm:$0xff]  ;;  %4285 = vst.msk [vmem:[#allocation2 + $0x80] sm:$0xff] %vm23_vm0, %v4249_v16  ;;  %v4108_v56 = vadd.f32 %v10978_v33, %v4107_v53  ;;  %v4109_v19 = vpop.f32.mrb[19].mxu0  ;;  %v4901_v51 = vmul.f32 %v10953_v62, %v4649_v23 }
 0x6db   :  { %5069 = vst.msk [vmem:[#allocation3] sm:$0xff] %vm868_vm1, %v4962_v60  ;;  %v4578_v41 = vmul.f32 %v10888_v39, %v11058_v58  ;;  %v11079_v19 = vpop.permute.xlu0 %4886 }
 0x6dc   :  { %v4250_v44 = vmax.f32 %v4108_v56, 0.0  ;;  %4985 = vrot.lane.b32.xlu1 %v4901_v51, %s8749_s20 }
 0x6dd   :  { %4614 = vst.msk [vmem:[#allocation3 + $0xd0] sm:$0xff] %vm23_vm0, %v4578_v41  ;;  %v4112_v50 = vpop.f32.mrb[20].mxu0  ;;  %v4650_v45 = vld [vmem:[#allocation2 + $0x78] sm:$0xff] }
 0x6de   :  { %v11070_v28 = vld [vmem:[#allocation2 + $0x74] sm:$0xff]  ;;  %4286 = vst.msk [vmem:[#allocation2 + $0x88] sm:$0xff] %vm23_vm0, %v4250_v44  ;;  %v4113_v62 = vadd.f32 %v10978_v33, %v4112_v50  ;;  %v4114_v16 = vpop.f32.mrb[21].mxu0  ;;  %v4902_v53 = vmul.f32 %v10959_v21, %v4650_v45 }
 0x6df   :  { %v4579_v39 = vmul.f32 %v10880_v32, %v11070_v28 }
 0x6e0   :  { %v4251_v23 = vmax.f32 %v4113_v62, 0.0  ;;  %4987 = vrot.lane.b32.xlu0 %v4902_v53, %s8749_s20 }
 0x6e1   :  { %4615 = vst.msk [vmem:[#allocation3 + $0xe0] sm:$0xff] %vm23_vm0, %v4579_v39  ;;  %v4117_v60 = vpop.f32.mrb[22].mxu0  ;;  %v4651_v56 = vld [vmem:[#allocation2 + $0x80] sm:$0xff] }
 0x6e2   :  { %v11081_v51 = vld [vmem:[#allocation2 + $0x7c] sm:$0xff]  ;;  %4287 = vst.msk [vmem:[#allocation2 + $0x90] sm:$0xff] %vm23_vm0, %v4251_v23  ;;  %v4118_v41 = vadd.f32 %v10978_v33, %v4117_v60  ;;  %v4119_v44 = vpop.f32.mrb[23].mxu0  ;;  %v4903_v21 = vmul.f32 %v10957_v7, %v4651_v56 }
 0x6e3   :  { %v4580_v32 = vmul.f32 %v10893_v12, %v11081_v51 }
 0x6e4   :  { %v4252_v50 = vmax.f32 %v4118_v41, 0.0  ;;  %4989 = vrot.lane.b32.xlu1 %v4903_v21, %s8749_s20 }
 0x6e5   :  { %4616 = vst.msk [vmem:[#allocation3 + $0xf0] sm:$0xff] %vm23_vm0, %v4580_v32  ;;  %v4122_v45 = vpop.f32.mrb[24].mxu0  ;;  %v4652_v62 = vld [vmem:[#allocation2 + $0x88] sm:$0xff]  ;;  %v4964_v16 = vpop.permute.xlu0 %4963 }
 0x6e6   :  { %v11090_v53 = vld [vmem:[#allocation2 + $0x84] sm:$0xff]  ;;  %4288 = vst.msk [vmem:[#allocation2 + $0x98] sm:$0xff] %vm23_vm0, %v4252_v50  ;;  %v4123_v39 = vadd.f32 %v10978_v33, %v4122_v45  ;;  %v4124_v23 = vpop.f32.mrb[25].mxu0  ;;  %v4904_v7 = vmul.f32 %v10963_v17, %v4652_v62 }
 0x6e7   :  { %5070 = vst.msk [vmem:[#allocation3 + $0x10] sm:$0xff] %vm868_vm1, %v4964_v16  ;;  %v4581_v12 = vmul.f32 %v10885_v38, %v11090_v53 }
 0x6e8   :  { %v4253_v60 = vmax.f32 %v4123_v39, 0.0  ;;  %4991 = vrot.lane.b32.xlu0 %v4904_v7, %s8749_s20 }
 0x6e9   :  { %4617 = vst.msk [vmem:[#allocation3 + $0x100] sm:$0xff] %vm23_vm0, %v4581_v12  ;;  %v4127_v56 = vpop.f32.mrb[26].mxu0  ;;  %v4653_v41 = vld [vmem:[#allocation2 + $0x90] sm:$0xff]  ;;  %v4966_v44 = vpop.permute.xlu1 %4965 }
 0x6ea   :  { %v11100_v21 = vld [vmem:[#allocation2 + $0x8c] sm:$0xff]  ;;  %4289 = vst.msk [vmem:[#allocation2 + $0xa0] sm:$0xff] %vm23_vm0, %v4253_v60  ;;  %v4128_v32 = vadd.f32 %v10978_v33, %v4127_v56  ;;  %v4129_v17 = vpop.f32.mrb[27].mxu0  ;;  %v4905_v50 = vmul.f32 %v10961_v26, %v4653_v41  ;;  %v4968_v38 = vpop.permute.xlu0 %4967 }
 0x6eb   :  { %5071 = vst.msk [vmem:[#allocation3 + $0x20] sm:$0xff] %vm868_vm1, %v4966_v44  ;;  %v4582_v45 = vmul.f32 %v10898_v48, %v11100_v21  ;;  %5072 = vst.msk [vmem:[#allocation3 + $0x30] sm:$0xff] %vm868_vm1, %v4968_v38 }
 0x6ec   :  { %v4254_v62 = vmax.f32 %v4128_v32, 0.0  ;;  %4993 = vrot.lane.b32.xlu1 %v4905_v50, %s8749_s20 }
 0x6ed   :  { %4618 = vst.msk [vmem:[#allocation3 + $0x110] sm:$0xff] %vm23_vm0, %v4582_v45  ;;  %v4132_v16 = vpop.f32.mrb[28].mxu0  ;;  %v4654_v39 = vld [vmem:[#allocation2 + $0x98] sm:$0xff]  ;;  %v4970_v23 = vpop.permute.xlu1 %4969 }
 0x6ee   :  { %v11111_v7 = vld [vmem:[#allocation2 + $0x94] sm:$0xff]  ;;  %4290 = vst.msk [vmem:[#allocation2 + $0xa8] sm:$0xff] %vm23_vm0, %v4254_v62  ;;  %v4133_v26 = vadd.f32 %v10978_v33, %v4132_v16  ;;  %v4134_v12 = vpop.f32.mrb[29].mxu0  ;;  %v4906_v60 = vmul.f32 %v10967_v25, %v4654_v39  ;;  %v4972_v48 = vpop.permute.xlu0 %4971 }
 0x6ef   :  { %5073 = vst.msk [vmem:[#allocation3 + $0x40] sm:$0xff] %vm868_vm1, %v4970_v23  ;;  %v4583_v56 = vmul.f32 %v10890_v57, %v11111_v7  ;;  %5074 = vst.msk [vmem:[#allocation3 + $0x50] sm:$0xff] %vm868_vm1, %v4972_v48 }
 0x6f0   :  { %v4255_v41 = vmax.f32 %v4133_v26, 0.0  ;;  %4995 = vrot.lane.b32.xlu0 %v4906_v60, %s8749_s20 }
 0x6f1   :  { %4619 = vst.msk [vmem:[#allocation3 + $0x120] sm:$0xff] %vm23_vm0, %v4583_v56  ;;  %v4137_v44 = vpop.f32.mrb[30].mxu0  ;;  %v4655_v32 = vld [vmem:[#allocation2 + $0xa0] sm:$0xff] }
 0x6f2   :  { %v11122_v17 = vld [vmem:[#allocation2 + $0x9c] sm:$0xff]  ;;  %4291 = vst.msk [vmem:[#allocation2 + $0xb0] sm:$0xff] %vm23_vm0, %v4255_v41  ;;  %v4138_v25 = vadd.f32 %v10978_v33, %v4137_v44  ;;  %v4139_v50 = vpop.f32.mrb[31].mxu0  ;;  %v4907_v38 = vmul.f32 %v10965_v4, %v4655_v32 }
 0x6f3   :  { %v4584_v57 = vmul.f32 %v10903_v34, %v11122_v17 }
 0x6f4   :  { %v4256_v45 = vmax.f32 %v4138_v25, 0.0  ;;  %4997 = vrot.lane.b32.xlu1 %v4907_v38, %s8749_s20 }
 0x6f5   :  { %4620 = vst.msk [vmem:[#allocation3 + $0x130] sm:$0xff] %vm23_vm0, %v4584_v57  ;;  %v4142_v62 = vpop.f32.mrb[32].mxu0  ;;  %v4656_v16 = vld [vmem:[#allocation2 + $0xa8] sm:$0xff] }
 0x6f6   :  { %v11131_v39 = vld [vmem:[#allocation2 + $0xa4] sm:$0xff]  ;;  %4292 = vst.msk [vmem:[#allocation2 + $0xb8] sm:$0xff] %vm23_vm0, %v4256_v45  ;;  %v4143_v23 = vadd.f32 %v10978_v33, %v4142_v62  ;;  %v4144_v26 = vpop.f32.mrb[33].mxu0  ;;  %v4908_v12 = vmul.f32 %v10971_v59, %v4656_v16 }
 0x6f7   :  { %v4585_v4 = vmul.f32 %v10895_v6, %v11131_v39 }
 0x6f8   :  { %v4257_v34 = vmax.f32 %v4143_v23, 0.0  ;;  %4999 = vrot.lane.b32.xlu0 %v4908_v12, %s8749_s20 }
 0x6f9   :  { %4621 = vst.msk [vmem:[#allocation3 + $0x140] sm:$0xff] %vm23_vm0, %v4585_v4  ;;  %v4147_v60 = vpop.f32.mrb[34].mxu0  ;;  %v4657_v48 = vld [vmem:[#allocation2 + $0xb0] sm:$0xff] }
 0x6fa   :  { %v11140_v56 = vld [vmem:[#allocation2 + $0xac] sm:$0xff]  ;;  %4293 = vst.msk [vmem:[#allocation2 + $0xc0] sm:$0xff] %vm23_vm0, %v4257_v34  ;;  %v4148_v41 = vadd.f32 %v10978_v33, %v4147_v60  ;;  %v4149_v44 = vpop.f32.mrb[35].mxu0  ;;  %v4909_v32 = vmul.f32 %v10969_v46, %v4657_v48 }
 0x6fb   :  { %v4586_v59 = vmul.f32 %v10908_v29, %v11140_v56 }
 0x6fc   :  { %v4258_v6 = vmax.f32 %v4148_v41, 0.0  ;;  %5001 = vrot.lane.b32.xlu1 %v4909_v32, %s8749_s20 }
 0x6fd   :  { %4622 = vst.msk [vmem:[#allocation3 + $0x150] sm:$0xff] %vm23_vm0, %v4586_v59  ;;  %v4152_v25 = vpop.f32.mrb[36].mxu0  ;;  %v4658_v50 = vld [vmem:[#allocation2 + $0xb8] sm:$0xff] }
 0x6fe   :  { %v11149_v38 = vld [vmem:[#allocation2 + $0xb4] sm:$0xff]  ;;  %4294 = vst.msk [vmem:[#allocation2 + $0xc8] sm:$0xff] %vm23_vm0, %v4258_v6  ;;  %v4153_v57 = vadd.f32 %v10978_v33, %v4152_v25  ;;  %v4154_v45 = vpop.f32.mrb[37].mxu0  ;;  %v4910_v62 = vmul.f32 %v10981_v36, %v4658_v50 }
 0x6ff   :  { %v4587_v46 = vmul.f32 %v10900_v20, %v11149_v38 }
 0x700   :  { %v4259_v29 = vmax.f32 %v4153_v57, 0.0  ;;  %5003 = vrot.lane.b32.xlu0 %v4910_v62, %s8749_s20 }
 0x701   :  { %4623 = vst.msk [vmem:[#allocation3 + $0x160] sm:$0xff] %vm23_vm0, %v4587_v46  ;;  %v4157_v16 = vpop.f32.mrb[38].mxu0  ;;  %v4659_v23 = vld [vmem:[#allocation2 + $0xc0] sm:$0xff] }
 0x702   :  { %v11158_v26 = vld [vmem:[#allocation2 + $0xbc] sm:$0xff]  ;;  %4295 = vst.msk [vmem:[#allocation2 + $0xd0] sm:$0xff] %vm23_vm0, %v4259_v29  ;;  %v4158_v12 = vadd.f32 %v10978_v33, %v4157_v16  ;;  %v4159_v4 = vpop.f32.mrb[39].mxu0  ;;  %v4911_v34 = vmul.f32 %v10973_v27, %v4659_v23 }
 0x703   :  { %v4588_v36 = vmul.f32 %v10913_v2, %v11158_v26 }
 0x704   :  { %v4260_v20 = vmax.f32 %v4158_v12, 0.0  ;;  %5005 = vrot.lane.b32.xlu1 %v4911_v34, %s8749_s20 }
 0x705   :  { %4624 = vst.msk [vmem:[#allocation3 + $0x170] sm:$0xff] %vm23_vm0, %v4588_v36  ;;  %v4162_v60 = vpop.f32.mrb[40].mxu0  ;;  %v4660_v48 = vld [vmem:[#allocation2 + $0xc8] sm:$0xff] }
 0x706   :  { %v11167_v41 = vld [vmem:[#allocation2 + $0xc4] sm:$0xff]  ;;  %4296 = vst.msk [vmem:[#allocation2 + $0xd8] sm:$0xff] %vm23_vm0, %v4260_v20  ;;  %v4163_v44 = vadd.f32 %v10978_v33, %v4162_v60  ;;  %v4164_v32 = vpop.f32.mrb[41].mxu0  ;;  %v4912_v59 = vmul.f32 %v10987_v63, %v4660_v48 }
 0x707   :  { %v4589_v27 = vmul.f32 %v10905_v43, %v11167_v41 }
 0x708   :  { %v4261_v2 = vmax.f32 %v4163_v44, 0.0  ;;  %5007 = vrot.lane.b32.xlu0 %v4912_v59, %s8749_s20 }
 0x709   :  { %4625 = vst.msk [vmem:[#allocation3 + $0x180] sm:$0xff] %vm23_vm0, %v4589_v27  ;;  %v4167_v6 = vpop.f32.mrb[42].mxu0  ;;  %v4661_v25 = vld [vmem:[#allocation2 + $0xd0] sm:$0xff] }
 0x70a   :  { %v11176_v50 = vld [vmem:[#allocation2 + $0xcc] sm:$0xff]  ;;  %4297 = vst.msk [vmem:[#allocation2 + $0xe0] sm:$0xff] %vm23_vm0, %v4261_v2  ;;  %v4168_v57 = vadd.f32 %v10978_v33, %v4167_v6  ;;  %v4169_v45 = vpop.f32.mrb[43].mxu0  ;;  %v4913_v62 = vmul.f32 %v10983_v22, %v4661_v25 }
 0x70b   :  { %v4590_v63 = vmul.f32 %v10918_v42, %v11176_v50 }
 0x70c   :  { %v4262_v43 = vmax.f32 %v4168_v57, 0.0  ;;  %5009 = vrot.lane.b32.xlu1 %v4913_v62, %s8749_s20 }
 0x70d   :  { %4626 = vst.msk [vmem:[#allocation3 + $0x190] sm:$0xff] %vm23_vm0, %v4590_v63  ;;  %v4172_v46 = vpop.f32.mrb[44].mxu0  ;;  %v4662_v29 = vld [vmem:[#allocation2 + $0xd8] sm:$0xff] }
 0x70e   :  { %v11185_v16 = vld [vmem:[#allocation2 + $0xd4] sm:$0xff]  ;;  %4298 = vst.msk [vmem:[#allocation2 + $0xe8] sm:$0xff] %vm23_vm0, %v4262_v43  ;;  %v4173_v23 = vadd.f32 %v10978_v33, %v4172_v46  ;;  %v4174_v12 = vpop.f32.mrb[45].mxu0  ;;  %v4914_v4 = vmul.f32 %v10995_v31, %v4662_v29 }
 0x70f   :  { %v4591_v22 = vmul.f32 %v10910_v10, %v11185_v16 }
 0x710   :  { %v4263_v42 = vmax.f32 %v4173_v23, 0.0  ;;  %5011 = vrot.lane.b32.xlu0 %v4914_v4, %s8749_s20 }
 0x711   :  { %4627 = vst.msk [vmem:[#allocation3 + $0x1a0] sm:$0xff] %vm23_vm0, %v4591_v22  ;;  %v4177_v34 = vpop.f32.mrb[46].mxu0  ;;  %v4663_v36 = vld [vmem:[#allocation2 + $0xe0] sm:$0xff] }
 0x712   :  { %v11194_v20 = vld [vmem:[#allocation2 + $0xdc] sm:$0xff]  ;;  %4299 = vst.msk [vmem:[#allocation2 + $0xf0] sm:$0xff] %vm23_vm0, %v4263_v42  ;;  %v4178_v60 = vadd.f32 %v10978_v33, %v4177_v34  ;;  %v4179_v48 = vpop.f32.mrb[47].mxu0  ;;  %v4915_v44 = vmul.f32 %v10989_v8, %v4663_v36 }
 0x713   :  { %v4592_v31 = vmul.f32 %v10923_v1, %v11194_v20 }
 0x714   :  { %v4264_v10 = vmax.f32 %v4178_v60, 0.0  ;;  %5013 = vrot.lane.b32.xlu1 %v4915_v44, %s8749_s20 }
 0x715   :  { %4628 = vst.msk [vmem:[#allocation3 + $0x1b0] sm:$0xff] %vm23_vm0, %v4592_v31  ;;  %v4182_v32 = vpop.f32.mrb[48].mxu0  ;;  %v4664_v59 = vld [vmem:[#allocation2 + $0xe8] sm:$0xff] }
 0x716   :  { %v11203_v27 = vld [vmem:[#allocation2 + $0xe4] sm:$0xff]  ;;  %4300 = vst.msk [vmem:[#allocation2 + $0xf8] sm:$0xff] %vm23_vm0, %v4264_v10  ;;  %v4183_v2 = vadd.f32 %v10978_v33, %v4182_v32  ;;  %v4184_v6 = vpop.f32.mrb[49].mxu0  ;;  %v4916_v25 = vmul.f32 %v11009_v14, %v4664_v59 }
 0x717   :  { %v4593_v8 = vmul.f32 %v10915_v55, %v11203_v27 }
 0x718   :  { %v4265_v1 = vmax.f32 %v4183_v2, 0.0  ;;  %5015 = vrot.lane.b32.xlu0 %v4916_v25, %s8749_s20 }
 0x719   :  { %4629 = vst.msk [vmem:[#allocation3 + $0x1c0] sm:$0xff] %vm23_vm0, %v4593_v8  ;;  %v4187_v57 = vpop.f32.mrb[50].mxu0  ;;  %v4665_v45 = vld [vmem:[#allocation2 + $0xf0] sm:$0xff] }
 0x71a   :  { %v11212_v62 = vld [vmem:[#allocation2 + $0xec] sm:$0xff]  ;;  %4301 = vst.msk [vmem:[#allocation2 + $0x100] sm:$0xff] %vm23_vm0, %v4265_v1  ;;  %v4188_v63 = vadd.f32 %v10978_v33, %v4187_v57  ;;  %v4189_v43 = vpop.f32.mrb[51].mxu0  ;;  %v4917_v46 = vmul.f32 %v10998_v18, %v4665_v45 }
 0x71b   :  { %v4594_v14 = vmul.f32 %v10928_v9, %v11212_v62 }
 0x71c   :  { %v4266_v55 = vmax.f32 %v4188_v63, 0.0  ;;  %5017 = vrot.lane.b32.xlu1 %v4917_v46, %s8749_s20 }
 0x71d   :  { %4630 = vst.msk [vmem:[#allocation3 + $0x1d0] sm:$0xff] %vm23_vm0, %v4594_v14  ;;  %v4192_v29 = vpop.f32.mrb[52].mxu0  ;;  %v4666_v23 = vld [vmem:[#allocation2 + $0xf8] sm:$0xff] }
 0x71e   :  { %v11221_v12 = vld [vmem:[#allocation2 + $0xf4] sm:$0xff]  ;;  %4302 = vst.msk [vmem:[#allocation2 + $0x108] sm:$0xff] %vm23_vm0, %v4266_v55  ;;  %v4193_v4 = vadd.f32 %v10978_v33, %v4192_v29  ;;  %v4194_v22 = vpop.f32.mrb[53].mxu0  ;;  %v4918_v42 = vmul.f32 %v11028_v30, %v4666_v23 }
 0x71f   :  { %v4595_v18 = vmul.f32 %v10920_v52, %v11221_v12 }
 0x720   :  { %v4267_v9 = vmax.f32 %v4193_v4, 0.0  ;;  %5019 = vrot.lane.b32.xlu0 %v4918_v42, %s8749_s20 }
 0x721   :  { %4631 = vst.msk [vmem:[#allocation3 + $0x1e0] sm:$0xff] %vm23_vm0, %v4595_v18  ;;  %v4197_v34 = vpop.f32.mrb[54].mxu0  ;;  %v4667_v36 = vld [vmem:[#allocation2 + $0x100] sm:$0xff] }
 0x722   :  { %v11230_v60 = vld [vmem:[#allocation2 + $0xfc] sm:$0xff]  ;;  %4303 = vst.msk [vmem:[#allocation2 + $0x110] sm:$0xff] %vm23_vm0, %v4267_v9  ;;  %v4198_v48 = vadd.f32 %v10978_v33, %v4197_v34  ;;  %v4199_v44 = vpop.f32.mrb[55].mxu0  ;;  %v4919_v31 = vmul.f32 %v11012_v3, %v4667_v36 }
 0x723   :  { %v4596_v30 = vmul.f32 %v10933_v11, %v11230_v60 }
 0x724   :  { %v4268_v52 = vmax.f32 %v4198_v48, 0.0  ;;  %5021 = vrot.lane.b32.xlu1 %v4919_v31, %s8749_s20  ;;  %v11278_v31 = vld [vmem:[%s13055_s1] sm:$0xff] }
 0x725   :  { %4632 = vst.msk [vmem:[#allocation3 + $0x1f0] sm:$0xff] %vm23_vm0, %v4596_v30  ;;  %v4202_v10 = vpop.f32.mrb[56].mxu0  ;;  %v4668_v32 = vld [vmem:[#allocation2 + $0x108] sm:$0xff] }
 0x726   :  { %v11239_v59 = vld [vmem:[#allocation2 + $0x104] sm:$0xff]  ;;  %4304 = vst.msk [vmem:[#allocation2 + $0x118] sm:$0xff] %vm23_vm0, %v4268_v52  ;;  %v4203_v2 = vadd.f32 %v10978_v33, %v4202_v10  ;;  %v4204_v6 = vpop.f32.mrb[57].mxu0  ;;  %v4920_v25 = vmul.f32 %v11044_v15, %v4668_v32 }
 0x727   :  { %v4597_v3 = vmul.f32 %v10925_v54, %v11239_v59  ;;  %v11294_v6 = vld [vmem:[%s13055_s1 + $0x10] sm:$0xff] }
 0x728   :  { %v4269_v11 = vmax.f32 %v4203_v2, 0.0  ;;  %5023 = vrot.lane.b32.xlu0 %v4920_v25, %s8749_s20  ;;  %v11289_v2 = vld [vmem:[%s13055_s1 + $0x8] sm:$0xff] }
 0x729   :  { %4633 = vst.msk [vmem:[#allocation3 + $0x200] sm:$0xff] %vm23_vm0, %v4597_v3  ;;  %v4207_v8 = vpop.f32.mrb[58].mxu0  ;;  %v4669_v1 = vld [vmem:[#allocation2 + $0x110] sm:$0xff] }
 0x72a   :  { %v11248_v57 = vld [vmem:[#allocation2 + $0x10c] sm:$0xff]  ;;  %4305 = vst.msk [vmem:[#allocation2 + $0x120] sm:$0xff] %vm23_vm0, %v4269_v11  ;;  %v4208_v45 = vadd.f32 %v10978_v33, %v4207_v8  ;;  %v4209_v63 = vpop.f32.mrb[59].mxu0  ;;  %v4921_v43 = vmul.f32 %v11032_v0, %v4669_v1  ;;  %v11304_v1 = vld [vmem:[%s13055_s1 + $0x20] sm:$0xff] }
 0x72b   :  { %v4598_v15 = vmul.f32 %v10936_v5, %v11248_v57 }
 0x72c   :  { %v4270_v54 = vmax.f32 %v4208_v45, 0.0  ;;  %5025 = vrot.lane.b32.xlu1 %v4921_v43, %s8749_s20  ;;  %v11309_v45 = vld [vmem:[%s13055_s1 + $0x18] sm:$0xff] }
 0x72d   :  { %4634 = vst.msk [vmem:[#allocation3 + $0x210] sm:$0xff] %vm23_vm0, %v4598_v15  ;;  %v4212_v46 = vpop.f32.mrb[60].mxu0  ;;  %v4670_v14 = vld [vmem:[#allocation2 + $0x118] sm:$0xff] }
 0x72e   :  { %v11257_v55 = vld [vmem:[#allocation2 + $0x114] sm:$0xff]  ;;  %4306 = vst.msk [vmem:[#allocation2 + $0x128] sm:$0xff] %vm23_vm0, %v4270_v54  ;;  %v4213_v29 = vadd.f32 %v10978_v33, %v4212_v46  ;;  %v4214_v23 = vpop.f32.mrb[61].mxu0  ;;  %v4922_v4 = vmul.f32 %v11066_v37, %v4670_v14 }
 0x72f   :  { %v4599_v0 = vmul.f32 %v10930_v13, %v11257_v55  ;;  %v11319_v14 = vld [vmem:[%s13055_s1 + $0x30] sm:$0xff] }
 0x730   :  { %v4271_v5 = vmax.f32 %v4213_v29, 0.0  ;;  %5027 = vrot.lane.b32.xlu0 %v4922_v4, %s8749_s20  ;;  %v11324_v29 = vld [vmem:[%s13055_s1 + $0x28] sm:$0xff] }
 0x731   :  { %4635 = vst.msk [vmem:[#allocation3 + $0x220] sm:$0xff] %vm23_vm0, %v4599_v0  ;;  %v4217_v22 = vpop.f32.mrb[62].mxu0  ;;  %v4671_v42 = vld [vmem:[#allocation2 + $0x120] sm:$0xff] }
 0x732   :  { %v11266_v18 = vld [vmem:[#allocation2 + $0x11c] sm:$0xff]  ;;  %4307 = vst.msk [vmem:[#allocation2 + $0x130] sm:$0xff] %vm23_vm0, %v4271_v5  ;;  %v4218_v9 = vadd.f32 %v10978_v33, %v4217_v22  ;;  %v4219_v34 = vpop.f32.mrb[63].mxu0  ;;  %v4923_v36 = vmul.f32 %v11047_v35, %v4671_v42 }
 0x733   :  { %v4600_v37 = vmul.f32 %v10940_v61, %v11266_v18  ;;  %v11334_v22 = vld [vmem:[%s13055_s1 + $0x40] sm:$0xff]  ;;  %v11339_v42 = vld [vmem:[%s13055_s1 + $0x38] sm:$0xff]  ;;  %v11353_v34 = vld [vmem:[%s13055_s1 + $0x48] sm:$0xff] }
 0x734   :  { %v4272_v13 = vmax.f32 %v4218_v9, 0.0  ;;  %5029 = vrot.lane.b32.xlu1 %v4923_v36, %s8749_s20  ;;  %v11348_v9 = vld [vmem:[%s13055_s1 + $0x50] sm:$0xff] }
 0x735   :  { %4636 = vst.msk [vmem:[#allocation3 + $0x230] sm:$0xff] %vm23_vm0, %v4600_v37  ;;  %v4222_v48 = vpop.f32.mrb[64].mxu0  ;;  %v4672_v44 = vld [vmem:[#allocation2 + $0x128] sm:$0xff]  ;;  %v11361_v37 = vld [vmem:[%s13055_s1 + $0x60] sm:$0xff] }
 0x736   :  { %4308 = vst.msk [vmem:[#allocation2 + $0x138] sm:$0xff] %vm23_vm0, %v4272_v13  ;;  %v4223_v30 = vadd.f32 %v10978_v33, %v4222_v48  ;;  %v4224_v35 = vpop.f32.mrb[65].mxu0  ;;  %v4974_v52 = vpop.permute.xlu1 %4973  ;;  %v4924_v61 = vmul.f32 %v11079_v19, %v4672_v44  ;;  %v11366_v13 = vld [vmem:[%s13055_s1 + $0x58] sm:$0xff]  ;;  %v11374_v44 = vld [vmem:[%s13055_s1 + $0x70] sm:$0xff] }
 0x737   :  { %5075 = vst.msk [vmem:[#allocation3 + $0x60] sm:$0xff] %vm868_vm1, %v4974_v52  ;;  %v11387_v52 = vld [vmem:[%s13055_s1 + $0x80] sm:$0xff] }
 0x738   :  { %v4273_v10 = vmax.f32 %v4223_v30, 0.0  ;;  %5031 = vrot.lane.b32.xlu0 %v4924_v61, %s8749_s20  ;;  %5179 = vperm.xlu1 %8684, %v11278_v31   ;;  %v11379_v30 = vld [vmem:[%s13055_s1 + $0x68] sm:$0xff]  ;;  %v11392_v61 = vld [vmem:[%s13055_s1 + $0x78] sm:$0xff] }
 0x739   :  { %v4227_v32 = vpop.f32.mrb[66].mxu0 }
 0x73a   :  { %4309 = vst.msk [vmem:[#allocation2 + $0x140] sm:$0xff] %vm23_vm0, %v4273_v10  ;;  %v4228_v19 = vadd.f32 %v10978_v33, %v4227_v32  ;;  %v4229_v25 = vpop.f32.mrb[67].mxu0  ;;  %v4976_v3 = vpop.permute.xlu0 %4975  ;;  %v11400_v32 = vld [vmem:[%s13055_s1 + $0x90] sm:$0xff] }
 0x73b   :  { %5076 = vst.msk [vmem:[#allocation3 + $0x70] sm:$0xff] %vm868_vm1, %v4976_v3  ;;  %v11413_v3 = vld [vmem:[%s13055_s1 + $0xa0] sm:$0xff] }
 0x73c   :  { %v4274_v11 = vmax.f32 %v4228_v19, 0.0  ;;  %5184 = vperm.xlu0 %8685, %v11289_v2   ;;  %5189 = vperm.xlu1 %8684, %v11294_v6   ;;  %v11405_v19 = vld [vmem:[%s13055_s1 + $0x88] sm:$0xff] }
 0x73d   :  { %v4232_v8 = vpop.f32.mrb[68].mxu0 }
 0x73e   :  { %4310 = vst.msk [vmem:[#allocation2 + $0x148] sm:$0xff] %vm23_vm0, %v4274_v11  ;;  %v4233_v63 = vadd.f32 %v10978_v33, %v4232_v8  ;;  %v4234_v43 = vpop.f32.mrb[69].mxu0  ;;  %v4978_v15 = vpop.permute.xlu1 %4977  ;;  %v11418_v11 = vld [vmem:[%s13055_s1 + $0x98] sm:$0xff] }
 0x73f   :  { %5077 = vst.msk [vmem:[#allocation3 + $0x80] sm:$0xff] %vm868_vm1, %v4978_v15  ;;  %v11431_v43 = vld [vmem:[%s13055_s1 + $0xa8] sm:$0xff] }
 0x740   :  { %v4275_v54 = vmax.f32 %v4233_v63, 0.0  ;;  %5199 = vperm.xlu0 %8685, %v11304_v1   ;;  %5194 = vperm.xlu1 %8684, %v11309_v45   ;;  %v11426_v63 = vld [vmem:[%s13055_s1 + $0xb0] sm:$0xff] }
 0x741   :  { %v4237_v46 = vpop.f32.mrb[70].mxu0  ;;  %13079 = vst [vmem:[#allocation5_spill] sm:$0xff] %v11426_v63 }
 0x742   :  { %4311 = vst.msk [vmem:[#allocation2 + $0x150] sm:$0xff] %vm23_vm0, %v4275_v54  ;;  %v4238_v23 = vadd.f32 %v10978_v33, %v4237_v46  ;;  %v4239_v4 = vpop.f32.mrb[71].mxu0  ;;  %v4980_v0 = vpop.permute.xlu0 %4979  ;;  %v11439_v54 = vld [vmem:[%s13055_s1 + $0xc0] sm:$0xff]  ;;  %v11444_v46 = vld [vmem:[%s13055_s1 + $0xb8] sm:$0xff] }
 0x743   :  { %5078 = vst.msk [vmem:[#allocation3 + $0x90] sm:$0xff] %vm868_vm1, %v4980_v0  ;;  %13080 = vst [vmem:[#allocation6_spill] sm:$0xff] %v11439_v54  ;;  %v11452_v4 = vld [vmem:[%s13055_s1 + $0xd0] sm:$0xff]  ;;  %v11457_v0 = vld [vmem:[%s13055_s1 + $0xc8] sm:$0xff] }
 0x744   :  { %v4276_v5 = vmax.f32 %v4238_v23, 0.0  ;;  %5209 = vperm.xlu0 %8685, %v11319_v14   ;;  %5204 = vperm.xlu1 %8684, %v11324_v29   ;;  %13081 = vst [vmem:[#allocation7_spill] sm:$0xff] %v11452_v4  ;;  %13082 = vst [vmem:[#allocation8_spill] sm:$0xff] %v11457_v0 }
 0x746   :  { %4312 = vst.msk [vmem:[#allocation2 + $0x158] sm:$0xff] %vm23_vm0, %v4276_v5  ;;  %v4982_v33 = vpop.permute.xlu1 %4981 }
 0x747   :  { %5079 = vst.msk [vmem:[#allocation3 + $0xa0] sm:$0xff] %vm868_vm1, %v4982_v33  ;;  %v11465_v33 = vld [vmem:[%s13055_s1 + $0xe0] sm:$0xff] }
 0x748   :  { %5219 = vperm.xlu0 %8685, %v11334_v22   ;;  %5214 = vperm.xlu1 %8684, %v11339_v42   ;;  %13083 = vst [vmem:[#allocation9_spill] sm:$0xff] %v11465_v33 }
 0x74a   :  { %v4984_v36 = vpop.permute.xlu0 %4983 }
 0x74b   :  { %5080 = vst.msk [vmem:[#allocation3 + $0xb0] sm:$0xff] %vm868_vm1, %v4984_v36  ;;  %v11470_v36 = vld [vmem:[%s13055_s1 + $0xd8] sm:$0xff] }
 0x74c   :  { %5229 = vperm.xlu0 %8685, %v11348_v9   ;;  %5224 = vperm.xlu1 %8684, %v11353_v34   ;;  %13084 = vst [vmem:[#allocation10_spill] sm:$0xff] %v11470_v36 }
 0x74e   :  { %v4986_v48 = vpop.permute.xlu1 %4985 }
 0x74f   :  { %5081 = vst.msk [vmem:[#allocation3 + $0xc0] sm:$0xff] %vm868_vm1, %v4986_v48 }
 0x750   :  { %5239 = vperm.xlu0 %8685, %v11361_v37   ;;  %5234 = vperm.xlu1 %8684, %v11366_v13  }
 0x752   :  { %v4988_v35 = vpop.permute.xlu0 %4987 }
 0x753   :  { %5082 = vst.msk [vmem:[#allocation3 + $0xd0] sm:$0xff] %vm868_vm1, %v4988_v35  ;;  %v11478_v35 = vld [vmem:[%s13055_s1 + $0xf0] sm:$0xff] }
 0x754   :  { %5249 = vperm.xlu0 %8685, %v11374_v44   ;;  %5244 = vperm.xlu1 %8684, %v11379_v30   ;;  %13085 = vst [vmem:[#allocation11_spill] sm:$0xff] %v11478_v35 }
 0x756   :  { %v4990_v10 = vpop.permute.xlu1 %4989 }
 0x757   :  { %5083 = vst.msk [vmem:[#allocation3 + $0xe0] sm:$0xff] %vm868_vm1, %v4990_v10  ;;  %v11483_v10 = vld [vmem:[%s13055_s1 + $0xe8] sm:$0xff] }
 0x758   :  { %5259 = vperm.xlu0 %8685, %v11387_v52   ;;  %5254 = vperm.xlu1 %8684, %v11392_v61   ;;  %13086 = vst [vmem:[#allocation12_spill] sm:$0xff] %v11483_v10 }
 0x75a   :  { %v4992_v25 = vpop.permute.xlu0 %4991 }
 0x75b   :  { %5084 = vst.msk [vmem:[#allocation3 + $0xf0] sm:$0xff] %vm868_vm1, %v4992_v25 }
 0x75c   :  { %5269 = vperm.xlu0 %8685, %v11400_v32   ;;  %5264 = vperm.xlu1 %8684, %v11405_v19  }
 0x75e   :  { %v4994_v8 = vpop.permute.xlu1 %4993 }
 0x75f   :  { %5085 = vst.msk [vmem:[#allocation3 + $0x100] sm:$0xff] %vm868_vm1, %v4994_v8  ;;  %v11491_v8 = vld [vmem:[%s13055_s1 + $0x100] sm:$0xff] }
 0x760   :  { %5279 = vperm.xlu0 %8685, %v11413_v3   ;;  %5274 = vperm.xlu1 %8684, %v11418_v11   ;;  %13087 = vst [vmem:[#allocation13_spill] sm:$0xff] %v11491_v8 }
 0x762   :  { %v4996_v15 = vpop.permute.xlu0 %4995 }
 0x763   :  { %5086 = vst.msk [vmem:[#allocation3 + $0x110] sm:$0xff] %vm868_vm1, %v4996_v15  ;;  %v11496_v15 = vld [vmem:[%s13055_s1 + $0xf8] sm:$0xff] }
 0x764   :  { %5289 = vperm.xlu0 %8685, %v11426_v63   ;;  %5284 = vperm.xlu1 %8684, %v11431_v43   ;;  %13088 = vst [vmem:[#allocation14_spill] sm:$0xff] %v11496_v15  ;;  %v11533_v63 = vld [vmem:[#allocation2 + $0x34] sm:$0xff] }
 0x766   :  { %v4998_v23 = vpop.permute.xlu1 %4997 }
 0x767   :  { %5087 = vst.msk [vmem:[#allocation3 + $0x120] sm:$0xff] %vm868_vm1, %v4998_v23 }
 0x768   :  { %5299 = vperm.xlu0 %8685, %v11439_v54   ;;  %5294 = vperm.xlu1 %8684, %v11444_v46  }
 0x76a   :  { %v5000_v5 = vpop.permute.xlu0 %4999 }
 0x76b   :  { %5088 = vst.msk [vmem:[#allocation3 + $0x130] sm:$0xff] %vm868_vm1, %v5000_v5  ;;  %v11504_v5 = vld [vmem:[%s13055_s1 + $0x110] sm:$0xff] }
 0x76c   :  { %5309 = vperm.xlu0 %8685, %v11452_v4   ;;  %5304 = vperm.xlu1 %8684, %v11457_v0   ;;  %13089 = vst [vmem:[#allocation15_spill] sm:$0xff] %v11504_v5 }
 0x76e   :  { %v5002_v48 = vpop.permute.xlu1 %5001 }
 0x76f   :  { %5089 = vst.msk [vmem:[#allocation3 + $0x140] sm:$0xff] %vm868_vm1, %v5002_v48  ;;  %v11509_v48 = vld [vmem:[%s13055_s1 + $0x108] sm:$0xff] }
 0x770   :  { %5319 = vperm.xlu0 %8685, %v11465_v33   ;;  %5314 = vperm.xlu1 %8684, %v11470_v36   ;;  %13090 = vst [vmem:[#allocation16_spill] sm:$0xff] %v11509_v48 }
 0x772   :  { %v5004_v25 = vpop.permute.xlu0 %5003 }
 0x773   :  { %5090 = vst.msk [vmem:[#allocation3 + $0x150] sm:$0xff] %vm868_vm1, %v5004_v25 }
 0x774   :  { %5329 = vperm.xlu0 %8685, %v11478_v35   ;;  %5324 = vperm.xlu1 %8684, %v11483_v10   ;;  %v8765_v35 = vmov 12   ;;  %v5106_v10 = vld [vmem:[#allocation2 + $0x24] sm:$0xff] }
 0x776   :  { %v5006_v23 = vpop.permute.xlu1 %5005 }
 0x777   :  { %5091 = vst.msk [vmem:[#allocation3 + $0x160] sm:$0xff] %vm868_vm1, %v5006_v23  ;;  %v11517_v23 = vld [vmem:[%s13055_s1 + $0x118] sm:$0xff] }
 0x778   :  { %5339 = vperm.xlu0 %8685, %v11491_v8   ;;  %5334 = vperm.xlu1 %8684, %v11496_v15   ;;  %13091 = vst [vmem:[#allocation17_spill] sm:$0xff] %v11517_v23 }
 0x77a   :  { %v5008_v25 = vpop.permute.xlu0 %5007 }
 0x77b   :  { %5092 = vst.msk [vmem:[#allocation3 + $0x170] sm:$0xff] %vm868_vm1, %v5008_v25 }
 0x77c   :  { %5349 = vperm.xlu0 %8685, %v11504_v5   ;;  %5344 = vperm.xlu1 %8684, %v11509_v48  }
 0x77e   :  { %v5010_v8 = vpop.permute.xlu1 %5009 }
 0x77f   :  { %5093 = vst.msk [vmem:[#allocation3 + $0x180] sm:$0xff] %vm868_vm1, %v5010_v8 }
 0x780   :  { %5354 = vperm.xlu1 %8684, %v11517_v23   ;;  %8686 = vset.pattern.permute.xlu0 %v8765_v35 }
 0x782   :  { %v5012_v33 = vpop.permute.xlu0 %5011 }
 0x783   :  { %5094 = vst.msk [vmem:[#allocation3 + $0x190] sm:$0xff] %vm868_vm1, %v5012_v33 }
 0x784   :  { %8687 = vset.pattern.permute.xlu1 %v8765_v35 }
 0x786   :  { %v5014_v25 = vpop.permute.xlu1 %5013 }
 0x787   :  { %5095 = vst.msk [vmem:[#allocation3 + $0x1a0] sm:$0xff] %vm868_vm1, %v5014_v25 }
 0x78a   :  { %v5016_v5 = vpop.permute.xlu0 %5015 }
 0x78b   :  { %5096 = vst.msk [vmem:[#allocation3 + $0x1b0] sm:$0xff] %vm868_vm1, %v5016_v5 }
 0x78e   :  { %v5018_v48 = vpop.permute.xlu1 %5017 }
 0x78f   :  { %5097 = vst.msk [vmem:[#allocation3 + $0x1c0] sm:$0xff] %vm868_vm1, %v5018_v48  ;;  %v5105_v48 = vld [vmem:[#allocation2 + $0x1c] sm:$0xff] }
 0x792   :  { %v5020_v15 = vpop.permute.xlu0 %5019 }
 0x793   :  { %5098 = vst.msk [vmem:[#allocation3 + $0x1d0] sm:$0xff] %vm868_vm1, %v5020_v15 }
 0x796   :  { %v5022_v8 = vpop.permute.xlu1 %5021 }
 0x797   :  { %5099 = vst.msk [vmem:[#allocation3 + $0x1e0] sm:$0xff] %vm868_vm1, %v5022_v8  ;;  %v5107_v8 = vld [vmem:[#allocation2 + $0x2c] sm:$0xff] }
 0x79a   :  { %v5024_v23 = vpop.permute.xlu0 %5023 }
 0x79b   :  { %5100 = vst.msk [vmem:[#allocation3 + $0x1f0] sm:$0xff] %vm868_vm1, %v5024_v23 }
 0x79e   :  { %v5026_v33 = vpop.permute.xlu1 %5025 }
 0x79f   :  { %5101 = vst.msk [vmem:[#allocation3 + $0x200] sm:$0xff] %vm868_vm1, %v5026_v33 }
 0x7a2   :  { %v5028_v35 = vpop.permute.xlu0 %5027 }
 0x7a3   :  { %5102 = vst.msk [vmem:[#allocation3 + $0x210] sm:$0xff] %vm868_vm1, %v5028_v35 }
 0x7a6   :  { %v5030_v25 = vpop.permute.xlu1 %5029 }
 0x7a7   :  { %5103 = vst.msk [vmem:[#allocation3 + $0x220] sm:$0xff] %vm868_vm1, %v5030_v25 }
 0x7aa   :  { %v5032_v5 = vpop.permute.xlu0 %5031 }
 0x7ab   :  { %5104 = vst.msk [vmem:[#allocation3 + $0x230] sm:$0xff] %vm868_vm1, %v5032_v5  ;;  %v8714_v5 = vld [vmem:[#allocation2 + $0x3c] sm:$0xff] }
 0x7b7   :  { %v5180_v15 = vpop.permute.xlu1 %5179 }
 0x7b8   :  { %v5357_v4 = vmul.f32 %v5180_v15, %v5105_v48 }
 0x7ba   :  { %5429 = vrot.lane.b32.xlu0 %v5357_v4, %s8751_s21 }
 0x7bb   :  { %v5185_v23 = vpop.permute.xlu0 %5184  ;;  %v5190_v54 = vpop.permute.xlu1 %5189 }
 0x7bc   :  { %v5358_v36 = vmul.f32 %v5185_v23, %v5106_v10  ;;  %v5359_v33 = vmul.f32 %v5190_v54, %v5107_v8 }
 0x7be   :  { %5431 = vrot.lane.b32.xlu1 %v5358_v36, %s8751_s21  ;;  %5433 = vrot.lane.b32.xlu0 %v5359_v33, %s8751_s21  ;;  %v13092_v33 = vld [vmem:[#allocation4_spill] sm:$0xff] }
 0x7bf   :  { %v5200_v35 = vpop.permute.xlu0 %5199  ;;  %v5195_v25 = vpop.permute.xlu1 %5194 }
 0x7c0   :  { %v5361_v0 = vmul.f32 %v8714_v5, %v5200_v35  ;;  %v5360_v48 = vmul.f32 %v5195_v25, %v11533_v63 }
 0x7c2   :  { %5437 = vrot.lane.b32.xlu0 %v5361_v0, %s8751_s21  ;;  %5435 = vrot.lane.b32.xlu1 %v5360_v48, %s8751_s21 }
 0x7c3   :  { %v5210_v4 = vpop.permute.xlu0 %5209  ;;  %v5205_v15 = vpop.permute.xlu1 %5204 }
 0x7c4   :  { %v5363_v54 = vmul.f32 %v5210_v4, %v11014_v49  ;;  %v5362_v10 = vmul.f32 %v5205_v15, %v11002_v47 }
 0x7c6   :  { %5441 = vrot.lane.b32.xlu0 %v5363_v54, %s8751_s21  ;;  %5439 = vrot.lane.b32.xlu1 %v5362_v10, %s8751_s21 }
 0x7c7   :  { %v5220_v36 = vpop.permute.xlu0 %5219  ;;  %v5215_v8 = vpop.permute.xlu1 %5214 }
 0x7c8   :  { %v5365_v23 = vmul.f32 %v5220_v36, %v11036_v24  ;;  %v5364_v35 = vmul.f32 %v5215_v8, %v13092_v33 }
 0x7ca   :  { %5445 = vrot.lane.b32.xlu0 %v5365_v23, %s8751_s21  ;;  %5443 = vrot.lane.b32.xlu1 %v5364_v35, %s8751_s21 }
 0x7cb   :  { %v5230_v0 = vpop.permute.xlu0 %5229  ;;  %v5225_v25 = vpop.permute.xlu1 %5224 }
 0x7cc   :  { %v5367_v49 = vmul.f32 %v5230_v0, %v11058_v58  ;;  %v5366_v47 = vmul.f32 %v5225_v25, %v11049_v40 }
 0x7ce   :  { %5449 = vrot.lane.b32.xlu0 %v5367_v49, %s8751_s21  ;;  %5447 = vrot.lane.b32.xlu1 %v5366_v47, %s8751_s21 }
 0x7cf   :  { %v5240_v5 = vpop.permute.xlu0 %5239  ;;  %v5235_v48 = vpop.permute.xlu1 %5234 }
 0x7d0   :  { %v5369_v24 = vmul.f32 %v5240_v5, %v11081_v51  ;;  %v5368_v4 = vmul.f32 %v5235_v48, %v11070_v28 }
 0x7d2   :  { %5453 = vrot.lane.b32.xlu0 %v5369_v24, %s8751_s21  ;;  %5451 = vrot.lane.b32.xlu1 %v5368_v4, %s8751_s21 }
 0x7d3   :  { %v5250_v15 = vpop.permute.xlu0 %5249  ;;  %v5245_v54 = vpop.permute.xlu1 %5244 }
 0x7d4   :  { %v5371_v58 = vmul.f32 %v5250_v15, %v11100_v21  ;;  %v5370_v40 = vmul.f32 %v5245_v54, %v11090_v53 }
 0x7d6   :  { %5457 = vrot.lane.b32.xlu0 %v5371_v58, %s8751_s21  ;;  %5455 = vrot.lane.b32.xlu1 %v5370_v40, %s8751_s21 }
 0x7d7   :  { %v5260_v10 = vpop.permute.xlu0 %5259  ;;  %v5255_v36 = vpop.permute.xlu1 %5254 }
 0x7d8   :  { %v5373_v51 = vmul.f32 %v5260_v10, %v11122_v17  ;;  %v5372_v28 = vmul.f32 %v5255_v36, %v11111_v7  ;;  %v11596_v10 = vld [vmem:[#allocation2 + $0x12c] sm:$0xff] }
 0x7da   :  { %5461 = vrot.lane.b32.xlu0 %v5373_v51, %s8751_s21  ;;  %5459 = vrot.lane.b32.xlu1 %v5372_v28, %s8751_s21  ;;  %v11598_v51 = vld [vmem:[#allocation2 + $0x124] sm:$0xff] }
 0x7db   :  { %v5270_v8 = vpop.permute.xlu0 %5269  ;;  %v5265_v23 = vpop.permute.xlu1 %5264 }
 0x7dc   :  { %v5375_v21 = vmul.f32 %v5270_v8, %v11140_v56  ;;  %v5374_v53 = vmul.f32 %v5265_v23, %v11131_v39 }
 0x7de   :  { %5465 = vrot.lane.b32.xlu0 %v5375_v21, %s8751_s21  ;;  %5463 = vrot.lane.b32.xlu1 %v5374_v53, %s8751_s21  ;;  %v11604_v21 = vld [vmem:[#allocation2 + $0x134] sm:$0xff] }
 0x7df   :  { %v5280_v33 = vpop.permute.xlu0 %5279  ;;  %v5275_v35 = vpop.permute.xlu1 %5274 }
 0x7e0   :  { %v5377_v17 = vmul.f32 %v5280_v33, %v11158_v26  ;;  %v5376_v7 = vmul.f32 %v5275_v35, %v11149_v38  ;;  %v13103_v35 = vld [vmem:[#allocation17_spill] sm:$0xff] }
 0x7e2   :  { %5469 = vrot.lane.b32.xlu0 %v5377_v17, %s8751_s21  ;;  %5467 = vrot.lane.b32.xlu1 %v5376_v7, %s8751_s21  ;;  %v13104_v17 = vld [vmem:[#allocation13_spill] sm:$0xff] }
 0x7e3   :  { %v5290_v0 = vpop.permute.xlu0 %5289  ;;  %v5285_v25 = vpop.permute.xlu1 %5284 }
 0x7e4   :  { %v5379_v56 = vmul.f32 %v5290_v0, %v11176_v50  ;;  %v5378_v39 = vmul.f32 %v5285_v25, %v11167_v41  ;;  %v13105_v25 = vld [vmem:[#allocation15_spill] sm:$0xff] }
 0x7e6   :  { %5473 = vrot.lane.b32.xlu0 %v5379_v56, %s8751_s21  ;;  %5471 = vrot.lane.b32.xlu1 %v5378_v39, %s8751_s21 }
 0x7e7   :  { %v5300_v49 = vpop.permute.xlu0 %5299  ;;  %v5295_v47 = vpop.permute.xlu1 %5294 }
 0x7e8   :  { %v5381_v26 = vmul.f32 %v5300_v49, %v11194_v20  ;;  %v5380_v38 = vmul.f32 %v5295_v47, %v11185_v16 }
 0x7ea   :  { %5477 = vrot.lane.b32.xlu0 %v5381_v26, %s8751_s21  ;;  %5475 = vrot.lane.b32.xlu1 %v5380_v38, %s8751_s21 }
 0x7eb   :  { %v5310_v5 = vpop.permute.xlu0 %5309  ;;  %v5305_v48 = vpop.permute.xlu1 %5304 }
 0x7ec   :  { %v5383_v50 = vmul.f32 %v5310_v5, %v11212_v62  ;;  %v5382_v41 = vmul.f32 %v5305_v48, %v11203_v27 }
 0x7ee   :  { %5481 = vrot.lane.b32.xlu0 %v5383_v50, %s8751_s21  ;;  %5479 = vrot.lane.b32.xlu1 %v5382_v41, %s8751_s21 }
 0x7ef   :  { %v5320_v24 = vpop.permute.xlu0 %5319  ;;  %v5315_v4 = vpop.permute.xlu1 %5314 }
 0x7f0   :  { %v5385_v20 = vmul.f32 %v5320_v24, %v11230_v60  ;;  %v5384_v16 = vmul.f32 %v5315_v4, %v11221_v12 }
 0x7f2   :  { %5485 = vrot.lane.b32.xlu0 %v5385_v20, %s8751_s21  ;;  %5483 = vrot.lane.b32.xlu1 %v5384_v16, %s8751_s21 }
 0x7f3   :  { %v5330_v15 = vpop.permute.xlu0 %5329  ;;  %v5325_v54 = vpop.permute.xlu1 %5324 }
 0x7f4   :  { %v5387_v62 = vmul.f32 %v5330_v15, %v11248_v57  ;;  %v5386_v27 = vmul.f32 %v5325_v54, %v11239_v59 }
 0x7f6   :  { %5489 = vrot.lane.b32.xlu0 %v5387_v62, %s8751_s21  ;;  %5487 = vrot.lane.b32.xlu1 %v5386_v27, %s8751_s21 }
 0x7f7   :  { %v5340_v58 = vpop.permute.xlu0 %5339  ;;  %v5335_v40 = vpop.permute.xlu1 %5334 }
 0x7f8   :  { %v5389_v60 = vmul.f32 %v5340_v58, %v11266_v18  ;;  %v5388_v12 = vmul.f32 %v5335_v40, %v11257_v55 }
 0x7fa   :  { %5493 = vrot.lane.b32.xlu0 %v5389_v60, %s8751_s21  ;;  %5491 = vrot.lane.b32.xlu1 %v5388_v12, %s8751_s21 }
 0x7fb   :  { %v5350_v36 = vpop.permute.xlu0 %5349  ;;  %v5345_v28 = vpop.permute.xlu1 %5344 }
 0x7fc   :  { %v5391_v8 = vmul.f32 %v5350_v36, %v11596_v10  ;;  %v5390_v23 = vmul.f32 %v5345_v28, %v11598_v51 }
 0x7fe   :  { %5497 = vrot.lane.b32.xlu0 %v5391_v8, %s8751_s21  ;;  %5495 = vrot.lane.b32.xlu1 %v5390_v23, %s8751_s21  ;;  %v5574_v8 = vld [vmem:[#allocation2 + $0x3c] sm:$0xff] }
 0x7ff   :  { %v5355_v53 = vpop.permute.xlu1 %5354 }
 0x800   :  { %v5392_v33 = vmul.f32 %v5355_v53, %v11604_v21 }
 0x802   :  { %5647 = vperm.xlu0 %8686, %v11278_v31   ;;  %5499 = vrot.lane.b32.xlu1 %v5392_v33, %s8751_s21 }
 0x806   :  { %5662 = vperm.xlu0 %8686, %v11309_v45   ;;  %5652 = vperm.xlu1 %8687, %v11289_v2   ;;  %v13094_v45 = vld [vmem:[#allocation5_spill] sm:$0xff] }
 0x80a   :  { %5672 = vperm.xlu0 %8686, %v11324_v29   ;;  %5657 = vperm.xlu1 %8687, %v11294_v6  }
 0x80e   :  { %5682 = vperm.xlu0 %8686, %v11339_v42   ;;  %5667 = vperm.xlu1 %8687, %v11304_v1   ;;  %v13093_v1 = vld [vmem:[#allocation8_spill] sm:$0xff]  ;;  %v13096_v42 = vld [vmem:[#allocation6_spill] sm:$0xff] }
 0x812   :  { %5692 = vperm.xlu0 %8686, %v11353_v34   ;;  %5677 = vperm.xlu1 %8687, %v11319_v14  }
 0x816   :  { %5702 = vperm.xlu0 %8686, %v11366_v13   ;;  %5687 = vperm.xlu1 %8687, %v11334_v22   ;;  %v13095_v22 = vld [vmem:[#allocation10_spill] sm:$0xff]  ;;  %v13098_v13 = vld [vmem:[#allocation7_spill] sm:$0xff] }
 0x81a   :  { %5712 = vperm.xlu0 %8686, %v11379_v30   ;;  %5697 = vperm.xlu1 %8687, %v11348_v9  }
 0x81e   :  { %5722 = vperm.xlu0 %8686, %v11392_v61   ;;  %5707 = vperm.xlu1 %8687, %v11361_v37   ;;  %v13097_v37 = vld [vmem:[#allocation12_spill] sm:$0xff]  ;;  %v13100_v61 = vld [vmem:[#allocation9_spill] sm:$0xff] }
 0x822   :  { %5732 = vperm.xlu0 %8686, %v11405_v19   ;;  %5717 = vperm.xlu1 %8687, %v11374_v44  }
 0x826   :  { %5742 = vperm.xlu0 %8686, %v11418_v11   ;;  %5727 = vperm.xlu1 %8687, %v11387_v52   ;;  %v13099_v52 = vld [vmem:[#allocation14_spill] sm:$0xff]  ;;  %v13102_v11 = vld [vmem:[#allocation11_spill] sm:$0xff] }
 0x82a   :  { %5752 = vperm.xlu0 %8686, %v11431_v43   ;;  %5737 = vperm.xlu1 %8687, %v11400_v32  }
 0x82c   :  { %v5430_v31 = vpop.permute.xlu0 %5429 }
 0x82d   :  { %5537 = vst.msk [vmem:[#allocation3] sm:$0xff] %vm1337_vm2, %v5430_v31  ;;  %v5575_v31 = vld [vmem:[#allocation2 + $0x44] sm:$0xff] }
 0x82e   :  { %5762 = vperm.xlu0 %8686, %v11444_v46   ;;  %5747 = vperm.xlu1 %8687, %v11413_v3   ;;  %v13101_v3 = vld [vmem:[#allocation16_spill] sm:$0xff] }
 0x830   :  { %v5434_v2 = vpop.permute.xlu0 %5433  ;;  %v5432_v6 = vpop.permute.xlu1 %5431 }
 0x831   :  { %5539 = vst.msk [vmem:[#allocation3 + $0x20] sm:$0xff] %vm1337_vm2, %v5434_v2  ;;  %5538 = vst.msk [vmem:[#allocation3 + $0x10] sm:$0xff] %vm1337_vm2, %v5432_v6  ;;  %v8715_v6 = vld [vmem:[#allocation2 + $0x4c] sm:$0xff] }
 0x832   :  { %5772 = vperm.xlu0 %8686, %v13093_v1   ;;  %5757 = vperm.xlu1 %8687, %v13094_v45  }
 0x834   :  { %v5438_v14 = vpop.permute.xlu0 %5437  ;;  %v5436_v29 = vpop.permute.xlu1 %5435 }
 0x835   :  { %5541 = vst.msk [vmem:[#allocation3 + $0x40] sm:$0xff] %vm1337_vm2, %v5438_v14  ;;  %5540 = vst.msk [vmem:[#allocation3 + $0x30] sm:$0xff] %vm1337_vm2, %v5436_v29  ;;  %v8716_v29 = vld [vmem:[#allocation2 + $0x5c] sm:$0xff] }
 0x836   :  { %5782 = vperm.xlu0 %8686, %v13095_v22   ;;  %5767 = vperm.xlu1 %8687, %v13096_v42   ;;  %v8717_v42 = vld [vmem:[#allocation2 + $0x54] sm:$0xff] }
 0x838   :  { %v5442_v9 = vpop.permute.xlu0 %5441  ;;  %v5440_v34 = vpop.permute.xlu1 %5439 }
 0x839   :  { %5543 = vst.msk [vmem:[#allocation3 + $0x60] sm:$0xff] %vm1337_vm2, %v5442_v9  ;;  %5542 = vst.msk [vmem:[#allocation3 + $0x50] sm:$0xff] %vm1337_vm2, %v5440_v34 }
 0x83a   :  { %5792 = vperm.xlu0 %8686, %v13097_v37   ;;  %5777 = vperm.xlu1 %8687, %v13098_v13   ;;  %v8718_v13 = vld [vmem:[#allocation2 + $0x6c] sm:$0xff] }
 0x83c   :  { %v5446_v44 = vpop.permute.xlu0 %5445  ;;  %v5444_v30 = vpop.permute.xlu1 %5443 }
 0x83d   :  { %5545 = vst.msk [vmem:[#allocation3 + $0x80] sm:$0xff] %vm1337_vm2, %v5446_v44  ;;  %5544 = vst.msk [vmem:[#allocation3 + $0x70] sm:$0xff] %vm1337_vm2, %v5444_v30  ;;  %v8719_v30 = vld [vmem:[#allocation2 + $0x64] sm:$0xff] }
 0x83e   :  { %5802 = vperm.xlu0 %8686, %v13099_v52   ;;  %5787 = vperm.xlu1 %8687, %v13100_v61  }
 0x840   :  { %v5450_v32 = vpop.permute.xlu0 %5449  ;;  %v5448_v19 = vpop.permute.xlu1 %5447 }
 0x841   :  { %5547 = vst.msk [vmem:[#allocation3 + $0xa0] sm:$0xff] %vm1337_vm2, %v5450_v32  ;;  %5546 = vst.msk [vmem:[#allocation3 + $0x90] sm:$0xff] %vm1337_vm2, %v5448_v19  ;;  %v8720_v19 = vld [vmem:[#allocation2 + $0x7c] sm:$0xff] }
 0x842   :  { %5812 = vperm.xlu0 %8686, %v13101_v3   ;;  %5797 = vperm.xlu1 %8687, %v13102_v11   ;;  %v8721_v11 = vld [vmem:[#allocation2 + $0x74] sm:$0xff] }
 0x844   :  { %v5454_v43 = vpop.permute.xlu0 %5453  ;;  %v5452_v46 = vpop.permute.xlu1 %5451 }
 0x845   :  { %5549 = vst.msk [vmem:[#allocation3 + $0xc0] sm:$0xff] %vm1337_vm2, %v5454_v43  ;;  %5548 = vst.msk [vmem:[#allocation3 + $0xb0] sm:$0xff] %vm1337_vm2, %v5452_v46 }
 0x846   :  { %5822 = vperm.xlu0 %8686, %v13103_v35   ;;  %5807 = vperm.xlu1 %8687, %v13104_v17   ;;  %v8766_v17 = vmov 14  }
 0x848   :  { %v5458_v7 = vpop.permute.xlu0 %5457  ;;  %v5456_v0 = vpop.permute.xlu1 %5455 }
 0x849   :  { %5551 = vst.msk [vmem:[#allocation3 + $0xe0] sm:$0xff] %vm1337_vm2, %v5458_v7  ;;  %5550 = vst.msk [vmem:[#allocation3 + $0xd0] sm:$0xff] %vm1337_vm2, %v5456_v0  ;;  %v8722_v7 = vld [vmem:[#allocation2 + $0x8c] sm:$0xff] }
 0x84a   :  { %5817 = vperm.xlu1 %8687, %v13105_v25   ;;  %8689 = vset.pattern.permute.xlu0 %v8766_v17  ;;  %v8723_v25 = vld [vmem:[#allocation2 + $0x84] sm:$0xff] }
 0x84c   :  { %v5462_v56 = vpop.permute.xlu0 %5461  ;;  %v5460_v39 = vpop.permute.xlu1 %5459 }
 0x84d   :  { %5553 = vst.msk [vmem:[#allocation3 + $0x100] sm:$0xff] %vm1337_vm2, %v5462_v56  ;;  %5552 = vst.msk [vmem:[#allocation3 + $0xf0] sm:$0xff] %vm1337_vm2, %v5460_v39 }
 0x84e   :  { %8688 = vset.pattern.permute.xlu1 %v8766_v17  ;;  %v11719_v17 = vld [vmem:[#allocation2 + $0x13c] sm:$0xff] }
 0x850   :  { %v5466_v49 = vpop.permute.xlu0 %5465  ;;  %v5464_v47 = vpop.permute.xlu1 %5463 }
 0x851   :  { %5555 = vst.msk [vmem:[#allocation3 + $0x120] sm:$0xff] %vm1337_vm2, %v5466_v49  ;;  %5554 = vst.msk [vmem:[#allocation3 + $0x110] sm:$0xff] %vm1337_vm2, %v5464_v47  ;;  %v8724_v47 = vld [vmem:[#allocation2 + $0x9c] sm:$0xff] }
 0x854   :  { %v5470_v26 = vpop.permute.xlu0 %5469  ;;  %v5468_v38 = vpop.permute.xlu1 %5467 }
 0x855   :  { %5557 = vst.msk [vmem:[#allocation3 + $0x140] sm:$0xff] %vm1337_vm2, %v5470_v26  ;;  %5556 = vst.msk [vmem:[#allocation3 + $0x130] sm:$0xff] %vm1337_vm2, %v5468_v38  ;;  %v8725_v38 = vld [vmem:[#allocation2 + $0x94] sm:$0xff] }
 0x858   :  { %v5474_v5 = vpop.permute.xlu0 %5473  ;;  %v5472_v48 = vpop.permute.xlu1 %5471 }
 0x859   :  { %5559 = vst.msk [vmem:[#allocation3 + $0x160] sm:$0xff] %vm1337_vm2, %v5474_v5  ;;  %5558 = vst.msk [vmem:[#allocation3 + $0x150] sm:$0xff] %vm1337_vm2, %v5472_v48 }
 0x85c   :  { %v5478_v50 = vpop.permute.xlu0 %5477  ;;  %v5476_v41 = vpop.permute.xlu1 %5475 }
 0x85d   :  { %5561 = vst.msk [vmem:[#allocation3 + $0x180] sm:$0xff] %vm1337_vm2, %v5478_v50  ;;  %5560 = vst.msk [vmem:[#allocation3 + $0x170] sm:$0xff] %vm1337_vm2, %v5476_v41  ;;  %v8726_v41 = vld [vmem:[#allocation2 + $0xac] sm:$0xff] }
 0x860   :  { %v5482_v24 = vpop.permute.xlu0 %5481  ;;  %v5480_v4 = vpop.permute.xlu1 %5479 }
 0x861   :  { %5563 = vst.msk [vmem:[#allocation3 + $0x1a0] sm:$0xff] %vm1337_vm2, %v5482_v24  ;;  %5562 = vst.msk [vmem:[#allocation3 + $0x190] sm:$0xff] %vm1337_vm2, %v5480_v4  ;;  %v8727_v4 = vld [vmem:[#allocation2 + $0xa4] sm:$0xff] }
 0x864   :  { %v5486_v20 = vpop.permute.xlu0 %5485  ;;  %v5484_v16 = vpop.permute.xlu1 %5483 }
 0x865   :  { %5565 = vst.msk [vmem:[#allocation3 + $0x1c0] sm:$0xff] %vm1337_vm2, %v5486_v20  ;;  %5564 = vst.msk [vmem:[#allocation3 + $0x1b0] sm:$0xff] %vm1337_vm2, %v5484_v16 }
 0x868   :  { %v5490_v15 = vpop.permute.xlu0 %5489  ;;  %v5488_v54 = vpop.permute.xlu1 %5487 }
 0x869   :  { %5567 = vst.msk [vmem:[#allocation3 + $0x1e0] sm:$0xff] %vm1337_vm2, %v5490_v15  ;;  %5566 = vst.msk [vmem:[#allocation3 + $0x1d0] sm:$0xff] %vm1337_vm2, %v5488_v54  ;;  %v8728_v54 = vld [vmem:[#allocation2 + $0xbc] sm:$0xff] }
 0x86c   :  { %v5494_v62 = vpop.permute.xlu0 %5493  ;;  %v5492_v27 = vpop.permute.xlu1 %5491 }
 0x86d   :  { %5569 = vst.msk [vmem:[#allocation3 + $0x200] sm:$0xff] %vm1337_vm2, %v5494_v62  ;;  %5568 = vst.msk [vmem:[#allocation3 + $0x1f0] sm:$0xff] %vm1337_vm2, %v5492_v27  ;;  %v8729_v27 = vld [vmem:[#allocation2 + $0xb4] sm:$0xff] }
 0x870   :  { %v5498_v58 = vpop.permute.xlu0 %5497  ;;  %v5496_v40 = vpop.permute.xlu1 %5495 }
 0x871   :  { %5571 = vst.msk [vmem:[#allocation3 + $0x220] sm:$0xff] %vm1337_vm2, %v5498_v58  ;;  %5570 = vst.msk [vmem:[#allocation3 + $0x210] sm:$0xff] %vm1337_vm2, %v5496_v40 }
 0x874   :  { %v5500_v60 = vpop.permute.xlu1 %5499 }
 0x875   :  { %5572 = vst.msk [vmem:[#allocation3 + $0x230] sm:$0xff] %vm1337_vm2, %v5500_v60 }
 0x881   :  { %v5648_v12 = vpop.permute.xlu0 %5647 }
 0x882   :  { %v5825_v36 = vmul.f32 %v5648_v12, %v11533_v63  ;;  %v8730_v12 = vld [vmem:[#allocation2 + $0xcc] sm:$0xff] }
 0x884   :  { %5897 = vrot.lane.b32.xlu1 %v5825_v36, %s8752_s22 }
 0x885   :  { %v5663_v28 = vpop.permute.xlu0 %5662  ;;  %v5653_v23 = vpop.permute.xlu1 %5652 }
 0x886   :  { %v5826_v53 = vmul.f32 %v5653_v23, %v5574_v8  ;;  %v5828_v1 = vmul.f32 %v8715_v6, %v5663_v28  ;;  %v8731_v28 = vld [vmem:[#allocation2 + $0xc4] sm:$0xff] }
 0x888   :  { %5899 = vrot.lane.b32.xlu0 %v5826_v53, %s8752_s22 }
 0x889   :  { %v5673_v33 = vpop.permute.xlu0 %5672  ;;  %v5658_v2 = vpop.permute.xlu1 %5657 }
 0x88a   :  { %v5827_v45 = vmul.f32 %v5658_v2, %v5575_v31  ;;  %v5830_v22 = vmul.f32 %v8716_v29, %v5673_v33  ;;  %v8732_v33 = vld [vmem:[#allocation2 + $0xdc] sm:$0xff]  ;;  %v8733_v2 = vld [vmem:[#allocation2 + $0xd4] sm:$0xff]  ;;  %v8735_v29 = vld [vmem:[#allocation2 + $0xe4] sm:$0xff] }
 0x88c   :  { %5903 = vrot.lane.b32.xlu0 %v5828_v1, %s8752_s22  ;;  %5901 = vrot.lane.b32.xlu1 %v5827_v45, %s8752_s22 }
 0x88d   :  { %v5683_v14 = vpop.permute.xlu0 %5682  ;;  %v5668_v63 = vpop.permute.xlu1 %5667 }
 0x88e   :  { %v5829_v9 = vmul.f32 %v8717_v42, %v5668_v63  ;;  %v5832_v44 = vmul.f32 %v8718_v13, %v5683_v14  ;;  %v8734_v14 = vld [vmem:[#allocation2 + $0xec] sm:$0xff]  ;;  %v8737_v13 = vld [vmem:[#allocation2 + $0xf4] sm:$0xff] }
 0x890   :  { %5907 = vrot.lane.b32.xlu0 %v5830_v22, %s8752_s22  ;;  %5905 = vrot.lane.b32.xlu1 %v5829_v9, %s8752_s22 }
 0x891   :  { %v5693_v34 = vpop.permute.xlu0 %5692  ;;  %v5678_v37 = vpop.permute.xlu1 %5677 }
 0x892   :  { %v5831_v52 = vmul.f32 %v8719_v30, %v5678_v37  ;;  %v5834_v3 = vmul.f32 %v8720_v19, %v5693_v34  ;;  %v8736_v34 = vld [vmem:[#allocation2 + $0xfc] sm:$0xff] }
 0x894   :  { %5911 = vrot.lane.b32.xlu0 %v5832_v44, %s8752_s22  ;;  %5909 = vrot.lane.b32.xlu1 %v5831_v52, %s8752_s22 }
 0x895   :  { %v5703_v61 = vpop.permute.xlu0 %5702  ;;  %v5688_v32 = vpop.permute.xlu1 %5687 }
 0x896   :  { %v5833_v43 = vmul.f32 %v8721_v11, %v5688_v32  ;;  %v5836_v0 = vmul.f32 %v8722_v7, %v5703_v61 }
 0x898   :  { %5915 = vrot.lane.b32.xlu0 %v5834_v3, %s8752_s22  ;;  %5913 = vrot.lane.b32.xlu1 %v5833_v43, %s8752_s22 }
 0x899   :  { %v5713_v46 = vpop.permute.xlu0 %5712  ;;  %v5698_v35 = vpop.permute.xlu1 %5697 }
 0x89a   :  { %v5835_v56 = vmul.f32 %v8723_v25, %v5698_v35  ;;  %v5838_v26 = vmul.f32 %v8724_v47, %v5713_v46  ;;  %v11725_v25 = vld [vmem:[#allocation2 + $0x14c] sm:$0xff]  ;;  %v6044_v47 = vld [vmem:[#allocation2 + $0x58] sm:$0xff] }
 0x89c   :  { %5919 = vrot.lane.b32.xlu0 %v5836_v0, %s8752_s22  ;;  %5917 = vrot.lane.b32.xlu1 %v5835_v56, %s8752_s22 }
 0x89d   :  { %v5723_v39 = vpop.permute.xlu0 %5722  ;;  %v5708_v49 = vpop.permute.xlu1 %5707 }
 0x89e   :  { %v5837_v5 = vmul.f32 %v8725_v38, %v5708_v49  ;;  %v5840_v24 = vmul.f32 %v8726_v41, %v5723_v39  ;;  %v6042_v49 = vld [vmem:[#allocation2 + $0x48] sm:$0xff] }
 0x89f   :  { %v6046_v38 = vld [vmem:[#allocation2 + $0x68] sm:$0xff] }
 0x8a0   :  { %5923 = vrot.lane.b32.xlu0 %v5838_v26, %s8752_s22  ;;  %5921 = vrot.lane.b32.xlu1 %v5837_v5, %s8752_s22  ;;  %v6043_v26 = vld [vmem:[#allocation2 + $0x50] sm:$0xff]  ;;  %v6045_v5 = vld [vmem:[#allocation2 + $0x60] sm:$0xff]  ;;  %v6050_v41 = vld [vmem:[#allocation2 + $0x88] sm:$0xff] }
 0x8a1   :  { %v5733_v48 = vpop.permute.xlu0 %5732  ;;  %v5718_v50 = vpop.permute.xlu1 %5717 }
 0x8a2   :  { %v5839_v20 = vmul.f32 %v8727_v4, %v5718_v50  ;;  %v5842_v62 = vmul.f32 %v8728_v54, %v5733_v48  ;;  %v6048_v48 = vld [vmem:[#allocation2 + $0x78] sm:$0xff]  ;;  %v6047_v50 = vld [vmem:[#allocation2 + $0x70] sm:$0xff] }
 0x8a3   :  { %v6052_v4 = vld [vmem:[#allocation2 + $0x98] sm:$0xff] }
 0x8a4   :  { %5927 = vrot.lane.b32.xlu0 %v5840_v24, %s8752_s22  ;;  %5925 = vrot.lane.b32.xlu1 %v5839_v20, %s8752_s22  ;;  %v6049_v24 = vld [vmem:[#allocation2 + $0x80] sm:$0xff]  ;;  %v6051_v20 = vld [vmem:[#allocation2 + $0x90] sm:$0xff]  ;;  %v6056_v54 = vld [vmem:[#allocation2 + $0xb8] sm:$0xff] }
 0x8a5   :  { %v5743_v16 = vpop.permute.xlu0 %5742  ;;  %v5728_v15 = vpop.permute.xlu1 %5727 }
 0x8a6   :  { %v5841_v58 = vmul.f32 %v8729_v27, %v5728_v15  ;;  %v5844_v36 = vmul.f32 %v8730_v12, %v5743_v16  ;;  %v6054_v16 = vld [vmem:[#allocation2 + $0xa8] sm:$0xff]  ;;  %v6053_v15 = vld [vmem:[#allocation2 + $0xa0] sm:$0xff] }
 0x8a7   :  { %v6058_v27 = vld [vmem:[#allocation2 + $0xc8] sm:$0xff] }
 0x8a8   :  { %5931 = vrot.lane.b32.xlu0 %v5842_v62, %s8752_s22  ;;  %5929 = vrot.lane.b32.xlu1 %v5841_v58, %s8752_s22  ;;  %v6055_v62 = vld [vmem:[#allocation2 + $0xb0] sm:$0xff]  ;;  %v6057_v58 = vld [vmem:[#allocation2 + $0xc0] sm:$0xff] }
 0x8a9   :  { %v5753_v40 = vpop.permute.xlu0 %5752  ;;  %v5738_v60 = vpop.permute.xlu1 %5737 }
 0x8aa   :  { %v5843_v8 = vmul.f32 %v8731_v28, %v5738_v60  ;;  %v5846_v31 = vmul.f32 %v8732_v33, %v5753_v40  ;;  %v6060_v40 = vld [vmem:[#allocation2 + $0xd8] sm:$0xff]  ;;  %v6059_v60 = vld [vmem:[#allocation2 + $0xd0] sm:$0xff]  ;;  %v6061_v28 = vld [vmem:[#allocation2 + $0xe0] sm:$0xff] }
 0x8ac   :  { %5935 = vrot.lane.b32.xlu0 %v5844_v36, %s8752_s22  ;;  %5933 = vrot.lane.b32.xlu1 %v5843_v8, %s8752_s22  ;;  %v6062_v36 = vld [vmem:[#allocation2 + $0xe8] sm:$0xff] }
 0x8ad   :  { %v5763_v23 = vpop.permute.xlu0 %5762  ;;  %v5748_v53 = vpop.permute.xlu1 %5747 }
 0x8ae   :  { %v5845_v6 = vmul.f32 %v8733_v2, %v5748_v53  ;;  %v5848_v63 = vmul.f32 %v8734_v14, %v5763_v23  ;;  %v6064_v23 = vld [vmem:[#allocation2 + $0xf8] sm:$0xff]  ;;  %v6063_v53 = vld [vmem:[#allocation2 + $0xf0] sm:$0xff]  ;;  %v6066_v2 = vld [vmem:[#allocation2 + $0x108] sm:$0xff] }
 0x8af   :  { %v6068_v14 = vld [vmem:[#allocation2 + $0x118] sm:$0xff] }
 0x8b0   :  { %5939 = vrot.lane.b32.xlu0 %v5846_v31, %s8752_s22  ;;  %5937 = vrot.lane.b32.xlu1 %v5845_v6, %s8752_s22  ;;  %v6065_v6 = vld [vmem:[#allocation2 + $0x100] sm:$0xff] }
 0x8b1   :  { %v5773_v1 = vpop.permute.xlu0 %5772  ;;  %v5758_v45 = vpop.permute.xlu1 %5757 }
 0x8b2   :  { %v5847_v22 = vmul.f32 %v8735_v29, %v5758_v45  ;;  %v5850_v37 = vmul.f32 %v8736_v34, %v5773_v1 }
 0x8b4   :  { %5943 = vrot.lane.b32.xlu0 %v5848_v63, %s8752_s22  ;;  %5941 = vrot.lane.b32.xlu1 %v5847_v22, %s8752_s22  ;;  %v6067_v63 = vld [vmem:[#allocation2 + $0x110] sm:$0xff] }
 0x8b5   :  { %v5783_v42 = vpop.permute.xlu0 %5782  ;;  %v5768_v9 = vpop.permute.xlu1 %5767 }
 0x8b6   :  { %v5849_v44 = vmul.f32 %v8737_v13, %v5768_v9  ;;  %v5852_v61 = vmul.f32 %v5783_v42, %v11248_v57  ;;  %v6070_v42 = vld [vmem:[#allocation2 + $0x128] sm:$0xff]  ;;  %v6069_v9 = vld [vmem:[#allocation2 + $0x120] sm:$0xff]  ;;  %v6072_v13 = vld [vmem:[#allocation2 + $0x138] sm:$0xff] }
 0x8b8   :  { %5947 = vrot.lane.b32.xlu0 %v5850_v37, %s8752_s22  ;;  %5945 = vrot.lane.b32.xlu1 %v5849_v44, %s8752_s22  ;;  %v6071_v44 = vld [vmem:[#allocation2 + $0x130] sm:$0xff] }
 0x8b9   :  { %v5793_v30 = vpop.permute.xlu0 %5792  ;;  %v5778_v52 = vpop.permute.xlu1 %5777 }
 0x8ba   :  { %v5851_v32 = vmul.f32 %v5778_v52, %v11239_v59  ;;  %v5854_v11 = vmul.f32 %v5793_v30, %v11266_v18 }
 0x8bc   :  { %5951 = vrot.lane.b32.xlu0 %v5852_v61, %s8752_s22  ;;  %5949 = vrot.lane.b32.xlu1 %v5851_v32, %s8752_s22  ;;  %v6074_v61 = vld [vmem:[#allocation2 + $0x148] sm:$0xff]  ;;  %v6073_v32 = vld [vmem:[#allocation2 + $0x140] sm:$0xff] }
 0x8bd   :  { %v5803_v19 = vpop.permute.xlu0 %5802  ;;  %v5788_v3 = vpop.permute.xlu1 %5787 }
 0x8be   :  { %v5853_v43 = vmul.f32 %v5788_v3, %v11257_v55  ;;  %v5856_v57 = vmul.f32 %v5803_v19, %v11596_v10  ;;  %v11727_v10 = vld [vmem:[#allocation2 + $0x144] sm:$0xff] }
 0x8c0   :  { %5955 = vrot.lane.b32.xlu0 %v5854_v11, %s8752_s22  ;;  %5953 = vrot.lane.b32.xlu1 %v5853_v43, %s8752_s22  ;;  %v6076_v11 = vld [vmem:[#allocation2 + $0x158] sm:$0xff]  ;;  %v6075_v43 = vld [vmem:[#allocation2 + $0x150] sm:$0xff] }
 0x8c1   :  { %v5813_v46 = vpop.permute.xlu0 %5812  ;;  %v5798_v35 = vpop.permute.xlu1 %5797 }
 0x8c2   :  { %v5855_v59 = vmul.f32 %v5798_v35, %v11598_v51  ;;  %v5858_v18 = vmul.f32 %v5813_v46, %v11719_v17  ;;  %v11786_v46 = vld [vmem:[%s13055_s1 + $0x8] sm:$0xff]  ;;  %v11791_v35 = vld [vmem:[%s13055_s1] sm:$0xff] }
 0x8c4   :  { %5959 = vrot.lane.b32.xlu0 %v5856_v57, %s8752_s22  ;;  %5957 = vrot.lane.b32.xlu1 %v5855_v59, %s8752_s22 }
 0x8c5   :  { %v5808_v7 = vpop.permute.xlu1 %5807  ;;  %v5823_v0 = vpop.permute.xlu0 %5822 }
 0x8c6   :  { %v5857_v55 = vmul.f32 %v5808_v7, %v11604_v21  ;;  %v5860_v56 = vmul.f32 %v5823_v0, %v11725_v25  ;;  %v6041_v21 = vld [vmem:[#allocation2 + $0x40] sm:$0xff] }
 0x8c7   :  { %v11800_v7 = vld [vmem:[%s13055_s1 + $0x20] sm:$0xff] }
 0x8c8   :  { %5963 = vrot.lane.b32.xlu0 %v5858_v18, %s8752_s22  ;;  %5961 = vrot.lane.b32.xlu1 %v5857_v55, %s8752_s22  ;;  %v11805_v18 = vld [vmem:[%s13055_s1 + $0x10] sm:$0xff] }
 0x8c9   :  { %v5818_v51 = vpop.permute.xlu1 %5817 }
 0x8ca   :  { %v5859_v39 = vmul.f32 %v5818_v51, %v11727_v10  ;;  %v11814_v51 = vld [vmem:[%s13055_s1 + $0x30] sm:$0xff] }
 0x8cc   :  { %5967 = vrot.lane.b32.xlu0 %v5860_v56, %s8752_s22  ;;  %5965 = vrot.lane.b32.xlu1 %v5859_v39, %s8752_s22  ;;  %v11819_v56 = vld [vmem:[%s13055_s1 + $0x18] sm:$0xff] }
 0x8d0   :  { %6115 = vrot.lane.b32.xlu0 %v6042_v49, %s8754_s23  ;;  %6113 = vrot.lane.b32.xlu1 %v6041_v21, %s8754_s23  ;;  %v11828_v21 = vld [vmem:[%s13055_s1 + $0x40] sm:$0xff] }
 0x8d4   :  { %6119 = vrot.lane.b32.xlu0 %v6044_v47, %s8754_s23  ;;  %6117 = vrot.lane.b32.xlu1 %v6043_v26, %s8754_s23  ;;  %v11833_v47 = vld [vmem:[%s13055_s1 + $0x28] sm:$0xff] }
 0x8d8   :  { %6123 = vrot.lane.b32.xlu0 %v6046_v38, %s8754_s23  ;;  %6121 = vrot.lane.b32.xlu1 %v6045_v5, %s8754_s23  ;;  %v11842_v5 = vld [vmem:[%s13055_s1 + $0x50] sm:$0xff] }
 0x8dc   :  { %6127 = vrot.lane.b32.xlu0 %v6048_v48, %s8754_s23  ;;  %6125 = vrot.lane.b32.xlu1 %v6047_v50, %s8754_s23  ;;  %v11847_v48 = vld [vmem:[%s13055_s1 + $0x38] sm:$0xff] }
 0x8e0   :  { %6131 = vrot.lane.b32.xlu0 %v6050_v41, %s8754_s23  ;;  %6129 = vrot.lane.b32.xlu1 %v6049_v24, %s8754_s23  ;;  %v11856_v24 = vld [vmem:[%s13055_s1 + $0x60] sm:$0xff] }
 0x8e4   :  { %6135 = vrot.lane.b32.xlu0 %v6052_v4, %s8754_s23  ;;  %6133 = vrot.lane.b32.xlu1 %v6051_v20, %s8754_s23  ;;  %v11861_v4 = vld [vmem:[%s13055_s1 + $0x48] sm:$0xff] }
 0x8e8   :  { %6139 = vrot.lane.b32.xlu0 %v6054_v16, %s8754_s23  ;;  %6137 = vrot.lane.b32.xlu1 %v6053_v15, %s8754_s23  ;;  %v11870_v15 = vld [vmem:[%s13055_s1 + $0x70] sm:$0xff] }
 0x8ec   :  { %6143 = vrot.lane.b32.xlu0 %v6056_v54, %s8754_s23  ;;  %6141 = vrot.lane.b32.xlu1 %v6055_v62, %s8754_s23  ;;  %v11875_v54 = vld [vmem:[%s13055_s1 + $0x58] sm:$0xff] }
 0x8f0   :  { %6147 = vrot.lane.b32.xlu0 %v6058_v27, %s8754_s23  ;;  %6145 = vrot.lane.b32.xlu1 %v6057_v58, %s8754_s23  ;;  %v11884_v58 = vld [vmem:[%s13055_s1 + $0x80] sm:$0xff] }
 0x8f4   :  { %6151 = vrot.lane.b32.xlu0 %v6060_v40, %s8754_s23  ;;  %6149 = vrot.lane.b32.xlu1 %v6059_v60, %s8754_s23  ;;  %v11889_v40 = vld [vmem:[%s13055_s1 + $0x68] sm:$0xff] }
 0x8f6   :  { %v5898_v12 = vpop.permute.xlu1 %5897 }
 0x8f7   :  { %6005 = vst.msk [vmem:[#allocation3] sm:$0xff] %vm1806_vm3, %v5898_v12 }
 0x8f8   :  { %6155 = vrot.lane.b32.xlu0 %v6062_v36, %s8754_s23  ;;  %6153 = vrot.lane.b32.xlu1 %v6061_v28, %s8754_s23  ;;  %v11898_v36 = vld [vmem:[%s13055_s1 + $0x90] sm:$0xff]  ;;  %v11903_v28 = vld [vmem:[%s13055_s1 + $0x78] sm:$0xff] }
 0x8fa   :  { %v5900_v8 = vpop.permute.xlu0 %5899 }
 0x8fb   :  { %6006 = vst.msk [vmem:[#allocation3 + $0x10] sm:$0xff] %vm1806_vm3, %v5900_v8 }
 0x8fc   :  { %6159 = vrot.lane.b32.xlu0 %v6064_v23, %s8754_s23  ;;  %6157 = vrot.lane.b32.xlu1 %v6063_v53, %s8754_s23  ;;  %v11912_v53 = vld [vmem:[%s13055_s1 + $0xa0] sm:$0xff] }
 0x8fe   :  { %v5904_v33 = vpop.permute.xlu0 %5903  ;;  %v5902_v31 = vpop.permute.xlu1 %5901 }
 0x8ff   :  { %6008 = vst.msk [vmem:[#allocation3 + $0x30] sm:$0xff] %vm1806_vm3, %v5904_v33  ;;  %6007 = vst.msk [vmem:[#allocation3 + $0x20] sm:$0xff] %vm1806_vm3, %v5902_v31  ;;  %v11917_v33 = vld [vmem:[%s13055_s1 + $0x88] sm:$0xff] }
 0x900   :  { %6163 = vrot.lane.b32.xlu0 %v6066_v2, %s8754_s23  ;;  %6161 = vrot.lane.b32.xlu1 %v6065_v6, %s8754_s23  ;;  %v6315_v6 = vld [vmem:[%s13055_s1 + $0xb0] sm:$0xff] }
 0x902   :  { %v5908_v1 = vpop.permute.xlu0 %5907  ;;  %v5906_v45 = vpop.permute.xlu1 %5905 }
 0x903   :  { %6010 = vst.msk [vmem:[#allocation3 + $0x50] sm:$0xff] %vm1806_vm3, %v5908_v1  ;;  %6009 = vst.msk [vmem:[#allocation3 + $0x40] sm:$0xff] %vm1806_vm3, %v5906_v45  ;;  %v11929_v1 = vld [vmem:[%s13055_s1 + $0x98] sm:$0xff] }
 0x904   :  { %6167 = vrot.lane.b32.xlu0 %v6068_v14, %s8754_s23  ;;  %6165 = vrot.lane.b32.xlu1 %v6067_v63, %s8754_s23  ;;  %v6317_v63 = vld [vmem:[%s13055_s1 + $0xc0] sm:$0xff] }
 0x906   :  { %v5912_v29 = vpop.permute.xlu0 %5911  ;;  %v5910_v22 = vpop.permute.xlu1 %5909 }
 0x907   :  { %6012 = vst.msk [vmem:[#allocation3 + $0x70] sm:$0xff] %vm1806_vm3, %v5912_v29  ;;  %6011 = vst.msk [vmem:[#allocation3 + $0x60] sm:$0xff] %vm1806_vm3, %v5910_v22  ;;  %v11940_v29 = vld [vmem:[%s13055_s1 + $0xa8] sm:$0xff] }
 0x908   :  { %6171 = vrot.lane.b32.xlu0 %v6070_v42, %s8754_s23  ;;  %6169 = vrot.lane.b32.xlu1 %v6069_v9, %s8754_s23  ;;  %v6319_v9 = vld [vmem:[%s13055_s1 + $0xd0] sm:$0xff] }
 0x90a   :  { %v5916_v34 = vpop.permute.xlu0 %5915  ;;  %v5914_v37 = vpop.permute.xlu1 %5913 }
 0x90b   :  { %6014 = vst.msk [vmem:[#allocation3 + $0x90] sm:$0xff] %vm1806_vm3, %v5916_v34  ;;  %6013 = vst.msk [vmem:[#allocation3 + $0x80] sm:$0xff] %vm1806_vm3, %v5914_v37  ;;  %v6316_v34 = vld [vmem:[%s13055_s1 + $0xb8] sm:$0xff] }
 0x90c   :  { %6175 = vrot.lane.b32.xlu0 %v6072_v13, %s8754_s23  ;;  %6173 = vrot.lane.b32.xlu1 %v6071_v44, %s8754_s23  ;;  %v6321_v44 = vld [vmem:[%s13055_s1 + $0xe0] sm:$0xff] }
 0x90e   :  { %v5920_v30 = vpop.permute.xlu0 %5919  ;;  %v5918_v52 = vpop.permute.xlu1 %5917 }
 0x90f   :  { %6016 = vst.msk [vmem:[#allocation3 + $0xb0] sm:$0xff] %vm1806_vm3, %v5920_v30  ;;  %6015 = vst.msk [vmem:[#allocation3 + $0xa0] sm:$0xff] %vm1806_vm3, %v5918_v52  ;;  %v6318_v30 = vld [vmem:[%s13055_s1 + $0xc8] sm:$0xff] }
 0x910   :  { %6179 = vrot.lane.b32.xlu0 %v6074_v61, %s8754_s23  ;;  %6177 = vrot.lane.b32.xlu1 %v6073_v32, %s8754_s23  ;;  %v6323_v32 = vld [vmem:[%s13055_s1 + $0xf0] sm:$0xff] }
 0x912   :  { %v5924_v19 = vpop.permute.xlu0 %5923  ;;  %v5922_v3 = vpop.permute.xlu1 %5921 }
 0x913   :  { %6018 = vst.msk [vmem:[#allocation3 + $0xd0] sm:$0xff] %vm1806_vm3, %v5924_v19  ;;  %6017 = vst.msk [vmem:[#allocation3 + $0xc0] sm:$0xff] %vm1806_vm3, %v5922_v3  ;;  %v6320_v19 = vld [vmem:[%s13055_s1 + $0xd8] sm:$0xff] }
 0x914   :  { %6183 = vrot.lane.b32.xlu0 %v6076_v11, %s8754_s23  ;;  %6181 = vrot.lane.b32.xlu1 %v6075_v43, %s8754_s23  ;;  %v6325_v43 = vld [vmem:[%s13055_s1 + $0x100] sm:$0xff] }
 0x916   :  { %v5928_v57 = vpop.permute.xlu0 %5927  ;;  %v5926_v59 = vpop.permute.xlu1 %5925 }
 0x917   :  { %6020 = vst.msk [vmem:[#allocation3 + $0xf0] sm:$0xff] %vm1806_vm3, %v5928_v57  ;;  %6019 = vst.msk [vmem:[#allocation3 + $0xe0] sm:$0xff] %vm1806_vm3, %v5926_v59  ;;  %v6322_v57 = vld [vmem:[%s13055_s1 + $0xe8] sm:$0xff] }
 0x918   :  { %6336 = vperm.xlu0 %8689, %v11786_v46   ;;  %6331 = vperm.xlu1 %8688, %v11791_v35  }
 0x91a   :  { %v5932_v55 = vpop.permute.xlu0 %5931  ;;  %v5930_v0 = vpop.permute.xlu1 %5929 }
 0x91b   :  { %6022 = vst.msk [vmem:[#allocation3 + $0x110] sm:$0xff] %vm1806_vm3, %v5932_v55  ;;  %6021 = vst.msk [vmem:[#allocation3 + $0x100] sm:$0xff] %vm1806_vm3, %v5930_v0  ;;  %v6327_v0 = vld [vmem:[%s13055_s1 + $0x110] sm:$0xff] }
 0x91c   :  { %6351 = vperm.xlu0 %8689, %v11800_v7   ;;  %6341 = vperm.xlu1 %8688, %v11805_v18  }
 0x91e   :  { %v5936_v39 = vpop.permute.xlu0 %5935  ;;  %v5934_v49 = vpop.permute.xlu1 %5933 }
 0x91f   :  { %6024 = vst.msk [vmem:[#allocation3 + $0x130] sm:$0xff] %vm1806_vm3, %v5936_v39  ;;  %6023 = vst.msk [vmem:[#allocation3 + $0x120] sm:$0xff] %vm1806_vm3, %v5934_v49  ;;  %v6324_v39 = vld [vmem:[%s13055_s1 + $0xf8] sm:$0xff] }
 0x920   :  { %6361 = vperm.xlu0 %8689, %v11814_v51   ;;  %6346 = vperm.xlu1 %8688, %v11819_v56  }
 0x922   :  { %v5940_v26 = vpop.permute.xlu0 %5939  ;;  %v5938_v38 = vpop.permute.xlu1 %5937 }
 0x923   :  { %6026 = vst.msk [vmem:[#allocation3 + $0x150] sm:$0xff] %vm1806_vm3, %v5940_v26  ;;  %6025 = vst.msk [vmem:[#allocation3 + $0x140] sm:$0xff] %vm1806_vm3, %v5938_v38  ;;  %v6326_v38 = vld [vmem:[%s13055_s1 + $0x108] sm:$0xff] }
 0x924   :  { %6371 = vperm.xlu0 %8689, %v11828_v21   ;;  %6356 = vperm.xlu1 %8688, %v11833_v47  }
 0x926   :  { %v5944_v50 = vpop.permute.xlu0 %5943  ;;  %v5942_v41 = vpop.permute.xlu1 %5941 }
 0x927   :  { %6028 = vst.msk [vmem:[#allocation3 + $0x170] sm:$0xff] %vm1806_vm3, %v5944_v50  ;;  %6027 = vst.msk [vmem:[#allocation3 + $0x160] sm:$0xff] %vm1806_vm3, %v5942_v41 }
 0x928   :  { %6381 = vperm.xlu0 %8689, %v11842_v5   ;;  %6366 = vperm.xlu1 %8688, %v11847_v48  }
 0x92a   :  { %v5948_v20 = vpop.permute.xlu0 %5947  ;;  %v5946_v16 = vpop.permute.xlu1 %5945 }
 0x92b   :  { %6030 = vst.msk [vmem:[#allocation3 + $0x190] sm:$0xff] %vm1806_vm3, %v5948_v20  ;;  %6029 = vst.msk [vmem:[#allocation3 + $0x180] sm:$0xff] %vm1806_vm3, %v5946_v16  ;;  %v6328_v20 = vld [vmem:[%s13055_s1 + $0x118] sm:$0xff] }
 0x92c   :  { %6391 = vperm.xlu0 %8689, %v11856_v24   ;;  %6376 = vperm.xlu1 %8688, %v11861_v4  }
 0x92e   :  { %v5952_v62 = vpop.permute.xlu0 %5951  ;;  %v5950_v27 = vpop.permute.xlu1 %5949 }
 0x92f   :  { %6032 = vst.msk [vmem:[#allocation3 + $0x1b0] sm:$0xff] %vm1806_vm3, %v5952_v62  ;;  %6031 = vst.msk [vmem:[#allocation3 + $0x1a0] sm:$0xff] %vm1806_vm3, %v5950_v27  ;;  %v8767_v27 = vmov 15  }
 0x930   :  { %6401 = vperm.xlu0 %8689, %v11870_v15   ;;  %6386 = vperm.xlu1 %8688, %v11875_v54  }
 0x932   :  { %v5956_v60 = vpop.permute.xlu0 %5955  ;;  %v5954_v12 = vpop.permute.xlu1 %5953 }
 0x933   :  { %6034 = vst.msk [vmem:[#allocation3 + $0x1d0] sm:$0xff] %vm1806_vm3, %v5956_v60  ;;  %6033 = vst.msk [vmem:[#allocation3 + $0x1c0] sm:$0xff] %vm1806_vm3, %v5954_v12 }
 0x934   :  { %6411 = vperm.xlu0 %8689, %v11884_v58   ;;  %6396 = vperm.xlu1 %8688, %v11889_v40  }
 0x936   :  { %v5960_v8 = vpop.permute.xlu0 %5959  ;;  %v5958_v23 = vpop.permute.xlu1 %5957 }
 0x937   :  { %6036 = vst.msk [vmem:[#allocation3 + $0x1f0] sm:$0xff] %vm1806_vm3, %v5960_v8  ;;  %6035 = vst.msk [vmem:[#allocation3 + $0x1e0] sm:$0xff] %vm1806_vm3, %v5958_v23 }
 0x938   :  { %6421 = vperm.xlu0 %8689, %v11898_v36   ;;  %6406 = vperm.xlu1 %8688, %v11903_v28  }
 0x93a   :  { %v5964_v31 = vpop.permute.xlu0 %5963  ;;  %v5962_v2 = vpop.permute.xlu1 %5961 }
 0x93b   :  { %6038 = vst.msk [vmem:[#allocation3 + $0x210] sm:$0xff] %vm1806_vm3, %v5964_v31  ;;  %6037 = vst.msk [vmem:[#allocation3 + $0x200] sm:$0xff] %vm1806_vm3, %v5962_v2 }
 0x93c   :  { %6431 = vperm.xlu0 %8689, %v11912_v53   ;;  %6416 = vperm.xlu1 %8688, %v11917_v33  }
 0x93e   :  { %v5968_v45 = vpop.permute.xlu0 %5967  ;;  %v5966_v14 = vpop.permute.xlu1 %5965 }
 0x93f   :  { %6040 = vst.msk [vmem:[#allocation3 + $0x230] sm:$0xff] %vm1806_vm3, %v5968_v45  ;;  %6039 = vst.msk [vmem:[#allocation3 + $0x220] sm:$0xff] %vm1806_vm3, %v5966_v14 }
 0x940   :  { %6441 = vperm.xlu0 %8689, %v6315_v6   ;;  %6426 = vperm.xlu1 %8688, %v11929_v1  }
 0x942   :  { %v6116_v22 = vpop.permute.xlu0 %6115  ;;  %v6114_v42 = vpop.permute.xlu1 %6113 }
 0x943   :  { %6222 = vst.msk [vmem:[#allocation3 + $0x10] sm:$0xff] %vm2023_vm4, %v6116_v22  ;;  %6221 = vst.msk [vmem:[#allocation3] sm:$0xff] %vm2023_vm4, %v6114_v42 }
 0x944   :  { %6451 = vperm.xlu0 %8689, %v6317_v63   ;;  %6436 = vperm.xlu1 %8688, %v11940_v29  }
 0x946   :  { %v6120_v37 = vpop.permute.xlu0 %6119  ;;  %v6118_v13 = vpop.permute.xlu1 %6117 }
 0x947   :  { %6224 = vst.msk [vmem:[#allocation3 + $0x30] sm:$0xff] %vm2023_vm4, %v6120_v37  ;;  %6223 = vst.msk [vmem:[#allocation3 + $0x20] sm:$0xff] %vm2023_vm4, %v6118_v13 }
 0x948   :  { %6461 = vperm.xlu0 %8689, %v6319_v9   ;;  %6446 = vperm.xlu1 %8688, %v6316_v34  }
 0x94a   :  { %v6124_v52 = vpop.permute.xlu0 %6123  ;;  %v6122_v61 = vpop.permute.xlu1 %6121 }
 0x94b   :  { %6226 = vst.msk [vmem:[#allocation3 + $0x50] sm:$0xff] %vm2023_vm4, %v6124_v52  ;;  %6225 = vst.msk [vmem:[#allocation3 + $0x40] sm:$0xff] %vm2023_vm4, %v6122_v61 }
 0x94c   :  { %6471 = vperm.xlu0 %8689, %v6321_v44   ;;  %6456 = vperm.xlu1 %8688, %v6318_v30  }
 0x94e   :  { %v6128_v3 = vpop.permute.xlu0 %6127  ;;  %v6126_v11 = vpop.permute.xlu1 %6125 }
 0x94f   :  { %6228 = vst.msk [vmem:[#allocation3 + $0x70] sm:$0xff] %vm2023_vm4, %v6128_v3  ;;  %6227 = vst.msk [vmem:[#allocation3 + $0x60] sm:$0xff] %vm2023_vm4, %v6126_v11  ;;  %v6257_v3 = vld [vmem:[#allocation2 + $0x4c] sm:$0xff] }
 0x950   :  { %6481 = vperm.xlu0 %8689, %v6323_v32   ;;  %6466 = vperm.xlu1 %8688, %v6320_v19   ;;  %v6258_v32 = vld [vmem:[#allocation2 + $0x54] sm:$0xff] }
 0x952   :  { %v6132_v59 = vpop.permute.xlu0 %6131  ;;  %v6130_v55 = vpop.permute.xlu1 %6129 }
 0x953   :  { %6230 = vst.msk [vmem:[#allocation3 + $0x90] sm:$0xff] %vm2023_vm4, %v6132_v59  ;;  %6229 = vst.msk [vmem:[#allocation3 + $0x80] sm:$0xff] %vm2023_vm4, %v6130_v55  ;;  %v6259_v55 = vld [vmem:[#allocation2 + $0x5c] sm:$0xff] }
 0x954   :  { %6491 = vperm.xlu0 %8689, %v6325_v43   ;;  %6476 = vperm.xlu1 %8688, %v6322_v57  }
 0x956   :  { %v6136_v49 = vpop.permute.xlu0 %6135  ;;  %v6134_v26 = vpop.permute.xlu1 %6133 }
 0x957   :  { %6232 = vst.msk [vmem:[#allocation3 + $0xb0] sm:$0xff] %vm2023_vm4, %v6136_v49  ;;  %6231 = vst.msk [vmem:[#allocation3 + $0xa0] sm:$0xff] %vm2023_vm4, %v6134_v26  ;;  %v12020_v49 = vld [vmem:[#allocation2 + $0x6c] sm:$0xff] }
 0x958   :  { %6501 = vperm.xlu0 %8689, %v6327_v0   ;;  %6486 = vperm.xlu1 %8688, %v6324_v39  }
 0x95a   :  { %v6140_v50 = vpop.permute.xlu0 %6139  ;;  %v6138_v41 = vpop.permute.xlu1 %6137 }
 0x95b   :  { %6234 = vst.msk [vmem:[#allocation3 + $0xd0] sm:$0xff] %vm2023_vm4, %v6140_v50  ;;  %6233 = vst.msk [vmem:[#allocation3 + $0xc0] sm:$0xff] %vm2023_vm4, %v6138_v41 }
 0x95c   :  { %6496 = vperm.xlu1 %8688, %v6326_v38   ;;  %8690 = vset.pattern.permute.xlu0 %v8767_v27  ;;  %v12022_v38 = vld [vmem:[#allocation2 + $0x64] sm:$0xff] }
 0x95e   :  { %v6144_v16 = vpop.permute.xlu0 %6143  ;;  %v6142_v62 = vpop.permute.xlu1 %6141 }
 0x95f   :  { %6236 = vst.msk [vmem:[#allocation3 + $0xf0] sm:$0xff] %vm2023_vm4, %v6144_v16  ;;  %6235 = vst.msk [vmem:[#allocation3 + $0xe0] sm:$0xff] %vm2023_vm4, %v6142_v62  ;;  %v12028_v16 = vld [vmem:[#allocation2 + $0x7c] sm:$0xff] }
 0x960   :  { %6506 = vperm.xlu1 %8688, %v6328_v20  }
 0x962   :  { %v6148_v60 = vpop.permute.xlu0 %6147  ;;  %v6146_v12 = vpop.permute.xlu1 %6145 }
 0x963   :  { %6238 = vst.msk [vmem:[#allocation3 + $0x110] sm:$0xff] %vm2023_vm4, %v6148_v60  ;;  %6237 = vst.msk [vmem:[#allocation3 + $0x100] sm:$0xff] %vm2023_vm4, %v6146_v12  ;;  %v12030_v60 = vld [vmem:[#allocation2 + $0x74] sm:$0xff] }
 0x964   :  { %8691 = vset.pattern.permute.xlu1 %v8767_v27 }
 0x966   :  { %v6152_v8 = vpop.permute.xlu0 %6151  ;;  %v6150_v23 = vpop.permute.xlu1 %6149 }
 0x967   :  { %6240 = vst.msk [vmem:[#allocation3 + $0x130] sm:$0xff] %vm2023_vm4, %v6152_v8  ;;  %6239 = vst.msk [vmem:[#allocation3 + $0x120] sm:$0xff] %vm2023_vm4, %v6150_v23 }
 0x96a   :  { %v6156_v31 = vpop.permute.xlu0 %6155  ;;  %v6154_v2 = vpop.permute.xlu1 %6153 }
 0x96b   :  { %6242 = vst.msk [vmem:[#allocation3 + $0x150] sm:$0xff] %vm2023_vm4, %v6156_v31  ;;  %6241 = vst.msk [vmem:[#allocation3 + $0x140] sm:$0xff] %vm2023_vm4, %v6154_v2  ;;  %v12036_v31 = vld [vmem:[#allocation2 + $0x8c] sm:$0xff] }
 0x96e   :  { %v6160_v6 = vpop.permute.xlu0 %6159  ;;  %v6158_v45 = vpop.permute.xlu1 %6157 }
 0x96f   :  { %6244 = vst.msk [vmem:[#allocation3 + $0x170] sm:$0xff] %vm2023_vm4, %v6160_v6  ;;  %6243 = vst.msk [vmem:[#allocation3 + $0x160] sm:$0xff] %vm2023_vm4, %v6158_v45  ;;  %v12038_v6 = vld [vmem:[#allocation2 + $0x84] sm:$0xff] }
 0x972   :  { %v6164_v14 = vpop.permute.xlu0 %6163  ;;  %v6162_v63 = vpop.permute.xlu1 %6161 }
 0x973   :  { %6246 = vst.msk [vmem:[#allocation3 + $0x190] sm:$0xff] %vm2023_vm4, %v6164_v14  ;;  %6245 = vst.msk [vmem:[#allocation3 + $0x180] sm:$0xff] %vm2023_vm4, %v6162_v63 }
 0x976   :  { %v6168_v22 = vpop.permute.xlu0 %6167  ;;  %v6166_v42 = vpop.permute.xlu1 %6165 }
 0x977   :  { %6248 = vst.msk [vmem:[#allocation3 + $0x1b0] sm:$0xff] %vm2023_vm4, %v6168_v22  ;;  %6247 = vst.msk [vmem:[#allocation3 + $0x1a0] sm:$0xff] %vm2023_vm4, %v6166_v42  ;;  %v12044_v22 = vld [vmem:[#allocation2 + $0x9c] sm:$0xff] }
 0x97a   :  { %v6172_v9 = vpop.permute.xlu0 %6171  ;;  %v6170_v34 = vpop.permute.xlu1 %6169 }
 0x97b   :  { %6250 = vst.msk [vmem:[#allocation3 + $0x1d0] sm:$0xff] %vm2023_vm4, %v6172_v9  ;;  %6249 = vst.msk [vmem:[#allocation3 + $0x1c0] sm:$0xff] %vm2023_vm4, %v6170_v34  ;;  %v12046_v9 = vld [vmem:[#allocation2 + $0x94] sm:$0xff] }
 0x97e   :  { %v6176_v37 = vpop.permute.xlu0 %6175  ;;  %v6174_v13 = vpop.permute.xlu1 %6173 }
 0x97f   :  { %6252 = vst.msk [vmem:[#allocation3 + $0x1f0] sm:$0xff] %vm2023_vm4, %v6176_v37  ;;  %6251 = vst.msk [vmem:[#allocation3 + $0x1e0] sm:$0xff] %vm2023_vm4, %v6174_v13 }
 0x982   :  { %v6180_v44 = vpop.permute.xlu0 %6179  ;;  %v6178_v30 = vpop.permute.xlu1 %6177 }
 0x983   :  { %6254 = vst.msk [vmem:[#allocation3 + $0x210] sm:$0xff] %vm2023_vm4, %v6180_v44  ;;  %6253 = vst.msk [vmem:[#allocation3 + $0x200] sm:$0xff] %vm2023_vm4, %v6178_v30  ;;  %v12052_v44 = vld [vmem:[#allocation2 + $0xac] sm:$0xff] }
 0x986   :  { %v6184_v52 = vpop.permute.xlu0 %6183  ;;  %v6182_v61 = vpop.permute.xlu1 %6181 }
 0x987   :  { %6256 = vst.msk [vmem:[#allocation3 + $0x230] sm:$0xff] %vm2023_vm4, %v6184_v52  ;;  %6255 = vst.msk [vmem:[#allocation3 + $0x220] sm:$0xff] %vm2023_vm4, %v6182_v61  ;;  %v12054_v52 = vld [vmem:[#allocation2 + $0xa4] sm:$0xff] }
 0x997   :  { %v6337_v19 = vpop.permute.xlu0 %6336  ;;  %v6332_v11 = vpop.permute.xlu1 %6331 }
 0x998   :  { %v6510_v43 = vmul.f32 %v6337_v19, %v6258_v32  ;;  %v6509_v57 = vmul.f32 %v6332_v11, %v6257_v3  ;;  %v12060_v3 = vld [vmem:[#allocation2 + $0xbc] sm:$0xff] }
 0x99a   :  { %6583 = vrot.lane.b32.xlu1 %v6510_v43, %s8756_s9  ;;  %6581 = vrot.lane.b32.xlu0 %v6509_v57, %s8756_s9  ;;  %v12062_v43 = vld [vmem:[#allocation2 + $0xb4] sm:$0xff] }
 0x99b   :  { %v6352_v59 = vpop.permute.xlu0 %6351  ;;  %v6342_v0 = vpop.permute.xlu1 %6341 }
 0x99c   :  { %v6511_v39 = vmul.f32 %v6342_v0, %v6259_v55  ;;  %v6513_v41 = vmul.f32 %v6352_v59, %v12020_v49  ;;  %v12068_v0 = vld [vmem:[#allocation2 + $0xcc] sm:$0xff] }
 0x99e   :  { %6585 = vrot.lane.b32.xlu0 %v6511_v39, %s8756_s9 }
 0x99f   :  { %v6362_v26 = vpop.permute.xlu0 %6361  ;;  %v6347_v50 = vpop.permute.xlu1 %6346 }
 0x9a0   :  { %v6512_v20 = vmul.f32 %v6347_v50, %v12022_v38  ;;  %v6515_v8 = vmul.f32 %v6362_v26, %v12028_v16  ;;  %v12070_v26 = vld [vmem:[#allocation2 + $0xc4] sm:$0xff] }
 0x9a2   :  { %6589 = vrot.lane.b32.xlu0 %v6513_v41, %s8756_s9  ;;  %6587 = vrot.lane.b32.xlu1 %v6512_v20, %s8756_s9 }
 0x9a3   :  { %v6372_v62 = vpop.permute.xlu0 %6371  ;;  %v6357_v12 = vpop.permute.xlu1 %6356 }
 0x9a4   :  { %v6514_v23 = vmul.f32 %v6357_v12, %v12030_v60  ;;  %v6517_v14 = vmul.f32 %v6372_v62, %v12036_v31  ;;  %v6275_v62 = vld [vmem:[#allocation2 + $0xdc] sm:$0xff] }
 0x9a6   :  { %6593 = vrot.lane.b32.xlu0 %v6515_v8, %s8756_s9  ;;  %6591 = vrot.lane.b32.xlu1 %v6514_v23, %s8756_s9  ;;  %v12076_v8 = vld [vmem:[#allocation2 + $0xd4] sm:$0xff] }
 0x9a7   :  { %v6382_v2 = vpop.permute.xlu0 %6381  ;;  %v6367_v45 = vpop.permute.xlu1 %6366 }
 0x9a8   :  { %v6516_v63 = vmul.f32 %v6367_v45, %v12038_v6  ;;  %v6519_v37 = vmul.f32 %v6382_v2, %v12044_v22 }
 0x9aa   :  { %6597 = vrot.lane.b32.xlu0 %v6517_v14, %s8756_s9  ;;  %6595 = vrot.lane.b32.xlu1 %v6516_v63, %s8756_s9  ;;  %v6277_v14 = vld [vmem:[#allocation2 + $0xec] sm:$0xff] }
 0x9ab   :  { %v6392_v42 = vpop.permute.xlu0 %6391  ;;  %v6377_v34 = vpop.permute.xlu1 %6376 }
 0x9ac   :  { %v6518_v13 = vmul.f32 %v6377_v34, %v12046_v9  ;;  %v6521_v32 = vmul.f32 %v6392_v42, %v12052_v44  ;;  %v6276_v42 = vld [vmem:[#allocation2 + $0xe4] sm:$0xff] }
 0x9ae   :  { %6601 = vrot.lane.b32.xlu0 %v6519_v37, %s8756_s9  ;;  %6599 = vrot.lane.b32.xlu1 %v6518_v13, %s8756_s9 }
 0x9af   :  { %v6402_v30 = vpop.permute.xlu0 %6401  ;;  %v6387_v61 = vpop.permute.xlu1 %6386 }
 0x9b0   :  { %v6520_v19 = vmul.f32 %v6387_v61, %v12054_v52  ;;  %v6523_v59 = vmul.f32 %v6402_v30, %v12060_v3  ;;  %v6279_v30 = vld [vmem:[#allocation2 + $0xfc] sm:$0xff] }
 0x9b2   :  { %6605 = vrot.lane.b32.xlu0 %v6521_v32, %s8756_s9  ;;  %6603 = vrot.lane.b32.xlu1 %v6520_v19, %s8756_s9  ;;  %v6278_v32 = vld [vmem:[#allocation2 + $0xf4] sm:$0xff] }
 0x9b3   :  { %v6412_v11 = vpop.permute.xlu0 %6411  ;;  %v6397_v57 = vpop.permute.xlu1 %6396 }
 0x9b4   :  { %v6522_v55 = vmul.f32 %v6397_v57, %v12062_v43  ;;  %v6525_v41 = vmul.f32 %v6412_v11, %v12068_v0 }
 0x9b6   :  { %6609 = vrot.lane.b32.xlu0 %v6523_v59, %s8756_s9  ;;  %6607 = vrot.lane.b32.xlu1 %v6522_v55, %s8756_s9  ;;  %v6281_v59 = vld [vmem:[#allocation2 + $0x10c] sm:$0xff] }
 0x9b7   :  { %v6422_v39 = vpop.permute.xlu0 %6421  ;;  %v6407_v50 = vpop.permute.xlu1 %6406 }
 0x9b8   :  { %v6524_v20 = vmul.f32 %v6407_v50, %v12070_v26  ;;  %v6527_v2 = vmul.f32 %v6422_v39, %v6275_v62  ;;  %v6280_v39 = vld [vmem:[#allocation2 + $0x104] sm:$0xff]  ;;  %v6283_v62 = vld [vmem:[#allocation2 + $0x11c] sm:$0xff] }
 0x9ba   :  { %6613 = vrot.lane.b32.xlu0 %v6525_v41, %s8756_s9  ;;  %6611 = vrot.lane.b32.xlu1 %v6524_v20, %s8756_s9 }
 0x9bb   :  { %v6432_v12 = vpop.permute.xlu0 %6431  ;;  %v6417_v23 = vpop.permute.xlu1 %6416 }
 0x9bc   :  { %v6526_v45 = vmul.f32 %v6417_v23, %v12076_v8  ;;  %v6529_v37 = vmul.f32 %v6432_v12, %v6277_v14  ;;  %v6282_v23 = vld [vmem:[#allocation2 + $0x114] sm:$0xff] }
 0x9be   :  { %6617 = vrot.lane.b32.xlu0 %v6527_v2, %s8756_s9  ;;  %6615 = vrot.lane.b32.xlu1 %v6526_v45, %s8756_s9 }
 0x9bf   :  { %v6442_v63 = vpop.permute.xlu0 %6441  ;;  %v6427_v34 = vpop.permute.xlu1 %6426 }
 0x9c0   :  { %v6528_v13 = vmul.f32 %v6427_v34, %v6276_v42  ;;  %v6531_v11 = vmul.f32 %v6442_v63, %v6279_v30  ;;  %v6285_v63 = vld [vmem:[#allocation2 + $0x12c] sm:$0xff]  ;;  %v6284_v34 = vld [vmem:[#allocation2 + $0x124] sm:$0xff] }
 0x9c2   :  { %6621 = vrot.lane.b32.xlu0 %v6529_v37, %s8756_s9  ;;  %6619 = vrot.lane.b32.xlu1 %v6528_v13, %s8756_s9 }
 0x9c3   :  { %v6452_v61 = vpop.permute.xlu0 %6451  ;;  %v6437_v19 = vpop.permute.xlu1 %6436 }
 0x9c4   :  { %v6530_v57 = vmul.f32 %v6437_v19, %v6278_v32  ;;  %v6533_v41 = vmul.f32 %v6452_v61, %v6281_v59  ;;  %v6286_v32 = vld [vmem:[#allocation2 + $0x134] sm:$0xff] }
 0x9c6   :  { %6625 = vrot.lane.b32.xlu0 %v6531_v11, %s8756_s9  ;;  %6623 = vrot.lane.b32.xlu1 %v6530_v57, %s8756_s9 }
 0x9c7   :  { %v6462_v55 = vpop.permute.xlu0 %6461  ;;  %v6447_v50 = vpop.permute.xlu1 %6446 }
 0x9c8   :  { %v6532_v20 = vmul.f32 %v6447_v50, %v6280_v39  ;;  %v6535_v45 = vmul.f32 %v6462_v55, %v6283_v62 }
 0x9ca   :  { %6629 = vrot.lane.b32.xlu0 %v6533_v41, %s8756_s9  ;;  %6627 = vrot.lane.b32.xlu1 %v6532_v20, %s8756_s9  ;;  %v6291_v41 = vld [vmem:[#allocation2 + $0x15c] sm:$0xff]  ;;  %v6290_v20 = vld [vmem:[#allocation2 + $0x154] sm:$0xff] }
 0x9cb   :  { %v6472_v12 = vpop.permute.xlu0 %6471  ;;  %v6457_v2 = vpop.permute.xlu1 %6456 }
 0x9cc   :  { %v6534_v14 = vmul.f32 %v6457_v2, %v6282_v23  ;;  %v6537_v13 = vmul.f32 %v6472_v12, %v6285_v63  ;;  %v6292_v23 = vld [vmem:[#allocation2 + $0x164] sm:$0xff] }
 0x9ce   :  { %6633 = vrot.lane.b32.xlu0 %v6535_v45, %s8756_s9  ;;  %6631 = vrot.lane.b32.xlu1 %v6534_v14, %s8756_s9 }
 0x9cf   :  { %v6482_v42 = vpop.permute.xlu0 %6481  ;;  %v6467_v37 = vpop.permute.xlu1 %6466 }
 0x9d0   :  { %v6536_v30 = vmul.f32 %v6467_v37, %v6284_v34  ;;  %v6539_v11 = vmul.f32 %v6482_v42, %v11719_v17 }
 0x9d2   :  { %6637 = vrot.lane.b32.xlu0 %v6537_v13, %s8756_s9  ;;  %6635 = vrot.lane.b32.xlu1 %v6536_v30, %s8756_s9 }
 0x9d3   :  { %v6492_v61 = vpop.permute.xlu0 %6491  ;;  %v6477_v19 = vpop.permute.xlu1 %6476 }
 0x9d4   :  { %v6538_v57 = vmul.f32 %v6477_v19, %v6286_v32  ;;  %v6541_v55 = vmul.f32 %v6492_v61, %v11725_v25  ;;  %v8768_v25 = vmov 16  }
 0x9d6   :  { %6641 = vrot.lane.b32.xlu0 %v6539_v11, %s8756_s9  ;;  %6639 = vrot.lane.b32.xlu1 %v6538_v57, %s8756_s9 }
 0x9d7   :  { %v6487_v59 = vpop.permute.xlu1 %6486  ;;  %v6502_v50 = vpop.permute.xlu0 %6501 }
 0x9d8   :  { %v6540_v39 = vmul.f32 %v6487_v59, %v11727_v10  ;;  %v6543_v12 = vmul.f32 %v6502_v50, %v6291_v41 }
 0x9da   :  { %6645 = vrot.lane.b32.xlu0 %v6541_v55, %s8756_s9  ;;  %6643 = vrot.lane.b32.xlu1 %v6540_v39, %s8756_s9 }
 0x9db   :  { %v6497_v62 = vpop.permute.xlu1 %6496 }
 0x9dc   :  { %v6542_v17 = vmul.f32 %v6497_v62, %v6290_v20 }
 0x9de   :  { %6649 = vrot.lane.b32.xlu0 %v6543_v12, %s8756_s9  ;;  %6647 = vrot.lane.b32.xlu1 %v6542_v17, %s8756_s9 }
 0x9df   :  { %v6507_v2 = vpop.permute.xlu1 %6506 }
 0x9e0   :  { %v6544_v45 = vmul.f32 %v6507_v2, %v6292_v23 }
 0x9e2   :  { %6799 = vperm.xlu0 %8690, %v11791_v35   ;;  %6651 = vrot.lane.b32.xlu1 %v6544_v45, %s8756_s9 }
 0x9e6   :  { %6814 = vperm.xlu0 %8690, %v11819_v56   ;;  %6804 = vperm.xlu1 %8691, %v11786_v46  }
 0x9ea   :  { %8693 = vset.pattern.permute.xlu0 %v8768_v25  ;;  %6809 = vperm.xlu1 %8691, %v11805_v18  }
 0x9eb   :  { %7272 = vperm.xlu0 %8693, %v11786_v46  }
 0x9ee   :  { %6819 = vperm.xlu1 %8691, %v11800_v7  }
 0x9ef   :  { %7287 = vperm.xlu0 %8693, %v11800_v7  }
 0x9f2   :  { %6829 = vperm.xlu1 %8691, %v11814_v51  }
 0x9f3   :  { %7297 = vperm.xlu0 %8693, %v11814_v51  }
 0x9f6   :  { %6839 = vperm.xlu1 %8691, %v11828_v21  }
 0x9f7   :  { %7307 = vperm.xlu0 %8693, %v11828_v21  }
 0x9fa   :  { %6849 = vperm.xlu1 %8691, %v11842_v5  }
 0x9fb   :  { %7317 = vperm.xlu0 %8693, %v11842_v5  }
 0x9fe   :  { %6859 = vperm.xlu1 %8691, %v11856_v24  }
 0x9ff   :  { %7327 = vperm.xlu0 %8693, %v11856_v24  }
 0xa02   :  { %6869 = vperm.xlu1 %8691, %v11870_v15  }
 0xa03   :  { %7337 = vperm.xlu0 %8693, %v11870_v15  }
 0xa06   :  { %6879 = vperm.xlu1 %8691, %v11884_v58  }
 0xa07   :  { %7342 = vperm.xlu0 %8693, %v11903_v28  }
 0xa0a   :  { %6889 = vperm.xlu1 %8691, %v11898_v36  }
 0xa0b   :  { %7347 = vperm.xlu0 %8693, %v11884_v58  }
 0xa0c   :  { %v6582_v10 = vpop.permute.xlu0 %6581  ;;  %v6584_v7 = vpop.permute.xlu1 %6583 }
 0xa0d   :  { %6689 = vst.msk [vmem:[#allocation3] sm:$0xff] %vm2492_vm5, %v6582_v10  ;;  %6690 = vst.msk [vmem:[#allocation3 + $0x10] sm:$0xff] %vm2492_vm5, %v6584_v7  ;;  %v8057_v10 = vld [vmem:[%s13059_s4] sm:$0xff]  ;;  %v8058_v7 = vld [vmem:[%s13059_s4 + $0x8] sm:$0xff] }
 0xa0e   :  { %6899 = vperm.xlu1 %8691, %v11912_v53  }
 0xa10   :  { %v6586_v51 = vpop.permute.xlu0 %6585 }
 0xa11   :  { %6691 = vst.msk [vmem:[#allocation3 + $0x20] sm:$0xff] %vm2492_vm5, %v6586_v51  ;;  %v8613_v51 = vpack.c.bf16 %v8058_v7, %v8057_v10  ;;  %v12283_v10 = vld [vmem:[%s13055_s1 + $0x58] sm:$0xff] }
 0xa12   :  { %8692 = vset.pattern.permute.xlu1 %v8768_v25  ;;  %v7700_v7 = vld [vmem:[%s13055_s1 + $0x18] sm:$0xff] }
 0xa13   :  { %7267 = vperm.xlu1 %8692, %v11791_v35   ;;  %8614 = vmatpush1.bf16.msra.mxu1 %v8613_v51 }
 0xa14   :  { %v6590_v21 = vpop.permute.xlu0 %6589  ;;  %v6588_v5 = vpop.permute.xlu1 %6587 }
 0xa15   :  { %6693 = vst.msk [vmem:[#allocation3 + $0x40] sm:$0xff] %vm2492_vm5, %v6590_v21  ;;  %6692 = vst.msk [vmem:[#allocation3 + $0x30] sm:$0xff] %vm2492_vm5, %v6588_v5  ;;  %v13106_v21 = vmov 0.0|0.0  }
 0xa16   :  { %8615 = vmatprep.subr.bf16.mxu1 %v13106_v21 }
 0xa17   :  { %7277 = vperm.xlu1 %8692, %v11805_v18  }
 0xa18   :  { %v6594_v24 = vpop.permute.xlu0 %6593  ;;  %v6592_v15 = vpop.permute.xlu1 %6591 }
 0xa19   :  { %6695 = vst.msk [vmem:[#allocation3 + $0x60] sm:$0xff] %vm2492_vm5, %v6594_v24  ;;  %6694 = vst.msk [vmem:[#allocation3 + $0x50] sm:$0xff] %vm2492_vm5, %v6592_v15 }
 0xa1b   :  { %7282 = vperm.xlu1 %8692, %v11819_v56  }
 0xa1c   :  { %v6598_v58 = vpop.permute.xlu0 %6597  ;;  %v6596_v28 = vpop.permute.xlu1 %6595 }
 0xa1d   :  { %6697 = vst.msk [vmem:[#allocation3 + $0x80] sm:$0xff] %vm2492_vm5, %v6598_v58  ;;  %6696 = vst.msk [vmem:[#allocation3 + $0x70] sm:$0xff] %vm2492_vm5, %v6596_v28  ;;  %v8061_v58 = vld [vmem:[%s13059_s4 + $0x20] sm:$0xff]  ;;  %v8062_v28 = vld [vmem:[%s13059_s4 + $0x28] sm:$0xff] }
 0xa1f   :  { %7292 = vperm.xlu1 %8692, %v11833_v47  }
 0xa20   :  { %v6602_v14 = vpop.permute.xlu0 %6601  ;;  %v6600_v63 = vpop.permute.xlu1 %6599 }
 0xa21   :  { %6699 = vst.msk [vmem:[#allocation3 + $0xa0] sm:$0xff] %vm2492_vm5, %v6602_v14  ;;  %6698 = vst.msk [vmem:[#allocation3 + $0x90] sm:$0xff] %vm2492_vm5, %v6600_v63  ;;  %v8619_v14 = vpack.c.bf16 %v8062_v28, %v8061_v58  ;;  %v7701_v58 = vld [vmem:[%s13055_s1 + $0x20] sm:$0xff] }
 0xa22   :  { %v7195_v28 = vld [vmem:[#allocation2 + $0x80] sm:$0xff] }
 0xa23   :  { %7302 = vperm.xlu1 %8692, %v11847_v48  }
 0xa24   :  { %v6606_v42 = vpop.permute.xlu0 %6605  ;;  %v6604_v34 = vpop.permute.xlu1 %6603 }
 0xa25   :  { %6701 = vst.msk [vmem:[#allocation3 + $0xc0] sm:$0xff] %vm2492_vm5, %v6606_v42  ;;  %6700 = vst.msk [vmem:[#allocation3 + $0xb0] sm:$0xff] %vm2492_vm5, %v6604_v34  ;;  %v8064_v42 = vld [vmem:[%s13059_s4 + $0x38] sm:$0xff] }
 0xa27   :  { %7312 = vperm.xlu1 %8692, %v11861_v4   ;;  %v8769_v4 = vmov 17  }
 0xa28   :  { %v6610_v56 = vpop.permute.xlu0 %6609  ;;  %v6608_v37 = vpop.permute.xlu1 %6607 }
 0xa29   :  { %6703 = vst.msk [vmem:[#allocation3 + $0xe0] sm:$0xff] %vm2492_vm5, %v6610_v56  ;;  %6702 = vst.msk [vmem:[#allocation3 + $0xd0] sm:$0xff] %vm2492_vm5, %v6608_v37 }
 0xa2b   :  { %7322 = vperm.xlu1 %8692, %v11875_v54  }
 0xa2c   :  { %v6614_v47 = vpop.permute.xlu0 %6613  ;;  %v6612_v13 = vpop.permute.xlu1 %6611 }
 0xa2d   :  { %6705 = vst.msk [vmem:[#allocation3 + $0x100] sm:$0xff] %vm2492_vm5, %v6614_v47  ;;  %6704 = vst.msk [vmem:[#allocation3 + $0xf0] sm:$0xff] %vm2492_vm5, %v6612_v13  ;;  %v8065_v47 = vld [vmem:[%s13059_s4 + $0x40] sm:$0xff]  ;;  %v8066_v13 = vld [vmem:[%s13059_s4 + $0x48] sm:$0xff] }
 0xa2f   :  { %7332 = vperm.xlu1 %8692, %v11889_v40  }
 0xa30   :  { %v6618_v48 = vpop.permute.xlu0 %6617  ;;  %v6616_v30 = vpop.permute.xlu1 %6615 }
 0xa31   :  { %6707 = vst.msk [vmem:[#allocation3 + $0x120] sm:$0xff] %vm2492_vm5, %v6618_v48  ;;  %6706 = vst.msk [vmem:[#allocation3 + $0x110] sm:$0xff] %vm2492_vm5, %v6616_v30  ;;  %v8625_v48 = vpack.c.bf16 %v8066_v13, %v8065_v47  ;;  %v8067_v30 = vld [vmem:[%s13059_s4 + $0x50] sm:$0xff]  ;;  %v7196_v47 = vld [vmem:[#allocation2 + $0x88] sm:$0xff] }
 0xa33   :  { %8694 = vset.pattern.permute.xlu1 %v8769_v4 }
 0xa34   :  { %v6622_v61 = vpop.permute.xlu0 %6621  ;;  %7735 = vperm.xlu1 %8694, %v11791_v35   ;;  %v6620_v54 = vpop.permute.xlu1 %6619 }
 0xa35   :  { %6709 = vst.msk [vmem:[#allocation3 + $0x140] sm:$0xff] %vm2492_vm5, %v6622_v61  ;;  %6708 = vst.msk [vmem:[#allocation3 + $0x130] sm:$0xff] %vm2492_vm5, %v6620_v54  ;;  %v8068_v61 = vld [vmem:[%s13059_s4 + $0x58] sm:$0xff] }
 0xa36   :  { %v8628_v54 = vpack.c.bf16 %v8068_v61, %v8067_v30 }
 0xa38   :  { %v6626_v32 = vpop.permute.xlu0 %6625  ;;  %7740 = vperm.xlu1 %8694, %v11786_v46   ;;  %v6624_v40 = vpop.permute.xlu1 %6623 }
 0xa39   :  { %6711 = vst.msk [vmem:[#allocation3 + $0x160] sm:$0xff] %vm2492_vm5, %v6626_v32  ;;  %6710 = vst.msk [vmem:[#allocation3 + $0x150] sm:$0xff] %vm2492_vm5, %v6624_v40 }
 0xa3c   :  { %v6630_v19 = vpop.permute.xlu0 %6629  ;;  %7745 = vperm.xlu1 %8694, %v11805_v18   ;;  %v6628_v11 = vpop.permute.xlu1 %6627 }
 0xa3d   :  { %6713 = vst.msk [vmem:[#allocation3 + $0x180] sm:$0xff] %vm2492_vm5, %v6630_v19  ;;  %6712 = vst.msk [vmem:[#allocation3 + $0x170] sm:$0xff] %vm2492_vm5, %v6628_v11  ;;  %v8069_v19 = vld [vmem:[%s13059_s4 + $0x60] sm:$0xff]  ;;  %v8070_v11 = vld [vmem:[%s13059_s4 + $0x68] sm:$0xff] }
 0xa40   :  { %v6634_v35 = vpop.permute.xlu0 %6633  ;;  %v6632_v57 = vpop.permute.xlu1 %6631 }
 0xa41   :  { %6715 = vst.msk [vmem:[#allocation3 + $0x1a0] sm:$0xff] %vm2492_vm5, %v6634_v35  ;;  %6714 = vst.msk [vmem:[#allocation3 + $0x190] sm:$0xff] %vm2492_vm5, %v6632_v57  ;;  %v8631_v35 = vpack.c.bf16 %v8070_v11, %v8069_v19  ;;  %v8071_v57 = vld [vmem:[%s13059_s4 + $0x70] sm:$0xff] }
 0xa44   :  { %v6638_v46 = vpop.permute.xlu0 %6637  ;;  %v6636_v59 = vpop.permute.xlu1 %6635 }
 0xa45   :  { %6717 = vst.msk [vmem:[#allocation3 + $0x1c0] sm:$0xff] %vm2492_vm5, %v6638_v46  ;;  %6716 = vst.msk [vmem:[#allocation3 + $0x1b0] sm:$0xff] %vm2492_vm5, %v6636_v59  ;;  %v8072_v46 = vld [vmem:[%s13059_s4 + $0x78] sm:$0xff] }
 0xa46   :  { %v8634_v59 = vpack.c.bf16 %v8072_v46, %v8071_v57 }
 0xa48   :  { %v6642_v55 = vpop.permute.xlu0 %6641  ;;  %v6640_v39 = vpop.permute.xlu1 %6639 }
 0xa49   :  { %6719 = vst.msk [vmem:[#allocation3 + $0x1e0] sm:$0xff] %vm2492_vm5, %v6642_v55  ;;  %6718 = vst.msk [vmem:[#allocation3 + $0x1d0] sm:$0xff] %vm2492_vm5, %v6640_v39  ;;  %v6766_v39 = vld [vmem:[%s13055_s1 + $0x28] sm:$0xff] }
 0xa4c   :  { %v6646_v18 = vpop.permute.xlu0 %6645  ;;  %v6644_v50 = vpop.permute.xlu1 %6643 }
 0xa4d   :  { %6721 = vst.msk [vmem:[#allocation3 + $0x200] sm:$0xff] %vm2492_vm5, %v6646_v18  ;;  %6720 = vst.msk [vmem:[#allocation3 + $0x1f0] sm:$0xff] %vm2492_vm5, %v6644_v50  ;;  %v8073_v18 = vld [vmem:[%s13059_s4 + $0x80] sm:$0xff]  ;;  %v8074_v50 = vld [vmem:[%s13059_s4 + $0x88] sm:$0xff] }
 0xa50   :  { %v6650_v41 = vpop.permute.xlu0 %6649  ;;  %v6648_v20 = vpop.permute.xlu1 %6647 }
 0xa51   :  { %6723 = vst.msk [vmem:[#allocation3 + $0x220] sm:$0xff] %vm2492_vm5, %v6650_v41  ;;  %6722 = vst.msk [vmem:[#allocation3 + $0x210] sm:$0xff] %vm2492_vm5, %v6648_v20  ;;  %v8637_v41 = vpack.c.bf16 %v8074_v50, %v8073_v18  ;;  %v12347_v18 = vld [vmem:[%s13055_s1 + $0xb0] sm:$0xff] }
 0xa54   :  { %v6652_v62 = vpop.permute.xlu1 %6651 }
 0xa55   :  { %6724 = vst.msk [vmem:[#allocation3 + $0x230] sm:$0xff] %vm2492_vm5, %v6652_v62  ;;  %v6768_v62 = vld [vmem:[%s13055_s1 + $0x38] sm:$0xff] }
 0xa61   :  { %v6800_v12 = vpop.permute.xlu0 %6799 }
 0xa62   :  { %v6977_v17 = vmul.f32 %v6800_v12, %v12022_v38  ;;  %v7193_v12 = vld [vmem:[#allocation2 + $0x70] sm:$0xff] }
 0xa64   :  { %7049 = vrot.lane.b32.xlu0 %v6977_v17, %s8758_s10 }
 0xa65   :  { %v6805_v23 = vpop.permute.xlu1 %6804  ;;  %v6815_v63 = vpop.permute.xlu0 %6814 }
 0xa66   :  { %v6978_v45 = vmul.f32 %v6805_v23, %v12020_v49  ;;  %v8060_v49 = vld [vmem:[%s13059_s4 + $0x18] sm:$0xff]  ;;  %v6980_v37 = vmul.f32 %v6815_v63, %v12028_v16  ;;  %v12276_v23 = vld [vmem:[%s13055_s1 + $0x48] sm:$0xff] }
 0xa67   :  { %v12312_v63 = vld [vmem:[%s13055_s1 + $0x88] sm:$0xff] }
 0xa68   :  { %7352 = vperm.xlu0 %8693, %v11917_v33   ;;  %v8059_v33 = vld [vmem:[%s13059_s4 + $0x10] sm:$0xff] }
 0xa69   :  { %v6810_v2 = vpop.permute.xlu1 %6809  ;;  %v8616_v5 = vpack.c.bf16 %v8060_v49, %v8059_v33  ;;  %v12292_v33 = vld [vmem:[%s13055_s1 + $0x68] sm:$0xff] }
 0xa6a   :  { %v6979_v15 = vmul.f32 %v6810_v2, %v12030_v60  ;;  %v8063_v60 = vld [vmem:[%s13059_s4 + $0x30] sm:$0xff]  ;;  %v7273_v51 = vpop.permute.xlu0 %7272 }
 0xa6b   :  { %8617 = vmatpush1.bf16.msra.mxu1 %v8616_v5  ;;  %v8622_v34 = vpack.c.bf16 %v8064_v42, %v8063_v60 }
 0xa6c   :  { %7051 = vrot.lane.b32.xlu0 %v6978_v45, %s8758_s10  ;;  %8618 = vmatprep.subr.bf16.mxu1 %v13106_v21 }
 0xa6d   :  { %v6820_v38 = vpop.permute.xlu1 %6819 }
 0xa6e   :  { %v6981_v40 = vmul.f32 %v6820_v38, %v12038_v6  ;;  %v7194_v38 = vld [vmem:[#allocation2 + $0x78] sm:$0xff] }
 0xa6f   :  { %8620 = vmatpush1.bf16.msra.mxu1 %v8619_v14  ;;  %v7446_v49 = vmul.f32 %v7273_v51, %v7194_v38 }
 0xa70   :  { %7357 = vperm.xlu0 %8693, %v11898_v36   ;;  %8621 = vmatprep.subr.bf16.mxu1 %v13106_v21 }
 0xa71   :  { %v12192_v24 = vpop.permute.xlu1 %6829 }
 0xa73   :  { %8623 = vmatpush1.bf16.msra.mxu1 %v8622_v34  ;;  %v12321_v34 = vld [vmem:[%s13055_s1 + $0x98] sm:$0xff] }
 0xa74   :  { %7053 = vrot.lane.b32.xlu0 %v6979_v15, %s8758_s10  ;;  %8624 = vmatprep.subr.bf16.mxu1 %v13106_v21  ;;  %v12301_v15 = vld [vmem:[%s13055_s1 + $0x78] sm:$0xff] }
 0xa75   :  { %v12203_v36 = vpop.permute.xlu1 %6839 }
 0xa77   :  { %8626 = vmatpush1.bf16.msra.mxu1 %v8625_v48 }
 0xa78   :  { %7362 = vperm.xlu0 %8693, %v11929_v1   ;;  %8627 = vmatprep.subr.bf16.mxu1 %v13106_v21 }
 0xa79   :  { %v12213_v56 = vpop.permute.xlu1 %6849 }
 0xa7b   :  { %8629 = vmatpush1.bf16.msra.mxu1 %v8628_v54  ;;  %v7703_v54 = vld [vmem:[%s13055_s1 + $0x30] sm:$0xff] }
 0xa7c   :  { %7055 = vrot.lane.b32.xlu0 %v6980_v37, %s8758_s10  ;;  %8630 = vmatprep.subr.bf16.mxu1 %v13106_v21  ;;  %v7288_v37 = vpop.permute.xlu0 %7287 }
 0xa7d   :  { %v12224_v1 = vpop.permute.xlu1 %6859 }
 0xa7f   :  { %8632 = vmatpush1.bf16.msra.mxu1 %v8631_v35 }
 0xa80   :  { %7367 = vperm.xlu0 %8693, %v11912_v53   ;;  %8633 = vmatprep.subr.bf16.mxu1 %v13106_v21  ;;  %v12328_v30 = vpop.permute.xlu0 %7297 }
 0xa81   :  { %v12234_v32 = vpop.permute.xlu1 %6869 }
 0xa83   :  { %8635 = vmatpush1.bf16.msra.mxu1 %v8634_v59 }
 0xa84   :  { %7057 = vrot.lane.b32.xlu0 %v6981_v40, %s8758_s10  ;;  %8636 = vmatprep.subr.bf16.mxu1 %v13106_v21  ;;  %v7197_v40 = vld [vmem:[#allocation2 + $0x90] sm:$0xff]  ;;  %v12335_v35 = vpop.permute.xlu0 %7307 }
 0xa85   :  { %v12245_v53 = vpop.permute.xlu1 %6879  ;;  %v7449_v19 = vmul.f32 %v7288_v37, %v7197_v40  ;;  %v7198_v40 = vld [vmem:[#allocation2 + $0x98] sm:$0xff] }
 0xa87   :  { %8638 = vmatpush1.bf16.msra.mxu1 %v8637_v41  ;;  %v6983_v41 = vmul.f32 %v12192_v24, %v12046_v9 }
 0xa88   :  { %7372 = vperm.xlu0 %8693, %v11940_v29   ;;  %v12341_v59 = vpop.permute.xlu0 %7317 }
 0xa89   :  { %v12255_v55 = vpop.permute.xlu1 %6889 }
 0xa8c   :  { %8695 = vset.pattern.permute.xlu0 %v8767_v27 }
 0xa8d   :  { %6824 = vperm.xlu0 %8695, %v6766_v39   ;;  %v12268_v20 = vpop.permute.xlu1 %6899 }
 0xa91   :  { %6834 = vperm.xlu0 %8695, %v6768_v62  }
 0xa92   :  { %v7268_v17 = vpop.permute.xlu1 %7267 }
 0xa93   :  { %v7445_v2 = vmul.f32 %v7268_v17, %v7193_v12  ;;  %v12367_v12 = vld [vmem:[%s13055_s1 + $0xb8] sm:$0xff] }
 0xa95   :  { %6844 = vperm.xlu0 %8695, %v12276_v23   ;;  %7517 = vrot.lane.b32.xlu1 %v7445_v2, %s8760_s29 }
 0xa96   :  { %v7278_v45 = vpop.permute.xlu1 %7277 }
 0xa97   :  { %v7447_v60 = vmul.f32 %v7278_v45, %v7195_v28 }
 0xa99   :  { %6854 = vperm.xlu0 %8695, %v12283_v10   ;;  %7750 = vperm.xlu1 %8694, %v7700_v7  }
 0xa9a   :  { %v7283_v21 = vpop.permute.xlu1 %7282 }
 0xa9b   :  { %v7448_v48 = vmul.f32 %v7283_v21, %v7196_v47 }
 0xa9d   :  { %6864 = vperm.xlu0 %8695, %v12292_v33   ;;  %7519 = vrot.lane.b32.xlu1 %v7446_v49, %s8760_s29 }
 0xa9e   :  { %v12296_v5 = vpop.permute.xlu1 %7292 }
 0xaa1   :  { %6874 = vperm.xlu0 %8695, %v12301_v15   ;;  %7755 = vperm.xlu1 %8694, %v7701_v58  }
 0xaa2   :  { %v12307_v14 = vpop.permute.xlu1 %7302 }
 0xaa5   :  { %6884 = vperm.xlu0 %8695, %v12312_v63   ;;  %7521 = vrot.lane.b32.xlu1 %v7447_v60, %s8760_s29 }
 0xaa6   :  { %v12316_v42 = vpop.permute.xlu1 %7312 }
 0xaa9   :  { %6894 = vperm.xlu0 %8695, %v12321_v34   ;;  %7760 = vperm.xlu1 %8694, %v6766_v39  }
 0xaaa   :  { %v12324_v13 = vpop.permute.xlu1 %7322 }
 0xaad   :  { %6904 = vperm.xlu0 %8695, %v11940_v29   ;;  %7523 = vrot.lane.b32.xlu1 %v7448_v48, %s8760_s29 }
 0xaae   :  { %v12330_v61 = vpop.permute.xlu1 %7332 }
 0xab1   :  { %7765 = vperm.xlu1 %8694, %v7703_v54  }
 0xab3   :  { %v7736_v11 = vpop.permute.xlu1 %7735 }
 0xab4   :  { %v7913_v57 = vmul.f32 %v7736_v11, %v12028_v16 }
 0xab5   :  { %7525 = vrot.lane.b32.xlu1 %v7449_v19, %s8760_s29 }
 0xab6   :  { %7949 = vst.msk [vmem:[#allocation3 + $0x8] sm:$0xff] %vm23_vm0, %v7913_v57  ;;  %v7450_v57 = vmul.f32 %v12296_v5, %v7198_v40 }
 0xab7   :  { %v7741_v29 = vpop.permute.xlu1 %7740 }
 0xab8   :  { %v7914_v46 = vmul.f32 %v7741_v29, %v12038_v6  ;;  %v12354_v6 = vpop.permute.xlu0 %7327 }
 0xab9   :  { %7770 = vperm.xlu1 %8694, %v6768_v62  }
 0xaba   :  { %7950 = vst.msk [vmem:[#allocation3 + $0x18] sm:$0xff] %vm23_vm0, %v7914_v46  ;;  %v7199_v46 = vld [vmem:[#allocation2 + $0xa0] sm:$0xff] }
 0xabb   :  { %v7746_v39 = vpop.permute.xlu1 %7745 }
 0xabc   :  { %v7915_v16 = vmul.f32 %v7746_v39, %v12036_v31  ;;  %v12360_v62 = vpop.permute.xlu0 %7337  ;;  %v7200_v39 = vld [vmem:[#allocation2 + $0xa8] sm:$0xff] }
 0xabd   :  { %8696 = vset.pattern.permute.xlu1 %v8767_v27  ;;  %v7986_v50 = vld [vmem:[#allocation3 + $0x8] sm:$0xff] }
 0xabe   :  { %7951 = vst.msk [vmem:[#allocation3 + $0x28] sm:$0xff] %vm23_vm0, %v7915_v16  ;;  %6909 = vperm.xlu1 %8696, %v12347_v18   ;;  %8549 = vmatprep.mubr.msk.f32.mxu1 %vm23_vm0, %v7986_v50  ;;  %v7452_v16 = vmul.f32 %v12307_v14, %v7200_v39 }
 0xac0   :  { %v12370_v17 = vpop.permute.xlu0 %7342 }
 0xac1   :  { %v7988_v11 = vld [vmem:[#allocation3 + $0x18] sm:$0xff] }
 0xac2   :  { %8697 = vset.pattern.permute.xlu1 %v8768_v25 }
 0xac3   :  { %7377 = vperm.xlu1 %8697, %v12347_v18  }
 0xac4   :  { %v12374_v24 = vpop.permute.xlu0 %7347 }
 0xac7   :  { %7061 = vrot.lane.b32.xlu1 %v6983_v41, %s8758_s10  ;;  %v6985_v41 = vmul.f32 %v12203_v36, %v12054_v52  ;;  %v12427_v52 = vld [vmem:[%s13055_s1 + $0xc8] sm:$0xff] }
 0xac8   :  { %8698 = vset.pattern.permute.xlu1 %v8767_v27 }
 0xacb   :  { %6914 = vperm.xlu1 %8698, %v12367_v12  }
 0xacf   :  { %8699 = vset.pattern.permute.xlu1 %v8768_v25 }
 0xad0   :  { %7382 = vperm.xlu1 %8699, %v12367_v12  }
 0xad6   :  { %v7050_v2 = vpop.permute.xlu0 %7049 }
 0xad7   :  { %7157 = vst.msk [vmem:[#allocation3] sm:$0xff] %vm2961_vm6, %v7050_v2 }
 0xae7   :  { %v12377_v45 = vpop.permute.xlu0 %7352 }
 0xaeb   :  { %v7052_v7 = vpop.permute.xlu0 %7051 }
 0xaec   :  { %7158 = vst.msk [vmem:[#allocation3 + $0x10] sm:$0xff] %vm2961_vm6, %v7052_v7 }
 0xaef   :  { %v12380_v51 = vpop.permute.xlu0 %7357 }
 0xaf3   :  { %v7054_v38 = vpop.permute.xlu0 %7053 }
 0xaf4   :  { %7159 = vst.msk [vmem:[#allocation3 + $0x20] sm:$0xff] %vm2961_vm6, %v7054_v38  ;;  %v12422_v38 = vld [vmem:[%s13055_s1 + $0xd0] sm:$0xff] }
 0xaf7   :  { %v12383_v21 = vpop.permute.xlu0 %7362 }
 0xafb   :  { %v7056_v49 = vpop.permute.xlu0 %7055 }
 0xafc   :  { %7160 = vst.msk [vmem:[#allocation3 + $0x30] sm:$0xff] %vm2961_vm6, %v7056_v49 }
 0xaff   :  { %v12386_v58 = vpop.permute.xlu0 %7367 }
 0xb03   :  { %v7058_v28 = vpop.permute.xlu0 %7057 }
 0xb04   :  { %7161 = vst.msk [vmem:[#allocation3 + $0x40] sm:$0xff] %vm2961_vm6, %v7058_v28 }
 0xb07   :  { %v12389_v60 = vpop.permute.xlu0 %7372  ;;  %v7518_v37 = vpop.permute.xlu1 %7517 }
 0xb08   :  { %7625 = vst.msk [vmem:[#allocation3] sm:$0xff] %vm3430_vm7, %v7518_v37 }
 0xb0c   :  { %v6825_v47 = vpop.permute.xlu0 %6824 }
 0xb0d   :  { %v6982_v48 = vmul.f32 %v6825_v47, %v12036_v31  ;;  %v7451_v31 = vmul.f32 %v12328_v30, %v7199_v46  ;;  %v7201_v30 = vld [vmem:[#allocation2 + $0xb0] sm:$0xff]  ;;  %v7990_v47 = vld [vmem:[#allocation3 + $0x28] sm:$0xff] }
 0xb0e   :  { %v7453_v2 = vmul.f32 %v12335_v35, %v7201_v30  ;;  %v7203_v35 = vld [vmem:[#allocation2 + $0xc0] sm:$0xff]  ;;  %v12456_v30 = vld [vmem:[%s13055_s1 + $0xf0] sm:$0xff] }
 0xb0f   :  { %7059 = vrot.lane.b32.xlu0 %v6982_v48, %s8758_s10  ;;  %v7985_v54 = vld [vmem:[#allocation3] sm:$0xff]  ;;  %v7455_v37 = vmul.f32 %v12341_v59, %v7203_v35 }
 0xb10   :  { %v6835_v19 = vpop.permute.xlu0 %6834  ;;  %8255 = vmatmul.mubr.f32.vlgmr.msra.gmra.mrb[0].mxu1 %v7985_v54  ;;  %v7666_v54 = vld [vmem:[#allocation2 + $0xa4] sm:$0xff] }
 0xb11   :  { %v6984_v29 = vmul.f32 %v6835_v19, %v12044_v22  ;;  %8550 = vmatprep.mubr.msk.f32.mxu1 %vm23_vm0, %v7988_v11  ;;  %v12406_v22 = vld [vmem:[%s13055_s1 + $0xc0] sm:$0xff] }
 0xb12   :  { %v12441_v19 = vld [vmem:[%s13055_s1 + $0xe0] sm:$0xff] }
 0xb13   :  { %7063 = vrot.lane.b32.xlu1 %v6984_v29, %s8758_s10  ;;  %7527 = vrot.lane.b32.xlu0 %v7450_v57, %s8760_s29  ;;  %v7205_v57 = vld [vmem:[#allocation2 + $0xd0] sm:$0xff] }
 0xb14   :  { %v6845_v48 = vpop.permute.xlu0 %6844  ;;  %v7457_v39 = vmul.f32 %v12354_v6, %v7205_v57  ;;  %v7204_v57 = vld [vmem:[#allocation2 + $0xc8] sm:$0xff] }
 0xb15   :  { %v6986_v11 = vmul.f32 %v6845_v48, %v12052_v44  ;;  %v7667_v44 = vld [vmem:[#allocation2 + $0xac] sm:$0xff] }
 0xb17   :  { %7529 = vrot.lane.b32.xlu0 %v7451_v31, %s8760_s29  ;;  %7531 = vrot.lane.b32.xlu1 %v7452_v16, %s8760_s29  ;;  %v7202_v31 = vld [vmem:[#allocation2 + $0xb8] sm:$0xff] }
 0xb18   :  { %v7751_v50 = vpop.permute.xlu1 %7750 }
 0xb19   :  { %v7916_v5 = vmul.f32 %v7751_v50, %v12046_v9  ;;  %v7665_v9 = vld [vmem:[#allocation2 + $0x9c] sm:$0xff]  ;;  %v7454_v50 = vmul.f32 %v12316_v42, %v7202_v31 }
 0xb1a   :  { %v7206_v31 = vld [vmem:[#allocation2 + $0xd8] sm:$0xff] }
 0xb1b   :  { %7952 = vst.msk [vmem:[#allocation3 + $0x38] sm:$0xff] %vm23_vm0, %v7916_v5  ;;  %6919 = vperm.xlu0 %8695, %v12406_v22   ;;  %7387 = vperm.xlu1 %8699, %v12406_v22  }
 0xb1c   :  { %v7520_v14 = vpop.permute.xlu1 %7519 }
 0xb1d   :  { %7626 = vst.msk [vmem:[#allocation3 + $0x10] sm:$0xff] %vm3430_vm7, %v7520_v14  ;;  %v7207_v14 = vld [vmem:[#allocation2 + $0xe0] sm:$0xff] }
 0xb1f   :  { %7533 = vrot.lane.b32.xlu0 %v7453_v2, %s8760_s29  ;;  %7065 = vrot.lane.b32.xlu1 %v6985_v41, %s8758_s10  ;;  %v7459_v2 = vmul.f32 %v12360_v62, %v7207_v14 }
 0xb20   :  { %v7756_v7 = vpop.permute.xlu1 %7755  ;;  %8700 = vset.pattern.permute.xlu1 %v8767_v27 }
 0xb21   :  { %v7917_v36 = vmul.f32 %v7756_v7, %v7665_v9  ;;  %v6987_v7 = vmul.f32 %v12213_v56, %v12062_v43  ;;  %v12477_v43 = vld [vmem:[%s13055_s1 + $0xd8] sm:$0xff]  ;;  %v7209_v56 = vld [vmem:[#allocation2 + $0xf0] sm:$0xff] }
 0xb22   :  { %v7992_v16 = vld [vmem:[#allocation3 + $0x38] sm:$0xff] }
 0xb23   :  { %7953 = vst.msk [vmem:[#allocation3 + $0x48] sm:$0xff] %vm23_vm0, %v7917_v36  ;;  %6929 = vperm.xlu0 %8695, %v12422_v38   ;;  %6924 = vperm.xlu1 %8700, %v12427_v52   ;;  %v7668_v36 = vld [vmem:[#allocation2 + $0xb4] sm:$0xff] }
 0xb24   :  { %v7522_v49 = vpop.permute.xlu1 %7521  ;;  %v7987_v28 = vld [vmem:[#allocation3 + $0x10] sm:$0xff] }
 0xb25   :  { %7627 = vst.msk [vmem:[#allocation3 + $0x20] sm:$0xff] %vm3430_vm7, %v7522_v49  ;;  %8260 = vmatmul.mubr.f32.gmra.mrb[2].mxu1 %v7987_v28  ;;  %v12471_v49 = vld [vmem:[%s13055_s1 + $0x100] sm:$0xff] }
 0xb26   :  { %8551 = vmatprep.mubr.msk.f32.mxu1 %vm23_vm0, %v7990_v47 }
 0xb27   :  { %7537 = vrot.lane.b32.xlu0 %v7455_v37, %s8760_s29  ;;  %8701 = vset.pattern.permute.xlu1 %v8768_v25  ;;  %v7461_v37 = vmul.f32 %v12374_v24, %v7209_v56  ;;  %v12584_v56 = vld [vmem:[%s13055_s1 + $0x108] sm:$0xff] }
 0xb28   :  { %7392 = vperm.xlu1 %8701, %v12427_v52   ;;  %v7761_v40 = vpop.permute.xlu1 %7760 }
 0xb29   :  { %v7918_v59 = vmul.f32 %v7761_v40, %v7666_v54  ;;  %v6855_v54 = vpop.permute.xlu0 %6854  ;;  %v12491_v40 = vld [vmem:[%s13055_s1 + $0x110] sm:$0xff] }
 0xb2a   :  { %v7994_v9 = vld [vmem:[#allocation3 + $0x48] sm:$0xff]  ;;  %v6988_v24 = vmul.f32 %v6855_v54, %v12060_v3  ;;  %v7707_v3 = vld [vmem:[%s13055_s1 + $0x50] sm:$0xff] }
 0xb2b   :  { %7954 = vst.msk [vmem:[#allocation3 + $0x58] sm:$0xff] %vm23_vm0, %v7918_v59  ;;  %6939 = vperm.xlu0 %8695, %v12441_v19  }
 0xb2c   :  { %7067 = vrot.lane.b32.xlu1 %v6986_v11, %s8758_s10  ;;  %v7524_v29 = vpop.permute.xlu1 %7523  ;;  %v7989_v46 = vld [vmem:[#allocation3 + $0x20] sm:$0xff] }
 0xb2d   :  { %7628 = vst.msk [vmem:[#allocation3 + $0x30] sm:$0xff] %vm3430_vm7, %v7524_v29  ;;  %8265 = vmatmul.mubr.f32.gmra.mrb[4].mxu1 %v7989_v46  ;;  %v7705_v11 = vld [vmem:[%s13055_s1 + $0x40] sm:$0xff]  ;;  %v7456_v46 = vmul.f32 %v12324_v13, %v7204_v57  ;;  %v12518_v13 = vld [vmem:[%s13055_s1 + $0xe8] sm:$0xff] }
 0xb2e   :  { %8552 = vmatprep.mubr.msk.f32.mxu1 %vm23_vm0, %v7992_v16  ;;  %v7458_v16 = vmul.f32 %v12330_v61, %v7206_v31  ;;  %v12547_v61 = vld [vmem:[%s13055_s1 + $0xf8] sm:$0xff]  ;;  %v8741_v57 = vld [vmem:[#allocation2 + $0xec] sm:$0xff] }
 0xb2f   :  { %7541 = vrot.lane.b32.xlu0 %v7457_v39, %s8760_s29  ;;  %v6989_v39 = vmul.f32 %v12224_v1, %v12070_v26  ;;  %v6865_v26 = vpop.permute.xlu0 %6864  ;;  %v8742_v31 = vld [vmem:[#allocation2 + $0xf4] sm:$0xff] }
 0xb30   :  { %7535 = vrot.lane.b32.xlu1 %v7454_v50, %s8760_s29  ;;  %v7766_v5 = vpop.permute.xlu1 %7765  ;;  %v6990_v1 = vmul.f32 %v6865_v26, %v12068_v0  ;;  %v7713_v0 = vld [vmem:[%s13055_s1 + $0x80] sm:$0xff] }
 0xb31   :  { %v7919_v6 = vmul.f32 %v7766_v5, %v7667_v44 }
 0xb32   :  { %v7996_v48 = vld [vmem:[#allocation3 + $0x58] sm:$0xff] }
 0xb33   :  { %7955 = vst.msk [vmem:[#allocation3 + $0x68] sm:$0xff] %vm23_vm0, %v7919_v6  ;;  %6949 = vperm.xlu0 %8695, %v12456_v30   ;;  %v6875_v50 = vpop.permute.xlu0 %6874  ;;  %v7208_v6 = vld [vmem:[#allocation2 + $0xe8] sm:$0xff] }
 0xb34   :  { %7397 = vperm.xlu1 %8701, %v12422_v38   ;;  %v7526_v42 = vpop.permute.xlu1 %7525  ;;  %v7991_v41 = vld [vmem:[#allocation3 + $0x30] sm:$0xff]  ;;  %v7460_v14 = vmul.f32 %v12370_v17, %v7208_v6  ;;  %v7218_v6 = vld [vmem:[#allocation2 + $0x138] sm:$0xff] }
 0xb35   :  { %7629 = vst.msk [vmem:[#allocation3 + $0x40] sm:$0xff] %vm3430_vm7, %v7526_v42  ;;  %8270 = vmatmul.mubr.f32.gmra.mrb[6].mxu1 %v7991_v41  ;;  %v7211_v42 = vld [vmem:[#allocation2 + $0x100] sm:$0xff] }
 0xb36   :  { %8553 = vmatprep.mubr.msk.f32.mxu1 %vm23_vm0, %v7994_v9  ;;  %v7463_v41 = vmul.f32 %v12380_v51, %v7211_v42  ;;  %v7718_v9 = vld [vmem:[%s13055_s1 + $0xa8] sm:$0xff] }
 0xb37   :  { %7545 = vrot.lane.b32.xlu0 %v7459_v2, %s8760_s29 }
 0xb38   :  { %7069 = vrot.lane.b32.xlu1 %v6987_v7, %s8758_s10  ;;  %v7771_v35 = vpop.permute.xlu1 %7770  ;;  %v8739_v7 = vld [vmem:[#allocation2 + $0xe4] sm:$0xff] }
 0xb39   :  { %v7920_v62 = vmul.f32 %v7771_v35, %v7668_v36  ;;  %8702 = vset.pattern.permute.xlu1 %v8767_v27  ;;  %v6993_v17 = vmul.f32 %v8739_v7, %v12245_v53  ;;  %v7212_v36 = vld [vmem:[#allocation2 + $0x108] sm:$0xff] }
 0xb3b   :  { %7956 = vst.msk [vmem:[#allocation3 + $0x78] sm:$0xff] %vm23_vm0, %v7920_v62  ;;  %6959 = vperm.xlu0 %8695, %v12471_v49   ;;  %v7464_v62 = vmul.f32 %v12383_v21, %v7212_v36 }
 0xb3c   :  { %6934 = vperm.xlu1 %8702, %v12477_v43   ;;  %v7993_v28 = vld [vmem:[#allocation3 + $0x40] sm:$0xff] }
 0xb3d   :  { %8275 = vmatmul.mubr.f32.gmra.mrb[8].mxu1 %v7993_v28  ;;  %v12483_v47 = vpop.permute.xlu1 %6909 }
 0xb3e   :  { %8554 = vmatprep.mubr.msk.f32.mxu1 %vm23_vm0, %v7996_v48 }
 0xb3f   :  { %7549 = vrot.lane.b32.xlu0 %v7461_v37, %s8760_s29  ;;  %v8740_v37 = vld [vmem:[#allocation2 + $0x104] sm:$0xff] }
 0xb40   :  { %8703 = vset.pattern.permute.xlu1 %v8768_v25  ;;  %v6997_v48 = vmul.f32 %v8740_v37, %v12268_v20  ;;  %v7214_v20 = vld [vmem:[#allocation2 + $0x118] sm:$0xff] }
 0xb41   :  { %7402 = vperm.xlu1 %8703, %v12477_v43  }
 0xb42   :  { %v12494_v59 = vpop.permute.xlu1 %7377 }
 0xb43   :  { %6969 = vperm.xlu0 %8695, %v12491_v40  }
 0xb45   :  { %7071 = vrot.lane.b32.xlu1 %v6988_v24, %s8758_s10 }
 0xb46   :  { %v7062_v29 = vpop.permute.xlu1 %7061 }
 0xb47   :  { %7163 = vst.msk [vmem:[#allocation3 + $0x60] sm:$0xff] %vm2961_vm6, %v7062_v29  ;;  %8710 = vset.pattern.permute.xlu0 %v8769_v4 }
 0xb48   :  { %7775 = vperm.xlu0 %8710, %v7705_v11   ;;  %v7466_v11 = vmul.f32 %v12389_v60, %v7214_v20  ;;  %v8000_v60 = vld [vmem:[#allocation3 + $0x78] sm:$0xff] }
 0xb49   :  { %7539 = vrot.lane.b32.xlu1 %v7456_v46, %s8760_s29  ;;  %v7998_v46 = vld [vmem:[#allocation3 + $0x68] sm:$0xff] }
 0xb4a   :  { %v12565_v2 = vpop.permute.xlu1 %6914 }
 0xb4c   :  { %7780 = vperm.xlu0 %8710, %v12276_v23   ;;  %v7709_v23 = vld [vmem:[%s13055_s1 + $0x60] sm:$0xff] }
 0xb4d   :  { %7407 = vperm.xlu1 %8703, %v12441_v19  }
 0xb4f   :  { %v7383_v51 = vpop.permute.xlu1 %7382 }
 0xb50   :  { %7785 = vperm.xlu0 %8710, %v7707_v3   ;;  %v7210_v3 = vld [vmem:[#allocation2 + $0xf8] sm:$0xff] }
 0xb51   :  { %7073 = vrot.lane.b32.xlu1 %v6989_v39, %s8758_s10  ;;  %v12600_v39 = vld [vmem:[#allocation2 + $0x114] sm:$0xff] }
 0xb52   :  { %8704 = vset.pattern.permute.xlu1 %v8767_v27  ;;  %v6999_v26 = vmul.f32 %v12483_v47, %v12600_v39 }
 0xb54   :  { %7790 = vperm.xlu0 %8710, %v12283_v10   ;;  %v7711_v10 = vld [vmem:[%s13055_s1 + $0x70] sm:$0xff] }
 0xb55   :  { %6944 = vperm.xlu1 %8704, %v12518_v13  }
 0xb58   :  { %7795 = vperm.xlu0 %8710, %v7709_v23   ;;  %v7462_v23 = vmul.f32 %v12377_v45, %v7210_v3  ;;  %v6995_v45 = vmul.f32 %v8742_v31, %v12255_v55 }
 0xb59   :  { %8705 = vset.pattern.permute.xlu1 %v8768_v25 }
 0xb5a   :  { %7412 = vperm.xlu1 %8705, %v12518_v13  }
 0xb5c   :  { %7800 = vperm.xlu0 %8710, %v12292_v33   ;;  %v6991_v33 = vmul.f32 %v12234_v32, %v12076_v8  ;;  %v6885_v8 = vpop.permute.xlu0 %6884  ;;  %v8738_v32 = vld [vmem:[#allocation2 + $0xdc] sm:$0xff] }
 0xb5d   :  { %v6992_v44 = vmul.f32 %v8738_v32, %v6875_v50  ;;  %v6994_v29 = vmul.f32 %v8741_v57, %v6885_v8 }
 0xb5e   :  { %7075 = vrot.lane.b32.xlu1 %v6990_v1, %s8758_s10 }
 0xb60   :  { %7805 = vperm.xlu0 %8710, %v7711_v10   ;;  %v12560_v5 = vpop.permute.xlu0 %6894  ;;  %v7216_v10 = vld [vmem:[#allocation2 + $0x128] sm:$0xff] }
 0xb62   :  { %7543 = vrot.lane.b32.xlu1 %v7458_v16, %s8760_s29  ;;  %v7468_v16 = vmul.f32 %v7383_v51, %v7216_v10  ;;  %v8744_v51 = vld [vmem:[#allocation2 + $0x10c] sm:$0xff] }
 0xb64   :  { %7810 = vperm.xlu0 %8710, %v12301_v15   ;;  %v7715_v15 = vld [vmem:[%s13055_s1 + $0x90] sm:$0xff] }
 0xb66   :  { %7417 = vperm.xlu1 %8705, %v12456_v30  }
 0xb68   :  { %7815 = vperm.xlu0 %8710, %v7713_v0  }
 0xb6a   :  { %7077 = vrot.lane.b32.xlu1 %v6991_v33, %s8758_s10  ;;  %v12615_v33 = vld [vmem:[#allocation2 + $0x124] sm:$0xff] }
 0xb6b   :  { %8706 = vset.pattern.permute.xlu1 %v8767_v27 }
 0xb6c   :  { %7820 = vperm.xlu0 %8710, %v12312_v63   ;;  %v7717_v63 = vld [vmem:[%s13055_s1 + $0xa0] sm:$0xff] }
 0xb6e   :  { %6954 = vperm.xlu1 %8706, %v12547_v61  }
 0xb70   :  { %7825 = vperm.xlu0 %8710, %v7715_v15  }
 0xb72   :  { %8707 = vset.pattern.permute.xlu1 %v8768_v25 }
 0xb73   :  { %7422 = vperm.xlu1 %8707, %v12547_v61  }
 0xb74   :  { %7830 = vperm.xlu0 %8710, %v12321_v34   ;;  %v12569_v34 = vpop.permute.xlu0 %6904 }
 0xb77   :  { %7079 = vrot.lane.b32.xlu1 %v6992_v44, %s8758_s10  ;;  %v8743_v44 = vld [vmem:[#allocation2 + $0xfc] sm:$0xff] }
 0xb78   :  { %7835 = vperm.xlu0 %8710, %v7717_v63   ;;  %v6996_v63 = vmul.f32 %v8743_v44, %v12560_v5  ;;  %v7213_v5 = vld [vmem:[#allocation2 + $0x110] sm:$0xff] }
 0xb7b   :  { %7547 = vrot.lane.b32.xlu1 %v7460_v14, %s8760_s29 }
 0xb7c   :  { %7553 = vrot.lane.b32.xlu0 %v7463_v41, %s8760_s29 }
 0xb7f   :  { %7427 = vperm.xlu1 %8707, %v12471_v49  }
 0xb80   :  { %7840 = vperm.xlu0 %8710, %v7718_v9   ;;  %v12637_v9 = vld [vmem:[#allocation2 + $0x134] sm:$0xff] }
 0xb81   :  { %v7060_v35 = vpop.permute.xlu0 %7059 }
 0xb82   :  { %7162 = vst.msk [vmem:[#allocation3 + $0x50] sm:$0xff] %vm2961_vm6, %v7060_v35  ;;  %v6998_v35 = vmul.f32 %v8744_v51, %v12569_v34  ;;  %v12662_v34 = vld [vmem:[#allocation2 + $0x11c] sm:$0xff]  ;;  %v7674_v51 = vld [vmem:[#allocation2 + $0xe4] sm:$0xff] }
 0xb83   :  { %7081 = vrot.lane.b32.xlu1 %v6993_v17, %s8758_s10  ;;  %v7465_v17 = vmul.f32 %v12386_v58, %v7213_v5  ;;  %v7215_v58 = vld [vmem:[#allocation2 + $0x120] sm:$0xff] }
 0xb84   :  { %7555 = vrot.lane.b32.xlu0 %v7464_v62, %s8760_s29  ;;  %8708 = vset.pattern.permute.xlu1 %v8767_v27 }
 0xb85   :  { %v7528_v28 = vpop.permute.xlu0 %7527  ;;  %v7064_v53 = vpop.permute.xlu1 %7063 }
 0xb86   :  { %7630 = vst.msk [vmem:[#allocation3 + $0x50] sm:$0xff] %vm3430_vm7, %v7528_v28 }
 0xb87   :  { %7164 = vst.msk [vmem:[#allocation3 + $0x70] sm:$0xff] %vm2961_vm6, %v7064_v53  ;;  %6964 = vperm.xlu1 %8708, %v12584_v56  }
 0xb88   :  { %7089 = vrot.lane.b32.xlu0 %v6997_v48, %s8758_s10 }
 0xb89   :  { %v7530_v21 = vpop.permute.xlu0 %7529  ;;  %v7532_v54 = vpop.permute.xlu1 %7531 }
 0xb8a   :  { %7631 = vst.msk [vmem:[#allocation3 + $0x60] sm:$0xff] %vm3430_vm7, %v7530_v21  ;;  %7632 = vst.msk [vmem:[#allocation3 + $0x70] sm:$0xff] %vm3430_vm7, %v7532_v54  ;;  %v7000_v21 = vmul.f32 %v12565_v2, %v12662_v34  ;;  %v7220_v54 = vld [vmem:[#allocation2 + $0x148] sm:$0xff] }
 0xb8b   :  { %8709 = vset.pattern.permute.xlu1 %v8768_v25 }
 0xb8c   :  { %7850 = vperm.xlu0 %8710, %v12367_v12   ;;  %7432 = vperm.xlu1 %8709, %v12584_v56  }
 0xb8d   :  { %v7995_v24 = vld [vmem:[#allocation3 + $0x50] sm:$0xff] }
 0xb8e   :  { %8280 = vmatmul.mubr.f32.gmra.mrb[10].mxu1 %v7995_v24 }
 0xb8f   :  { %8555 = vmatprep.mubr.msk.f32.mxu1 %vm23_vm0, %v7998_v46  ;;  %v7669_v46 = vld [vmem:[#allocation2 + $0xbc] sm:$0xff] }
 0xb90   :  { %7559 = vrot.lane.b32.xlu0 %v7466_v11, %s8760_s29  ;;  %7083 = vrot.lane.b32.xlu1 %v6994_v29, %s8758_s10  ;;  %v7217_v29 = vld [vmem:[#allocation2 + $0x130] sm:$0xff] }
 0xb91   :  { %v7997_v12 = vld [vmem:[#allocation3 + $0x60] sm:$0xff]  ;;  %v7999_v1 = vld [vmem:[#allocation3 + $0x70] sm:$0xff] }
 0xb92   :  { %8285 = vmatmul.mubr.f32.gmra.mrb[12].mxu1 %v7997_v12 }
 0xb93   :  { %8556 = vmatprep.mubr.msk.f32.mxu1 %vm23_vm0, %v8000_v60  ;;  %v7670_v60 = vld [vmem:[#allocation2 + $0xc4] sm:$0xff] }
 0xb94   :  { %7551 = vrot.lane.b32.xlu1 %v7462_v23, %s8760_s29  ;;  %7093 = vrot.lane.b32.xlu0 %v6999_v26, %s8758_s10  ;;  %v12681_v26 = vld [vmem:[#allocation2 + $0x12c] sm:$0xff] }
 0xb96   :  { %8290 = vmatmul.mubr.f32.gmra.mrb[14].mxu1 %v7999_v1 }
 0xb98   :  { %7437 = vperm.xlu1 %8709, %v12491_v40   ;;  %7860 = vperm.xlu0 %8710, %v12427_v52   ;;  %v12621_v52 = vld [vmem:[%s13055_s1 + $0x118] sm:$0xff] }
 0xb9a   :  { %v6920_v47 = vpop.permute.xlu0 %6919  ;;  %v12611_v0 = vpop.permute.xlu1 %7387 }
 0xb9b   :  { %v7001_v50 = vmul.f32 %v6920_v47, %v12615_v33  ;;  %v7469_v2 = vmul.f32 %v12611_v0, %v7217_v29 }
 0xb9c   :  { %7085 = vrot.lane.b32.xlu1 %v6995_v45, %s8758_s10  ;;  %7563 = vrot.lane.b32.xlu0 %v7468_v16, %s8760_s29  ;;  %v7671_v45 = vld [vmem:[#allocation2 + $0xcc] sm:$0xff] }
 0xb9d   :  { %8711 = vset.pattern.permute.xlu1 %v8767_v27 }
 0xb9e   :  { %v7534_v55 = vpop.permute.xlu0 %7533  ;;  %v7066_v15 = vpop.permute.xlu1 %7065 }
 0xb9f   :  { %7165 = vst.msk [vmem:[#allocation3 + $0x80] sm:$0xff] %vm2961_vm6, %v7066_v15 }
 0xba0   :  { %7633 = vst.msk [vmem:[#allocation3 + $0x80] sm:$0xff] %vm3430_vm7, %v7534_v55  ;;  %6974 = vperm.xlu1 %8711, %v12621_v52   ;;  %7097 = vrot.lane.b32.xlu0 %v7001_v50, %s8758_s10  ;;  %v7219_v55 = vld [vmem:[#allocation2 + $0x140] sm:$0xff] }
 0xba2   :  { %v6930_v8 = vpop.permute.xlu0 %6929  ;;  %v12628_v32 = vpop.permute.xlu1 %6924 }
 0xba4   :  { %8712 = vset.pattern.permute.xlu1 %v8768_v25  ;;  %7870 = vperm.xlu0 %8710, %v12477_v43   ;;  %v7003_v43 = vmul.f32 %v6930_v8, %v12637_v9  ;;  %v7672_v8 = vld [vmem:[#allocation2 + $0xd4] sm:$0xff] }
 0xba5   :  { %7442 = vperm.xlu1 %8712, %v12621_v52  }
 0xba6   :  { %v7538_v27 = vpop.permute.xlu0 %7537 }
 0xba7   :  { %v7393_v14 = vpop.permute.xlu1 %7392 }
 0xba8   :  { %v7470_v42 = vmul.f32 %v7393_v14, %v7218_v6 }
 0xba9   :  { %7087 = vrot.lane.b32.xlu1 %v6996_v63, %s8758_s10 }
 0xbaa   :  { %v6940_v41 = vpop.permute.xlu0 %6939  ;;  %7567 = vrot.lane.b32.xlu0 %v7470_v42, %s8760_s29  ;;  %8713 = vset.pattern.permute.xlu1 %v8769_v4  ;;  %v7673_v42 = vld [vmem:[#allocation2 + $0xdc] sm:$0xff] }
 0xbab   :  { %v7068_v25 = vpop.permute.xlu1 %7067 }
 0xbac   :  { %7166 = vst.msk [vmem:[#allocation3 + $0x90] sm:$0xff] %vm2961_vm6, %v7068_v25 }
 0xbad   :  { %7845 = vperm.xlu1 %8713, %v12347_v18  }
 0xbae   :  { %v12642_v7 = vpop.permute.xlu0 %7541  ;;  %7101 = vrot.lane.b32.xlu0 %v7003_v43, %s8758_s10  ;;  %v7222_v43 = vld [vmem:[#allocation2 + $0x158] sm:$0xff] }
 0xbaf   :  { %v7536_v36 = vpop.permute.xlu1 %7535 }
 0xbb0   :  { %7634 = vst.msk [vmem:[#allocation3 + $0x90] sm:$0xff] %vm3430_vm7, %v7536_v36 }
 0xbb1   :  { %7557 = vrot.lane.b32.xlu1 %v7465_v17, %s8760_s29 }
 0xbb2   :  { %v12648_v4 = vpop.permute.xlu0 %6949  ;;  %7880 = vperm.xlu0 %8710, %v12518_v13   ;;  %v7467_v13 = vmul.f32 %v12494_v59, %v7215_v58  ;;  %v12672_v59 = vld [vmem:[#allocation2 + $0x144] sm:$0xff] }
 0xbb3   :  { %v7398_v18 = vpop.permute.xlu1 %7397  ;;  %v7005_v57 = vmul.f32 %v6940_v41, %v12672_v59 }
 0xbb4   :  { %v7471_v15 = vmul.f32 %v7398_v18, %v7219_v55 }
 0xbb5   :  { %7091 = vrot.lane.b32.xlu1 %v6998_v35, %s8758_s10 }
 0xbb6   :  { %v12653_v62 = vpop.permute.xlu0 %7545 }
 0xbb7   :  { %v7070_v28 = vpop.permute.xlu1 %7069  ;;  %v8003_v6 = vld [vmem:[#allocation3 + $0x90] sm:$0xff] }
 0xbb8   :  { %7167 = vst.msk [vmem:[#allocation3 + $0xa0] sm:$0xff] %vm2961_vm6, %v7070_v28  ;;  %v12705_v28 = vld [vmem:[#allocation2 + $0x154] sm:$0xff] }
 0xbb9   :  { %7635 = vst.msk [vmem:[#allocation3 + $0xa0] sm:$0xff] %vm3430_vm7, %v7538_v27  ;;  %7855 = vperm.xlu1 %8713, %v12406_v22  }
 0xbba   :  { %v12658_v53 = vpop.permute.xlu0 %6959 }
 0xbbb   :  { %v6935_v37 = vpop.permute.xlu1 %6934 }
 0xbbd   :  { %7561 = vrot.lane.b32.xlu1 %v7467_v13, %s8760_s29 }
 0xbbe   :  { %v12664_v48 = vpop.permute.xlu0 %7549 }
 0xbc0   :  { %v7403_v20 = vpop.permute.xlu1 %7402  ;;  %v8005_v36 = vld [vmem:[#allocation3 + $0xa0] sm:$0xff] }
 0xbc1   :  { %v7472_v24 = vmul.f32 %v7403_v20, %v7220_v54  ;;  %7095 = vrot.lane.b32.xlu1 %v7000_v21, %s8758_s10  ;;  %v7221_v21 = vld [vmem:[#allocation2 + $0x150] sm:$0xff] }
 0xbc2   :  { %v12669_v22 = vpop.permute.xlu0 %6969 }
 0xbc3   :  { %7571 = vrot.lane.b32.xlu0 %v7472_v24, %s8760_s29  ;;  %v7675_v24 = vld [vmem:[#allocation2 + $0xec] sm:$0xff] }
 0xbc4   :  { %v7072_v11 = vpop.permute.xlu1 %7071 }
 0xbc5   :  { %7168 = vst.msk [vmem:[#allocation3 + $0xb0] sm:$0xff] %vm2961_vm6, %v7072_v11  ;;  %7865 = vperm.xlu1 %8713, %v12422_v38   ;;  %v7002_v38 = vmul.f32 %v12628_v32, %v12681_v26 }
 0xbc7   :  { %v7776_v3 = vpop.permute.xlu0 %7775  ;;  %7105 = vrot.lane.b32.xlu0 %v7005_v57, %s8758_s10 }
 0xbc8   :  { %v7921_v12 = vmul.f32 %v7776_v3, %v7669_v46  ;;  %v7540_v23 = vpop.permute.xlu1 %7539 }
 0xbc9   :  { %7636 = vst.msk [vmem:[#allocation3 + $0xb0] sm:$0xff] %vm3430_vm7, %v7540_v23  ;;  %7565 = vrot.lane.b32.xlu1 %v7469_v2, %s8760_s29  ;;  %v12720_v2 = vld [vmem:[#allocation2 + $0x14c] sm:$0xff] }
 0xbca   :  { %7957 = vst.msk [vmem:[#allocation3 + $0x88] sm:$0xff] %vm23_vm0, %v7921_v12  ;;  %v7676_v12 = vld [vmem:[#allocation2 + $0xf4] sm:$0xff] }
 0xbcb   :  { %v7781_v1 = vpop.permute.xlu0 %7780  ;;  %7890 = vperm.xlu0 %8710, %v12547_v61   ;;  %v8001_v61 = vld [vmem:[#allocation3 + $0x80] sm:$0xff] }
 0xbcc   :  { %v7922_v10 = vmul.f32 %v7781_v1, %v7670_v60  ;;  %v7408_v31 = vpop.permute.xlu1 %7407 }
 0xbcd   :  { %7099 = vrot.lane.b32.xlu1 %v7002_v38, %s8758_s10  ;;  %v7473_v20 = vmul.f32 %v7408_v31, %v7221_v21 }
 0xbce   :  { %7958 = vst.msk [vmem:[#allocation3 + $0x98] sm:$0xff] %vm23_vm0, %v7922_v10 }
 0xbcf   :  { %v7786_v16 = vpop.permute.xlu0 %7785 }
 0xbd0   :  { %v7923_v47 = vmul.f32 %v7786_v16, %v7671_v45  ;;  %v7074_v0 = vpop.permute.xlu1 %7073  ;;  %v8007_v54 = vld [vmem:[#allocation3 + $0xb0] sm:$0xff] }
 0xbd1   :  { %7169 = vst.msk [vmem:[#allocation3 + $0xc0] sm:$0xff] %vm2961_vm6, %v7074_v0  ;;  %7875 = vperm.xlu1 %8713, %v12441_v19   ;;  %v8002_v50 = vld [vmem:[#allocation3 + $0x88] sm:$0xff]  ;;  %v12696_v19 = vld [vmem:[#allocation2 + $0x13c] sm:$0xff] }
 0xbd2   :  { %7959 = vst.msk [vmem:[#allocation3 + $0xa8] sm:$0xff] %vm23_vm0, %v7923_v47  ;;  %8557 = vmatprep.mubr.msk.f32.mxu1 %vm23_vm0, %v8002_v50  ;;  %v7004_v14 = vmul.f32 %v6935_v37, %v12696_v19  ;;  %v7007_v37 = vmul.f32 %v12648_v4, %v12705_v28  ;;  %v12718_v4 = vld [vmem:[%s13060_s5] ss:$0 sm:$0xff] }
 0xbd3   :  { %7637 = vst.msk [vmem:[#allocation3 + $0xc0] sm:$0xff] %vm3430_vm7, %v12642_v7  ;;  %v7791_v32 = vpop.permute.xlu0 %7790  ;;  %8295 = vmatmul.mubr.f32.gmra.mrb[16].mxu1 %v8001_v61  ;;  %v7677_v47 = vld [vmem:[#allocation2 + $0xfc] sm:$0xff] }
 0xbd4   :  { %v7924_v27 = vmul.f32 %v7791_v32, %v7672_v8  ;;  %v6945_v44 = vpop.permute.xlu1 %6944  ;;  %v7223_v50 = vld [vmem:[#allocation2 + $0x160] sm:$0xff] }
 0xbd5   :  { %7569 = vrot.lane.b32.xlu1 %v7471_v15, %s8760_s29  ;;  %v8004_v63 = vld [vmem:[#allocation3 + $0x98] sm:$0xff]  ;;  %v7006_v3 = vmul.f32 %v6945_v44, %v12720_v2  ;;  %v7678_v32 = vld [vmem:[#allocation2 + $0x104] sm:$0xff] }
 0xbd6   :  { %7960 = vst.msk [vmem:[#allocation3 + $0xb8] sm:$0xff] %vm23_vm0, %v7924_v27  ;;  %8558 = vmatprep.mubr.msk.f32.mxu1 %vm23_vm0, %v8004_v63 }
 0xbd7   :  { %v7796_v41 = vpop.permute.xlu0 %7795  ;;  %8300 = vmatmul.mubr.f32.gmra.mrb[18].mxu1 %v8003_v6 }
 0xbd8   :  { %v7925_v25 = vmul.f32 %v7796_v41, %v7673_v42 }
 0xbd9   :  { %7103 = vrot.lane.b32.xlu1 %v7004_v14, %s8758_s10  ;;  %v7413_v5 = vpop.permute.xlu1 %7412  ;;  %v8006_v7 = vld [vmem:[#allocation3 + $0xa8] sm:$0xff] }
 0xbda   :  { %7961 = vst.msk [vmem:[#allocation3 + $0xc8] sm:$0xff] %vm23_vm0, %v7925_v25  ;;  %v7474_v17 = vmul.f32 %v7413_v5, %v7222_v43  ;;  %8559 = vmatprep.mubr.msk.f32.mxu1 %vm23_vm0, %v8006_v7  ;;  %v8009_v46 = vld [vmem:[#allocation3 + $0xc0] sm:$0xff]  ;;  %v7679_v14 = vld [vmem:[#allocation2 + $0x10c] sm:$0xff] }
 0xbdb   :  { %v7801_v35 = vpop.permute.xlu0 %7800  ;;  %8305 = vmatmul.mubr.f32.gmra.mrb[20].mxu1 %v8005_v36  ;;  %v7224_v25 = vld [vmem:[#allocation2 + $0x168] sm:$0xff] }
 0xbdc   :  { %v7926_v18 = vmul.f32 %v7801_v35, %v7674_v51  ;;  %7575 = vrot.lane.b32.xlu0 %v7474_v17, %s8760_s29  ;;  %v12748_v36 = vld [vmem:[#allocation2 + $0x164] sm:$0xff] }
 0xbdd   :  { %7885 = vperm.xlu1 %8713, %v12456_v30   ;;  %v7076_v58 = vpop.permute.xlu1 %7075  ;;  %v8008_v13 = vld [vmem:[#allocation3 + $0xb8] sm:$0xff] }
 0xbde   :  { %7962 = vst.msk [vmem:[#allocation3 + $0xd8] sm:$0xff] %vm23_vm0, %v7926_v18  ;;  %8560 = vmatprep.mubr.msk.f32.mxu1 %vm23_vm0, %v8008_v13  ;;  %v7009_v18 = vmul.f32 %v12658_v53, %v12748_v36  ;;  %v7225_v53 = vld [vmem:[#allocation2 + $0x170] sm:$0xff] }
 0xbdf   :  { %7170 = vst.msk [vmem:[#allocation3 + $0xd0] sm:$0xff] %vm2961_vm6, %v7076_v58  ;;  %v7806_v11 = vpop.permute.xlu0 %7805  ;;  %8310 = vmatmul.mubr.f32.gmra.mrb[22].mxu1 %v8007_v54 }
 0xbe0   :  { %v7927_v57 = vmul.f32 %v7806_v11, %v7675_v24  ;;  %7109 = vrot.lane.b32.xlu0 %v7007_v37, %s8758_s10 }
 0xbe1   :  { %7573 = vrot.lane.b32.xlu1 %v7473_v20, %s8760_s29  ;;  %v7544_v30 = vpop.permute.xlu1 %7543  ;;  %v8010_v29 = vld [vmem:[#allocation3 + $0xc8] sm:$0xff] }
 0xbe2   :  { %7963 = vst.msk [vmem:[#allocation3 + $0xe8] sm:$0xff] %vm23_vm0, %v7927_v57  ;;  %8561 = vmatprep.mubr.msk.f32.mxu1 %vm23_vm0, %v8010_v29 }
 0xbe3   :  { %7638 = vst.msk [vmem:[#allocation3 + $0xd0] sm:$0xff] %vm3430_vm7, %v7544_v30  ;;  %v7811_v23 = vpop.permute.xlu0 %7810  ;;  %v8256_v38 = vpop.f32.mrb[0].mxu1  ;;  %8315 = vmatmul.mubr.f32.gmra.mrb[24].mxu1 %v8009_v46 }
 0xbe4   :  { %v7928_v60 = vmul.f32 %v7811_v23, %v7676_v12  ;;  %v8257_v1 = vadd.f32 %v12718_v4, %v8256_v38  ;;  %v8258_v10 = vpop.f32.mrb[1].mxu1  ;;  %7900 = vperm.xlu0 %8710, %v12584_v56  }
 0xbe5   :  { %7107 = vrot.lane.b32.xlu1 %v7006_v3, %s8758_s10  ;;  %v7418_v31 = vpop.permute.xlu1 %7417  ;;  %v8012_v45 = vld [vmem:[#allocation3 + $0xd8] sm:$0xff] }
 0xbe6   :  { %7964 = vst.msk [vmem:[#allocation3 + $0xf8] sm:$0xff] %vm23_vm0, %v7928_v60  ;;  %v8435_v16 = vmax.f32 %v8257_v1, 0.0  ;;  %8562 = vmatprep.mubr.msk.f32.mxu1 %vm23_vm0, %v8012_v45  ;;  %v7475_v8 = vmul.f32 %v7418_v31, %v7223_v50  ;;  %v12787_v31 = vld [vmem:[#allocation2 + $0x174] sm:$0xff] }
 0xbe7   :  { %v7816_v0 = vpop.permute.xlu0 %7815 }
 0xbe8   :  { %8471 = vst.msk [vmem:[%s13061_s6] sm:$0xff] %vm23_vm0, %v8435_v16  ;;  %v7929_v55 = vmul.f32 %v7816_v0, %v7677_v47  ;;  %v7226_v47 = vld [vmem:[#allocation2 + $0x178] sm:$0xff]  ;;  %v7011_v0 = vmul.f32 %v12669_v22, %v12787_v31 }
 0xbe9   :  { %7895 = vperm.xlu1 %8713, %v12471_v49   ;;  %v7078_v56 = vpop.permute.xlu1 %7077  ;;  %v8014_v15 = vld [vmem:[#allocation3 + $0xe8] sm:$0xff]  ;;  %v12742_v49 = vld [vmem:[#allocation2 + $0x15c] sm:$0xff] }
 0xbea   :  { %v8011_v61 = vld [vmem:[#allocation3 + $0xd0] sm:$0xff]  ;;  %7965 = vst.msk [vmem:[#allocation3 + $0x108] sm:$0xff] %vm23_vm0, %v7929_v55 }
 0xbeb   :  { %7171 = vst.msk [vmem:[#allocation3 + $0xe0] sm:$0xff] %vm2961_vm6, %v7078_v56  ;;  %8320 = vmatmul.mubr.f32.gmra.mrb[26].mxu1 %v8011_v61  ;;  %v7821_v27 = vpop.permute.xlu0 %7820 }
 0xbec   :  { %7639 = vst.msk [vmem:[#allocation3 + $0xe0] sm:$0xff] %vm3430_vm7, %v12653_v62  ;;  %8563 = vmatprep.mubr.msk.f32.mxu1 %vm23_vm0, %v8014_v15  ;;  %v7930_v44 = vmul.f32 %v7821_v27, %v7678_v32 }
 0xbed   :  { %7577 = vrot.lane.b32.xlu1 %v7475_v8, %s8760_s29  ;;  %v6955_v63 = vpop.permute.xlu1 %6954  ;;  %v8016_v17 = vld [vmem:[#allocation3 + $0xf8] sm:$0xff] }
 0xbee   :  { %7966 = vst.msk [vmem:[#allocation3 + $0x118] sm:$0xff] %vm23_vm0, %v7930_v44  ;;  %v7008_v6 = vmul.f32 %v6955_v63, %v12742_v49 }
 0xbef   :  { %v7826_v42 = vpop.permute.xlu0 %7825 }
 0xbf0   :  { %v7931_v41 = vmul.f32 %v7826_v42, %v7679_v14 }
 0xbf1   :  { %7111 = vrot.lane.b32.xlu1 %v7008_v6, %s8758_s10 }
 0xbf2   :  { %7967 = vst.msk [vmem:[#allocation3 + $0x128] sm:$0xff] %vm23_vm0, %v7931_v41  ;;  %v7423_v62 = vpop.permute.xlu1 %7422  ;;  %v7227_v41 = vld [vmem:[#allocation2 + $0x180] sm:$0xff] }
 0xbf3   :  { %v8013_v43 = vld [vmem:[#allocation3 + $0xe0] sm:$0xff]  ;;  %v7476_v5 = vmul.f32 %v7423_v62, %v7224_v25  ;;  %v7831_v7 = vpop.permute.xlu0 %7830 }
 0xbf4   :  { %8325 = vmatmul.mubr.f32.gmra.mrb[28].mxu1 %v8013_v43  ;;  %v7932_v51 = vmul.f32 %v7831_v7, %v12600_v39 }
 0xbf5   :  { %8564 = vmatprep.mubr.msk.f32.mxu1 %vm23_vm0, %v8016_v17  ;;  %7905 = vperm.xlu1 %8713, %v12491_v40   ;;  %v8020_v32 = vld [vmem:[#allocation3 + $0x118] sm:$0xff] }
 0xbf6   :  { %7579 = vrot.lane.b32.xlu0 %v7476_v5, %s8760_s29  ;;  %7968 = vst.msk [vmem:[#allocation3 + $0x138] sm:$0xff] %vm23_vm0, %v7932_v51  ;;  %v7080_v35 = vpop.permute.xlu1 %7079 }
 0xbf7   :  { %7172 = vst.msk [vmem:[#allocation3 + $0xf0] sm:$0xff] %vm2961_vm6, %v7080_v35  ;;  %v7836_v58 = vpop.permute.xlu0 %7835 }
 0xbf8   :  { %v7933_v13 = vmul.f32 %v7836_v58, %v12662_v34  ;;  %v8261_v37 = vpop.f32.mrb[2].mxu1 }
 0xbf9   :  { %v8262_v39 = vadd.f32 %v12718_v4, %v8261_v37  ;;  %v8263_v21 = vpop.f32.mrb[3].mxu1  ;;  %v8022_v35 = vld [vmem:[#allocation3 + $0x128] sm:$0xff] }
 0xbfa   :  { %7113 = vrot.lane.b32.xlu0 %v7009_v18, %s8758_s10  ;;  %7969 = vst.msk [vmem:[#allocation3 + $0x148] sm:$0xff] %vm23_vm0, %v7933_v13  ;;  %v7548_v40 = vpop.permute.xlu1 %7547  ;;  %v12822_v18 = vld [vmem:[#allocation2 + $0x17c] sm:$0xff]  ;;  %v7228_v37 = vld [vmem:[#allocation2 + $0x188] sm:$0xff] }
 0xbfb   :  { %v8436_v54 = vmax.f32 %v8262_v39, 0.0  ;;  %7640 = vst.msk [vmem:[#allocation3 + $0xf0] sm:$0xff] %vm3430_vm7, %v7548_v40  ;;  %v12763_v20 = vpop.permute.xlu0 %7553 }
 0xbfd   :  { %8472 = vst.msk [vmem:[%s13061_s6 + $0x8] sm:$0xff] %vm23_vm0, %v8436_v54 }
 0xbfe   :  { %7910 = vperm.xlu0 %8710, %v12621_v52   ;;  %v7428_v34 = vpop.permute.xlu1 %7427  ;;  %v8018_v52 = vld [vmem:[#allocation3 + $0x108] sm:$0xff] }
 0xbff   :  { %v7477_v24 = vmul.f32 %v7428_v34, %v7225_v53  ;;  %v7841_v11 = vpop.permute.xlu0 %7840 }
 0xc00   :  { %v7934_v57 = vmul.f32 %v7841_v11, %v12615_v33  ;;  %v8266_v30 = vpop.f32.mrb[4].mxu1  ;;  %v12780_v33 = vld [vmem:[#allocation2 + $0x16c] sm:$0xff] }
 0xc01   :  { %v8267_v29 = vadd.f32 %v12718_v4, %v8266_v30  ;;  %v8268_v46 = vpop.f32.mrb[5].mxu1  ;;  %7581 = vrot.lane.b32.xlu1 %v7477_v24, %s8760_s29 }
 0xc02   :  { %7970 = vst.msk [vmem:[#allocation3 + $0x158] sm:$0xff] %vm23_vm0, %v7934_v57  ;;  %v7082_v3 = vpop.permute.xlu1 %7081  ;;  %v8015_v12 = vld [vmem:[#allocation3 + $0xf0] sm:$0xff] }
 0xc03   :  { %v8437_v23 = vmax.f32 %v8267_v29, 0.0  ;;  %7173 = vst.msk [vmem:[#allocation3 + $0x100] sm:$0xff] %vm2961_vm6, %v7082_v3  ;;  %v12775_v38 = vpop.permute.xlu0 %7555  ;;  %8330 = vmatmul.mubr.f32.gmra.mrb[30].mxu1 %v8015_v12  ;;  %v8026_v12 = vld [vmem:[#allocation3 + $0x148] sm:$0xff] }
 0xc04   :  { %7641 = vst.msk [vmem:[#allocation3 + $0x100] sm:$0xff] %vm3430_vm7, %v12664_v48  ;;  %8565 = vmatprep.mubr.msk.f32.mxu1 %vm23_vm0, %v8018_v52 }
 0xc05   :  { %8473 = vst.msk [vmem:[%s13061_s6 + $0x10] sm:$0xff] %vm23_vm0, %v8437_v23 }
 0xc06   :  { %v6965_v60 = vpop.permute.xlu1 %6964 }
 0xc07   :  { %v7010_v1 = vmul.f32 %v6965_v60, %v12780_v33  ;;  %v7090_v10 = vpop.permute.xlu0 %7089 }
 0xc08   :  { %7177 = vst.msk [vmem:[#allocation3 + $0x140] sm:$0xff] %vm2961_vm6, %v7090_v10  ;;  %v8271_v45 = vpop.f32.mrb[6].mxu1 }
 0xc09   :  { %v8272_v48 = vadd.f32 %v12718_v4, %v8271_v45  ;;  %v8273_v16 = vpop.f32.mrb[7].mxu1  ;;  %7115 = vrot.lane.b32.xlu1 %v7010_v1, %s8758_s10 }
 0xc0b   :  { %v8438_v50 = vmax.f32 %v8272_v48, 0.0  ;;  %v7851_v55 = vpop.permute.xlu0 %7850  ;;  %v7433_v56 = vpop.permute.xlu1 %7432  ;;  %v8017_v61 = vld [vmem:[#allocation3 + $0x100] sm:$0xff] }
 0xc0c   :  { %v7936_v15 = vmul.f32 %v7851_v55, %v12637_v9  ;;  %v7478_v8 = vmul.f32 %v7433_v56, %v7226_v47  ;;  %8335 = vmatmul.mubr.f32.gmra.mrb[32].mxu1 %v8017_v61 }
 0xc0d   :  { %8474 = vst.msk [vmem:[%s13061_s6 + $0x18] sm:$0xff] %vm23_vm0, %v8438_v50  ;;  %7117 = vrot.lane.b32.xlu1 %v7011_v0, %s8758_s10  ;;  %8566 = vmatprep.mubr.msk.f32.mxu1 %vm23_vm0, %v8020_v32 }
 0xc0e   :  { %7972 = vst.msk [vmem:[#allocation3 + $0x178] sm:$0xff] %vm23_vm0, %v7936_v15  ;;  %7583 = vrot.lane.b32.xlu0 %v7478_v8, %s8760_s29 }
 0xc0f   :  { %v12803_v22 = vpop.permute.xlu0 %7559  ;;  %v7084_v27 = vpop.permute.xlu1 %7083 }
 0xc10   :  { %7174 = vst.msk [vmem:[#allocation3 + $0x110] sm:$0xff] %vm2961_vm6, %v7084_v27  ;;  %v8276_v9 = vpop.f32.mrb[8].mxu1 }
 0xc11   :  { %v8277_v44 = vadd.f32 %v12718_v4, %v8276_v9  ;;  %v8278_v63 = vpop.f32.mrb[9].mxu1 }
 0xc13   :  { %v8439_v6 = vmax.f32 %v8277_v44, 0.0  ;;  %v7094_v14 = vpop.permute.xlu0 %7093  ;;  %v7552_v42 = vpop.permute.xlu1 %7551 }
 0xc14   :  { %7179 = vst.msk [vmem:[#allocation3 + $0x160] sm:$0xff] %vm2961_vm6, %v7094_v14 }
 0xc15   :  { %7642 = vst.msk [vmem:[#allocation3 + $0x110] sm:$0xff] %vm3430_vm7, %v7552_v42  ;;  %v8032_v50 = vld [vmem:[#allocation3 + $0x178] sm:$0xff] }
 0xc16   :  { %8475 = vst.msk [vmem:[%s13061_s6 + $0x20] sm:$0xff] %vm23_vm0, %v8439_v6 }
 0xc17   :  { %v7861_v25 = vpop.permute.xlu0 %7860  ;;  %v7438_v62 = vpop.permute.xlu1 %7437 }
 0xc18   :  { %v7938_v43 = vmul.f32 %v7861_v25, %v12672_v59  ;;  %v7479_v5 = vmul.f32 %v7438_v62, %v7227_v41 }
 0xc1a   :  { %7974 = vst.msk [vmem:[#allocation3 + $0x198] sm:$0xff] %vm23_vm0, %v7938_v43  ;;  %7585 = vrot.lane.b32.xlu0 %v7479_v5, %s8760_s29 }
 0xc1b   :  { %v12816_v7 = vpop.permute.xlu0 %7563  ;;  %v7086_v17 = vpop.permute.xlu1 %7085 }
 0xc1c   :  { %v8019_v51 = vld [vmem:[#allocation3 + $0x110] sm:$0xff]  ;;  %7175 = vst.msk [vmem:[#allocation3 + $0x120] sm:$0xff] %vm2961_vm6, %v7086_v17  ;;  %v7694_v17 = vld [vmem:[#allocation2 + $0x184] sm:$0xff] }
 0xc1d   :  { %8340 = vmatmul.mubr.f32.gmra.mrb[34].mxu1 %v8019_v51  ;;  %7643 = vst.msk [vmem:[#allocation3 + $0x120] sm:$0xff] %vm3430_vm7, %v12763_v20  ;;  %v8024_v20 = vld [vmem:[#allocation3 + $0x138] sm:$0xff] }
 0xc1e   :  { %8567 = vmatprep.mubr.msk.f32.mxu1 %vm23_vm0, %v8022_v35 }
 0xc1f   :  { %v7098_v59 = vpop.permute.xlu0 %7097  ;;  %v6975_v58 = vpop.permute.xlu1 %6974 }
 0xc20   :  { %7181 = vst.msk [vmem:[#allocation3 + $0x180] sm:$0xff] %vm2961_vm6, %v7098_v59  ;;  %v7012_v13 = vmul.f32 %v6975_v58, %v12822_v18 }
 0xc21   :  { %v8036_v44 = vld [vmem:[#allocation3 + $0x198] sm:$0xff] }
 0xc22   :  { %7119 = vrot.lane.b32.xlu1 %v7012_v13, %s8758_s10 }
 0xc23   :  { %v7871_v39 = vpop.permute.xlu0 %7870 }
 0xc24   :  { %v7940_v21 = vmul.f32 %v7871_v39, %v12705_v28  ;;  %v7443_v40 = vpop.permute.xlu1 %7442  ;;  %v8021_v54 = vld [vmem:[#allocation3 + $0x120] sm:$0xff] }
 0xc25   :  { %v7480_v53 = vmul.f32 %v7443_v40, %v7228_v37  ;;  %8345 = vmatmul.mubr.f32.gmra.mrb[36].mxu1 %v8021_v54 }
 0xc26   :  { %7976 = vst.msk [vmem:[#allocation3 + $0x1b8] sm:$0xff] %vm23_vm0, %v7940_v21  ;;  %8568 = vmatprep.mubr.msk.f32.mxu1 %vm23_vm0, %v8024_v20 }
 0xc27   :  { %v7568_v34 = vpop.permute.xlu0 %7567  ;;  %7587 = vrot.lane.b32.xlu0 %v7480_v53, %s8760_s29 }
 0xc28   :  { %v7088_v24 = vpop.permute.xlu1 %7087 }
 0xc29   :  { %7176 = vst.msk [vmem:[#allocation3 + $0x130] sm:$0xff] %vm2961_vm6, %v7088_v24 }
 0xc2a   :  { %7644 = vst.msk [vmem:[#allocation3 + $0x130] sm:$0xff] %vm3430_vm7, %v12775_v38 }
 0xc2b   :  { %v7102_v11 = vpop.permute.xlu0 %7101 }
 0xc2c   :  { %7183 = vst.msk [vmem:[#allocation3 + $0x1a0] sm:$0xff] %vm2961_vm6, %v7102_v11  ;;  %v7846_v28 = vpop.permute.xlu1 %7845 }
 0xc2d   :  { %v7935_v57 = vmul.f32 %v7846_v28, %v12681_v26  ;;  %v8040_v62 = vld [vmem:[#allocation3 + $0x1b8] sm:$0xff] }
 0xc2f   :  { %7971 = vst.msk [vmem:[#allocation3 + $0x168] sm:$0xff] %vm23_vm0, %v7935_v57 }
 0xc30   :  { %v7558_v30 = vpop.permute.xlu1 %7557 }
 0xc31   :  { %7645 = vst.msk [vmem:[#allocation3 + $0x140] sm:$0xff] %vm3430_vm7, %v7558_v30  ;;  %v7881_v29 = vpop.permute.xlu0 %7880  ;;  %v8023_v46 = vld [vmem:[#allocation3 + $0x130] sm:$0xff] }
 0xc32   :  { %v7942_v3 = vmul.f32 %v7881_v29, %v12748_v36  ;;  %8350 = vmatmul.mubr.f32.gmra.mrb[38].mxu1 %v8023_v46  ;;  %v8028_v36 = vld [vmem:[#allocation3 + $0x158] sm:$0xff] }
 0xc33   :  { %8569 = vmatprep.mubr.msk.f32.mxu1 %vm23_vm0, %v8026_v12 }
 0xc34   :  { %7978 = vst.msk [vmem:[#allocation3 + $0x1d8] sm:$0xff] %vm23_vm0, %v7942_v3  ;;  %v7092_v23 = vpop.permute.xlu1 %7091 }
 0xc35   :  { %7178 = vst.msk [vmem:[#allocation3 + $0x150] sm:$0xff] %vm2961_vm6, %v7092_v23  ;;  %v7572_v38 = vpop.permute.xlu0 %7571 }
 0xc36   :  { %7646 = vst.msk [vmem:[#allocation3 + $0x150] sm:$0xff] %vm3430_vm7, %v12803_v22  ;;  %v8030_v48 = vld [vmem:[#allocation3 + $0x168] sm:$0xff] }
 0xc38   :  { %v7856_v26 = vpop.permute.xlu1 %7855  ;;  %v8025_v52 = vld [vmem:[#allocation3 + $0x140] sm:$0xff] }
 0xc39   :  { %v7937_v60 = vmul.f32 %v7856_v26, %v12696_v19  ;;  %v7106_v1 = vpop.permute.xlu0 %7105  ;;  %8355 = vmatmul.mubr.f32.gmra.mrb[40].mxu1 %v8025_v52 }
 0xc3a   :  { %7185 = vst.msk [vmem:[#allocation3 + $0x1c0] sm:$0xff] %vm2961_vm6, %v7106_v1  ;;  %8570 = vmatprep.mubr.msk.f32.mxu1 %vm23_vm0, %v8028_v36 }
 0xc3b   :  { %7973 = vst.msk [vmem:[#allocation3 + $0x188] sm:$0xff] %vm23_vm0, %v7937_v60  ;;  %v8044_v28 = vld [vmem:[#allocation3 + $0x1d8] sm:$0xff] }
 0xc3c   :  { %v7562_v10 = vpop.permute.xlu1 %7561 }
 0xc3d   :  { %7647 = vst.msk [vmem:[#allocation3 + $0x160] sm:$0xff] %vm3430_vm7, %v7562_v10  ;;  %v8027_v45 = vld [vmem:[#allocation3 + $0x150] sm:$0xff] }
 0xc3e   :  { %8360 = vmatmul.mubr.f32.gmra.mrb[42].mxu1 %v8027_v45 }
 0xc3f   :  { %8571 = vmatprep.mubr.msk.f32.mxu1 %vm23_vm0, %v8030_v48  ;;  %v7696_v48 = vld [vmem:[#allocation2 + $0x194] sm:$0xff] }
 0xc40   :  { %v7096_v16 = vpop.permute.xlu1 %7095 }
 0xc41   :  { %7180 = vst.msk [vmem:[#allocation3 + $0x170] sm:$0xff] %vm2961_vm6, %v7096_v16 }
 0xc42   :  { %7648 = vst.msk [vmem:[#allocation3 + $0x170] sm:$0xff] %vm3430_vm7, %v12816_v7  ;;  %v8034_v15 = vld [vmem:[#allocation3 + $0x188] sm:$0xff] }
 0xc44   :  { %v7866_v19 = vpop.permute.xlu1 %7865  ;;  %v8029_v47 = vld [vmem:[#allocation3 + $0x160] sm:$0xff] }
 0xc45   :  { %v7939_v0 = vmul.f32 %v7866_v19, %v12720_v2  ;;  %8365 = vmatmul.mubr.f32.gmra.mrb[44].mxu1 %v8029_v47 }
 0xc46   :  { %8572 = vmatprep.mubr.msk.f32.mxu1 %vm23_vm0, %v8032_v50 }
 0xc47   :  { %7975 = vst.msk [vmem:[#allocation3 + $0x1a8] sm:$0xff] %vm23_vm0, %v7939_v0 }
 0xc48   :  { %v7566_v55 = vpop.permute.xlu1 %7565 }
 0xc49   :  { %7649 = vst.msk [vmem:[#allocation3 + $0x180] sm:$0xff] %vm3430_vm7, %v7566_v55  ;;  %v8031_v56 = vld [vmem:[#allocation3 + $0x170] sm:$0xff] }
 0xc4a   :  { %v7891_v61 = vpop.permute.xlu0 %7890  ;;  %8370 = vmatmul.mubr.f32.gmra.mrb[46].mxu1 %v8031_v56 }
 0xc4b   :  { %v7944_v8 = vmul.f32 %v7891_v61, %v12787_v31  ;;  %8573 = vmatprep.mubr.msk.f32.mxu1 %vm23_vm0, %v8034_v15 }
 0xc4c   :  { %v7100_v32 = vpop.permute.xlu1 %7099 }
 0xc4d   :  { %7980 = vst.msk [vmem:[#allocation3 + $0x1f8] sm:$0xff] %vm23_vm0, %v7944_v8 }
 0xc4e   :  { %7182 = vst.msk [vmem:[#allocation3 + $0x190] sm:$0xff] %vm2961_vm6, %v7100_v32  ;;  %v7576_v2 = vpop.permute.xlu0 %7575  ;;  %v8038_v14 = vld [vmem:[#allocation3 + $0x1a8] sm:$0xff] }
 0xc4f   :  { %7650 = vst.msk [vmem:[#allocation3 + $0x190] sm:$0xff] %vm3430_vm7, %v7568_v34 }
 0xc50   :  { %v7876_v22 = vpop.permute.xlu1 %7875  ;;  %v8033_v27 = vld [vmem:[#allocation3 + $0x180] sm:$0xff] }
 0xc51   :  { %v7941_v9 = vmul.f32 %v7876_v22, %v12742_v49  ;;  %8375 = vmatmul.mubr.f32.gmra.mrb[48].mxu1 %v8033_v27 }
 0xc52   :  { %v7110_v63 = vpop.permute.xlu0 %7109  ;;  %8574 = vmatprep.mubr.msk.f32.mxu1 %vm23_vm0, %v8036_v44 }
 0xc53   :  { %7977 = vst.msk [vmem:[#allocation3 + $0x1c8] sm:$0xff] %vm23_vm0, %v7941_v9 }
 0xc54   :  { %7187 = vst.msk [vmem:[#allocation3 + $0x1e0] sm:$0xff] %vm2961_vm6, %v7110_v63  ;;  %v7570_v31 = vpop.permute.xlu1 %7569  ;;  %v8048_v1 = vld [vmem:[#allocation3 + $0x1f8] sm:$0xff] }
 0xc55   :  { %7651 = vst.msk [vmem:[#allocation3 + $0x1a0] sm:$0xff] %vm3430_vm7, %v7570_v31 }
 0xc56   :  { %v8035_v6 = vld [vmem:[#allocation3 + $0x190] sm:$0xff] }
 0xc57   :  { %8380 = vmatmul.mubr.f32.gmra.mrb[50].mxu1 %v8035_v6 }
 0xc58   :  { %8575 = vmatprep.mubr.msk.f32.mxu1 %vm23_vm0, %v8038_v14  ;;  %v7104_v42 = vpop.permute.xlu1 %7103 }
 0xc59   :  { %7184 = vst.msk [vmem:[#allocation3 + $0x1b0] sm:$0xff] %vm2961_vm6, %v7104_v42 }
 0xc5a   :  { %7652 = vst.msk [vmem:[#allocation3 + $0x1b0] sm:$0xff] %vm3430_vm7, %v7572_v38  ;;  %v8042_v59 = vld [vmem:[#allocation3 + $0x1c8] sm:$0xff] }
 0xc5b   :  { %v7695_v38 = vld [vmem:[#allocation2 + $0x18c] sm:$0xff] }
 0xc5c   :  { %v7886_v49 = vpop.permute.xlu1 %7885  ;;  %v8037_v41 = vld [vmem:[#allocation3 + $0x1a0] sm:$0xff] }
 0xc5d   :  { %v7943_v25 = vmul.f32 %v7886_v49, %v12780_v33  ;;  %8385 = vmatmul.mubr.f32.gmra.mrb[52].mxu1 %v8037_v41 }
 0xc5e   :  { %8576 = vmatprep.mubr.msk.f32.mxu1 %vm23_vm0, %v8040_v62 }
 0xc5f   :  { %7979 = vst.msk [vmem:[#allocation3 + $0x1e8] sm:$0xff] %vm23_vm0, %v7943_v25 }
 0xc60   :  { %v7574_v43 = vpop.permute.xlu1 %7573 }
 0xc61   :  { %7653 = vst.msk [vmem:[#allocation3 + $0x1c0] sm:$0xff] %vm3430_vm7, %v7574_v43  ;;  %v8281_v5 = vpop.f32.mrb[10].mxu1  ;;  %v8039_v7 = vld [vmem:[#allocation3 + $0x1b0] sm:$0xff] }
 0xc62   :  { %v8282_v51 = vadd.f32 %v12718_v4, %v8281_v5  ;;  %v8283_v35 = vpop.f32.mrb[11].mxu1  ;;  %8390 = vmatmul.mubr.f32.gmra.mrb[54].mxu1 %v8039_v7 }
 0xc63   :  { %v7901_v58 = vpop.permute.xlu0 %7900  ;;  %8577 = vmatprep.mubr.msk.f32.mxu1 %vm23_vm0, %v8042_v59 }
 0xc64   :  { %v8440_v33 = vmax.f32 %v8282_v51, 0.0  ;;  %v7946_v13 = vmul.f32 %v7901_v58, %v7694_v17  ;;  %v7108_v37 = vpop.permute.xlu1 %7107 }
 0xc65   :  { %7186 = vst.msk [vmem:[#allocation3 + $0x1d0] sm:$0xff] %vm2961_vm6, %v7108_v37  ;;  %v8286_v39 = vpop.f32.mrb[12].mxu1 }
 0xc66   :  { %8476 = vst.msk [vmem:[%s13061_s6 + $0x28] sm:$0xff] %vm23_vm0, %v8440_v33  ;;  %7982 = vst.msk [vmem:[#allocation3 + $0x218] sm:$0xff] %vm23_vm0, %v7946_v13  ;;  %v8287_v21 = vadd.f32 %v12718_v4, %v8286_v39  ;;  %v8288_v40 = vpop.f32.mrb[13].mxu1  ;;  %v8046_v12 = vld [vmem:[#allocation3 + $0x1e8] sm:$0xff] }
 0xc67   :  { %7654 = vst.msk [vmem:[#allocation3 + $0x1d0] sm:$0xff] %vm3430_vm7, %v7576_v2 }
 0xc68   :  { %v7580_v54 = vpop.permute.xlu0 %7579  ;;  %v8441_v53 = vmax.f32 %v8287_v21, 0.0  ;;  %v7896_v20 = vpop.permute.xlu1 %7895  ;;  %v8041_v34 = vld [vmem:[#allocation3 + $0x1c0] sm:$0xff] }
 0xc69   :  { %v7945_v24 = vmul.f32 %v7896_v20, %v12822_v18  ;;  %v8291_v11 = vpop.f32.mrb[14].mxu1  ;;  %8395 = vmatmul.mubr.f32.gmra.mrb[56].mxu1 %v8041_v34 }
 0xc6a   :  { %8477 = vst.msk [vmem:[%s13061_s6 + $0x30] sm:$0xff] %vm23_vm0, %v8441_v53  ;;  %v8292_v57 = vadd.f32 %v12718_v4, %v8291_v11  ;;  %v8293_v30 = vpop.f32.mrb[15].mxu1  ;;  %8578 = vmatprep.mubr.msk.f32.mxu1 %vm23_vm0, %v8044_v28 }
 0xc6b   :  { %7981 = vst.msk [vmem:[#allocation3 + $0x208] sm:$0xff] %vm23_vm0, %v7945_v24 }
 0xc6c   :  { %v7114_v29 = vpop.permute.xlu0 %7113  ;;  %v8442_v46 = vmax.f32 %v8292_v57, 0.0  ;;  %v7578_v18 = vpop.permute.xlu1 %7577 }
 0xc6d   :  { %7189 = vst.msk [vmem:[#allocation3 + $0x200] sm:$0xff] %vm2961_vm6, %v7114_v29  ;;  %v8052_v56 = vld [vmem:[#allocation3 + $0x218] sm:$0xff] }
 0xc6e   :  { %7655 = vst.msk [vmem:[#allocation3 + $0x1e0] sm:$0xff] %vm3430_vm7, %v7578_v18  ;;  %v8043_v3 = vld [vmem:[#allocation3 + $0x1d0] sm:$0xff] }
 0xc6f   :  { %8478 = vst.msk [vmem:[%s13061_s6 + $0x38] sm:$0xff] %vm23_vm0, %v8442_v46  ;;  %8400 = vmatmul.mubr.f32.gmra.mrb[58].mxu1 %v8043_v3 }
 0xc70   :  { %8579 = vmatprep.mubr.msk.f32.mxu1 %vm23_vm0, %v8046_v12  ;;  %v7112_v23 = vpop.permute.xlu1 %7111 }
 0xc71   :  { %7188 = vst.msk [vmem:[#allocation3 + $0x1f0] sm:$0xff] %vm2961_vm6, %v7112_v23 }
 0xc72   :  { %7656 = vst.msk [vmem:[#allocation3 + $0x1f0] sm:$0xff] %vm3430_vm7, %v7580_v54  ;;  %v8050_v45 = vld [vmem:[#allocation3 + $0x208] sm:$0xff] }
 0xc74   :  { %v7906_v26 = vpop.permute.xlu1 %7905 }
 0xc75   :  { %v8045_v52 = vld [vmem:[#allocation3 + $0x1e0] sm:$0xff]  ;;  %v7947_v60 = vmul.f32 %v7906_v26, %v7695_v38 }
 0xc76   :  { %8405 = vmatmul.mubr.f32.gmra.mrb[60].mxu1 %v8045_v52 }
 0xc77   :  { %8580 = vmatprep.mubr.msk.f32.mxu1 %vm23_vm0, %v8048_v1  ;;  %7983 = vst.msk [vmem:[#allocation3 + $0x228] sm:$0xff] %vm23_vm0, %v7947_v60 }
 0xc78   :  { %v7582_v36 = vpop.permute.xlu1 %7581 }
 0xc79   :  { %7657 = vst.msk [vmem:[#allocation3 + $0x200] sm:$0xff] %vm3430_vm7, %v7582_v36  ;;  %v8047_v10 = vld [vmem:[#allocation3 + $0x1f0] sm:$0xff] }
 0xc7a   :  { %8410 = vmatmul.mubr.f32.gmra.mrb[62].mxu1 %v8047_v10 }
 0xc7b   :  { %8581 = vmatprep.mubr.msk.f32.mxu1 %vm23_vm0, %v8050_v45 }
 0xc7c   :  { %v7116_v19 = vpop.permute.xlu1 %7115 }
 0xc7d   :  { %v7911_v16 = vpop.permute.xlu0 %7910  ;;  %7190 = vst.msk [vmem:[#allocation3 + $0x210] sm:$0xff] %vm2961_vm6, %v7116_v19 }
 0xc7e   :  { %v7948_v47 = vmul.f32 %v7911_v16, %v7696_v48  ;;  %v8054_v15 = vld [vmem:[#allocation3 + $0x228] sm:$0xff] }
 0xc80   :  { %7984 = vst.msk [vmem:[#allocation3 + $0x238] sm:$0xff] %vm23_vm0, %v7948_v47  ;;  %v7118_v50 = vpop.permute.xlu1 %7117  ;;  %v8049_v55 = vld [vmem:[#allocation3 + $0x200] sm:$0xff] }
 0xc81   :  { %v7584_v0 = vpop.permute.xlu0 %7583  ;;  %7191 = vst.msk [vmem:[#allocation3 + $0x220] sm:$0xff] %vm2961_vm6, %v7118_v50  ;;  %8415 = vmatmul.mubr.f32.gmra.mrb[64].mxu1 %v8049_v55 }
 0xc82   :  { %7658 = vst.msk [vmem:[#allocation3 + $0x210] sm:$0xff] %vm3430_vm7, %v7584_v0  ;;  %8582 = vmatprep.mubr.msk.f32.mxu1 %vm23_vm0, %v8052_v56 }
 0xc87   :  { %v8056_v22 = vld [vmem:[#allocation3 + $0x238] sm:$0xff] }
 0xc89   :  { %v8051_v61 = vld [vmem:[#allocation3 + $0x210] sm:$0xff] }
 0xc8a   :  { %8420 = vmatmul.mubr.f32.gmra.mrb[66].mxu1 %v8051_v61 }
 0xc8b   :  { %8583 = vmatprep.mubr.msk.f32.mxu1 %vm23_vm0, %v8054_v15 }
 0xc8c   :  { %v7586_v8 = vpop.permute.xlu0 %7585 }
 0xc8d   :  { %7659 = vst.msk [vmem:[#allocation3 + $0x220] sm:$0xff] %vm3430_vm7, %v7586_v8 }
 0xc94   :  { %v7120_v32 = vpop.permute.xlu1 %7119  ;;  %v8053_v2 = vld [vmem:[#allocation3 + $0x220] sm:$0xff] }
 0xc95   :  { %7192 = vst.msk [vmem:[#allocation3 + $0x230] sm:$0xff] %vm2961_vm6, %v7120_v32  ;;  %8425 = vmatmul.mubr.f32.gmra.mrb[68].mxu1 %v8053_v2 }
 0xc96   :  { %8584 = vmatprep.mubr.msk.f32.mxu1 %vm23_vm0, %v8056_v22 }
 0xc99   :  { %v7588_v27 = vpop.permute.xlu0 %7587 }
 0xc9a   :  { %7660 = vst.msk [vmem:[#allocation3 + $0x230] sm:$0xff] %vm3430_vm7, %v7588_v27 }
 0xca1   :  { %v8055_v9 = vld [vmem:[#allocation3 + $0x230] sm:$0xff] }
 0xca2   :  { %8430 = vmatmul.mubr.f32.gmra.mrb[70].mxu1 %v8055_v9 }
 0xca6   :  { %v8296_v44 = vpop.f32.mrb[16].mxu1 }
 0xca7   :  { %v8297_v63 = vadd.f32 %v12718_v4, %v8296_v44  ;;  %v8298_v31 = vpop.f32.mrb[17].mxu1 }
 0xca9   :  { %v8443_v6 = vmax.f32 %v8297_v63, 0.0 }
 0xcaa   :  { %v8301_v14 = vpop.f32.mrb[18].mxu1 }
 0xcab   :  { %8479 = vst.msk [vmem:[%s13061_s6 + $0x40] sm:$0xff] %vm23_vm0, %v8443_v6  ;;  %v8302_v42 = vadd.f32 %v12718_v4, %v8301_v14  ;;  %v8303_v49 = vpop.f32.mrb[19].mxu1 }
 0xcad   :  { %v8444_v41 = vmax.f32 %v8302_v42, 0.0 }
 0xcae   :  { %v8306_v25 = vpop.f32.mrb[20].mxu1 }
 0xcaf   :  { %8480 = vst.msk [vmem:[%s13061_s6 + $0x48] sm:$0xff] %vm23_vm0, %v8444_v41  ;;  %v8307_v62 = vadd.f32 %v12718_v4, %v8306_v25  ;;  %v8308_v43 = vpop.f32.mrb[21].mxu1 }
 0xcb1   :  { %v8445_v5 = vmax.f32 %v8307_v62, 0.0 }
 0xcb2   :  { %v8311_v7 = vpop.f32.mrb[22].mxu1 }
 0xcb3   :  { %8481 = vst.msk [vmem:[%s13061_s6 + $0x50] sm:$0xff] %vm23_vm0, %v8445_v5  ;;  %v8312_v17 = vadd.f32 %v12718_v4, %v8311_v7  ;;  %v8313_v51 = vpop.f32.mrb[23].mxu1 }
 0xcb5   :  { %v8446_v35 = vmax.f32 %v8312_v17, 0.0 }
 0xcb6   :  { %v8316_v59 = vpop.f32.mrb[24].mxu1 }
 0xcb7   :  { %8482 = vst.msk [vmem:[%s13061_s6 + $0x58] sm:$0xff] %vm23_vm0, %v8446_v35  ;;  %v8317_v58 = vadd.f32 %v12718_v4, %v8316_v59  ;;  %v8318_v33 = vpop.f32.mrb[25].mxu1 }
 0xcb9   :  { %v8447_v13 = vmax.f32 %v8317_v58, 0.0 }
 0xcbb   :  { %8483 = vst.msk [vmem:[%s13061_s6 + $0x60] sm:$0xff] %vm23_vm0, %v8447_v13 }
 0xcbe   :  { %v8321_v37 = vpop.f32.mrb[26].mxu1 }
 0xcbf   :  { %v8322_v39 = vadd.f32 %v12718_v4, %v8321_v37  ;;  %v8323_v21 = vpop.f32.mrb[27].mxu1 }
 0xcc1   :  { %v8448_v40 = vmax.f32 %v8322_v39, 0.0 }
 0xcc3   :  { %8484 = vst.msk [vmem:[%s13061_s6 + $0x68] sm:$0xff] %vm23_vm0, %v8448_v40 }
 0xcc7   :  { %v8326_v54 = vpop.f32.mrb[28].mxu1 }
 0xcc8   :  { %v8327_v53 = vadd.f32 %v12718_v4, %v8326_v54  ;;  %v8328_v20 = vpop.f32.mrb[29].mxu1 }
 0xcca   :  { %v8449_v34 = vmax.f32 %v8327_v53, 0.0 }
 0xccc   :  { %8485 = vst.msk [vmem:[%s13061_s6 + $0x70] sm:$0xff] %vm23_vm0, %v8449_v34 }
 0xcd6   :  { %v8331_v24 = vpop.f32.mrb[30].mxu1 }
 0xcd7   :  { %v8332_v11 = vadd.f32 %v12718_v4, %v8331_v24  ;;  %v8333_v28 = vpop.f32.mrb[31].mxu1 }
 0xcd9   :  { %v8450_v57 = vmax.f32 %v8332_v11, 0.0 }
 0xcdb   :  { %8486 = vst.msk [vmem:[%s13061_s6 + $0x78] sm:$0xff] %vm23_vm0, %v8450_v57 }
 0xcdf   :  { %v8336_v30 = vpop.f32.mrb[32].mxu1 }
 0xce0   :  { %v8337_v29 = vadd.f32 %v12718_v4, %v8336_v30  ;;  %v8338_v46 = vpop.f32.mrb[33].mxu1 }
 0xce2   :  { %v8451_v18 = vmax.f32 %v8337_v29, 0.0 }
 0xce4   :  { %8487 = vst.msk [vmem:[%s13061_s6 + $0x80] sm:$0xff] %vm23_vm0, %v8451_v18 }
 0xcf0   :  { %v8341_v3 = vpop.f32.mrb[34].mxu1 }
 0xcf1   :  { %v8342_v12 = vadd.f32 %v12718_v4, %v8341_v3  ;;  %v8343_v23 = vpop.f32.mrb[35].mxu1 }
 0xcf3   :  { %v8452_v38 = vmax.f32 %v8342_v12, 0.0 }
 0xcf5   :  { %8488 = vst.msk [vmem:[%s13061_s6 + $0x88] sm:$0xff] %vm23_vm0, %v8452_v38 }
 0xcf8   :  { %v8346_v26 = vpop.f32.mrb[36].mxu1 }
 0xcf9   :  { %v8347_v52 = vadd.f32 %v12718_v4, %v8346_v26  ;;  %v8348_v60 = vpop.f32.mrb[37].mxu1 }
 0xcfb   :  { %v8453_v1 = vmax.f32 %v8347_v52, 0.0 }
 0xcfd   :  { %8489 = vst.msk [vmem:[%s13061_s6 + $0x90] sm:$0xff] %vm23_vm0, %v8453_v1 }
 0xd05   :  { %v8351_v36 = vpop.f32.mrb[38].mxu1 }
 0xd06   :  { %v8352_v10 = vadd.f32 %v12718_v4, %v8351_v36  ;;  %v8353_v45 = vpop.f32.mrb[39].mxu1 }
 0xd08   :  { %v8454_v48 = vmax.f32 %v8352_v10, 0.0 }
 0xd0a   :  { %8490 = vst.msk [vmem:[%s13061_s6 + $0x98] sm:$0xff] %vm23_vm0, %v8454_v48 }
 0xd0c   :  { %v8356_v16 = vpop.f32.mrb[40].mxu1 }
 0xd0d   :  { %v8357_v19 = vadd.f32 %v12718_v4, %v8356_v16  ;;  %v8358_v47 = vpop.f32.mrb[41].mxu1 }
 0xd0f   :  { %v8455_v0 = vmax.f32 %v8357_v19, 0.0 }
 0xd11   :  { %8491 = vst.msk [vmem:[%s13061_s6 + $0xa0] sm:$0xff] %vm23_vm0, %v8455_v0  ;;  %v8361_v50 = vpop.f32.mrb[42].mxu1 }
 0xd12   :  { %v8362_v55 = vadd.f32 %v12718_v4, %v8361_v50  ;;  %v8363_v56 = vpop.f32.mrb[43].mxu1 }
 0xd14   :  { %v8456_v61 = vmax.f32 %v8362_v55, 0.0 }
 0xd16   :  { %8492 = vst.msk [vmem:[%s13061_s6 + $0xa8] sm:$0xff] %vm23_vm0, %v8456_v61 }
 0xd18   :  { %v8366_v15 = vpop.f32.mrb[44].mxu1 }
 0xd19   :  { %v8367_v8 = vadd.f32 %v12718_v4, %v8366_v15  ;;  %v8368_v32 = vpop.f32.mrb[45].mxu1 }
 0xd1b   :  { %v8457_v2 = vmax.f32 %v8367_v8, 0.0 }
 0xd1d   :  { %8493 = vst.msk [vmem:[%s13061_s6 + $0xb0] sm:$0xff] %vm23_vm0, %v8457_v2  ;;  %v8371_v22 = vpop.f32.mrb[46].mxu1 }
 0xd1e   :  { %v8372_v27 = vadd.f32 %v12718_v4, %v8371_v22  ;;  %v8373_v9 = vpop.f32.mrb[47].mxu1 }
 0xd20   :  { %v8458_v44 = vmax.f32 %v8372_v27, 0.0 }
 0xd22   :  { %8494 = vst.msk [vmem:[%s13061_s6 + $0xb8] sm:$0xff] %vm23_vm0, %v8458_v44 }
 0xd24   :  { %v8376_v63 = vpop.f32.mrb[48].mxu1 }
 0xd25   :  { %v8377_v31 = vadd.f32 %v12718_v4, %v8376_v63  ;;  %v8378_v6 = vpop.f32.mrb[49].mxu1 }
 0xd27   :  { %v8459_v14 = vmax.f32 %v8377_v31, 0.0 }
 0xd29   :  { %8495 = vst.msk [vmem:[%s13061_s6 + $0xc0] sm:$0xff] %vm23_vm0, %v8459_v14 }
 0xd2a   :  { %v8381_v42 = vpop.f32.mrb[50].mxu1 }
 0xd2b   :  { %v8382_v49 = vadd.f32 %v12718_v4, %v8381_v42  ;;  %v8383_v41 = vpop.f32.mrb[51].mxu1 }
 0xd2d   :  { %v8460_v25 = vmax.f32 %v8382_v49, 0.0 }
 0xd2f   :  { %8496 = vst.msk [vmem:[%s13061_s6 + $0xc8] sm:$0xff] %vm23_vm0, %v8460_v25 }
 0xd30   :  { %v8386_v62 = vpop.f32.mrb[52].mxu1 }
 0xd31   :  { %v8387_v43 = vadd.f32 %v12718_v4, %v8386_v62  ;;  %v8388_v5 = vpop.f32.mrb[53].mxu1 }
 0xd33   :  { %v8461_v7 = vmax.f32 %v8387_v43, 0.0 }
 0xd35   :  { %8497 = vst.msk [vmem:[%s13061_s6 + $0xd0] sm:$0xff] %vm23_vm0, %v8461_v7  ;;  %v8391_v17 = vpop.f32.mrb[54].mxu1 }
 0xd36   :  { %v8392_v51 = vadd.f32 %v12718_v4, %v8391_v17  ;;  %v8393_v35 = vpop.f32.mrb[55].mxu1 }
 0xd38   :  { %v8462_v59 = vmax.f32 %v8392_v51, 0.0 }
 0xd3a   :  { %8498 = vst.msk [vmem:[%s13061_s6 + $0xd8] sm:$0xff] %vm23_vm0, %v8462_v59 }
 0xd3c   :  { %v8396_v58 = vpop.f32.mrb[56].mxu1 }
 0xd3d   :  { %v8397_v33 = vadd.f32 %v12718_v4, %v8396_v58  ;;  %v8398_v13 = vpop.f32.mrb[57].mxu1 }
 0xd3f   :  { %v8463_v37 = vmax.f32 %v8397_v33, 0.0 }
 0xd41   :  { %8499 = vst.msk [vmem:[%s13061_s6 + $0xe0] sm:$0xff] %vm23_vm0, %v8463_v37 }
 0xd42   :  { %v8401_v39 = vpop.f32.mrb[58].mxu1 }
 0xd43   :  { %v8402_v21 = vadd.f32 %v12718_v4, %v8401_v39  ;;  %v8403_v40 = vpop.f32.mrb[59].mxu1 }
 0xd45   :  { %v8464_v54 = vmax.f32 %v8402_v21, 0.0 }
 0xd47   :  { %8500 = vst.msk [vmem:[%s13061_s6 + $0xe8] sm:$0xff] %vm23_vm0, %v8464_v54 }
 0xd49   :  { %v8406_v53 = vpop.f32.mrb[60].mxu1 }
 0xd4a   :  { %v8407_v20 = vadd.f32 %v12718_v4, %v8406_v53  ;;  %v8408_v34 = vpop.f32.mrb[61].mxu1 }
 0xd4c   :  { %v8465_v24 = vmax.f32 %v8407_v20, 0.0 }
 0xd4d   :  { %v8411_v11 = vpop.f32.mrb[62].mxu1 }
 0xd4e   :  { %8501 = vst.msk [vmem:[%s13061_s6 + $0xf0] sm:$0xff] %vm23_vm0, %v8465_v24  ;;  %v8412_v28 = vadd.f32 %v12718_v4, %v8411_v11  ;;  %v8413_v57 = vpop.f32.mrb[63].mxu1 }
 0xd50   :  { %v8466_v30 = vmax.f32 %v8412_v28, 0.0 }
 0xd52   :  { %8502 = vst.msk [vmem:[%s13061_s6 + $0xf8] sm:$0xff] %vm23_vm0, %v8466_v30 }
 0xd54   :  { %v8416_v29 = vpop.f32.mrb[64].mxu1 }
 0xd55   :  { %v8417_v46 = vadd.f32 %v12718_v4, %v8416_v29  ;;  %v8418_v18 = vpop.f32.mrb[65].mxu1 }
 0xd57   :  { %v8467_v3 = vmax.f32 %v8417_v46, 0.0 }
 0xd59   :  { %8503 = vst.msk [vmem:[%s13061_s6 + $0x100] sm:$0xff] %vm23_vm0, %v8467_v3 }
 0xd5d   :  { %v8421_v12 = vpop.f32.mrb[66].mxu1 }
 0xd5e   :  { %v8422_v23 = vadd.f32 %v12718_v4, %v8421_v12  ;;  %v8423_v38 = vpop.f32.mrb[67].mxu1 }
 0xd60   :  { %v8468_v26 = vmax.f32 %v8422_v23, 0.0 }
 0xd62   :  { %8504 = vst.msk [vmem:[%s13061_s6 + $0x108] sm:$0xff] %vm23_vm0, %v8468_v26 }
 0xd68   :  { %v8426_v52 = vpop.f32.mrb[68].mxu1 }
 0xd69   :  { %v8427_v60 = vadd.f32 %v12718_v4, %v8426_v52  ;;  %v8428_v1 = vpop.f32.mrb[69].mxu1 }
 0xd6b   :  { %v8469_v36 = vmax.f32 %v8427_v60, 0.0 }
 0xd6d   :  { %8505 = vst.msk [vmem:[%s13061_s6 + $0x110] sm:$0xff] %vm23_vm0, %v8469_v36 }
 0xd75   :  { %v8431_v10 = vpop.f32.mrb[70].mxu1 }
 0xd76   :  { %v8432_v45 = vadd.f32 %v12718_v4, %v8431_v10  ;;  %v8433_v48 = vpop.f32.mrb[71].mxu1 }
 0xd78   :  { %v8470_v16 = vmax.f32 %v8432_v45, 0.0 }
 0xd7a   :  { %8506 = vst.msk [vmem:[%s13061_s6 + $0x118] sm:$0xff] %vm23_vm0, %v8470_v16 }

</bundles_post_ra>
